<compile_context>
chip_gen: v7x
topology: tpu7x:2x2x1
jax: 0.10.0
libtpu: 0.0.40
codegen_flags: <defaults>
</compile_context>

<pallas_src>
import jax
import jax.numpy as jnp
from jax import lax
from jax.experimental import pallas as pl
from jax.experimental.pallas import tpu as pltpu

HIDDEN = 128   # forced by the hardcoded 128-slices in the PyTorch forward()
SUBLANE = 8    # f32 sublane count; batch is padded to a multiple of this


# ----------------------------- Pallas kernel -------------------------------

def _run_bilstm_layer(in_2d, wih_ref, whh_ref, b_ref, xg_ref, act_ref,
                      T, B, H, write_seq):
    """One fused bidirectional LSTM layer.

    in_2d:   (T*B, Din)  layer input, time-major rows (value, already loaded)
    wih_ref: (Din, 8H)   input->gates weights, cols = [fwd i,f,o,g | bwd i,f,o,g]
    whh_ref: (2, H, 4H)  hidden->gates weights per direction (gate order i,f,o,g)
    b_ref:   (1, 8H)     fused bias (b_ih + b_hh) per direction
    xg_ref:  (T, B, 8H)  VMEM scratch for the hoisted input projection
    act_ref: (T, B, 2H)  VMEM scratch for per-step hidden states (if write_seq)
    Returns (h_fwd_final, h_bwd_final), each (B, H), carried in registers.
    """
    G4 = 4 * H

    # Prologue: hoist BOTH directions' input projections out of the recurrence
    # as a single (T*B, Din) @ (Din, 8H) MXU matmul.
    proj = jnp.dot(in_2d, wih_ref[...], preferred_element_type=jnp.float32)
    xg_ref[...] = proj.reshape(T, B, 2 * G4) + b_ref[...]

    whh_f = whh_ref[0]                      # hoisted: loaded once
    whh_b = whh_ref[1]
    h_f = jnp.zeros((B, H), jnp.float32)    # recurrent state stays in vregs
    c_f = jnp.zeros((B, H), jnp.float32)
    h_b = jnp.zeros((B, H), jnp.float32)
    c_b = jnp.zeros((B, H), jnp.float32)

    # Serial recurrence, fully unrolled (T static & small).  The fwd and bwd
    # directions are interleaved inside each step so their MXU / EUP work
    # overlaps; all time indices are static immediates.
    for t in range(T):
        tb = T - 1 - t
        g_f = xg_ref[t, :, :G4] + jnp.dot(h_f, whh_f,
                                          preferred_element_type=jnp.float32)
        g_b = xg_ref[tb, :, G4:] + jnp.dot(h_b, whh_b,
                                           preferred_element_type=jnp.float32)
        # gate order (i, f, o, g): one sigmoid over 3H, one tanh over H per dir
        s_f = jax.nn.sigmoid(g_f[:, :3 * H])
        s_b = jax.nn.sigmoid(g_b[:, :3 * H])
        t_f = jnp.tanh(g_f[:, 3 * H:])
        t_b = jnp.tanh(g_b[:, 3 * H:])
        c_f = s_f[:, H:2 * H] * c_f + s_f[:, :H] * t_f
        c_b = s_b[:, H:2 * H] * c_b + s_b[:, :H] * t_b
        h_f = s_f[:, 2 * H:] * jnp.tanh(c_f)
        h_b = s_b[:, 2 * H:] * jnp.tanh(c_b)
        if write_seq:
            act_ref[t, :, :H] = h_f
            act_ref[tb, :, H:] = h_b
    return h_f, h_b


def _make_birnn_kernel(num_layers):
    def kernel(*refs):
        # refs = x, (wih, whh, bias) * num_layers, wfc, bfc, out, act, xg
        x_ref = refs[0]
        layer_refs = refs[1:1 + 3 * num_layers]
        wfc_ref, bfc_ref, out_ref = refs[1 + 3 * num_layers:4 + 3 * num_layers]
        act_ref, xg_ref = refs[4 + 3 * num_layers:]

        T, B, din0 = x_ref.shape
        H = layer_refs[1].shape[1]          # whh0: (2, H, 4H)

        layer_in = x_ref[...].reshape(T * B, din0)
        h_f = h_b = None
        for l in range(num_layers):
            wih_ref, whh_ref, b_ref = layer_refs[3 * l:3 * l + 3]
            last = (l == num_layers - 1)
            h_f, h_b = _run_bilstm_layer(layer_in, wih_ref, whh_ref, b_ref,
                                         xg_ref, act_ref, T, B, H,
                                         write_seq=not last)
            if not last:
                layer_in = act_ref[...].reshape(T * B, 2 * H)

        # Fused FC head.  h_f final == lstm_out[:, -1, :H],
        # h_b final == lstm_out[:, 0, H:], so the feature slice/concat of the
        # reference is exactly [h_f | h_b]; sum the two FC partials in-kernel.
        out_ref[...] = (
            jnp.dot(h_f, wfc_ref[0], preferred_element_type=jnp.float32)
            + jnp.dot(h_b, wfc_ref[1], preferred_element_type=jnp.float32)
            + bfc_ref[...])
    return kernel


# ------------------------------ host wrapper --------------------------------

def _round_up(n, m):
    return ((n + m - 1) // m) * m


@jax.jit
def birnn_forward(x, params):
    """x: (B, T, input_size) batch-first -> (B, num_classes)."""
    B, T, _ = x.shape
    x_tbd = jnp.transpose(x, (1, 0, 2))            # time-major (T, B, Din)
    B_pad = _round_up(B, SUBLANE)                  # fill f32 sublanes/MXU rows
    if B_pad != B:
        x_tbd = jnp.pad(x_tbd, ((0, 0), (0, B_pad - B), (0, 0)))

    layers = params["layers"]
    num_layers = len(layers)
    H = layers[0]["whh"].shape[1]
    C = params["fc"]["w"].shape[2]

    args = [x_tbd]
    for layer in layers:
        args += [layer["wih"], layer["whh"], layer["bias"]]
    args += [params["fc"]["w"], params["fc"]["b"]]

    # Single fused call: no grid, everything (inputs + inter-layer activations)
    # VMEM-resident.  For large T*B add a batch-tiling grid axis and/or raise
    # vmem_limit_bytes; not needed at these sizes.
    out = pl.pallas_call(
        _make_birnn_kernel(num_layers),
        out_shape=jax.ShapeDtypeStruct((B_pad, C), jnp.float32),
        scratch_shapes=[
            pltpu.VMEM((T, B_pad, 2 * H), jnp.float32),   # inter-layer h-seq
            pltpu.VMEM((T, B_pad, 8 * H), jnp.float32),   # hoisted input proj
        ],
    )(*args)
    return out[:B]


# ------------------------------- parameters --------------------------------

def init_params(key, input_size, hidden_size, num_layers, num_classes):
    H = hidden_size
    bound = 1.0 / float(H) ** 0.5

    def permute_gates(w):
        # PyTorch gate order is (i, f, g, o) along the first axis; permute to
        # (i, f, o, g) so the three sigmoid gates form one contiguous slice.
        return jnp.concatenate([w[:2 * H], w[3 * H:], w[2 * H:3 * H]], axis=0)

    layers = []
    for l in range(num_layers):
        din = input_size if l == 0 else 2 * H
        wih_dirs, whh_dirs, b_dirs = [], [], []
        for _ in range(2):   # fwd, bwd
            key, k1, k2, k3, k4 = jax.random.split(key, 5)
            w_ih = jax.random.uniform(k1, (4 * H, din), jnp.float32, -bound, bound)
            w_hh = jax.random.uniform(k2, (4 * H, H), jnp.float32, -bound, bound)
            b_ih = jax.random.uniform(k3, (4 * H,), jnp.float32, -bound, bound)
            b_hh = jax.random.uniform(k4, (4 * H,), jnp.float32, -bound, bound)
            wih_dirs.append(permute_gates(w_ih).T)        # (din, 4H)
            whh_dirs.append(permute_gates(w_hh).T)        # (H, 4H)
            b_dirs.append(permute_gates(b_ih + b_hh))     # (4H,)
        layers.append({
            "wih": jnp.concatenate(wih_dirs, axis=1),     # (din, 8H)
            "whh": jnp.stack(whh_dirs),                   # (2, H, 4H)
            "bias": jnp.concatenate(b_dirs)[None, :],     # (1, 8H)
        })
    key, k1, k2 = jax.random.split(key, 3)
    fbound = 1.0 / float(2 * H) ** 0.5
    w_fc = jax.random.uniform(k1, (num_classes, 2 * H), jnp.float32, -fbound, fbound)
    b_fc = jax.random.uniform(k2, (num_classes,), jnp.float32, -fbound, fbound)
    return {"layers": layers,
            "fc": {"w": w_fc.T.reshape(2, H, num_classes),   # (2, H, C)
                   "b": b_fc[None, :]}}                      # (1, C)


# ---------------------------- pure-JAX reference ----------------------------

def _lstm_dir_ref(x_tbd, wih, whh, bias):
    # wih: (Din, 4H), whh: (H, 4H), bias: (4H,) -- gate order (i, f, o, g)
    _, B, _ = x_tbd.shape
    H = whh.shape[0]

    def step(carry, x_t):
        h, c = carry
        gates = x_t @ wih + h @ whh + bias
        i = jax.nn.sigmoid(gates[:, :H])
        f = jax.nn.sigmoid(gates[:, H:2 * H])
        o = jax.nn.sigmoid(gates[:, 2 * H:3 * H])
        g = jnp.tanh(gates[:, 3 * H:])
        c = f * c + i * g
        h = o * jnp.tanh(c)
        return (h, c), h

    (_, _), hs = lax.scan(step, (jnp.zeros((B, H), jnp.float32),
                                 jnp.zeros((B, H), jnp.float32)), x_tbd)
    return hs


def birnn_forward_ref(x, params, hidden_size):
    H = hidden_size
    layer_in = jnp.transpose(x, (1, 0, 2))
    for layer in params["layers"]:
        wih, whh, b = layer["wih"], layer["whh"], layer["bias"][0]
        hf = _lstm_dir_ref(layer_in, wih[:, :4 * H], whh[0], b[:4 * H])
        hb = _lstm_dir_ref(layer_in[::-1], wih[:, 4 * H:], whh[1], b[4 * H:])[::-1]
        layer_in = jnp.concatenate([hf, hb], axis=-1)
    feat = jnp.concatenate([layer_in[-1, :, :H], layer_in[0, :, H:]], axis=1)
    w_fc = params["fc"]["w"].reshape(2 * H, -1)
    return feat @ w_fc + params["fc"]["b"]


# ----------------------------------- main -----------------------------------

if __name__ == "__main__":
    B, T, input_size = 2, 8, 32
    hidden_size, num_layers, num_classes = HIDDEN, 2, 10

    key = jax.random.PRNGKey(0)
    kx, kp = jax.random.split(key)
    x = jax.random.normal(kx, (B, T, input_size), jnp.float32)
    params = init_params(kp, input_size, hidden_size, num_layers, num_classes)

    out = jax.block_until_ready(birnn_forward(x, params))

    ref = birnn_forward_ref(x, params, hidden_size)
    assert out.shape == (B, num_classes)
    assert jnp.allclose(out, ref, atol=1e-4, rtol=1e-4)

    print("KERNEL_OK")
</pallas_src>

<mosaic_0001>
module attributes {stable_mosaic.version = 11 : i64} {
  func.func @kernel(%arg0: memref<8x8x32xf32, #tpu.memory_space<vmem>>, %arg1: memref<32x1024xf32, #tpu.memory_space<vmem>>, %arg2: memref<2x128x512xf32, #tpu.memory_space<vmem>>, %arg3: memref<1x1024xf32, #tpu.memory_space<vmem>>, %arg4: memref<256x1024xf32, #tpu.memory_space<vmem>>, %arg5: memref<2x128x512xf32, #tpu.memory_space<vmem>>, %arg6: memref<1x1024xf32, #tpu.memory_space<vmem>>, %arg7: memref<2x128x10xf32, #tpu.memory_space<vmem>>, %arg8: memref<1x10xf32, #tpu.memory_space<vmem>>, %arg9: memref<8x10xf32, #tpu.memory_space<vmem>>, %arg10: memref<8x8x256xf32, #tpu.memory_space<vmem>>, %arg11: memref<8x8x1024xf32, #tpu.memory_space<vmem>>) attributes {dimension_semantics = [], scalar_prefetch = 0 : i64, scratch_operands = 2 : i64, tpu.core_type = #tpu.core_type<tc>} {
    %c0 = arith.constant 0 : index
    %c0_0 = arith.constant 0 : index
    %c0_1 = arith.constant 0 : index
    %0 = vector.load %arg0[%c0, %c0_0, %c0_1] : memref<8x8x32xf32, #tpu.memory_space<vmem>>, vector<8x8x32xf32>
    %1 = vector.shape_cast %0 : vector<8x8x32xf32> to vector<64x32xf32>
    %c0_2 = arith.constant 0 : index
    %c0_3 = arith.constant 0 : index
    %2 = vector.load %arg1[%c0_2, %c0_3] : memref<32x1024xf32, #tpu.memory_space<vmem>>, vector<32x1024xf32>
    %cst = arith.constant dense<0.000000e+00> : vector<64x1024xf32>
    %3 = tpu.matmul %1, %2, %cst {dimension_numbers = #tpu.dot_dimension_numbers<[1], [0], [0], [1], [0, 0, 1, 1], [], []>} : vector<64x32xf32>, vector<32x1024xf32>, vector<64x1024xf32> -> vector<64x1024xf32>
    %4 = vector.shape_cast %3 : vector<64x1024xf32> to vector<8x8x1024xf32>
    %c0_4 = arith.constant 0 : index
    %c0_5 = arith.constant 0 : index
    %5 = vector.load %arg3[%c0_4, %c0_5] : memref<1x1024xf32, #tpu.memory_space<vmem>>, vector<1x1024xf32>
    %6 = vector.shape_cast %5 : vector<1x1024xf32> to vector<1x1x1024xf32>
    %7 = vector.broadcast %6 : vector<1x1x1024xf32> to vector<8x8x1024xf32>
    %8 = arith.addf %4, %7 : vector<8x8x1024xf32>
    %c0_6 = arith.constant 0 : index
    %c0_7 = arith.constant 0 : index
    %c0_8 = arith.constant 0 : index
    %9 = vector.load %arg11[%c0_6, %c0_7, %c0_8] : memref<8x8x1024xf32, #tpu.memory_space<vmem>>, vector<8x8x1024xf32>
    tpu.vector_store %arg11[%c0_6, %c0_7, %c0_8], %8 {strides = array<i32>} : memref<8x8x1024xf32, #tpu.memory_space<vmem>>, vector<8x8x1024xf32>,
    %c0_9 = arith.constant 0 : index
    %c0_10 = arith.constant 0 : index
    %c0_11 = arith.constant 0 : index
    %10 = vector.load %arg2[%c0_9, %c0_10, %c0_11] : memref<2x128x512xf32, #tpu.memory_space<vmem>>, vector<1x128x512xf32>
    %11 = vector.shape_cast %10 : vector<1x128x512xf32> to vector<128x512xf32>
    %c1 = arith.constant 1 : index
    %c0_12 = arith.constant 0 : index
    %c0_13 = arith.constant 0 : index
    %12 = vector.load %arg2[%c1, %c0_12, %c0_13] : memref<2x128x512xf32, #tpu.memory_space<vmem>>, vector<1x128x512xf32>
    %13 = vector.shape_cast %12 : vector<1x128x512xf32> to vector<128x512xf32>
    %cst_14 = arith.constant 0.000000e+00 : f32
    %14 = vector.broadcast %cst_14 : f32 to vector<8x128xf32>
    %cst_15 = arith.constant 0.000000e+00 : f32
    %15 = vector.broadcast %cst_15 : f32 to vector<8x128xf32>
    %cst_16 = arith.constant 0.000000e+00 : f32
    %16 = vector.broadcast %cst_16 : f32 to vector<8x128xf32>
    %cst_17 = arith.constant 0.000000e+00 : f32
    %17 = vector.broadcast %cst_17 : f32 to vector<8x128xf32>
    %c0_18 = arith.constant 0 : index
    %c0_19 = arith.constant 0 : index
    %c0_20 = arith.constant 0 : index
    %18 = vector.load %arg11[%c0_18, %c0_19, %c0_20] : memref<8x8x1024xf32, #tpu.memory_space<vmem>>, vector<1x8x512xf32>
    %19 = vector.shape_cast %18 : vector<1x8x512xf32> to vector<8x512xf32>
    %cst_21 = arith.constant dense<0.000000e+00> : vector<8x512xf32>
    %20 = tpu.matmul %14, %11, %cst_21 {dimension_numbers = #tpu.dot_dimension_numbers<[1], [0], [0], [1], [0, 0, 1, 1], [], []>} : vector<8x128xf32>, vector<128x512xf32>, vector<8x512xf32> -> vector<8x512xf32>
    %21 = arith.addf %19, %20 : vector<8x512xf32>
    %c7 = arith.constant 7 : index
    %c0_22 = arith.constant 0 : index
    %c512 = arith.constant 512 : index
    %22 = vector.load %arg11[%c7, %c0_22, %c512] : memref<8x8x1024xf32, #tpu.memory_space<vmem>>, vector<1x8x512xf32>
    %23 = vector.shape_cast %22 : vector<1x8x512xf32> to vector<8x512xf32>
    %cst_23 = arith.constant dense<0.000000e+00> : vector<8x512xf32>
    %24 = tpu.matmul %16, %13, %cst_23 {dimension_numbers = #tpu.dot_dimension_numbers<[1], [0], [0], [1], [0, 0, 1, 1], [], []>} : vector<8x128xf32>, vector<128x512xf32>, vector<8x512xf32> -> vector<8x512xf32>
    %25 = arith.addf %23, %24 : vector<8x512xf32>
    %26 = vector.extract_strided_slice %21 {offsets = [0, 0], sizes = [8, 384], strides = [1, 1]} : vector<8x512xf32> to vector<8x384xf32>
    %27 = arith.negf %26 : vector<8x384xf32>
    %28 = math.exp %27 : vector<8x384xf32>
    %cst_24 = arith.constant 1.000000e+00 : f32
    %29 = vector.broadcast %cst_24 : f32 to vector<8x384xf32>
    %30 = arith.addf %29, %28 : vector<8x384xf32>
    %31 = arith.divf %29, %30 : vector<8x384xf32>
    %32 = vector.extract_strided_slice %25 {offsets = [0, 0], sizes = [8, 384], strides = [1, 1]} : vector<8x512xf32> to vector<8x384xf32>
    %33 = arith.negf %32 : vector<8x384xf32>
    %34 = math.exp %33 : vector<8x384xf32>
    %cst_25 = arith.constant 1.000000e+00 : f32
    %35 = vector.broadcast %cst_25 : f32 to vector<8x384xf32>
    %36 = arith.addf %35, %34 : vector<8x384xf32>
    %37 = arith.divf %35, %36 : vector<8x384xf32>
    %38 = vector.extract_strided_slice %21 {offsets = [0, 384], sizes = [8, 128], strides = [1, 1]} : vector<8x512xf32> to vector<8x128xf32>
    %39 = math.tanh %38 : vector<8x128xf32>
    %40 = vector.extract_strided_slice %25 {offsets = [0, 384], sizes = [8, 128], strides = [1, 1]} : vector<8x512xf32> to vector<8x128xf32>
    %41 = math.tanh %40 : vector<8x128xf32>
    %42 = vector.extract_strided_slice %31 {offsets = [0, 128], sizes = [8, 128], strides = [1, 1]} : vector<8x384xf32> to vector<8x128xf32>
    %43 = arith.mulf %42, %15 : vector<8x128xf32>
    %44 = vector.extract_strided_slice %31 {offsets = [0, 0], sizes = [8, 128], strides = [1, 1]} : vector<8x384xf32> to vector<8x128xf32>
    %45 = arith.mulf %44, %39 : vector<8x128xf32>
    %46 = arith.addf %43, %45 : vector<8x128xf32>
    %47 = vector.extract_strided_slice %37 {offsets = [0, 128], sizes = [8, 128], strides = [1, 1]} : vector<8x384xf32> to vector<8x128xf32>
    %48 = arith.mulf %47, %17 : vector<8x128xf32>
    %49 = vector.extract_strided_slice %37 {offsets = [0, 0], sizes = [8, 128], strides = [1, 1]} : vector<8x384xf32> to vector<8x128xf32>
    %50 = arith.mulf %49, %41 : vector<8x128xf32>
    %51 = arith.addf %48, %50 : vector<8x128xf32>
    %52 = vector.extract_strided_slice %31 {offsets = [0, 256], sizes = [8, 128], strides = [1, 1]} : vector<8x384xf32> to vector<8x128xf32>
    %53 = math.tanh %46 : vector<8x128xf32>
    %54 = arith.mulf %52, %53 : vector<8x128xf32>
    %55 = vector.extract_strided_slice %37 {offsets = [0, 256], sizes = [8, 128], strides = [1, 1]} : vector<8x384xf32> to vector<8x128xf32>
    %56 = math.tanh %51 : vector<8x128xf32>
    %57 = arith.mulf %55, %56 : vector<8x128xf32>
    %c0_26 = arith.constant 0 : index
    %c0_27 = arith.constant 0 : index
    %c0_28 = arith.constant 0 : index
    %58 = vector.load %arg10[%c0_26, %c0_27, %c0_28] : memref<8x8x256xf32, #tpu.memory_space<vmem>>, vector<1x8x128xf32>
    %59 = vector.shape_cast %58 : vector<1x8x128xf32> to vector<8x128xf32>
    %60 = vector.shape_cast %54 : vector<8x128xf32> to vector<1x8x128xf32>
    tpu.vector_store %arg10[%c0_26, %c0_27, %c0_28], %60 {strides = array<i32>} : memref<8x8x256xf32, #tpu.memory_space<vmem>>, vector<1x8x128xf32>,
    %c7_29 = arith.constant 7 : index
    %c0_30 = arith.constant 0 : index
    %c128 = arith.constant 128 : index
    %61 = vector.load %arg10[%c7_29, %c0_30, %c128] : memref<8x8x256xf32, #tpu.memory_space<vmem>>, vector<1x8x128xf32>
    %62 = vector.shape_cast %61 : vector<1x8x128xf32> to vector<8x128xf32>
    %63 = vector.shape_cast %57 : vector<8x128xf32> to vector<1x8x128xf32>
    tpu.vector_store %arg10[%c7_29, %c0_30, %c128], %63 {strides = array<i32>} : memref<8x8x256xf32, #tpu.memory_space<vmem>>, vector<1x8x128xf32>,
    %c1_31 = arith.constant 1 : index
    %c0_32 = arith.constant 0 : index
    %c0_33 = arith.constant 0 : index
    %64 = vector.load %arg11[%c1_31, %c0_32, %c0_33] : memref<8x8x1024xf32, #tpu.memory_space<vmem>>, vector<1x8x512xf32>
    %65 = vector.shape_cast %64 : vector<1x8x512xf32> to vector<8x512xf32>
    %cst_34 = arith.constant dense<0.000000e+00> : vector<8x512xf32>
    %66 = tpu.matmul %54, %11, %cst_34 {dimension_numbers = #tpu.dot_dimension_numbers<[1], [0], [0], [1], [0, 0, 1, 1], [], []>} : vector<8x128xf32>, vector<128x512xf32>, vector<8x512xf32> -> vector<8x512xf32>
    %67 = arith.addf %65, %66 : vector<8x512xf32>
    %c6 = arith.constant 6 : index
    %c0_35 = arith.constant 0 : index
    %c512_36 = arith.constant 512 : index
    %68 = vector.load %arg11[%c6, %c0_35, %c512_36] : memref<8x8x1024xf32, #tpu.memory_space<vmem>>, vector<1x8x512xf32>
    %69 = vector.shape_cast %68 : vector<1x8x512xf32> to vector<8x512xf32>
    %cst_37 = arith.constant dense<0.000000e+00> : vector<8x512xf32>
    %70 = tpu.matmul %57, %13, %cst_37 {dimension_numbers = #tpu.dot_dimension_numbers<[1], [0], [0], [1], [0, 0, 1, 1], [], []>} : vector<8x128xf32>, vector<128x512xf32>, vector<8x512xf32> -> vector<8x512xf32>
    %71 = arith.addf %69, %70 : vector<8x512xf32>
    %72 = vector.extract_strided_slice %67 {offsets = [0, 0], sizes = [8, 384], strides = [1, 1]} : vector<8x512xf32> to vector<8x384xf32>
    %73 = arith.negf %72 : vector<8x384xf32>
    %74 = math.exp %73 : vector<8x384xf32>
    %cst_38 = arith.constant 1.000000e+00 : f32
    %75 = vector.broadcast %cst_38 : f32 to vector<8x384xf32>
    %76 = arith.addf %75, %74 : vector<8x384xf32>
    %77 = arith.divf %75, %76 : vector<8x384xf32>
    %78 = vector.extract_strided_slice %71 {offsets = [0, 0], sizes = [8, 384], strides = [1, 1]} : vector<8x512xf32> to vector<8x384xf32>
    %79 = arith.negf %78 : vector<8x384xf32>
    %80 = math.exp %79 : vector<8x384xf32>
    %cst_39 = arith.constant 1.000000e+00 : f32
    %81 = vector.broadcast %cst_39 : f32 to vector<8x384xf32>
    %82 = arith.addf %81, %80 : vector<8x384xf32>
    %83 = arith.divf %81, %82 : vector<8x384xf32>
    %84 = vector.extract_strided_slice %67 {offsets = [0, 384], sizes = [8, 128], strides = [1, 1]} : vector<8x512xf32> to vector<8x128xf32>
    %85 = math.tanh %84 : vector<8x128xf32>
    %86 = vector.extract_strided_slice %71 {offsets = [0, 384], sizes = [8, 128], strides = [1, 1]} : vector<8x512xf32> to vector<8x128xf32>
    %87 = math.tanh %86 : vector<8x128xf32>
    %88 = vector.extract_strided_slice %77 {offsets = [0, 128], sizes = [8, 128], strides = [1, 1]} : vector<8x384xf32> to vector<8x128xf32>
    %89 = arith.mulf %88, %46 : vector<8x128xf32>
    %90 = vector.extract_strided_slice %77 {offsets = [0, 0], sizes = [8, 128], strides = [1, 1]} : vector<8x384xf32> to vector<8x128xf32>
    %91 = arith.mulf %90, %85 : vector<8x128xf32>
    %92 = arith.addf %89, %91 : vector<8x128xf32>
    %93 = vector.extract_strided_slice %83 {offsets = [0, 128], sizes = [8, 128], strides = [1, 1]} : vector<8x384xf32> to vector<8x128xf32>
    %94 = arith.mulf %93, %51 : vector<8x128xf32>
    %95 = vector.extract_strided_slice %83 {offsets = [0, 0], sizes = [8, 128], strides = [1, 1]} : vector<8x384xf32> to vector<8x128xf32>
    %96 = arith.mulf %95, %87 : vector<8x128xf32>
    %97 = arith.addf %94, %96 : vector<8x128xf32>
    %98 = vector.extract_strided_slice %77 {offsets = [0, 256], sizes = [8, 128], strides = [1, 1]} : vector<8x384xf32> to vector<8x128xf32>
    %99 = math.tanh %92 : vector<8x128xf32>
    %100 = arith.mulf %98, %99 : vector<8x128xf32>
    %101 = vector.extract_strided_slice %83 {offsets = [0, 256], sizes = [8, 128], strides = [1, 1]} : vector<8x384xf32> to vector<8x128xf32>
    %102 = math.tanh %97 : vector<8x128xf32>
    %103 = arith.mulf %101, %102 : vector<8x128xf32>
    %c1_40 = arith.constant 1 : index
    %c0_41 = arith.constant 0 : index
    %c0_42 = arith.constant 0 : index
    %104 = vector.load %arg10[%c1_40, %c0_41, %c0_42] : memref<8x8x256xf32, #tpu.memory_space<vmem>>, vector<1x8x128xf32>
    %105 = vector.shape_cast %104 : vector<1x8x128xf32> to vector<8x128xf32>
    %106 = vector.shape_cast %100 : vector<8x128xf32> to vector<1x8x128xf32>
    tpu.vector_store %arg10[%c1_40, %c0_41, %c0_42], %106 {strides = array<i32>} : memref<8x8x256xf32, #tpu.memory_space<vmem>>, vector<1x8x128xf32>,
    %c6_43 = arith.constant 6 : index
    %c0_44 = arith.constant 0 : index
    %c128_45 = arith.constant 128 : index
    %107 = vector.load %arg10[%c6_43, %c0_44, %c128_45] : memref<8x8x256xf32, #tpu.memory_space<vmem>>, vector<1x8x128xf32>
    %108 = vector.shape_cast %107 : vector<1x8x128xf32> to vector<8x128xf32>
    %109 = vector.shape_cast %103 : vector<8x128xf32> to vector<1x8x128xf32>
    tpu.vector_store %arg10[%c6_43, %c0_44, %c128_45], %109 {strides = array<i32>} : memref<8x8x256xf32, #tpu.memory_space<vmem>>, vector<1x8x128xf32>,
    %c2 = arith.constant 2 : index
    %c0_46 = arith.constant 0 : index
    %c0_47 = arith.constant 0 : index
    %110 = vector.load %arg11[%c2, %c0_46, %c0_47] : memref<8x8x1024xf32, #tpu.memory_space<vmem>>, vector<1x8x512xf32>
    %111 = vector.shape_cast %110 : vector<1x8x512xf32> to vector<8x512xf32>
    %cst_48 = arith.constant dense<0.000000e+00> : vector<8x512xf32>
    %112 = tpu.matmul %100, %11, %cst_48 {dimension_numbers = #tpu.dot_dimension_numbers<[1], [0], [0], [1], [0, 0, 1, 1], [], []>} : vector<8x128xf32>, vector<128x512xf32>, vector<8x512xf32> -> vector<8x512xf32>
    %113 = arith.addf %111, %112 : vector<8x512xf32>
    %c5 = arith.constant 5 : index
    %c0_49 = arith.constant 0 : index
    %c512_50 = arith.constant 512 : index
    %114 = vector.load %arg11[%c5, %c0_49, %c512_50] : memref<8x8x1024xf32, #tpu.memory_space<vmem>>, vector<1x8x512xf32>
    %115 = vector.shape_cast %114 : vector<1x8x512xf32> to vector<8x512xf32>
    %cst_51 = arith.constant dense<0.000000e+00> : vector<8x512xf32>
    %116 = tpu.matmul %103, %13, %cst_51 {dimension_numbers = #tpu.dot_dimension_numbers<[1], [0], [0], [1], [0, 0, 1, 1], [], []>} : vector<8x128xf32>, vector<128x512xf32>, vector<8x512xf32> -> vector<8x512xf32>
    %117 = arith.addf %115, %116 : vector<8x512xf32>
    %118 = vector.extract_strided_slice %113 {offsets = [0, 0], sizes = [8, 384], strides = [1, 1]} : vector<8x512xf32> to vector<8x384xf32>
    %119 = arith.negf %118 : vector<8x384xf32>
    %120 = math.exp %119 : vector<8x384xf32>
    %cst_52 = arith.constant 1.000000e+00 : f32
    %121 = vector.broadcast %cst_52 : f32 to vector<8x384xf32>
    %122 = arith.addf %121, %120 : vector<8x384xf32>
    %123 = arith.divf %121, %122 : vector<8x384xf32>
    %124 = vector.extract_strided_slice %117 {offsets = [0, 0], sizes = [8, 384], strides = [1, 1]} : vector<8x512xf32> to vector<8x384xf32>
    %125 = arith.negf %124 : vector<8x384xf32>
    %126 = math.exp %125 : vector<8x384xf32>
    %cst_53 = arith.constant 1.000000e+00 : f32
    %127 = vector.broadcast %cst_53 : f32 to vector<8x384xf32>
    %128 = arith.addf %127, %126 : vector<8x384xf32>
    %129 = arith.divf %127, %128 : vector<8x384xf32>
    %130 = vector.extract_strided_slice %113 {offsets = [0, 384], sizes = [8, 128], strides = [1, 1]} : vector<8x512xf32> to vector<8x128xf32>
    %131 = math.tanh %130 : vector<8x128xf32>
    %132 = vector.extract_strided_slice %117 {offsets = [0, 384], sizes = [8, 128], strides = [1, 1]} : vector<8x512xf32> to vector<8x128xf32>
    %133 = math.tanh %132 : vector<8x128xf32>
    %134 = vector.extract_strided_slice %123 {offsets = [0, 128], sizes = [8, 128], strides = [1, 1]} : vector<8x384xf32> to vector<8x128xf32>
    %135 = arith.mulf %134, %92 : vector<8x128xf32>
    %136 = vector.extract_strided_slice %123 {offsets = [0, 0], sizes = [8, 128], strides = [1, 1]} : vector<8x384xf32> to vector<8x128xf32>
    %137 = arith.mulf %136, %131 : vector<8x128xf32>
    %138 = arith.addf %135, %137 : vector<8x128xf32>
    %139 = vector.extract_strided_slice %129 {offsets = [0, 128], sizes = [8, 128], strides = [1, 1]} : vector<8x384xf32> to vector<8x128xf32>
    %140 = arith.mulf %139, %97 : vector<8x128xf32>
    %141 = vector.extract_strided_slice %129 {offsets = [0, 0], sizes = [8, 128], strides = [1, 1]} : vector<8x384xf32> to vector<8x128xf32>
    %142 = arith.mulf %141, %133 : vector<8x128xf32>
    %143 = arith.addf %140, %142 : vector<8x128xf32>
    %144 = vector.extract_strided_slice %123 {offsets = [0, 256], sizes = [8, 128], strides = [1, 1]} : vector<8x384xf32> to vector<8x128xf32>
    %145 = math.tanh %138 : vector<8x128xf32>
    %146 = arith.mulf %144, %145 : vector<8x128xf32>
    %147 = vector.extract_strided_slice %129 {offsets = [0, 256], sizes = [8, 128], strides = [1, 1]} : vector<8x384xf32> to vector<8x128xf32>
    %148 = math.tanh %143 : vector<8x128xf32>
    %149 = arith.mulf %147, %148 : vector<8x128xf32>
    %c2_54 = arith.constant 2 : index
    %c0_55 = arith.constant 0 : index
    %c0_56 = arith.constant 0 : index
    %150 = vector.load %arg10[%c2_54, %c0_55, %c0_56] : memref<8x8x256xf32, #tpu.memory_space<vmem>>, vector<1x8x128xf32>
    %151 = vector.shape_cast %150 : vector<1x8x128xf32> to vector<8x128xf32>
    %152 = vector.shape_cast %146 : vector<8x128xf32> to vector<1x8x128xf32>
    tpu.vector_store %arg10[%c2_54, %c0_55, %c0_56], %152 {strides = array<i32>} : memref<8x8x256xf32, #tpu.memory_space<vmem>>, vector<1x8x128xf32>,
    %c5_57 = arith.constant 5 : index
    %c0_58 = arith.constant 0 : index
    %c128_59 = arith.constant 128 : index
    %153 = vector.load %arg10[%c5_57, %c0_58, %c128_59] : memref<8x8x256xf32, #tpu.memory_space<vmem>>, vector<1x8x128xf32>
    %154 = vector.shape_cast %153 : vector<1x8x128xf32> to vector<8x128xf32>
    %155 = vector.shape_cast %149 : vector<8x128xf32> to vector<1x8x128xf32>
    tpu.vector_store %arg10[%c5_57, %c0_58, %c128_59], %155 {strides = array<i32>} : memref<8x8x256xf32, #tpu.memory_space<vmem>>, vector<1x8x128xf32>,
    %c3 = arith.constant 3 : index
    %c0_60 = arith.constant 0 : index
    %c0_61 = arith.constant 0 : index
    %156 = vector.load %arg11[%c3, %c0_60, %c0_61] : memref<8x8x1024xf32, #tpu.memory_space<vmem>>, vector<1x8x512xf32>
    %157 = vector.shape_cast %156 : vector<1x8x512xf32> to vector<8x512xf32>
    %cst_62 = arith.constant dense<0.000000e+00> : vector<8x512xf32>
    %158 = tpu.matmul %146, %11, %cst_62 {dimension_numbers = #tpu.dot_dimension_numbers<[1], [0], [0], [1], [0, 0, 1, 1], [], []>} : vector<8x128xf32>, vector<128x512xf32>, vector<8x512xf32> -> vector<8x512xf32>
    %159 = arith.addf %157, %158 : vector<8x512xf32>
    %c4 = arith.constant 4 : index
    %c0_63 = arith.constant 0 : index
    %c512_64 = arith.constant 512 : index
    %160 = vector.load %arg11[%c4, %c0_63, %c512_64] : memref<8x8x1024xf32, #tpu.memory_space<vmem>>, vector<1x8x512xf32>
    %161 = vector.shape_cast %160 : vector<1x8x512xf32> to vector<8x512xf32>
    %cst_65 = arith.constant dense<0.000000e+00> : vector<8x512xf32>
    %162 = tpu.matmul %149, %13, %cst_65 {dimension_numbers = #tpu.dot_dimension_numbers<[1], [0], [0], [1], [0, 0, 1, 1], [], []>} : vector<8x128xf32>, vector<128x512xf32>, vector<8x512xf32> -> vector<8x512xf32>
    %163 = arith.addf %161, %162 : vector<8x512xf32>
    %164 = vector.extract_strided_slice %159 {offsets = [0, 0], sizes = [8, 384], strides = [1, 1]} : vector<8x512xf32> to vector<8x384xf32>
    %165 = arith.negf %164 : vector<8x384xf32>
    %166 = math.exp %165 : vector<8x384xf32>
    %cst_66 = arith.constant 1.000000e+00 : f32
    %167 = vector.broadcast %cst_66 : f32 to vector<8x384xf32>
    %168 = arith.addf %167, %166 : vector<8x384xf32>
    %169 = arith.divf %167, %168 : vector<8x384xf32>
    %170 = vector.extract_strided_slice %163 {offsets = [0, 0], sizes = [8, 384], strides = [1, 1]} : vector<8x512xf32> to vector<8x384xf32>
    %171 = arith.negf %170 : vector<8x384xf32>
    %172 = math.exp %171 : vector<8x384xf32>
    %cst_67 = arith.constant 1.000000e+00 : f32
    %173 = vector.broadcast %cst_67 : f32 to vector<8x384xf32>
    %174 = arith.addf %173, %172 : vector<8x384xf32>
    %175 = arith.divf %173, %174 : vector<8x384xf32>
    %176 = vector.extract_strided_slice %159 {offsets = [0, 384], sizes = [8, 128], strides = [1, 1]} : vector<8x512xf32> to vector<8x128xf32>
    %177 = math.tanh %176 : vector<8x128xf32>
    %178 = vector.extract_strided_slice %163 {offsets = [0, 384], sizes = [8, 128], strides = [1, 1]} : vector<8x512xf32> to vector<8x128xf32>
    %179 = math.tanh %178 : vector<8x128xf32>
    %180 = vector.extract_strided_slice %169 {offsets = [0, 128], sizes = [8, 128], strides = [1, 1]} : vector<8x384xf32> to vector<8x128xf32>
    %181 = arith.mulf %180, %138 : vector<8x128xf32>
    %182 = vector.extract_strided_slice %169 {offsets = [0, 0], sizes = [8, 128], strides = [1, 1]} : vector<8x384xf32> to vector<8x128xf32>
    %183 = arith.mulf %182, %177 : vector<8x128xf32>
    %184 = arith.addf %181, %183 : vector<8x128xf32>
    %185 = vector.extract_strided_slice %175 {offsets = [0, 128], sizes = [8, 128], strides = [1, 1]} : vector<8x384xf32> to vector<8x128xf32>
    %186 = arith.mulf %185, %143 : vector<8x128xf32>
    %187 = vector.extract_strided_slice %175 {offsets = [0, 0], sizes = [8, 128], strides = [1, 1]} : vector<8x384xf32> to vector<8x128xf32>
    %188 = arith.mulf %187, %179 : vector<8x128xf32>
    %189 = arith.addf %186, %188 : vector<8x128xf32>
    %190 = vector.extract_strided_slice %169 {offsets = [0, 256], sizes = [8, 128], strides = [1, 1]} : vector<8x384xf32> to vector<8x128xf32>
    %191 = math.tanh %184 : vector<8x128xf32>
    %192 = arith.mulf %190, %191 : vector<8x128xf32>
    %193 = vector.extract_strided_slice %175 {offsets = [0, 256], sizes = [8, 128], strides = [1, 1]} : vector<8x384xf32> to vector<8x128xf32>
    %194 = math.tanh %189 : vector<8x128xf32>
    %195 = arith.mulf %193, %194 : vector<8x128xf32>
    %c3_68 = arith.constant 3 : index
    %c0_69 = arith.constant 0 : index
    %c0_70 = arith.constant 0 : index
    %196 = vector.load %arg10[%c3_68, %c0_69, %c0_70] : memref<8x8x256xf32, #tpu.memory_space<vmem>>, vector<1x8x128xf32>
    %197 = vector.shape_cast %196 : vector<1x8x128xf32> to vector<8x128xf32>
    %198 = vector.shape_cast %192 : vector<8x128xf32> to vector<1x8x128xf32>
    tpu.vector_store %arg10[%c3_68, %c0_69, %c0_70], %198 {strides = array<i32>} : memref<8x8x256xf32, #tpu.memory_space<vmem>>, vector<1x8x128xf32>,
    %c4_71 = arith.constant 4 : index
    %c0_72 = arith.constant 0 : index
    %c128_73 = arith.constant 128 : index
    %199 = vector.load %arg10[%c4_71, %c0_72, %c128_73] : memref<8x8x256xf32, #tpu.memory_space<vmem>>, vector<1x8x128xf32>
    %200 = vector.shape_cast %199 : vector<1x8x128xf32> to vector<8x128xf32>
    %201 = vector.shape_cast %195 : vector<8x128xf32> to vector<1x8x128xf32>
    tpu.vector_store %arg10[%c4_71, %c0_72, %c128_73], %201 {strides = array<i32>} : memref<8x8x256xf32, #tpu.memory_space<vmem>>, vector<1x8x128xf32>,
    %c4_74 = arith.constant 4 : index
    %c0_75 = arith.constant 0 : index
    %c0_76 = arith.constant 0 : index
    %202 = vector.load %arg11[%c4_74, %c0_75, %c0_76] : memref<8x8x1024xf32, #tpu.memory_space<vmem>>, vector<1x8x512xf32>
    %203 = vector.shape_cast %202 : vector<1x8x512xf32> to vector<8x512xf32>
    %cst_77 = arith.constant dense<0.000000e+00> : vector<8x512xf32>
    %204 = tpu.matmul %192, %11, %cst_77 {dimension_numbers = #tpu.dot_dimension_numbers<[1], [0], [0], [1], [0, 0, 1, 1], [], []>} : vector<8x128xf32>, vector<128x512xf32>, vector<8x512xf32> -> vector<8x512xf32>
    %205 = arith.addf %203, %204 : vector<8x512xf32>
    %c3_78 = arith.constant 3 : index
    %c0_79 = arith.constant 0 : index
    %c512_80 = arith.constant 512 : index
    %206 = vector.load %arg11[%c3_78, %c0_79, %c512_80] : memref<8x8x1024xf32, #tpu.memory_space<vmem>>, vector<1x8x512xf32>
    %207 = vector.shape_cast %206 : vector<1x8x512xf32> to vector<8x512xf32>
    %cst_81 = arith.constant dense<0.000000e+00> : vector<8x512xf32>
    %208 = tpu.matmul %195, %13, %cst_81 {dimension_numbers = #tpu.dot_dimension_numbers<[1], [0], [0], [1], [0, 0, 1, 1], [], []>} : vector<8x128xf32>, vector<128x512xf32>, vector<8x512xf32> -> vector<8x512xf32>
    %209 = arith.addf %207, %208 : vector<8x512xf32>
    %210 = vector.extract_strided_slice %205 {offsets = [0, 0], sizes = [8, 384], strides = [1, 1]} : vector<8x512xf32> to vector<8x384xf32>
    %211 = arith.negf %210 : vector<8x384xf32>
    %212 = math.exp %211 : vector<8x384xf32>
    %cst_82 = arith.constant 1.000000e+00 : f32
    %213 = vector.broadcast %cst_82 : f32 to vector<8x384xf32>
    %214 = arith.addf %213, %212 : vector<8x384xf32>
    %215 = arith.divf %213, %214 : vector<8x384xf32>
    %216 = vector.extract_strided_slice %209 {offsets = [0, 0], sizes = [8, 384], strides = [1, 1]} : vector<8x512xf32> to vector<8x384xf32>
    %217 = arith.negf %216 : vector<8x384xf32>
    %218 = math.exp %217 : vector<8x384xf32>
    %cst_83 = arith.constant 1.000000e+00 : f32
    %219 = vector.broadcast %cst_83 : f32 to vector<8x384xf32>
    %220 = arith.addf %219, %218 : vector<8x384xf32>
    %221 = arith.divf %219, %220 : vector<8x384xf32>
    %222 = vector.extract_strided_slice %205 {offsets = [0, 384], sizes = [8, 128], strides = [1, 1]} : vector<8x512xf32> to vector<8x128xf32>
    %223 = math.tanh %222 : vector<8x128xf32>
    %224 = vector.extract_strided_slice %209 {offsets = [0, 384], sizes = [8, 128], strides = [1, 1]} : vector<8x512xf32> to vector<8x128xf32>
    %225 = math.tanh %224 : vector<8x128xf32>
    %226 = vector.extract_strided_slice %215 {offsets = [0, 128], sizes = [8, 128], strides = [1, 1]} : vector<8x384xf32> to vector<8x128xf32>
    %227 = arith.mulf %226, %184 : vector<8x128xf32>
    %228 = vector.extract_strided_slice %215 {offsets = [0, 0], sizes = [8, 128], strides = [1, 1]} : vector<8x384xf32> to vector<8x128xf32>
    %229 = arith.mulf %228, %223 : vector<8x128xf32>
    %230 = arith.addf %227, %229 : vector<8x128xf32>
    %231 = vector.extract_strided_slice %221 {offsets = [0, 128], sizes = [8, 128], strides = [1, 1]} : vector<8x384xf32> to vector<8x128xf32>
    %232 = arith.mulf %231, %189 : vector<8x128xf32>
    %233 = vector.extract_strided_slice %221 {offsets = [0, 0], sizes = [8, 128], strides = [1, 1]} : vector<8x384xf32> to vector<8x128xf32>
    %234 = arith.mulf %233, %225 : vector<8x128xf32>
    %235 = arith.addf %232, %234 : vector<8x128xf32>
    %236 = vector.extract_strided_slice %215 {offsets = [0, 256], sizes = [8, 128], strides = [1, 1]} : vector<8x384xf32> to vector<8x128xf32>
    %237 = math.tanh %230 : vector<8x128xf32>
    %238 = arith.mulf %236, %237 : vector<8x128xf32>
    %239 = vector.extract_strided_slice %221 {offsets = [0, 256], sizes = [8, 128], strides = [1, 1]} : vector<8x384xf32> to vector<8x128xf32>
    %240 = math.tanh %235 : vector<8x128xf32>
    %241 = arith.mulf %239, %240 : vector<8x128xf32>
    %c4_84 = arith.constant 4 : index
    %c0_85 = arith.constant 0 : index
    %c0_86 = arith.constant 0 : index
    %242 = vector.load %arg10[%c4_84, %c0_85, %c0_86] : memref<8x8x256xf32, #tpu.memory_space<vmem>>, vector<1x8x128xf32>
    %243 = vector.shape_cast %242 : vector<1x8x128xf32> to vector<8x128xf32>
    %244 = vector.shape_cast %238 : vector<8x128xf32> to vector<1x8x128xf32>
    tpu.vector_store %arg10[%c4_84, %c0_85, %c0_86], %244 {strides = array<i32>} : memref<8x8x256xf32, #tpu.memory_space<vmem>>, vector<1x8x128xf32>,
    %c3_87 = arith.constant 3 : index
    %c0_88 = arith.constant 0 : index
    %c128_89 = arith.constant 128 : index
    %245 = vector.load %arg10[%c3_87, %c0_88, %c128_89] : memref<8x8x256xf32, #tpu.memory_space<vmem>>, vector<1x8x128xf32>
    %246 = vector.shape_cast %245 : vector<1x8x128xf32> to vector<8x128xf32>
    %247 = vector.shape_cast %241 : vector<8x128xf32> to vector<1x8x128xf32>
    tpu.vector_store %arg10[%c3_87, %c0_88, %c128_89], %247 {strides = array<i32>} : memref<8x8x256xf32, #tpu.memory_space<vmem>>, vector<1x8x128xf32>,
    %c5_90 = arith.constant 5 : index
    %c0_91 = arith.constant 0 : index
    %c0_92 = arith.constant 0 : index
    %248 = vector.load %arg11[%c5_90, %c0_91, %c0_92] : memref<8x8x1024xf32, #tpu.memory_space<vmem>>, vector<1x8x512xf32>
    %249 = vector.shape_cast %248 : vector<1x8x512xf32> to vector<8x512xf32>
    %cst_93 = arith.constant dense<0.000000e+00> : vector<8x512xf32>
    %250 = tpu.matmul %238, %11, %cst_93 {dimension_numbers = #tpu.dot_dimension_numbers<[1], [0], [0], [1], [0, 0, 1, 1], [], []>} : vector<8x128xf32>, vector<128x512xf32>, vector<8x512xf32> -> vector<8x512xf32>
    %251 = arith.addf %249, %250 : vector<8x512xf32>
    %c2_94 = arith.constant 2 : index
    %c0_95 = arith.constant 0 : index
    %c512_96 = arith.constant 512 : index
    %252 = vector.load %arg11[%c2_94, %c0_95, %c512_96] : memref<8x8x1024xf32, #tpu.memory_space<vmem>>, vector<1x8x512xf32>
    %253 = vector.shape_cast %252 : vector<1x8x512xf32> to vector<8x512xf32>
    %cst_97 = arith.constant dense<0.000000e+00> : vector<8x512xf32>
    %254 = tpu.matmul %241, %13, %cst_97 {dimension_numbers = #tpu.dot_dimension_numbers<[1], [0], [0], [1], [0, 0, 1, 1], [], []>} : vector<8x128xf32>, vector<128x512xf32>, vector<8x512xf32> -> vector<8x512xf32>
    %255 = arith.addf %253, %254 : vector<8x512xf32>
    %256 = vector.extract_strided_slice %251 {offsets = [0, 0], sizes = [8, 384], strides = [1, 1]} : vector<8x512xf32> to vector<8x384xf32>
    %257 = arith.negf %256 : vector<8x384xf32>
    %258 = math.exp %257 : vector<8x384xf32>
    %cst_98 = arith.constant 1.000000e+00 : f32
    %259 = vector.broadcast %cst_98 : f32 to vector<8x384xf32>
    %260 = arith.addf %259, %258 : vector<8x384xf32>
    %261 = arith.divf %259, %260 : vector<8x384xf32>
    %262 = vector.extract_strided_slice %255 {offsets = [0, 0], sizes = [8, 384], strides = [1, 1]} : vector<8x512xf32> to vector<8x384xf32>
    %263 = arith.negf %262 : vector<8x384xf32>
    %264 = math.exp %263 : vector<8x384xf32>
    %cst_99 = arith.constant 1.000000e+00 : f32
    %265 = vector.broadcast %cst_99 : f32 to vector<8x384xf32>
    %266 = arith.addf %265, %264 : vector<8x384xf32>
    %267 = arith.divf %265, %266 : vector<8x384xf32>
    %268 = vector.extract_strided_slice %251 {offsets = [0, 384], sizes = [8, 128], strides = [1, 1]} : vector<8x512xf32> to vector<8x128xf32>
    %269 = math.tanh %268 : vector<8x128xf32>
    %270 = vector.extract_strided_slice %255 {offsets = [0, 384], sizes = [8, 128], strides = [1, 1]} : vector<8x512xf32> to vector<8x128xf32>
    %271 = math.tanh %270 : vector<8x128xf32>
    %272 = vector.extract_strided_slice %261 {offsets = [0, 128], sizes = [8, 128], strides = [1, 1]} : vector<8x384xf32> to vector<8x128xf32>
    %273 = arith.mulf %272, %230 : vector<8x128xf32>
    %274 = vector.extract_strided_slice %261 {offsets = [0, 0], sizes = [8, 128], strides = [1, 1]} : vector<8x384xf32> to vector<8x128xf32>
    %275 = arith.mulf %274, %269 : vector<8x128xf32>
    %276 = arith.addf %273, %275 : vector<8x128xf32>
    %277 = vector.extract_strided_slice %267 {offsets = [0, 128], sizes = [8, 128], strides = [1, 1]} : vector<8x384xf32> to vector<8x128xf32>
    %278 = arith.mulf %277, %235 : vector<8x128xf32>
    %279 = vector.extract_strided_slice %267 {offsets = [0, 0], sizes = [8, 128], strides = [1, 1]} : vector<8x384xf32> to vector<8x128xf32>
    %280 = arith.mulf %279, %271 : vector<8x128xf32>
    %281 = arith.addf %278, %280 : vector<8x128xf32>
    %282 = vector.extract_strided_slice %261 {offsets = [0, 256], sizes = [8, 128], strides = [1, 1]} : vector<8x384xf32> to vector<8x128xf32>
    %283 = math.tanh %276 : vector<8x128xf32>
    %284 = arith.mulf %282, %283 : vector<8x128xf32>
    %285 = vector.extract_strided_slice %267 {offsets = [0, 256], sizes = [8, 128], strides = [1, 1]} : vector<8x384xf32> to vector<8x128xf32>
    %286 = math.tanh %281 : vector<8x128xf32>
    %287 = arith.mulf %285, %286 : vector<8x128xf32>
    %c5_100 = arith.constant 5 : index
    %c0_101 = arith.constant 0 : index
    %c0_102 = arith.constant 0 : index
    %288 = vector.load %arg10[%c5_100, %c0_101, %c0_102] : memref<8x8x256xf32, #tpu.memory_space<vmem>>, vector<1x8x128xf32>
    %289 = vector.shape_cast %288 : vector<1x8x128xf32> to vector<8x128xf32>
    %290 = vector.shape_cast %284 : vector<8x128xf32> to vector<1x8x128xf32>
    tpu.vector_store %arg10[%c5_100, %c0_101, %c0_102], %290 {strides = array<i32>} : memref<8x8x256xf32, #tpu.memory_space<vmem>>, vector<1x8x128xf32>,
    %c2_103 = arith.constant 2 : index
    %c0_104 = arith.constant 0 : index
    %c128_105 = arith.constant 128 : index
    %291 = vector.load %arg10[%c2_103, %c0_104, %c128_105] : memref<8x8x256xf32, #tpu.memory_space<vmem>>, vector<1x8x128xf32>
    %292 = vector.shape_cast %291 : vector<1x8x128xf32> to vector<8x128xf32>
    %293 = vector.shape_cast %287 : vector<8x128xf32> to vector<1x8x128xf32>
    tpu.vector_store %arg10[%c2_103, %c0_104, %c128_105], %293 {strides = array<i32>} : memref<8x8x256xf32, #tpu.memory_space<vmem>>, vector<1x8x128xf32>,
    %c6_106 = arith.constant 6 : index
    %c0_107 = arith.constant 0 : index
    %c0_108 = arith.constant 0 : index
    %294 = vector.load %arg11[%c6_106, %c0_107, %c0_108] : memref<8x8x1024xf32, #tpu.memory_space<vmem>>, vector<1x8x512xf32>
    %295 = vector.shape_cast %294 : vector<1x8x512xf32> to vector<8x512xf32>
    %cst_109 = arith.constant dense<0.000000e+00> : vector<8x512xf32>
    %296 = tpu.matmul %284, %11, %cst_109 {dimension_numbers = #tpu.dot_dimension_numbers<[1], [0], [0], [1], [0, 0, 1, 1], [], []>} : vector<8x128xf32>, vector<128x512xf32>, vector<8x512xf32> -> vector<8x512xf32>
    %297 = arith.addf %295, %296 : vector<8x512xf32>
    %c1_110 = arith.constant 1 : index
    %c0_111 = arith.constant 0 : index
    %c512_112 = arith.constant 512 : index
    %298 = vector.load %arg11[%c1_110, %c0_111, %c512_112] : memref<8x8x1024xf32, #tpu.memory_space<vmem>>, vector<1x8x512xf32>
    %299 = vector.shape_cast %298 : vector<1x8x512xf32> to vector<8x512xf32>
    %cst_113 = arith.constant dense<0.000000e+00> : vector<8x512xf32>
    %300 = tpu.matmul %287, %13, %cst_113 {dimension_numbers = #tpu.dot_dimension_numbers<[1], [0], [0], [1], [0, 0, 1, 1], [], []>} : vector<8x128xf32>, vector<128x512xf32>, vector<8x512xf32> -> vector<8x512xf32>
    %301 = arith.addf %299, %300 : vector<8x512xf32>
    %302 = vector.extract_strided_slice %297 {offsets = [0, 0], sizes = [8, 384], strides = [1, 1]} : vector<8x512xf32> to vector<8x384xf32>
    %303 = arith.negf %302 : vector<8x384xf32>
    %304 = math.exp %303 : vector<8x384xf32>
    %cst_114 = arith.constant 1.000000e+00 : f32
    %305 = vector.broadcast %cst_114 : f32 to vector<8x384xf32>
    %306 = arith.addf %305, %304 : vector<8x384xf32>
    %307 = arith.divf %305, %306 : vector<8x384xf32>
    %308 = vector.extract_strided_slice %301 {offsets = [0, 0], sizes = [8, 384], strides = [1, 1]} : vector<8x512xf32> to vector<8x384xf32>
    %309 = arith.negf %308 : vector<8x384xf32>
    %310 = math.exp %309 : vector<8x384xf32>
    %cst_115 = arith.constant 1.000000e+00 : f32
    %311 = vector.broadcast %cst_115 : f32 to vector<8x384xf32>
    %312 = arith.addf %311, %310 : vector<8x384xf32>
    %313 = arith.divf %311, %312 : vector<8x384xf32>
    %314 = vector.extract_strided_slice %297 {offsets = [0, 384], sizes = [8, 128], strides = [1, 1]} : vector<8x512xf32> to vector<8x128xf32>
    %315 = math.tanh %314 : vector<8x128xf32>
    %316 = vector.extract_strided_slice %301 {offsets = [0, 384], sizes = [8, 128], strides = [1, 1]} : vector<8x512xf32> to vector<8x128xf32>
    %317 = math.tanh %316 : vector<8x128xf32>
    %318 = vector.extract_strided_slice %307 {offsets = [0, 128], sizes = [8, 128], strides = [1, 1]} : vector<8x384xf32> to vector<8x128xf32>
    %319 = arith.mulf %318, %276 : vector<8x128xf32>
    %320 = vector.extract_strided_slice %307 {offsets = [0, 0], sizes = [8, 128], strides = [1, 1]} : vector<8x384xf32> to vector<8x128xf32>
    %321 = arith.mulf %320, %315 : vector<8x128xf32>
    %322 = arith.addf %319, %321 : vector<8x128xf32>
    %323 = vector.extract_strided_slice %313 {offsets = [0, 128], sizes = [8, 128], strides = [1, 1]} : vector<8x384xf32> to vector<8x128xf32>
    %324 = arith.mulf %323, %281 : vector<8x128xf32>
    %325 = vector.extract_strided_slice %313 {offsets = [0, 0], sizes = [8, 128], strides = [1, 1]} : vector<8x384xf32> to vector<8x128xf32>
    %326 = arith.mulf %325, %317 : vector<8x128xf32>
    %327 = arith.addf %324, %326 : vector<8x128xf32>
    %328 = vector.extract_strided_slice %307 {offsets = [0, 256], sizes = [8, 128], strides = [1, 1]} : vector<8x384xf32> to vector<8x128xf32>
    %329 = math.tanh %322 : vector<8x128xf32>
    %330 = arith.mulf %328, %329 : vector<8x128xf32>
    %331 = vector.extract_strided_slice %313 {offsets = [0, 256], sizes = [8, 128], strides = [1, 1]} : vector<8x384xf32> to vector<8x128xf32>
    %332 = math.tanh %327 : vector<8x128xf32>
    %333 = arith.mulf %331, %332 : vector<8x128xf32>
    %c6_116 = arith.constant 6 : index
    %c0_117 = arith.constant 0 : index
    %c0_118 = arith.constant 0 : index
    %334 = vector.load %arg10[%c6_116, %c0_117, %c0_118] : memref<8x8x256xf32, #tpu.memory_space<vmem>>, vector<1x8x128xf32>
    %335 = vector.shape_cast %334 : vector<1x8x128xf32> to vector<8x128xf32>
    %336 = vector.shape_cast %330 : vector<8x128xf32> to vector<1x8x128xf32>
    tpu.vector_store %arg10[%c6_116, %c0_117, %c0_118], %336 {strides = array<i32>} : memref<8x8x256xf32, #tpu.memory_space<vmem>>, vector<1x8x128xf32>,
    %c1_119 = arith.constant 1 : index
    %c0_120 = arith.constant 0 : index
    %c128_121 = arith.constant 128 : index
    %337 = vector.load %arg10[%c1_119, %c0_120, %c128_121] : memref<8x8x256xf32, #tpu.memory_space<vmem>>, vector<1x8x128xf32>
    %338 = vector.shape_cast %337 : vector<1x8x128xf32> to vector<8x128xf32>
    %339 = vector.shape_cast %333 : vector<8x128xf32> to vector<1x8x128xf32>
    tpu.vector_store %arg10[%c1_119, %c0_120, %c128_121], %339 {strides = array<i32>} : memref<8x8x256xf32, #tpu.memory_space<vmem>>, vector<1x8x128xf32>,
    %c7_122 = arith.constant 7 : index
    %c0_123 = arith.constant 0 : index
    %c0_124 = arith.constant 0 : index
    %340 = vector.load %arg11[%c7_122, %c0_123, %c0_124] : memref<8x8x1024xf32, #tpu.memory_space<vmem>>, vector<1x8x512xf32>
    %341 = vector.shape_cast %340 : vector<1x8x512xf32> to vector<8x512xf32>
    %cst_125 = arith.constant dense<0.000000e+00> : vector<8x512xf32>
    %342 = tpu.matmul %330, %11, %cst_125 {dimension_numbers = #tpu.dot_dimension_numbers<[1], [0], [0], [1], [0, 0, 1, 1], [], []>} : vector<8x128xf32>, vector<128x512xf32>, vector<8x512xf32> -> vector<8x512xf32>
    %343 = arith.addf %341, %342 : vector<8x512xf32>
    %c0_126 = arith.constant 0 : index
    %c0_127 = arith.constant 0 : index
    %c512_128 = arith.constant 512 : index
    %344 = vector.load %arg11[%c0_126, %c0_127, %c512_128] : memref<8x8x1024xf32, #tpu.memory_space<vmem>>, vector<1x8x512xf32>
    %345 = vector.shape_cast %344 : vector<1x8x512xf32> to vector<8x512xf32>
    %cst_129 = arith.constant dense<0.000000e+00> : vector<8x512xf32>
    %346 = tpu.matmul %333, %13, %cst_129 {dimension_numbers = #tpu.dot_dimension_numbers<[1], [0], [0], [1], [0, 0, 1, 1], [], []>} : vector<8x128xf32>, vector<128x512xf32>, vector<8x512xf32> -> vector<8x512xf32>
    %347 = arith.addf %345, %346 : vector<8x512xf32>
    %348 = vector.extract_strided_slice %343 {offsets = [0, 0], sizes = [8, 384], strides = [1, 1]} : vector<8x512xf32> to vector<8x384xf32>
    %349 = arith.negf %348 : vector<8x384xf32>
    %350 = math.exp %349 : vector<8x384xf32>
    %cst_130 = arith.constant 1.000000e+00 : f32
    %351 = vector.broadcast %cst_130 : f32 to vector<8x384xf32>
    %352 = arith.addf %351, %350 : vector<8x384xf32>
    %353 = arith.divf %351, %352 : vector<8x384xf32>
    %354 = vector.extract_strided_slice %347 {offsets = [0, 0], sizes = [8, 384], strides = [1, 1]} : vector<8x512xf32> to vector<8x384xf32>
    %355 = arith.negf %354 : vector<8x384xf32>
    %356 = math.exp %355 : vector<8x384xf32>
    %cst_131 = arith.constant 1.000000e+00 : f32
    %357 = vector.broadcast %cst_131 : f32 to vector<8x384xf32>
    %358 = arith.addf %357, %356 : vector<8x384xf32>
    %359 = arith.divf %357, %358 : vector<8x384xf32>
    %360 = vector.extract_strided_slice %343 {offsets = [0, 384], sizes = [8, 128], strides = [1, 1]} : vector<8x512xf32> to vector<8x128xf32>
    %361 = math.tanh %360 : vector<8x128xf32>
    %362 = vector.extract_strided_slice %347 {offsets = [0, 384], sizes = [8, 128], strides = [1, 1]} : vector<8x512xf32> to vector<8x128xf32>
    %363 = math.tanh %362 : vector<8x128xf32>
    %364 = vector.extract_strided_slice %353 {offsets = [0, 128], sizes = [8, 128], strides = [1, 1]} : vector<8x384xf32> to vector<8x128xf32>
    %365 = arith.mulf %364, %322 : vector<8x128xf32>
    %366 = vector.extract_strided_slice %353 {offsets = [0, 0], sizes = [8, 128], strides = [1, 1]} : vector<8x384xf32> to vector<8x128xf32>
    %367 = arith.mulf %366, %361 : vector<8x128xf32>
    %368 = arith.addf %365, %367 : vector<8x128xf32>
    %369 = vector.extract_strided_slice %359 {offsets = [0, 128], sizes = [8, 128], strides = [1, 1]} : vector<8x384xf32> to vector<8x128xf32>
    %370 = arith.mulf %369, %327 : vector<8x128xf32>
    %371 = vector.extract_strided_slice %359 {offsets = [0, 0], sizes = [8, 128], strides = [1, 1]} : vector<8x384xf32> to vector<8x128xf32>
    %372 = arith.mulf %371, %363 : vector<8x128xf32>
    %373 = arith.addf %370, %372 : vector<8x128xf32>
    %374 = vector.extract_strided_slice %353 {offsets = [0, 256], sizes = [8, 128], strides = [1, 1]} : vector<8x384xf32> to vector<8x128xf32>
    %375 = math.tanh %368 : vector<8x128xf32>
    %376 = arith.mulf %374, %375 : vector<8x128xf32>
    %377 = vector.extract_strided_slice %359 {offsets = [0, 256], sizes = [8, 128], strides = [1, 1]} : vector<8x384xf32> to vector<8x128xf32>
    %378 = math.tanh %373 : vector<8x128xf32>
    %379 = arith.mulf %377, %378 : vector<8x128xf32>
    %c7_132 = arith.constant 7 : index
    %c0_133 = arith.constant 0 : index
    %c0_134 = arith.constant 0 : index
    %380 = vector.load %arg10[%c7_132, %c0_133, %c0_134] : memref<8x8x256xf32, #tpu.memory_space<vmem>>, vector<1x8x128xf32>
    %381 = vector.shape_cast %380 : vector<1x8x128xf32> to vector<8x128xf32>
    %382 = vector.shape_cast %376 : vector<8x128xf32> to vector<1x8x128xf32>
    tpu.vector_store %arg10[%c7_132, %c0_133, %c0_134], %382 {strides = array<i32>} : memref<8x8x256xf32, #tpu.memory_space<vmem>>, vector<1x8x128xf32>,
    %c0_135 = arith.constant 0 : index
    %c0_136 = arith.constant 0 : index
    %c128_137 = arith.constant 128 : index
    %383 = vector.load %arg10[%c0_135, %c0_136, %c128_137] : memref<8x8x256xf32, #tpu.memory_space<vmem>>, vector<1x8x128xf32>
    %384 = vector.shape_cast %383 : vector<1x8x128xf32> to vector<8x128xf32>
    %385 = vector.shape_cast %379 : vector<8x128xf32> to vector<1x8x128xf32>
    tpu.vector_store %arg10[%c0_135, %c0_136, %c128_137], %385 {strides = array<i32>} : memref<8x8x256xf32, #tpu.memory_space<vmem>>, vector<1x8x128xf32>,
    %c0_138 = arith.constant 0 : index
    %c0_139 = arith.constant 0 : index
    %c0_140 = arith.constant 0 : index
    %386 = vector.load %arg10[%c0_138, %c0_139, %c0_140] : memref<8x8x256xf32, #tpu.memory_space<vmem>>, vector<8x8x256xf32>
    %387 = vector.shape_cast %386 : vector<8x8x256xf32> to vector<64x256xf32>
    %c0_141 = arith.constant 0 : index
    %c0_142 = arith.constant 0 : index
    %388 = vector.load %arg4[%c0_141, %c0_142] : memref<256x1024xf32, #tpu.memory_space<vmem>>, vector<256x1024xf32>
    %cst_143 = arith.constant dense<0.000000e+00> : vector<64x1024xf32>
    %389 = tpu.matmul %387, %388, %cst_143 {dimension_numbers = #tpu.dot_dimension_numbers<[1], [0], [0], [1], [0, 0, 1, 1], [], []>} : vector<64x256xf32>, vector<256x1024xf32>, vector<64x1024xf32> -> vector<64x1024xf32>
    %390 = vector.shape_cast %389 : vector<64x1024xf32> to vector<8x8x1024xf32>
    %c0_144 = arith.constant 0 : index
    %c0_145 = arith.constant 0 : index
    %391 = vector.load %arg6[%c0_144, %c0_145] : memref<1x1024xf32, #tpu.memory_space<vmem>>, vector<1x1024xf32>
    %392 = vector.shape_cast %391 : vector<1x1024xf32> to vector<1x1x1024xf32>
    %393 = vector.broadcast %392 : vector<1x1x1024xf32> to vector<8x8x1024xf32>
    %394 = arith.addf %390, %393 : vector<8x8x1024xf32>
    %c0_146 = arith.constant 0 : index
    %c0_147 = arith.constant 0 : index
    %c0_148 = arith.constant 0 : index
    %395 = vector.load %arg11[%c0_146, %c0_147, %c0_148] : memref<8x8x1024xf32, #tpu.memory_space<vmem>>, vector<8x8x1024xf32>
    tpu.vector_store %arg11[%c0_146, %c0_147, %c0_148], %394 {strides = array<i32>} : memref<8x8x1024xf32, #tpu.memory_space<vmem>>, vector<8x8x1024xf32>,
    %c0_149 = arith.constant 0 : index
    %c0_150 = arith.constant 0 : index
    %c0_151 = arith.constant 0 : index
    %396 = vector.load %arg5[%c0_149, %c0_150, %c0_151] : memref<2x128x512xf32, #tpu.memory_space<vmem>>, vector<1x128x512xf32>
    %397 = vector.shape_cast %396 : vector<1x128x512xf32> to vector<128x512xf32>
    %c1_152 = arith.constant 1 : index
    %c0_153 = arith.constant 0 : index
    %c0_154 = arith.constant 0 : index
    %398 = vector.load %arg5[%c1_152, %c0_153, %c0_154] : memref<2x128x512xf32, #tpu.memory_space<vmem>>, vector<1x128x512xf32>
    %399 = vector.shape_cast %398 : vector<1x128x512xf32> to vector<128x512xf32>
    %cst_155 = arith.constant 0.000000e+00 : f32
    %400 = vector.broadcast %cst_155 : f32 to vector<8x128xf32>
    %cst_156 = arith.constant 0.000000e+00 : f32
    %401 = vector.broadcast %cst_156 : f32 to vector<8x128xf32>
    %cst_157 = arith.constant 0.000000e+00 : f32
    %402 = vector.broadcast %cst_157 : f32 to vector<8x128xf32>
    %cst_158 = arith.constant 0.000000e+00 : f32
    %403 = vector.broadcast %cst_158 : f32 to vector<8x128xf32>
    %c0_159 = arith.constant 0 : index
    %c0_160 = arith.constant 0 : index
    %c0_161 = arith.constant 0 : index
    %404 = vector.load %arg11[%c0_159, %c0_160, %c0_161] : memref<8x8x1024xf32, #tpu.memory_space<vmem>>, vector<1x8x512xf32>
    %405 = vector.shape_cast %404 : vector<1x8x512xf32> to vector<8x512xf32>
    %cst_162 = arith.constant dense<0.000000e+00> : vector<8x512xf32>
    %406 = tpu.matmul %400, %397, %cst_162 {dimension_numbers = #tpu.dot_dimension_numbers<[1], [0], [0], [1], [0, 0, 1, 1], [], []>} : vector<8x128xf32>, vector<128x512xf32>, vector<8x512xf32> -> vector<8x512xf32>
    %407 = arith.addf %405, %406 : vector<8x512xf32>
    %c7_163 = arith.constant 7 : index
    %c0_164 = arith.constant 0 : index
    %c512_165 = arith.constant 512 : index
    %408 = vector.load %arg11[%c7_163, %c0_164, %c512_165] : memref<8x8x1024xf32, #tpu.memory_space<vmem>>, vector<1x8x512xf32>
    %409 = vector.shape_cast %408 : vector<1x8x512xf32> to vector<8x512xf32>
    %cst_166 = arith.constant dense<0.000000e+00> : vector<8x512xf32>
    %410 = tpu.matmul %402, %399, %cst_166 {dimension_numbers = #tpu.dot_dimension_numbers<[1], [0], [0], [1], [0, 0, 1, 1], [], []>} : vector<8x128xf32>, vector<128x512xf32>, vector<8x512xf32> -> vector<8x512xf32>
    %411 = arith.addf %409, %410 : vector<8x512xf32>
    %412 = vector.extract_strided_slice %407 {offsets = [0, 0], sizes = [8, 384], strides = [1, 1]} : vector<8x512xf32> to vector<8x384xf32>
    %413 = arith.negf %412 : vector<8x384xf32>
    %414 = math.exp %413 : vector<8x384xf32>
    %cst_167 = arith.constant 1.000000e+00 : f32
    %415 = vector.broadcast %cst_167 : f32 to vector<8x384xf32>
    %416 = arith.addf %415, %414 : vector<8x384xf32>
    %417 = arith.divf %415, %416 : vector<8x384xf32>
    %418 = vector.extract_strided_slice %411 {offsets = [0, 0], sizes = [8, 384], strides = [1, 1]} : vector<8x512xf32> to vector<8x384xf32>
    %419 = arith.negf %418 : vector<8x384xf32>
    %420 = math.exp %419 : vector<8x384xf32>
    %cst_168 = arith.constant 1.000000e+00 : f32
    %421 = vector.broadcast %cst_168 : f32 to vector<8x384xf32>
    %422 = arith.addf %421, %420 : vector<8x384xf32>
    %423 = arith.divf %421, %422 : vector<8x384xf32>
    %424 = vector.extract_strided_slice %407 {offsets = [0, 384], sizes = [8, 128], strides = [1, 1]} : vector<8x512xf32> to vector<8x128xf32>
    %425 = math.tanh %424 : vector<8x128xf32>
    %426 = vector.extract_strided_slice %411 {offsets = [0, 384], sizes = [8, 128], strides = [1, 1]} : vector<8x512xf32> to vector<8x128xf32>
    %427 = math.tanh %426 : vector<8x128xf32>
    %428 = vector.extract_strided_slice %417 {offsets = [0, 128], sizes = [8, 128], strides = [1, 1]} : vector<8x384xf32> to vector<8x128xf32>
    %429 = arith.mulf %428, %401 : vector<8x128xf32>
    %430 = vector.extract_strided_slice %417 {offsets = [0, 0], sizes = [8, 128], strides = [1, 1]} : vector<8x384xf32> to vector<8x128xf32>
    %431 = arith.mulf %430, %425 : vector<8x128xf32>
    %432 = arith.addf %429, %431 : vector<8x128xf32>
    %433 = vector.extract_strided_slice %423 {offsets = [0, 128], sizes = [8, 128], strides = [1, 1]} : vector<8x384xf32> to vector<8x128xf32>
    %434 = arith.mulf %433, %403 : vector<8x128xf32>
    %435 = vector.extract_strided_slice %423 {offsets = [0, 0], sizes = [8, 128], strides = [1, 1]} : vector<8x384xf32> to vector<8x128xf32>
    %436 = arith.mulf %435, %427 : vector<8x128xf32>
    %437 = arith.addf %434, %436 : vector<8x128xf32>
    %438 = vector.extract_strided_slice %417 {offsets = [0, 256], sizes = [8, 128], strides = [1, 1]} : vector<8x384xf32> to vector<8x128xf32>
    %439 = math.tanh %432 : vector<8x128xf32>
    %440 = arith.mulf %438, %439 : vector<8x128xf32>
    %441 = vector.extract_strided_slice %423 {offsets = [0, 256], sizes = [8, 128], strides = [1, 1]} : vector<8x384xf32> to vector<8x128xf32>
    %442 = math.tanh %437 : vector<8x128xf32>
    %443 = arith.mulf %441, %442 : vector<8x128xf32>
    %c1_169 = arith.constant 1 : index
    %c0_170 = arith.constant 0 : index
    %c0_171 = arith.constant 0 : index
    %444 = vector.load %arg11[%c1_169, %c0_170, %c0_171] : memref<8x8x1024xf32, #tpu.memory_space<vmem>>, vector<1x8x512xf32>
    %445 = vector.shape_cast %444 : vector<1x8x512xf32> to vector<8x512xf32>
    %cst_172 = arith.constant dense<0.000000e+00> : vector<8x512xf32>
    %446 = tpu.matmul %440, %397, %cst_172 {dimension_numbers = #tpu.dot_dimension_numbers<[1], [0], [0], [1], [0, 0, 1, 1], [], []>} : vector<8x128xf32>, vector<128x512xf32>, vector<8x512xf32> -> vector<8x512xf32>
    %447 = arith.addf %445, %446 : vector<8x512xf32>
    %c6_173 = arith.constant 6 : index
    %c0_174 = arith.constant 0 : index
    %c512_175 = arith.constant 512 : index
    %448 = vector.load %arg11[%c6_173, %c0_174, %c512_175] : memref<8x8x1024xf32, #tpu.memory_space<vmem>>, vector<1x8x512xf32>
    %449 = vector.shape_cast %448 : vector<1x8x512xf32> to vector<8x512xf32>
    %cst_176 = arith.constant dense<0.000000e+00> : vector<8x512xf32>
    %450 = tpu.matmul %443, %399, %cst_176 {dimension_numbers = #tpu.dot_dimension_numbers<[1], [0], [0], [1], [0, 0, 1, 1], [], []>} : vector<8x128xf32>, vector<128x512xf32>, vector<8x512xf32> -> vector<8x512xf32>
    %451 = arith.addf %449, %450 : vector<8x512xf32>
    %452 = vector.extract_strided_slice %447 {offsets = [0, 0], sizes = [8, 384], strides = [1, 1]} : vector<8x512xf32> to vector<8x384xf32>
    %453 = arith.negf %452 : vector<8x384xf32>
    %454 = math.exp %453 : vector<8x384xf32>
    %cst_177 = arith.constant 1.000000e+00 : f32
    %455 = vector.broadcast %cst_177 : f32 to vector<8x384xf32>
    %456 = arith.addf %455, %454 : vector<8x384xf32>
    %457 = arith.divf %455, %456 : vector<8x384xf32>
    %458 = vector.extract_strided_slice %451 {offsets = [0, 0], sizes = [8, 384], strides = [1, 1]} : vector<8x512xf32> to vector<8x384xf32>
    %459 = arith.negf %458 : vector<8x384xf32>
    %460 = math.exp %459 : vector<8x384xf32>
    %cst_178 = arith.constant 1.000000e+00 : f32
    %461 = vector.broadcast %cst_178 : f32 to vector<8x384xf32>
    %462 = arith.addf %461, %460 : vector<8x384xf32>
    %463 = arith.divf %461, %462 : vector<8x384xf32>
    %464 = vector.extract_strided_slice %447 {offsets = [0, 384], sizes = [8, 128], strides = [1, 1]} : vector<8x512xf32> to vector<8x128xf32>
    %465 = math.tanh %464 : vector<8x128xf32>
    %466 = vector.extract_strided_slice %451 {offsets = [0, 384], sizes = [8, 128], strides = [1, 1]} : vector<8x512xf32> to vector<8x128xf32>
    %467 = math.tanh %466 : vector<8x128xf32>
    %468 = vector.extract_strided_slice %457 {offsets = [0, 128], sizes = [8, 128], strides = [1, 1]} : vector<8x384xf32> to vector<8x128xf32>
    %469 = arith.mulf %468, %432 : vector<8x128xf32>
    %470 = vector.extract_strided_slice %457 {offsets = [0, 0], sizes = [8, 128], strides = [1, 1]} : vector<8x384xf32> to vector<8x128xf32>
    %471 = arith.mulf %470, %465 : vector<8x128xf32>
    %472 = arith.addf %469, %471 : vector<8x128xf32>
    %473 = vector.extract_strided_slice %463 {offsets = [0, 128], sizes = [8, 128], strides = [1, 1]} : vector<8x384xf32> to vector<8x128xf32>
    %474 = arith.mulf %473, %437 : vector<8x128xf32>
    %475 = vector.extract_strided_slice %463 {offsets = [0, 0], sizes = [8, 128], strides = [1, 1]} : vector<8x384xf32> to vector<8x128xf32>
    %476 = arith.mulf %475, %467 : vector<8x128xf32>
    %477 = arith.addf %474, %476 : vector<8x128xf32>
    %478 = vector.extract_strided_slice %457 {offsets = [0, 256], sizes = [8, 128], strides = [1, 1]} : vector<8x384xf32> to vector<8x128xf32>
    %479 = math.tanh %472 : vector<8x128xf32>
    %480 = arith.mulf %478, %479 : vector<8x128xf32>
    %481 = vector.extract_strided_slice %463 {offsets = [0, 256], sizes = [8, 128], strides = [1, 1]} : vector<8x384xf32> to vector<8x128xf32>
    %482 = math.tanh %477 : vector<8x128xf32>
    %483 = arith.mulf %481, %482 : vector<8x128xf32>
    %c2_179 = arith.constant 2 : index
    %c0_180 = arith.constant 0 : index
    %c0_181 = arith.constant 0 : index
    %484 = vector.load %arg11[%c2_179, %c0_180, %c0_181] : memref<8x8x1024xf32, #tpu.memory_space<vmem>>, vector<1x8x512xf32>
    %485 = vector.shape_cast %484 : vector<1x8x512xf32> to vector<8x512xf32>
    %cst_182 = arith.constant dense<0.000000e+00> : vector<8x512xf32>
    %486 = tpu.matmul %480, %397, %cst_182 {dimension_numbers = #tpu.dot_dimension_numbers<[1], [0], [0], [1], [0, 0, 1, 1], [], []>} : vector<8x128xf32>, vector<128x512xf32>, vector<8x512xf32> -> vector<8x512xf32>
    %487 = arith.addf %485, %486 : vector<8x512xf32>
    %c5_183 = arith.constant 5 : index
    %c0_184 = arith.constant 0 : index
    %c512_185 = arith.constant 512 : index
    %488 = vector.load %arg11[%c5_183, %c0_184, %c512_185] : memref<8x8x1024xf32, #tpu.memory_space<vmem>>, vector<1x8x512xf32>
    %489 = vector.shape_cast %488 : vector<1x8x512xf32> to vector<8x512xf32>
    %cst_186 = arith.constant dense<0.000000e+00> : vector<8x512xf32>
    %490 = tpu.matmul %483, %399, %cst_186 {dimension_numbers = #tpu.dot_dimension_numbers<[1], [0], [0], [1], [0, 0, 1, 1], [], []>} : vector<8x128xf32>, vector<128x512xf32>, vector<8x512xf32> -> vector<8x512xf32>
    %491 = arith.addf %489, %490 : vector<8x512xf32>
    %492 = vector.extract_strided_slice %487 {offsets = [0, 0], sizes = [8, 384], strides = [1, 1]} : vector<8x512xf32> to vector<8x384xf32>
    %493 = arith.negf %492 : vector<8x384xf32>
    %494 = math.exp %493 : vector<8x384xf32>
    %cst_187 = arith.constant 1.000000e+00 : f32
    %495 = vector.broadcast %cst_187 : f32 to vector<8x384xf32>
    %496 = arith.addf %495, %494 : vector<8x384xf32>
    %497 = arith.divf %495, %496 : vector<8x384xf32>
    %498 = vector.extract_strided_slice %491 {offsets = [0, 0], sizes = [8, 384], strides = [1, 1]} : vector<8x512xf32> to vector<8x384xf32>
    %499 = arith.negf %498 : vector<8x384xf32>
    %500 = math.exp %499 : vector<8x384xf32>
    %cst_188 = arith.constant 1.000000e+00 : f32
    %501 = vector.broadcast %cst_188 : f32 to vector<8x384xf32>
    %502 = arith.addf %501, %500 : vector<8x384xf32>
    %503 = arith.divf %501, %502 : vector<8x384xf32>
    %504 = vector.extract_strided_slice %487 {offsets = [0, 384], sizes = [8, 128], strides = [1, 1]} : vector<8x512xf32> to vector<8x128xf32>
    %505 = math.tanh %504 : vector<8x128xf32>
    %506 = vector.extract_strided_slice %491 {offsets = [0, 384], sizes = [8, 128], strides = [1, 1]} : vector<8x512xf32> to vector<8x128xf32>
    %507 = math.tanh %506 : vector<8x128xf32>
    %508 = vector.extract_strided_slice %497 {offsets = [0, 128], sizes = [8, 128], strides = [1, 1]} : vector<8x384xf32> to vector<8x128xf32>
    %509 = arith.mulf %508, %472 : vector<8x128xf32>
    %510 = vector.extract_strided_slice %497 {offsets = [0, 0], sizes = [8, 128], strides = [1, 1]} : vector<8x384xf32> to vector<8x128xf32>
    %511 = arith.mulf %510, %505 : vector<8x128xf32>
    %512 = arith.addf %509, %511 : vector<8x128xf32>
    %513 = vector.extract_strided_slice %503 {offsets = [0, 128], sizes = [8, 128], strides = [1, 1]} : vector<8x384xf32> to vector<8x128xf32>
    %514 = arith.mulf %513, %477 : vector<8x128xf32>
    %515 = vector.extract_strided_slice %503 {offsets = [0, 0], sizes = [8, 128], strides = [1, 1]} : vector<8x384xf32> to vector<8x128xf32>
    %516 = arith.mulf %515, %507 : vector<8x128xf32>
    %517 = arith.addf %514, %516 : vector<8x128xf32>
    %518 = vector.extract_strided_slice %497 {offsets = [0, 256], sizes = [8, 128], strides = [1, 1]} : vector<8x384xf32> to vector<8x128xf32>
    %519 = math.tanh %512 : vector<8x128xf32>
    %520 = arith.mulf %518, %519 : vector<8x128xf32>
    %521 = vector.extract_strided_slice %503 {offsets = [0, 256], sizes = [8, 128], strides = [1, 1]} : vector<8x384xf32> to vector<8x128xf32>
    %522 = math.tanh %517 : vector<8x128xf32>
    %523 = arith.mulf %521, %522 : vector<8x128xf32>
    %c3_189 = arith.constant 3 : index
    %c0_190 = arith.constant 0 : index
    %c0_191 = arith.constant 0 : index
    %524 = vector.load %arg11[%c3_189, %c0_190, %c0_191] : memref<8x8x1024xf32, #tpu.memory_space<vmem>>, vector<1x8x512xf32>
    %525 = vector.shape_cast %524 : vector<1x8x512xf32> to vector<8x512xf32>
    %cst_192 = arith.constant dense<0.000000e+00> : vector<8x512xf32>
    %526 = tpu.matmul %520, %397, %cst_192 {dimension_numbers = #tpu.dot_dimension_numbers<[1], [0], [0], [1], [0, 0, 1, 1], [], []>} : vector<8x128xf32>, vector<128x512xf32>, vector<8x512xf32> -> vector<8x512xf32>
    %527 = arith.addf %525, %526 : vector<8x512xf32>
    %c4_193 = arith.constant 4 : index
    %c0_194 = arith.constant 0 : index
    %c512_195 = arith.constant 512 : index
    %528 = vector.load %arg11[%c4_193, %c0_194, %c512_195] : memref<8x8x1024xf32, #tpu.memory_space<vmem>>, vector<1x8x512xf32>
    %529 = vector.shape_cast %528 : vector<1x8x512xf32> to vector<8x512xf32>
    %cst_196 = arith.constant dense<0.000000e+00> : vector<8x512xf32>
    %530 = tpu.matmul %523, %399, %cst_196 {dimension_numbers = #tpu.dot_dimension_numbers<[1], [0], [0], [1], [0, 0, 1, 1], [], []>} : vector<8x128xf32>, vector<128x512xf32>, vector<8x512xf32> -> vector<8x512xf32>
    %531 = arith.addf %529, %530 : vector<8x512xf32>
    %532 = vector.extract_strided_slice %527 {offsets = [0, 0], sizes = [8, 384], strides = [1, 1]} : vector<8x512xf32> to vector<8x384xf32>
    %533 = arith.negf %532 : vector<8x384xf32>
    %534 = math.exp %533 : vector<8x384xf32>
    %cst_197 = arith.constant 1.000000e+00 : f32
    %535 = vector.broadcast %cst_197 : f32 to vector<8x384xf32>
    %536 = arith.addf %535, %534 : vector<8x384xf32>
    %537 = arith.divf %535, %536 : vector<8x384xf32>
    %538 = vector.extract_strided_slice %531 {offsets = [0, 0], sizes = [8, 384], strides = [1, 1]} : vector<8x512xf32> to vector<8x384xf32>
    %539 = arith.negf %538 : vector<8x384xf32>
    %540 = math.exp %539 : vector<8x384xf32>
    %cst_198 = arith.constant 1.000000e+00 : f32
    %541 = vector.broadcast %cst_198 : f32 to vector<8x384xf32>
    %542 = arith.addf %541, %540 : vector<8x384xf32>
    %543 = arith.divf %541, %542 : vector<8x384xf32>
    %544 = vector.extract_strided_slice %527 {offsets = [0, 384], sizes = [8, 128], strides = [1, 1]} : vector<8x512xf32> to vector<8x128xf32>
    %545 = math.tanh %544 : vector<8x128xf32>
    %546 = vector.extract_strided_slice %531 {offsets = [0, 384], sizes = [8, 128], strides = [1, 1]} : vector<8x512xf32> to vector<8x128xf32>
    %547 = math.tanh %546 : vector<8x128xf32>
    %548 = vector.extract_strided_slice %537 {offsets = [0, 128], sizes = [8, 128], strides = [1, 1]} : vector<8x384xf32> to vector<8x128xf32>
    %549 = arith.mulf %548, %512 : vector<8x128xf32>
    %550 = vector.extract_strided_slice %537 {offsets = [0, 0], sizes = [8, 128], strides = [1, 1]} : vector<8x384xf32> to vector<8x128xf32>
    %551 = arith.mulf %550, %545 : vector<8x128xf32>
    %552 = arith.addf %549, %551 : vector<8x128xf32>
    %553 = vector.extract_strided_slice %543 {offsets = [0, 128], sizes = [8, 128], strides = [1, 1]} : vector<8x384xf32> to vector<8x128xf32>
    %554 = arith.mulf %553, %517 : vector<8x128xf32>
    %555 = vector.extract_strided_slice %543 {offsets = [0, 0], sizes = [8, 128], strides = [1, 1]} : vector<8x384xf32> to vector<8x128xf32>
    %556 = arith.mulf %555, %547 : vector<8x128xf32>
    %557 = arith.addf %554, %556 : vector<8x128xf32>
    %558 = vector.extract_strided_slice %537 {offsets = [0, 256], sizes = [8, 128], strides = [1, 1]} : vector<8x384xf32> to vector<8x128xf32>
    %559 = math.tanh %552 : vector<8x128xf32>
    %560 = arith.mulf %558, %559 : vector<8x128xf32>
    %561 = vector.extract_strided_slice %543 {offsets = [0, 256], sizes = [8, 128], strides = [1, 1]} : vector<8x384xf32> to vector<8x128xf32>
    %562 = math.tanh %557 : vector<8x128xf32>
    %563 = arith.mulf %561, %562 : vector<8x128xf32>
    %c4_199 = arith.constant 4 : index
    %c0_200 = arith.constant 0 : index
    %c0_201 = arith.constant 0 : index
    %564 = vector.load %arg11[%c4_199, %c0_200, %c0_201] : memref<8x8x1024xf32, #tpu.memory_space<vmem>>, vector<1x8x512xf32>
    %565 = vector.shape_cast %564 : vector<1x8x512xf32> to vector<8x512xf32>
    %cst_202 = arith.constant dense<0.000000e+00> : vector<8x512xf32>
    %566 = tpu.matmul %560, %397, %cst_202 {dimension_numbers = #tpu.dot_dimension_numbers<[1], [0], [0], [1], [0, 0, 1, 1], [], []>} : vector<8x128xf32>, vector<128x512xf32>, vector<8x512xf32> -> vector<8x512xf32>
    %567 = arith.addf %565, %566 : vector<8x512xf32>
    %c3_203 = arith.constant 3 : index
    %c0_204 = arith.constant 0 : index
    %c512_205 = arith.constant 512 : index
    %568 = vector.load %arg11[%c3_203, %c0_204, %c512_205] : memref<8x8x1024xf32, #tpu.memory_space<vmem>>, vector<1x8x512xf32>
    %569 = vector.shape_cast %568 : vector<1x8x512xf32> to vector<8x512xf32>
    %cst_206 = arith.constant dense<0.000000e+00> : vector<8x512xf32>
    %570 = tpu.matmul %563, %399, %cst_206 {dimension_numbers = #tpu.dot_dimension_numbers<[1], [0], [0], [1], [0, 0, 1, 1], [], []>} : vector<8x128xf32>, vector<128x512xf32>, vector<8x512xf32> -> vector<8x512xf32>
    %571 = arith.addf %569, %570 : vector<8x512xf32>
    %572 = vector.extract_strided_slice %567 {offsets = [0, 0], sizes = [8, 384], strides = [1, 1]} : vector<8x512xf32> to vector<8x384xf32>
    %573 = arith.negf %572 : vector<8x384xf32>
    %574 = math.exp %573 : vector<8x384xf32>
    %cst_207 = arith.constant 1.000000e+00 : f32
    %575 = vector.broadcast %cst_207 : f32 to vector<8x384xf32>
    %576 = arith.addf %575, %574 : vector<8x384xf32>
    %577 = arith.divf %575, %576 : vector<8x384xf32>
    %578 = vector.extract_strided_slice %571 {offsets = [0, 0], sizes = [8, 384], strides = [1, 1]} : vector<8x512xf32> to vector<8x384xf32>
    %579 = arith.negf %578 : vector<8x384xf32>
    %580 = math.exp %579 : vector<8x384xf32>
    %cst_208 = arith.constant 1.000000e+00 : f32
    %581 = vector.broadcast %cst_208 : f32 to vector<8x384xf32>
    %582 = arith.addf %581, %580 : vector<8x384xf32>
    %583 = arith.divf %581, %582 : vector<8x384xf32>
    %584 = vector.extract_strided_slice %567 {offsets = [0, 384], sizes = [8, 128], strides = [1, 1]} : vector<8x512xf32> to vector<8x128xf32>
    %585 = math.tanh %584 : vector<8x128xf32>
    %586 = vector.extract_strided_slice %571 {offsets = [0, 384], sizes = [8, 128], strides = [1, 1]} : vector<8x512xf32> to vector<8x128xf32>
    %587 = math.tanh %586 : vector<8x128xf32>
    %588 = vector.extract_strided_slice %577 {offsets = [0, 128], sizes = [8, 128], strides = [1, 1]} : vector<8x384xf32> to vector<8x128xf32>
    %589 = arith.mulf %588, %552 : vector<8x128xf32>
    %590 = vector.extract_strided_slice %577 {offsets = [0, 0], sizes = [8, 128], strides = [1, 1]} : vector<8x384xf32> to vector<8x128xf32>
    %591 = arith.mulf %590, %585 : vector<8x128xf32>
    %592 = arith.addf %589, %591 : vector<8x128xf32>
    %593 = vector.extract_strided_slice %583 {offsets = [0, 128], sizes = [8, 128], strides = [1, 1]} : vector<8x384xf32> to vector<8x128xf32>
    %594 = arith.mulf %593, %557 : vector<8x128xf32>
    %595 = vector.extract_strided_slice %583 {offsets = [0, 0], sizes = [8, 128], strides = [1, 1]} : vector<8x384xf32> to vector<8x128xf32>
    %596 = arith.mulf %595, %587 : vector<8x128xf32>
    %597 = arith.addf %594, %596 : vector<8x128xf32>
    %598 = vector.extract_strided_slice %577 {offsets = [0, 256], sizes = [8, 128], strides = [1, 1]} : vector<8x384xf32> to vector<8x128xf32>
    %599 = math.tanh %592 : vector<8x128xf32>
    %600 = arith.mulf %598, %599 : vector<8x128xf32>
    %601 = vector.extract_strided_slice %583 {offsets = [0, 256], sizes = [8, 128], strides = [1, 1]} : vector<8x384xf32> to vector<8x128xf32>
    %602 = math.tanh %597 : vector<8x128xf32>
    %603 = arith.mulf %601, %602 : vector<8x128xf32>
    %c5_209 = arith.constant 5 : index
    %c0_210 = arith.constant 0 : index
    %c0_211 = arith.constant 0 : index
    %604 = vector.load %arg11[%c5_209, %c0_210, %c0_211] : memref<8x8x1024xf32, #tpu.memory_space<vmem>>, vector<1x8x512xf32>
    %605 = vector.shape_cast %604 : vector<1x8x512xf32> to vector<8x512xf32>
    %cst_212 = arith.constant dense<0.000000e+00> : vector<8x512xf32>
    %606 = tpu.matmul %600, %397, %cst_212 {dimension_numbers = #tpu.dot_dimension_numbers<[1], [0], [0], [1], [0, 0, 1, 1], [], []>} : vector<8x128xf32>, vector<128x512xf32>, vector<8x512xf32> -> vector<8x512xf32>
    %607 = arith.addf %605, %606 : vector<8x512xf32>
    %c2_213 = arith.constant 2 : index
    %c0_214 = arith.constant 0 : index
    %c512_215 = arith.constant 512 : index
    %608 = vector.load %arg11[%c2_213, %c0_214, %c512_215] : memref<8x8x1024xf32, #tpu.memory_space<vmem>>, vector<1x8x512xf32>
    %609 = vector.shape_cast %608 : vector<1x8x512xf32> to vector<8x512xf32>
    %cst_216 = arith.constant dense<0.000000e+00> : vector<8x512xf32>
    %610 = tpu.matmul %603, %399, %cst_216 {dimension_numbers = #tpu.dot_dimension_numbers<[1], [0], [0], [1], [0, 0, 1, 1], [], []>} : vector<8x128xf32>, vector<128x512xf32>, vector<8x512xf32> -> vector<8x512xf32>
    %611 = arith.addf %609, %610 : vector<8x512xf32>
    %612 = vector.extract_strided_slice %607 {offsets = [0, 0], sizes = [8, 384], strides = [1, 1]} : vector<8x512xf32> to vector<8x384xf32>
    %613 = arith.negf %612 : vector<8x384xf32>
    %614 = math.exp %613 : vector<8x384xf32>
    %cst_217 = arith.constant 1.000000e+00 : f32
    %615 = vector.broadcast %cst_217 : f32 to vector<8x384xf32>
    %616 = arith.addf %615, %614 : vector<8x384xf32>
    %617 = arith.divf %615, %616 : vector<8x384xf32>
    %618 = vector.extract_strided_slice %611 {offsets = [0, 0], sizes = [8, 384], strides = [1, 1]} : vector<8x512xf32> to vector<8x384xf32>
    %619 = arith.negf %618 : vector<8x384xf32>
    %620 = math.exp %619 : vector<8x384xf32>
    %cst_218 = arith.constant 1.000000e+00 : f32
    %621 = vector.broadcast %cst_218 : f32 to vector<8x384xf32>
    %622 = arith.addf %621, %620 : vector<8x384xf32>
    %623 = arith.divf %621, %622 : vector<8x384xf32>
    %624 = vector.extract_strided_slice %607 {offsets = [0, 384], sizes = [8, 128], strides = [1, 1]} : vector<8x512xf32> to vector<8x128xf32>
    %625 = math.tanh %624 : vector<8x128xf32>
    %626 = vector.extract_strided_slice %611 {offsets = [0, 384], sizes = [8, 128], strides = [1, 1]} : vector<8x512xf32> to vector<8x128xf32>
    %627 = math.tanh %626 : vector<8x128xf32>
    %628 = vector.extract_strided_slice %617 {offsets = [0, 128], sizes = [8, 128], strides = [1, 1]} : vector<8x384xf32> to vector<8x128xf32>
    %629 = arith.mulf %628, %592 : vector<8x128xf32>
    %630 = vector.extract_strided_slice %617 {offsets = [0, 0], sizes = [8, 128], strides = [1, 1]} : vector<8x384xf32> to vector<8x128xf32>
    %631 = arith.mulf %630, %625 : vector<8x128xf32>
    %632 = arith.addf %629, %631 : vector<8x128xf32>
    %633 = vector.extract_strided_slice %623 {offsets = [0, 128], sizes = [8, 128], strides = [1, 1]} : vector<8x384xf32> to vector<8x128xf32>
    %634 = arith.mulf %633, %597 : vector<8x128xf32>
    %635 = vector.extract_strided_slice %623 {offsets = [0, 0], sizes = [8, 128], strides = [1, 1]} : vector<8x384xf32> to vector<8x128xf32>
    %636 = arith.mulf %635, %627 : vector<8x128xf32>
    %637 = arith.addf %634, %636 : vector<8x128xf32>
    %638 = vector.extract_strided_slice %617 {offsets = [0, 256], sizes = [8, 128], strides = [1, 1]} : vector<8x384xf32> to vector<8x128xf32>
    %639 = math.tanh %632 : vector<8x128xf32>
    %640 = arith.mulf %638, %639 : vector<8x128xf32>
    %641 = vector.extract_strided_slice %623 {offsets = [0, 256], sizes = [8, 128], strides = [1, 1]} : vector<8x384xf32> to vector<8x128xf32>
    %642 = math.tanh %637 : vector<8x128xf32>
    %643 = arith.mulf %641, %642 : vector<8x128xf32>
    %c6_219 = arith.constant 6 : index
    %c0_220 = arith.constant 0 : index
    %c0_221 = arith.constant 0 : index
    %644 = vector.load %arg11[%c6_219, %c0_220, %c0_221] : memref<8x8x1024xf32, #tpu.memory_space<vmem>>, vector<1x8x512xf32>
    %645 = vector.shape_cast %644 : vector<1x8x512xf32> to vector<8x512xf32>
    %cst_222 = arith.constant dense<0.000000e+00> : vector<8x512xf32>
    %646 = tpu.matmul %640, %397, %cst_222 {dimension_numbers = #tpu.dot_dimension_numbers<[1], [0], [0], [1], [0, 0, 1, 1], [], []>} : vector<8x128xf32>, vector<128x512xf32>, vector<8x512xf32> -> vector<8x512xf32>
    %647 = arith.addf %645, %646 : vector<8x512xf32>
    %c1_223 = arith.constant 1 : index
    %c0_224 = arith.constant 0 : index
    %c512_225 = arith.constant 512 : index
    %648 = vector.load %arg11[%c1_223, %c0_224, %c512_225] : memref<8x8x1024xf32, #tpu.memory_space<vmem>>, vector<1x8x512xf32>
    %649 = vector.shape_cast %648 : vector<1x8x512xf32> to vector<8x512xf32>
    %cst_226 = arith.constant dense<0.000000e+00> : vector<8x512xf32>
    %650 = tpu.matmul %643, %399, %cst_226 {dimension_numbers = #tpu.dot_dimension_numbers<[1], [0], [0], [1], [0, 0, 1, 1], [], []>} : vector<8x128xf32>, vector<128x512xf32>, vector<8x512xf32> -> vector<8x512xf32>
    %651 = arith.addf %649, %650 : vector<8x512xf32>
    %652 = vector.extract_strided_slice %647 {offsets = [0, 0], sizes = [8, 384], strides = [1, 1]} : vector<8x512xf32> to vector<8x384xf32>
    %653 = arith.negf %652 : vector<8x384xf32>
    %654 = math.exp %653 : vector<8x384xf32>
    %cst_227 = arith.constant 1.000000e+00 : f32
    %655 = vector.broadcast %cst_227 : f32 to vector<8x384xf32>
    %656 = arith.addf %655, %654 : vector<8x384xf32>
    %657 = arith.divf %655, %656 : vector<8x384xf32>
    %658 = vector.extract_strided_slice %651 {offsets = [0, 0], sizes = [8, 384], strides = [1, 1]} : vector<8x512xf32> to vector<8x384xf32>
    %659 = arith.negf %658 : vector<8x384xf32>
    %660 = math.exp %659 : vector<8x384xf32>
    %cst_228 = arith.constant 1.000000e+00 : f32
    %661 = vector.broadcast %cst_228 : f32 to vector<8x384xf32>
    %662 = arith.addf %661, %660 : vector<8x384xf32>
    %663 = arith.divf %661, %662 : vector<8x384xf32>
    %664 = vector.extract_strided_slice %647 {offsets = [0, 384], sizes = [8, 128], strides = [1, 1]} : vector<8x512xf32> to vector<8x128xf32>
    %665 = math.tanh %664 : vector<8x128xf32>
    %666 = vector.extract_strided_slice %651 {offsets = [0, 384], sizes = [8, 128], strides = [1, 1]} : vector<8x512xf32> to vector<8x128xf32>
    %667 = math.tanh %666 : vector<8x128xf32>
    %668 = vector.extract_strided_slice %657 {offsets = [0, 128], sizes = [8, 128], strides = [1, 1]} : vector<8x384xf32> to vector<8x128xf32>
    %669 = arith.mulf %668, %632 : vector<8x128xf32>
    %670 = vector.extract_strided_slice %657 {offsets = [0, 0], sizes = [8, 128], strides = [1, 1]} : vector<8x384xf32> to vector<8x128xf32>
    %671 = arith.mulf %670, %665 : vector<8x128xf32>
    %672 = arith.addf %669, %671 : vector<8x128xf32>
    %673 = vector.extract_strided_slice %663 {offsets = [0, 128], sizes = [8, 128], strides = [1, 1]} : vector<8x384xf32> to vector<8x128xf32>
    %674 = arith.mulf %673, %637 : vector<8x128xf32>
    %675 = vector.extract_strided_slice %663 {offsets = [0, 0], sizes = [8, 128], strides = [1, 1]} : vector<8x384xf32> to vector<8x128xf32>
    %676 = arith.mulf %675, %667 : vector<8x128xf32>
    %677 = arith.addf %674, %676 : vector<8x128xf32>
    %678 = vector.extract_strided_slice %657 {offsets = [0, 256], sizes = [8, 128], strides = [1, 1]} : vector<8x384xf32> to vector<8x128xf32>
    %679 = math.tanh %672 : vector<8x128xf32>
    %680 = arith.mulf %678, %679 : vector<8x128xf32>
    %681 = vector.extract_strided_slice %663 {offsets = [0, 256], sizes = [8, 128], strides = [1, 1]} : vector<8x384xf32> to vector<8x128xf32>
    %682 = math.tanh %677 : vector<8x128xf32>
    %683 = arith.mulf %681, %682 : vector<8x128xf32>
    %c7_229 = arith.constant 7 : index
    %c0_230 = arith.constant 0 : index
    %c0_231 = arith.constant 0 : index
    %684 = vector.load %arg11[%c7_229, %c0_230, %c0_231] : memref<8x8x1024xf32, #tpu.memory_space<vmem>>, vector<1x8x512xf32>
    %685 = vector.shape_cast %684 : vector<1x8x512xf32> to vector<8x512xf32>
    %cst_232 = arith.constant dense<0.000000e+00> : vector<8x512xf32>
    %686 = tpu.matmul %680, %397, %cst_232 {dimension_numbers = #tpu.dot_dimension_numbers<[1], [0], [0], [1], [0, 0, 1, 1], [], []>} : vector<8x128xf32>, vector<128x512xf32>, vector<8x512xf32> -> vector<8x512xf32>
    %687 = arith.addf %685, %686 : vector<8x512xf32>
    %c0_233 = arith.constant 0 : index
    %c0_234 = arith.constant 0 : index
    %c512_235 = arith.constant 512 : index
    %688 = vector.load %arg11[%c0_233, %c0_234, %c512_235] : memref<8x8x1024xf32, #tpu.memory_space<vmem>>, vector<1x8x512xf32>
    %689 = vector.shape_cast %688 : vector<1x8x512xf32> to vector<8x512xf32>
    %cst_236 = arith.constant dense<0.000000e+00> : vector<8x512xf32>
    %690 = tpu.matmul %683, %399, %cst_236 {dimension_numbers = #tpu.dot_dimension_numbers<[1], [0], [0], [1], [0, 0, 1, 1], [], []>} : vector<8x128xf32>, vector<128x512xf32>, vector<8x512xf32> -> vector<8x512xf32>
    %691 = arith.addf %689, %690 : vector<8x512xf32>
    %692 = vector.extract_strided_slice %687 {offsets = [0, 0], sizes = [8, 384], strides = [1, 1]} : vector<8x512xf32> to vector<8x384xf32>
    %693 = arith.negf %692 : vector<8x384xf32>
    %694 = math.exp %693 : vector<8x384xf32>
    %cst_237 = arith.constant 1.000000e+00 : f32
    %695 = vector.broadcast %cst_237 : f32 to vector<8x384xf32>
    %696 = arith.addf %695, %694 : vector<8x384xf32>
    %697 = arith.divf %695, %696 : vector<8x384xf32>
    %698 = vector.extract_strided_slice %691 {offsets = [0, 0], sizes = [8, 384], strides = [1, 1]} : vector<8x512xf32> to vector<8x384xf32>
    %699 = arith.negf %698 : vector<8x384xf32>
    %700 = math.exp %699 : vector<8x384xf32>
    %cst_238 = arith.constant 1.000000e+00 : f32
    %701 = vector.broadcast %cst_238 : f32 to vector<8x384xf32>
    %702 = arith.addf %701, %700 : vector<8x384xf32>
    %703 = arith.divf %701, %702 : vector<8x384xf32>
    %704 = vector.extract_strided_slice %687 {offsets = [0, 384], sizes = [8, 128], strides = [1, 1]} : vector<8x512xf32> to vector<8x128xf32>
    %705 = math.tanh %704 : vector<8x128xf32>
    %706 = vector.extract_strided_slice %691 {offsets = [0, 384], sizes = [8, 128], strides = [1, 1]} : vector<8x512xf32> to vector<8x128xf32>
    %707 = math.tanh %706 : vector<8x128xf32>
    %708 = vector.extract_strided_slice %697 {offsets = [0, 128], sizes = [8, 128], strides = [1, 1]} : vector<8x384xf32> to vector<8x128xf32>
    %709 = arith.mulf %708, %672 : vector<8x128xf32>
    %710 = vector.extract_strided_slice %697 {offsets = [0, 0], sizes = [8, 128], strides = [1, 1]} : vector<8x384xf32> to vector<8x128xf32>
    %711 = arith.mulf %710, %705 : vector<8x128xf32>
    %712 = arith.addf %709, %711 : vector<8x128xf32>
    %713 = vector.extract_strided_slice %703 {offsets = [0, 128], sizes = [8, 128], strides = [1, 1]} : vector<8x384xf32> to vector<8x128xf32>
    %714 = arith.mulf %713, %677 : vector<8x128xf32>
    %715 = vector.extract_strided_slice %703 {offsets = [0, 0], sizes = [8, 128], strides = [1, 1]} : vector<8x384xf32> to vector<8x128xf32>
    %716 = arith.mulf %715, %707 : vector<8x128xf32>
    %717 = arith.addf %714, %716 : vector<8x128xf32>
    %718 = vector.extract_strided_slice %697 {offsets = [0, 256], sizes = [8, 128], strides = [1, 1]} : vector<8x384xf32> to vector<8x128xf32>
    %719 = math.tanh %712 : vector<8x128xf32>
    %720 = arith.mulf %718, %719 : vector<8x128xf32>
    %721 = vector.extract_strided_slice %703 {offsets = [0, 256], sizes = [8, 128], strides = [1, 1]} : vector<8x384xf32> to vector<8x128xf32>
    %722 = math.tanh %717 : vector<8x128xf32>
    %723 = arith.mulf %721, %722 : vector<8x128xf32>
    %c0_239 = arith.constant 0 : index
    %c0_240 = arith.constant 0 : index
    %c0_241 = arith.constant 0 : index
    %724 = vector.load %arg7[%c0_239, %c0_240, %c0_241] : memref<2x128x10xf32, #tpu.memory_space<vmem>>, vector<1x128x10xf32>
    %725 = vector.shape_cast %724 : vector<1x128x10xf32> to vector<128x10xf32>
    %cst_242 = arith.constant dense<0.000000e+00> : vector<8x10xf32>
    %726 = tpu.matmul %720, %725, %cst_242 {dimension_numbers = #tpu.dot_dimension_numbers<[1], [0], [0], [1], [0, 0, 1, 1], [], []>} : vector<8x128xf32>, vector<128x10xf32>, vector<8x10xf32> -> vector<8x10xf32>
    %c1_243 = arith.constant 1 : index
    %c0_244 = arith.constant 0 : index
    %c0_245 = arith.constant 0 : index
    %727 = vector.load %arg7[%c1_243, %c0_244, %c0_245] : memref<2x128x10xf32, #tpu.memory_space<vmem>>, vector<1x128x10xf32>
    %728 = vector.shape_cast %727 : vector<1x128x10xf32> to vector<128x10xf32>
    %cst_246 = arith.constant dense<0.000000e+00> : vector<8x10xf32>
    %729 = tpu.matmul %723, %728, %cst_246 {dimension_numbers = #tpu.dot_dimension_numbers<[1], [0], [0], [1], [0, 0, 1, 1], [], []>} : vector<8x128xf32>, vector<128x10xf32>, vector<8x10xf32> -> vector<8x10xf32>
    %730 = arith.addf %726, %729 : vector<8x10xf32>
    %c0_247 = arith.constant 0 : index
    %c0_248 = arith.constant 0 : index
    %731 = vector.load %arg8[%c0_247, %c0_248] : memref<1x10xf32, #tpu.memory_space<vmem>>, vector<1x10xf32>
    %732 = vector.broadcast %731 : vector<1x10xf32> to vector<8x10xf32>
    %733 = arith.addf %730, %732 : vector<8x10xf32>
    %c0_249 = arith.constant 0 : index
    %c0_250 = arith.constant 0 : index
    %734 = vector.load %arg9[%c0_249, %c0_250] : memref<8x10xf32, #tpu.memory_space<vmem>>, vector<8x10xf32>
    tpu.vector_store %arg9[%c0_249, %c0_250], %733 {strides = array<i32>} : memref<8x10xf32, #tpu.memory_space<vmem>>, vector<8x10xf32>,
    return
  }
}

</mosaic_0001>

<bundles_post_ra>
// kernel: birnn_forward.1
= control target key start
LH: loop header
LB: loop body
LE: loop exit
PB: predicated region body
PF: predicated region fallthrough
CT: control target
= control target key end

     0   :  { %14 = vsyncpa [#allocation5], 0  ;;  %s13424_s0 = inlined_call_operand.vmem [shape: f32[8,8,32], index: 0, kind: input, shape index: {}]   ;;  %s13425_s1 = inlined_call_operand.vmem [shape: f32[32,1024], index: 1, kind: input, shape index: {}]   ;;  %s13426_s2 = inlined_call_operand.hbm [shape: f32[2,128,512], index: 2, kind: input, shape index: {}]   ;;  %s13427_s3 = inlined_call_operand.vmem [shape: f32[1,1024], index: 3, kind: input, shape index: {}]   ;;  %s13428_s4 = inlined_call_operand.hbm [shape: f32[256,1024], index: 4, kind: input, shape index: {}]   ;;  %s13429_s5 = inlined_call_operand.hbm [shape: f32[2,128,512], index: 5, kind: input, shape index: {}]   ;;  %s13430_s6 = inlined_call_operand.vmem [shape: f32[1,1024], index: 6, kind: input, shape index: {}]   ;;  %s13431_s7 = inlined_call_operand.vmem [shape: f32[2,128,10], index: 7, kind: input, shape index: {}]   ;;  %s13432_s8 = inlined_call_operand.vmem [shape: f32[1,10], index: 8, kind: input, shape index: {}]   ;;  %s13433_s9 = inlined_call_operand.vmem [shape: f32[8,10], index: 9, kind: output, shape index: {}]  }
   0x1   :  { %15 = vsyncpa [#allocation7], 0  ;;  %s11180_s30 = smov [#allocation6]   ;;  %s11110_s13 = scalar_lea.hbm %s13428_s4, 32768 }
   0x2   :  { %s39_s10 = sshll.u32 %s11180_s30, 4  ;;  %p11111_p0 = scmp.ne.s32.totalorder %s13428_s4, %s11110_s13  ;;  %s40_s10 = int_to_ptr.vmem [resolvable:$true] %s39_s10 }
   0x3   :  { %p11114_p1 = scmp.lt.u32.totalorder %s11110_s13, %s13428_s4 }
   0x5   :  { %p11116_p2 = pnand %p11114_p1, %p11111_p0 }
   0x7   :  { %11119 = shalt.err (!%p11116_p2)
}
   0x8   :  { %s11120_s18 = scalar_lea.vmem %s40_s10, 32768  ;;  %p11125_p4 = scmp.lt.s32.totalorder %s40_s10, %s40_s10 }
   0x9   :  { %p11121_p3 = scmp.ne.s32.totalorder %s40_s10, %s11120_s18  ;;  %p11126_p5 = scmp.lt.s32.totalorder %s11120_s18, %s11120_s18 }
   0xb   :  { %p11127_p6 = por %p11126_p5, %p11125_p4 }
   0xd   :  { %p11128_p7 = pnand %p11127_p6, %p11121_p3 }
   0xf   :  { %11131 = shalt.err (!%p11128_p7)
}
  0x10   :  { %s11181_s19 = smov 1024   ;;  %s11182_s20 = smov 64  }
  0x11   :  { %45 = dma.hbm_to_vmem [thread:$0]  %s13428_s4, 32768, %s40_s10, [#allocation7], %s11181_s19, %s11181_s19, %s11182_s20  }
  0x12   :  { %s11183_s23 = smov [#allocation4]   ;;  %s11132_s27 = scalar_lea.hbm %s13426_s2, 16384 }
  0x13   :  { %s25_s24 = sshll.u32 %s11183_s23, 4  ;;  %p11133_p8 = scmp.ne.s32.totalorder %s13426_s2, %s11132_s27  ;;  %s26_s24 = int_to_ptr.vmem [resolvable:$true] %s25_s24 }
  0x14   :  { %p11136_p9 = scmp.lt.u32.totalorder %s11132_s27, %s13426_s2 }
  0x16   :  { %p11138_p10 = pnand %p11136_p9, %p11133_p8 }
  0x18   :  { %11141 = shalt.err (!%p11138_p10)
}
  0x19   :  { %s11142_s12 = scalar_lea.vmem %s26_s24, 16384  ;;  %p11147_p12 = scmp.lt.s32.totalorder %s26_s24, %s26_s24 }
  0x1a   :  { %p11143_p11 = scmp.ne.s32.totalorder %s26_s24, %s11142_s12  ;;  %p11148_p13 = scmp.lt.s32.totalorder %s11142_s12, %s11142_s12 }
  0x1c   :  { %p11149_p0 = por %p11148_p13, %p11147_p12 }
  0x1e   :  { %p11150_p1 = pnand %p11149_p0, %p11143_p11 }
  0x20   :  { %11153 = shalt.err (!%p11150_p1)
}
  0x21   :  { %s11184_s4 = smov 512   ;;  %s11185_s10 = smov 32  }
  0x22   :  { %31 = dma.hbm_to_vmem [thread:$0]  %s13426_s2, 16384, %s26_s24, [#allocation5], %s11184_s4, %s11184_s4, %s11185_s10  }
  0x23   :  { %s11186_s15 = smov [#allocation8]   ;;  %s11154_s19 = scalar_lea.hbm %s13429_s5, 16384 }
  0x24   :  { %s51_s16 = sshll.u32 %s11186_s15, 4  ;;  %p11155_p2 = scmp.ne.s32.totalorder %s13429_s5, %s11154_s19  ;;  %s52_s16 = int_to_ptr.vmem [resolvable:$true] %s51_s16 }
  0x25   :  { %p11158_p3 = scmp.lt.u32.totalorder %s11154_s19, %s13429_s5 }
  0x27   :  { %p11160_p4 = pnand %p11158_p3, %p11155_p2 }
  0x29   :  { %11163 = shalt.err (!%p11160_p4)
}
  0x2a   :  { %s11164_s25 = scalar_lea.vmem %s52_s16, 16384  ;;  %p11169_p6 = scmp.lt.s32.totalorder %s52_s16, %s52_s16 }
  0x2b   :  { %p11165_p5 = scmp.ne.s32.totalorder %s52_s16, %s11164_s25  ;;  %p11170_p7 = scmp.lt.s32.totalorder %s11164_s25, %s11164_s25 }
  0x2d   :  { %p11171_p8 = por %p11170_p7, %p11169_p6 }
  0x2f   :  { %p11172_p9 = pnand %p11171_p8, %p11165_p5 }
  0x31   :  { %11175 = shalt.err (!%p11172_p9)
}
  0x32   :  { %57 = dma.hbm_to_vmem [thread:$0]  %s13429_s5, 16384, %s52_s16, [#allocation7], %s11184_s4, %s11184_s4, %s11185_s10  }
  0x33   :  { %11176 = dma.done.wait [#allocation5], 16384  }
  0x34   :  { %11177 = vsyncadd [#allocation5], 4294950912 }
  0x35   :  { %11178 = dma.done.wait [#allocation7], 49152  }
  0x36   :  { %11179 = vsyncadd [#allocation7], 4294918144  ;;  %v13434_v0 = vmov 0.0   ;;  %v82_v1 = vld [vmem:[%s13425_s1 + $0x8] sm:$0xff]  ;;  %v84_v3 = vld [vmem:[%s13425_s1 + $0x18] sm:$0xff]  ;;  %vm113_vm0 = vcmask 261120  }
  0x37   :  { %202 = vmatprep.mubr.f32.mxu0 %v13434_v0  ;;  %315 = vmatprep.mubr.f32.mxu1 %v13434_v0  ;;  %v90_v2 = vld [vmem:[%s13425_s1 + $0x48] sm:$0xff]  ;;  %v92_v5 = vld [vmem:[%s13425_s1 + $0x58] sm:$0xff]  ;;  %v81_v6 = vld [vmem:[%s13425_s1] sm:$0xff]  ;;  %vm11189_vm1 = vmmov 0   ;;  %vm7691_vm2 = vcmask 80896  }
  0x38   :  { %v7948_v4 = vpack.c.bf16 %v90_v2, %v82_v1  ;;  %v89_v7 = vld [vmem:[%s13425_s1 + $0x40] sm:$0xff]  ;;  %v7956_v8 = vpack.c.bf16 %v92_v5, %v84_v3  ;;  %v83_v10 = vld [vmem:[%s13425_s1 + $0x10] sm:$0xff]  ;;  %v98_v12 = vld [vmem:[%s13425_s1 + $0x88] sm:$0xff] }
  0x39   :  { %v7950_v9 = vpack.c.bf16 %v89_v7, %v81_v6  ;;  %v91_v11 = vld [vmem:[%s13425_s1 + $0x50] sm:$0xff]  ;;  %v106_v14 = vld [vmem:[%s13425_s1 + $0xc8] sm:$0xff]  ;;  %v100_v15 = vld [vmem:[%s13425_s1 + $0x98] sm:$0xff] }
  0x3a   :  { %7949 = vmatprep.subr.bf16.mxu0 %v7948_v4  ;;  %v7958_v13 = vpack.c.bf16 %v91_v11, %v83_v10  ;;  %v108_v16 = vld [vmem:[%s13425_s1 + $0xd8] sm:$0xff]  ;;  %7957 = vmatprep.subr.bf16.mxu1 %v7956_v8  ;;  %v7952_v17 = vpack.c.bf16 %v106_v14, %v98_v12  ;;  %v97_v19 = vld [vmem:[%s13425_s1 + $0x80] sm:$0xff]  ;;  %v99_v21 = vld [vmem:[%s13425_s1 + $0x90] sm:$0xff] }
  0x3b   :  { %7951 = vmatpush1.bf16.msra.mxu0 %v7950_v9  ;;  %v7960_v18 = vpack.c.bf16 %v108_v16, %v100_v15  ;;  %v105_v20 = vld [vmem:[%s13425_s1 + $0xc0] sm:$0xff]  ;;  %v107_v23 = vld [vmem:[%s13425_s1 + $0xd0] sm:$0xff]  ;;  %v86_v24 = vld [vmem:[%s13425_s1 + $0x28] sm:$0xff] }
  0x3c   :  { %7959 = vmatpush1.bf16.msra.mxu1 %v7958_v13  ;;  %v7954_v22 = vpack.c.bf16 %v105_v20, %v97_v19  ;;  %7953 = vmatprep.subr.bf16.mxu0 %v7952_v17  ;;  %v7962_v25 = vpack.c.bf16 %v107_v23, %v99_v21  ;;  %v94_v26 = vld [vmem:[%s13425_s1 + $0x68] sm:$0xff]  ;;  %v85_v27 = vld [vmem:[%s13425_s1 + $0x20] sm:$0xff]  ;;  %v88_v32 = vld [vmem:[%s13425_s1 + $0x38] sm:$0xff] }
  0x3d   :  { %7961 = vmatprep.subr.bf16.mxu1 %v7960_v18  ;;  %v93_v28 = vld [vmem:[%s13425_s1 + $0x60] sm:$0xff]  ;;  %v7964_v29 = vpack.c.bf16 %v94_v26, %v86_v24  ;;  %v96_v33 = vld [vmem:[%s13425_s1 + $0x78] sm:$0xff]  ;;  %v102_v35 = vld [vmem:[%s13425_s1 + $0xa8] sm:$0xff] }
  0x3e   :  { %v11341_v30 = vld [vmem:[%s13424_s0] sm:$0xff]  ;;  %v7966_v31 = vpack.c.bf16 %v93_v28, %v85_v27  ;;  %v7972_v34 = vpack.c.bf16 %v96_v33, %v88_v32  ;;  %v110_v36 = vld [vmem:[%s13425_s1 + $0xe8] sm:$0xff]  ;;  %v87_v37 = vld [vmem:[%s13425_s1 + $0x30] sm:$0xff] }
  0x3f   :  { %7955 = vmatpush1.bf16.msra.mxu0 %v7954_v22  ;;  %v7968_v38 = vpack.c.bf16 %v110_v36, %v102_v35  ;;  %v95_v39 = vld [vmem:[%s13425_s1 + $0x70] sm:$0xff]  ;;  %v101_v40 = vld [vmem:[%s13425_s1 + $0xa0] sm:$0xff]  ;;  %v104_v43 = vld [vmem:[%s13425_s1 + $0xb8] sm:$0xff] }
  0x40   :  { %7963 = vmatpush1.bf16.msra.mxu1 %v7962_v25  ;;  %7965 = vmatprep.subr.bf16.mxu0 %v7964_v29  ;;  %v109_v41 = vld [vmem:[%s13425_s1 + $0xe0] sm:$0xff]  ;;  %v7974_v42 = vpack.c.bf16 %v95_v39, %v87_v37  ;;  %v11377_v44 = vld [vmem:[%s13424_s0 + $0x8] sm:$0xff]  ;;  %v112_v45 = vld [vmem:[%s13425_s1 + $0xf8] sm:$0xff] }
  0x41   :  { %7973 = vmatprep.subr.bf16.mxu1 %v7972_v34  ;;  %v103_v46 = vld [vmem:[%s13425_s1 + $0xb0] sm:$0xff]  ;;  %v7970_v47 = vpack.c.bf16 %v109_v41, %v101_v40  ;;  %v7976_v48 = vpack.c.bf16 %v112_v45, %v104_v43  ;;  %v761_v50 = vld [vmem:[#allocation4 + $0x8] sm:$0xff]  ;;  %v763_v54 = vld [vmem:[#allocation4 + $0x18] sm:$0xff] }
  0x42   :  { %7699 = vmatmul.mubr.msk.f32.vlgmr.msra.gmra.mrb[0].mxu0 %vm113_vm0, %v11341_v30  ;;  %v111_v49 = vld [vmem:[%s13425_s1 + $0xf0] sm:$0xff]  ;;  %v765_v51 = vld [vmem:[#allocation4 + $0x28] sm:$0xff]  ;;  %v767_v55 = vld [vmem:[#allocation4 + $0x38] sm:$0xff] }
  0x43   :  { %7707 = vmatmul.mubr.msk.f32.vlgmr.msra.gmra.mrb[0].mxu1 %vm113_vm0, %v11341_v30  ;;  %7967 = vmatpush1.bf16.msra.mxu0 %v7966_v31  ;;  %v7978_v52 = vpack.c.bf16 %v111_v49, %v103_v46  ;;  %v11390_v53 = vpack.c.bf16 %v765_v51, %v761_v50  ;;  %v11394_v56 = vpack.c.bf16 %v767_v55, %v763_v54  ;;  %v11402_v57 = vld [vmem:[%s13424_s0 + $0x10] sm:$0xff]  ;;  %v11415_v58 = vld [vmem:[%s13424_s0 + $0x18] sm:$0xff]  ;;  %v11426_v59 = vld [vmem:[%s13424_s0 + $0x20] sm:$0xff] }
  0x44   :  { %208 = vmatprep.mubr.f32.mxu0 %v13434_v0  ;;  %321 = vmatprep.mubr.f32.mxu1 %v13434_v0  ;;  %v11437_v60 = vld [vmem:[%s13424_s0 + $0x28] sm:$0xff]  ;;  %v11448_v61 = vld [vmem:[%s13424_s0 + $0x30] sm:$0xff]  ;;  %v11459_v62 = vld [vmem:[%s13424_s0 + $0x38] sm:$0xff] }
  0x45   :  { %7969 = vmatprep.subr.bf16.mxu0 %v7968_v38  ;;  %7975 = vmatpush1.bf16.msra.mxu1 %v7974_v42  ;;  %v760_v63 = vld [vmem:[#allocation4] sm:$0xff]  ;;  %v762_v2 = vld [vmem:[#allocation4 + $0x10] sm:$0xff]  ;;  %v769_v4 = vld [vmem:[#allocation4 + $0x48] sm:$0xff] }
  0x46   :  { %7700 = vmatmul.mubr.msk.f32.gmra.mrb[2].mxu0 %vm113_vm0, %v11377_v44  ;;  %7977 = vmatprep.subr.bf16.mxu1 %v7976_v48  ;;  %v764_v1 = vld [vmem:[#allocation4 + $0x20] sm:$0xff]  ;;  %v766_v3 = vld [vmem:[#allocation4 + $0x30] sm:$0xff]  ;;  %v773_v5 = vld [vmem:[#allocation4 + $0x68] sm:$0xff] }
  0x47   :  { %7708 = vmatmul.mubr.msk.f32.gmra.mrb[2].mxu1 %vm113_vm0, %v11377_v44  ;;  %214 = vmatprep.mubr.f32.mxu0 %v13434_v0  ;;  %v11467_v6 = vpack.c.bf16 %v764_v1, %v760_v63  ;;  %v771_v7 = vld [vmem:[#allocation4 + $0x58] sm:$0xff]  ;;  %v11470_v9 = vpack.c.bf16 %v766_v3, %v762_v2  ;;  %v768_v10 = vld [vmem:[#allocation4 + $0x40] sm:$0xff]  ;;  %v11472_v12 = vpack.c.bf16 %v773_v5, %v769_v4  ;;  %v770_v13 = vld [vmem:[#allocation4 + $0x50] sm:$0xff] }
  0x48   :  { %327 = vmatprep.mubr.f32.mxu1 %v13434_v0  ;;  %7971 = vmatpush1.bf16.msra.mxu0 %v7970_v47  ;;  %v775_v8 = vld [vmem:[#allocation4 + $0x78] sm:$0xff]  ;;  %v772_v11 = vld [vmem:[#allocation4 + $0x60] sm:$0xff]  ;;  %v774_v14 = vld [vmem:[#allocation4 + $0x70] sm:$0xff] }
  0x49   :  { %7979 = vmatpush1.bf16.msra.mxu1 %v7978_v52  ;;  %7981 = vmatprep.subr.bf16.mxu0 %v11390_v53  ;;  %v11476_v15 = vpack.c.bf16 %v775_v8, %v771_v7  ;;  %v777_v16 = vld [vmem:[#allocation4 + $0x88] sm:$0xff]  ;;  %v11481_v18 = vpack.c.bf16 %v772_v11, %v768_v10  ;;  %v779_v19 = vld [vmem:[#allocation4 + $0x98] sm:$0xff]  ;;  %v11485_v21 = vpack.c.bf16 %v774_v14, %v770_v13  ;;  %v776_v22 = vld [vmem:[#allocation4 + $0x80] sm:$0xff] }
  0x4a   :  { %7701 = vmatmul.mubr.msk.f32.gmra.mrb[4].mxu0 %vm113_vm0, %v11402_v57  ;;  %8013 = vmatprep.subr.bf16.mxu1 %v11394_v56  ;;  %v781_v17 = vld [vmem:[#allocation4 + $0xa8] sm:$0xff]  ;;  %v783_v20 = vld [vmem:[#allocation4 + $0xb8] sm:$0xff]  ;;  %v780_v23 = vld [vmem:[#allocation4 + $0xa0] sm:$0xff] }
  0x4b   :  { %7709 = vmatmul.mubr.msk.f32.gmra.mrb[4].mxu1 %vm113_vm0, %v11402_v57  ;;  %220 = vmatprep.mubr.f32.mxu0 %v13434_v0  ;;  %v11489_v24 = vpack.c.bf16 %v781_v17, %v777_v16  ;;  %v778_v25 = vld [vmem:[#allocation4 + $0x90] sm:$0xff]  ;;  %v11494_v27 = vpack.c.bf16 %v783_v20, %v779_v19  ;;  %v785_v28 = vld [vmem:[#allocation4 + $0xc8] sm:$0xff]  ;;  %v787_v31 = vld [vmem:[#allocation4 + $0xd8] sm:$0xff] }
  0x4c   :  { %333 = vmatprep.mubr.f32.mxu1 %v13434_v0  ;;  %v782_v26 = vld [vmem:[#allocation4 + $0xb0] sm:$0xff]  ;;  %v789_v29 = vld [vmem:[#allocation4 + $0xe8] sm:$0xff]  ;;  %v791_v32 = vld [vmem:[#allocation4 + $0xf8] sm:$0xff] }
  0x4d   :  { %13637 = vst [vmem:[#allocation11_spill] sm:$0xff] %v11489_v24  ;;  %13638 = vst [vmem:[#allocation12_spill] sm:$0xff] %v11494_v27  ;;  %v11503_v33 = vpack.c.bf16 %v782_v26, %v778_v25  ;;  %v784_v34 = vld [vmem:[#allocation4 + $0xc0] sm:$0xff]  ;;  %v11507_v36 = vpack.c.bf16 %v789_v29, %v785_v28  ;;  %v786_v37 = vld [vmem:[#allocation4 + $0xd0] sm:$0xff]  ;;  %v11512_v39 = vpack.c.bf16 %v791_v32, %v787_v31 }
  0x4e   :  { %7702 = vmatmul.mubr.msk.f32.gmra.mrb[6].mxu0 %vm113_vm0, %v11415_v58  ;;  %v788_v35 = vld [vmem:[#allocation4 + $0xe0] sm:$0xff]  ;;  %v790_v38 = vld [vmem:[#allocation4 + $0xf0] sm:$0xff]  ;;  %v793_v40 = vld [vmem:[#allocation4 + $0x108] sm:$0xff] }
  0x4f   :  { %7710 = vmatmul.mubr.msk.f32.gmra.mrb[6].mxu1 %vm113_vm0, %v11415_v58  ;;  %226 = vmatprep.mubr.f32.mxu0 %v13434_v0  ;;  %13640 = vst [vmem:[#allocation14_spill] sm:$0xff] %v11503_v33  ;;  %13641 = vst [vmem:[#allocation15_spill] sm:$0xff] %v11507_v36  ;;  %v797_v41 = vld [vmem:[#allocation4 + $0x128] sm:$0xff]  ;;  %v11517_v42 = vpack.c.bf16 %v788_v35, %v784_v34  ;;  %v795_v43 = vld [vmem:[#allocation4 + $0x118] sm:$0xff]  ;;  %v11521_v45 = vpack.c.bf16 %v790_v38, %v786_v37 }
  0x50   :  { %339 = vmatprep.mubr.f32.mxu1 %v13434_v0  ;;  %13642 = vst [vmem:[#allocation16_spill] sm:$0xff] %v11512_v39  ;;  %v792_v46 = vld [vmem:[#allocation4 + $0x100] sm:$0xff]  ;;  %v11525_v48 = vpack.c.bf16 %v797_v41, %v793_v40  ;;  %v794_v49 = vld [vmem:[#allocation4 + $0x110] sm:$0xff]  ;;  %v801_v52 = vld [vmem:[#allocation4 + $0x148] sm:$0xff] }
  0x51   :  { %13643 = vst [vmem:[#allocation17_spill] sm:$0xff] %v11517_v42  ;;  %13644 = vst [vmem:[#allocation18_spill] sm:$0xff] %v11521_v45  ;;  %v796_v47 = vld [vmem:[#allocation4 + $0x120] sm:$0xff]  ;;  %v798_v50 = vld [vmem:[#allocation4 + $0x130] sm:$0xff] }
  0x52   :  { %7703 = vmatmul.mubr.msk.f32.gmra.mrb[8].mxu0 %vm113_vm0, %v11426_v59  ;;  %13645 = vst [vmem:[#allocation19_spill] sm:$0xff] %v11525_v48  ;;  %v805_v54 = vld [vmem:[#allocation4 + $0x168] sm:$0xff]  ;;  %v11535_v55 = vpack.c.bf16 %v796_v47, %v792_v46  ;;  %v807_v63 = vld [vmem:[#allocation4 + $0x178] sm:$0xff]  ;;  %v11539_v1 = vpack.c.bf16 %v798_v50, %v794_v49  ;;  %v800_v2 = vld [vmem:[#allocation4 + $0x140] sm:$0xff] }
  0x53   :  { %7711 = vmatmul.mubr.msk.f32.gmra.mrb[8].mxu1 %vm113_vm0, %v11426_v59  ;;  %232 = vmatprep.mubr.f32.mxu0 %v13434_v0  ;;  %v804_v3 = vld [vmem:[#allocation4 + $0x160] sm:$0xff]  ;;  %v11543_v4 = vpack.c.bf16 %v805_v54, %v801_v52  ;;  %v806_v5 = vld [vmem:[#allocation4 + $0x170] sm:$0xff]  ;;  %v809_v8 = vld [vmem:[#allocation4 + $0x188] sm:$0xff] }
  0x54   :  { %345 = vmatprep.mubr.f32.mxu1 %v13434_v0  ;;  %13647 = vst [vmem:[#allocation21_spill] sm:$0xff] %v11535_v55  ;;  %13648 = vst [vmem:[#allocation22_spill] sm:$0xff] %v11539_v1  ;;  %v813_v10 = vld [vmem:[#allocation4 + $0x1a8] sm:$0xff]  ;;  %v11553_v11 = vpack.c.bf16 %v804_v3, %v800_v2  ;;  %v811_v13 = vld [vmem:[#allocation4 + $0x198] sm:$0xff] }
  0x55   :  { %13649 = vst [vmem:[#allocation23_spill] sm:$0xff] %v11543_v4  ;;  %v815_v14 = vld [vmem:[#allocation4 + $0x1b8] sm:$0xff]  ;;  %v808_v17 = vld [vmem:[#allocation4 + $0x180] sm:$0xff]  ;;  %v11561_v20 = vpack.c.bf16 %v813_v10, %v809_v8  ;;  %v817_v25 = vld [vmem:[#allocation4 + $0x1c8] sm:$0xff] }
  0x56   :  { %7704 = vmatmul.mubr.msk.f32.gmra.mrb[10].mxu0 %vm113_vm0, %v11437_v60  ;;  %13651 = vst [vmem:[#allocation25_spill] sm:$0xff] %v11553_v11  ;;  %v812_v19 = vld [vmem:[#allocation4 + $0x1a0] sm:$0xff]  ;;  %v821_v26 = vld [vmem:[#allocation4 + $0x1e8] sm:$0xff]  ;;  %v819_v29 = vld [vmem:[#allocation4 + $0x1d8] sm:$0xff] }
  0x57   :  { %7712 = vmatmul.mubr.msk.f32.gmra.mrb[10].mxu1 %vm113_vm0, %v11437_v60  ;;  %238 = vmatprep.mubr.f32.mxu0 %v13434_v0  ;;  %13653 = vst [vmem:[#allocation27_spill] sm:$0xff] %v11561_v20  ;;  %v11571_v28 = vpack.c.bf16 %v812_v19, %v808_v17  ;;  %v823_v31 = vld [vmem:[#allocation4 + $0x1f8] sm:$0xff]  ;;  %v816_v34 = vld [vmem:[#allocation4 + $0x1c0] sm:$0xff]  ;;  %v11579_v37 = vpack.c.bf16 %v821_v26, %v817_v25  ;;  %v822_v38 = vld [vmem:[#allocation4 + $0x1f0] sm:$0xff] }
  0x58   :  { %351 = vmatprep.mubr.f32.mxu1 %v13434_v0  ;;  %v820_v35 = vld [vmem:[#allocation4 + $0x1e0] sm:$0xff]  ;;  %v11584_v40 = vpack.c.bf16 %v823_v31, %v819_v29  ;;  %v826_v41 = vld [vmem:[#allocation4 + $0x208] sm:$0xff]  ;;  %v828_v46 = vld [vmem:[#allocation4 + $0x218] sm:$0xff] }
  0x59   :  { %13655 = vst [vmem:[#allocation29_spill] sm:$0xff] %v11571_v28  ;;  %13657 = vst [vmem:[#allocation31_spill] sm:$0xff] %v11579_v37  ;;  %v832_v47 = vld [vmem:[#allocation4 + $0x238] sm:$0xff]  ;;  %v825_v50 = vld [vmem:[#allocation4 + $0x200] sm:$0xff] }
  0x5a   :  { %7705 = vmatmul.mubr.msk.f32.gmra.mrb[12].mxu0 %vm113_vm0, %v11448_v61  ;;  %13658 = vst [vmem:[#allocation32_spill] sm:$0xff] %v11584_v40  ;;  %v829_v52 = vld [vmem:[#allocation4 + $0x220] sm:$0xff]  ;;  %v827_v54 = vld [vmem:[#allocation4 + $0x210] sm:$0xff]  ;;  %v838_v2 = vld [vmem:[#allocation4 + $0x268] sm:$0xff]  ;;  %v11602_v3 = vpack.c.bf16 %v832_v47, %v828_v46 }
  0x5b   :  { %7713 = vmatmul.mubr.msk.f32.gmra.mrb[12].mxu1 %vm113_vm0, %v11448_v61  ;;  %244 = vmatprep.mubr.f32.mxu0 %v13434_v0  ;;  %v11607_v8 = vpack.c.bf16 %v829_v52, %v825_v50  ;;  %v837_v17 = vld [vmem:[#allocation4 + $0x260] sm:$0xff]  ;;  %v835_v19 = vld [vmem:[#allocation4 + $0x250] sm:$0xff]  ;;  %v846_v25 = vld [vmem:[#allocation4 + $0x2a8] sm:$0xff] }
  0x5c   :  { %357 = vmatprep.mubr.f32.mxu1 %v13434_v0  ;;  %13662 = vst [vmem:[#allocation36_spill] sm:$0xff] %v11602_v3  ;;  %v844_v26 = vld [vmem:[#allocation4 + $0x298] sm:$0xff]  ;;  %v847_v46 = vld [vmem:[#allocation4 + $0x2b0] sm:$0xff]  ;;  %v850_v47 = vld [vmem:[#allocation4 + $0x2c8] sm:$0xff] }
  0x5d   :  { %v848_v29 = vld [vmem:[#allocation4 + $0x2b8] sm:$0xff]  ;;  %v854_v50 = vld [vmem:[#allocation4 + $0x2e8] sm:$0xff] }
  0x5e   :  { %7706 = vmatmul.mubr.msk.f32.gmra.mrb[14].mxu0 %vm113_vm0, %v11459_v62  ;;  %v852_v52 = vld [vmem:[#allocation4 + $0x2d8] sm:$0xff] }
  0x5f   :  { %7714 = vmatmul.mubr.msk.f32.gmra.mrb[14].mxu1 %vm113_vm0, %v11459_v62  ;;  %428 = vmatprep.mubr.f32.mxu0 %v13434_v0 }
  0x60   :  { %541 = vmatprep.mubr.f32.mxu1 %v13434_v0 }
  0x62   :  { %7715 = vmatmul.mubr.msk.f32.vlgmr.msra.gmra.mrb[16].mxu0 %vm113_vm0, %v11341_v30 }
  0x63   :  { %7723 = vmatmul.mubr.msk.f32.vlgmr.msra.gmra.mrb[16].mxu1 %vm113_vm0, %v11341_v30  ;;  %7983 = vmatpush1.bf16.msra.mxu0 %v11467_v6  ;;  %v11499_v30 = vpack.c.bf16 %v780_v23, %v776_v22  ;;  %v814_v22 = vld [vmem:[#allocation4 + $0x1b0] sm:$0xff]  ;;  %v11566_v23 = vpack.c.bf16 %v815_v14, %v811_v13  ;;  %v833_v14 = vld [vmem:[#allocation4 + $0x240] sm:$0xff] }
  0x64   :  { %8015 = vmatpush1.bf16.msra.mxu1 %v11470_v9  ;;  %434 = vmatprep.mubr.f32.mxu0 %v13434_v0  ;;  %v11623_v31 = vpack.c.bf16 %v837_v17, %v833_v14  ;;  %v851_v14 = vld [vmem:[#allocation4 + $0x2d0] sm:$0xff] }
  0x65   :  { %547 = vmatprep.mubr.f32.mxu1 %v13434_v0  ;;  %7985 = vmatprep.subr.bf16.mxu0 %v11472_v12  ;;  %13639 = vst [vmem:[#allocation13_spill] sm:$0xff] %v11499_v30  ;;  %13654 = vst [vmem:[#allocation28_spill] sm:$0xff] %v11566_v23 }
  0x66   :  { %8017 = vmatprep.subr.bf16.mxu1 %v11476_v15  ;;  %7716 = vmatmul.mubr.msk.f32.gmra.mrb[18].mxu0 %vm113_vm0, %v11377_v44 }
  0x67   :  { %7724 = vmatmul.mubr.msk.f32.gmra.mrb[18].mxu1 %vm113_vm0, %v11377_v44  ;;  %7987 = vmatpush1.bf16.msra.mxu0 %v11481_v18  ;;  %v799_v44 = vld [vmem:[#allocation4 + $0x138] sm:$0xff] }
  0x68   :  { %8019 = vmatpush1.bf16.msra.mxu1 %v11485_v21  ;;  %440 = vmatprep.mubr.f32.mxu0 %v13434_v0  ;;  %v11530_v51 = vpack.c.bf16 %v799_v44, %v795_v43  ;;  %v830_v43 = vld [vmem:[#allocation4 + $0x228] sm:$0xff]  ;;  %v11589_v44 = vpack.c.bf16 %v820_v35, %v816_v34 }
  0x69   :  { %553 = vmatprep.mubr.f32.mxu1 %v13434_v0  ;;  %7989 = vmatprep.subr.bf16.mxu0 %v11489_v24 }
  0x6a   :  { %8021 = vmatprep.subr.bf16.mxu1 %v11494_v27  ;;  %7717 = vmatmul.mubr.msk.f32.gmra.mrb[20].mxu0 %vm113_vm0, %v11402_v57  ;;  %13646 = vst [vmem:[#allocation20_spill] sm:$0xff] %v11530_v51  ;;  %13659 = vst [vmem:[#allocation33_spill] sm:$0xff] %v11589_v44 }
  0x6b   :  { %7725 = vmatmul.mubr.msk.f32.gmra.mrb[20].mxu1 %vm113_vm0, %v11402_v57  ;;  %7991 = vmatpush1.bf16.msra.mxu0 %v11499_v30  ;;  %v803_v57 = vld [vmem:[#allocation4 + $0x158] sm:$0xff] }
  0x6c   :  { %8023 = vmatpush1.bf16.msra.mxu1 %v11503_v33  ;;  %446 = vmatprep.mubr.f32.mxu0 %v13434_v0  ;;  %v11548_v7 = vpack.c.bf16 %v807_v63, %v803_v57  ;;  %v831_v57 = vld [vmem:[#allocation4 + $0x230] sm:$0xff]  ;;  %v834_v63 = vld [vmem:[#allocation4 + $0x248] sm:$0xff] }
  0x6d   :  { %559 = vmatprep.mubr.f32.mxu1 %v13434_v0  ;;  %7993 = vmatprep.subr.bf16.mxu0 %v11507_v36  ;;  %v11611_v10 = vpack.c.bf16 %v831_v57, %v827_v54  ;;  %v11613_v13 = vpack.c.bf16 %v838_v2, %v834_v63  ;;  %v856_v54 = vld [vmem:[#allocation4 + $0x2f8] sm:$0xff]  ;;  %v11643_v2 = vpack.c.bf16 %v854_v50, %v850_v47  ;;  %v859_v47 = vld [vmem:[#allocation4 + $0x310] sm:$0xff] }
  0x6e   :  { %8025 = vmatprep.subr.bf16.mxu1 %v11512_v39  ;;  %7718 = vmatmul.mubr.msk.f32.gmra.mrb[22].mxu0 %vm113_vm0, %v11415_v58  ;;  %13650 = vst [vmem:[#allocation24_spill] sm:$0xff] %v11548_v7  ;;  %v11646_v17 = vpack.c.bf16 %v856_v54, %v852_v52  ;;  %v863_v52 = vld [vmem:[#allocation4 + $0x330] sm:$0xff]  ;;  %v866_v54 = vld [vmem:[#allocation4 + $0x348] sm:$0xff] }
  0x6f   :  { %7726 = vmatmul.mubr.msk.f32.gmra.mrb[22].mxu1 %vm113_vm0, %v11415_v58  ;;  %7995 = vmatpush1.bf16.msra.mxu0 %v11517_v42  ;;  %v802_v58 = vld [vmem:[#allocation4 + $0x150] sm:$0xff]  ;;  %13664 = vst [vmem:[#allocation38_spill] sm:$0xff] %v11643_v2 }
  0x70   :  { %8027 = vmatpush1.bf16.msra.mxu1 %v11521_v45  ;;  %452 = vmatprep.mubr.f32.mxu0 %v13434_v0  ;;  %v11557_v16 = vpack.c.bf16 %v806_v5, %v802_v58  ;;  %v836_v58 = vld [vmem:[#allocation4 + $0x258] sm:$0xff]  ;;  %13665 = vst [vmem:[#allocation39_spill] sm:$0xff] %v11646_v17 }
  0x71   :  { %565 = vmatprep.mubr.f32.mxu1 %v13434_v0  ;;  %7997 = vmatprep.subr.bf16.mxu0 %v11525_v48  ;;  %v840_v5 = vld [vmem:[#allocation4 + $0x278] sm:$0xff] }
  0x72   :  { %8029 = vmatprep.subr.bf16.mxu1 %v11530_v51  ;;  %7719 = vmatmul.mubr.msk.f32.gmra.mrb[24].mxu0 %vm113_vm0, %v11426_v59  ;;  %13652 = vst [vmem:[#allocation26_spill] sm:$0xff] %v11557_v16 }
  0x73   :  { %7727 = vmatmul.mubr.msk.f32.gmra.mrb[24].mxu1 %vm113_vm0, %v11426_v59  ;;  %7999 = vmatpush1.bf16.msra.mxu0 %v11535_v55  ;;  %v810_v59 = vld [vmem:[#allocation4 + $0x190] sm:$0xff] }
  0x74   :  { %8031 = vmatpush1.bf16.msra.mxu1 %v11539_v1  ;;  %458 = vmatprep.mubr.f32.mxu0 %v13434_v0  ;;  %v11575_v32 = vpack.c.bf16 %v814_v22, %v810_v59  ;;  %v839_v59 = vld [vmem:[#allocation4 + $0x270] sm:$0xff]  ;;  %v842_v22 = vld [vmem:[#allocation4 + $0x288] sm:$0xff] }
  0x75   :  { %571 = vmatprep.mubr.f32.mxu1 %v13434_v0  ;;  %8001 = vmatprep.subr.bf16.mxu0 %v11543_v4  ;;  %v11627_v34 = vpack.c.bf16 %v839_v59, %v835_v19  ;;  %v11629_v35 = vpack.c.bf16 %v846_v25, %v842_v22  ;;  %v855_v19 = vld [vmem:[#allocation4 + $0x2f0] sm:$0xff]  ;;  %v858_v59 = vld [vmem:[#allocation4 + $0x308] sm:$0xff]  ;;  %v860_v25 = vld [vmem:[#allocation4 + $0x318] sm:$0xff] }
  0x76   :  { %8033 = vmatprep.subr.bf16.mxu1 %v11548_v7  ;;  %7720 = vmatmul.mubr.msk.f32.gmra.mrb[26].mxu0 %vm113_vm0, %v11437_v60  ;;  %13656 = vst [vmem:[#allocation30_spill] sm:$0xff] %v11575_v32  ;;  %v862_v22 = vld [vmem:[#allocation4 + $0x328] sm:$0xff] }
  0x77   :  { %7728 = vmatmul.mubr.msk.f32.gmra.mrb[26].mxu1 %vm113_vm0, %v11437_v60  ;;  %8003 = vmatpush1.bf16.msra.mxu0 %v11553_v11  ;;  %v818_v60 = vld [vmem:[#allocation4 + $0x1d0] sm:$0xff] }
  0x78   :  { %8035 = vmatpush1.bf16.msra.mxu1 %v11557_v16  ;;  %464 = vmatprep.mubr.f32.mxu0 %v13434_v0  ;;  %v11593_v49 = vpack.c.bf16 %v822_v38, %v818_v60  ;;  %v841_v60 = vld [vmem:[#allocation4 + $0x280] sm:$0xff] }
  0x79   :  { %577 = vmatprep.mubr.f32.mxu1 %v13434_v0  ;;  %8005 = vmatprep.subr.bf16.mxu0 %v11561_v20  ;;  %v845_v38 = vld [vmem:[#allocation4 + $0x2a0] sm:$0xff] }
  0x7a   :  { %8037 = vmatprep.subr.bf16.mxu1 %v11566_v23  ;;  %7721 = vmatmul.mubr.msk.f32.gmra.mrb[28].mxu0 %vm113_vm0, %v11448_v61  ;;  %13660 = vst [vmem:[#allocation34_spill] sm:$0xff] %v11593_v49  ;;  %v11637_v57 = vpack.c.bf16 %v845_v38, %v841_v60  ;;  %v11653_v60 = vpack.c.bf16 %v855_v19, %v851_v14 }
  0x7b   :  { %7729 = vmatmul.mubr.msk.f32.gmra.mrb[28].mxu1 %vm113_vm0, %v11448_v61  ;;  %8007 = vmatpush1.bf16.msra.mxu0 %v11571_v28  ;;  %v11597_v61 = vpack.c.bf16 %v830_v43, %v826_v41  ;;  %v843_v41 = vld [vmem:[#allocation4 + $0x290] sm:$0xff]  ;;  %v11632_v43 = vpack.c.bf16 %v848_v29, %v844_v26  ;;  %v864_v26 = vld [vmem:[#allocation4 + $0x338] sm:$0xff]  ;;  %v11655_v38 = vpack.c.bf16 %v862_v22, %v858_v59  ;;  %v865_v59 = vld [vmem:[#allocation4 + $0x340] sm:$0xff] }
  0x7c   :  { %8039 = vmatpush1.bf16.msra.mxu1 %v11575_v32  ;;  %470 = vmatprep.mubr.f32.mxu0 %v13434_v0  ;;  %v11641_v63 = vpack.c.bf16 %v847_v46, %v843_v41  ;;  %13667 = vst [vmem:[#allocation41_spill] sm:$0xff] %v11653_v60  ;;  %v857_v41 = vld [vmem:[#allocation4 + $0x300] sm:$0xff]  ;;  %v11658_v50 = vpack.c.bf16 %v864_v26, %v860_v25  ;;  %v867_v25 = vld [vmem:[#allocation4 + $0x350] sm:$0xff] }
  0x7d   :  { %583 = vmatprep.mubr.f32.mxu1 %v13434_v0  ;;  %8009 = vmatprep.subr.bf16.mxu0 %v11579_v37  ;;  %13661 = vst [vmem:[#allocation35_spill] sm:$0xff] %v11597_v61  ;;  %13668 = vst [vmem:[#allocation42_spill] sm:$0xff] %v11655_v38  ;;  %v861_v46 = vld [vmem:[#allocation4 + $0x320] sm:$0xff]  ;;  %v11665_v14 = vpack.c.bf16 %v863_v52, %v859_v47 }
  0x7e   :  { %8041 = vmatprep.subr.bf16.mxu1 %v11584_v40  ;;  %7722 = vmatmul.mubr.msk.f32.gmra.mrb[30].mxu0 %vm113_vm0, %v11459_v62  ;;  %13663 = vst [vmem:[#allocation37_spill] sm:$0xff] %v11641_v63  ;;  %13669 = vst [vmem:[#allocation43_spill] sm:$0xff] %v11658_v50  ;;  %v869_v22 = vld [vmem:[#allocation4 + $0x360] sm:$0xff] }
  0x7f   :  { %7730 = vmatmul.mubr.msk.f32.gmra.mrb[30].mxu1 %vm113_vm0, %v11459_v62  ;;  %8011 = vmatpush1.bf16.msra.mxu0 %v11589_v44  ;;  %v11617_v62 = vpack.c.bf16 %v840_v5, %v836_v58  ;;  %v849_v58 = vld [vmem:[#allocation4 + $0x2c0] sm:$0xff]  ;;  %13671 = vst [vmem:[#allocation45_spill] sm:$0xff] %v11665_v14 }
  0x80   :  { %8043 = vmatpush1.bf16.msra.mxu1 %v11593_v49  ;;  %957 = vmatprep.mubr.f32.mxu0 %v13434_v0  ;;  %v853_v5 = vld [vmem:[#allocation4 + $0x2e0] sm:$0xff] }
  0x81   :  { %1028 = vmatprep.mubr.f32.mxu1 %v13434_v0  ;;  %8045 = vmatprep.subr.bf16.mxu0 %v11597_v61  ;;  %v11649_v29 = vpack.c.bf16 %v853_v5, %v849_v58  ;;  %v868_v58 = vld [vmem:[#allocation4 + $0x358] sm:$0xff]  ;;  %v873_v52 = vld [vmem:[#allocation4 + $0x380] sm:$0xff] }
  0x82   :  { %8077 = vmatprep.subr.bf16.mxu1 %v11602_v3  ;;  %958 = vmatmul.mubr.f32.vlgmr.msra.gmra.mrb[0].mxu0 %v13434_v0  ;;  %v872_v5 = vld [vmem:[#allocation4 + $0x378] sm:$0xff] }
  0x83   :  { %1029 = vmatmul.mubr.f32.vlgmr.msra.gmra.mrb[0].mxu1 %v13434_v0  ;;  %8047 = vmatpush1.bf16.msra.mxu0 %v11607_v8  ;;  %13666 = vst [vmem:[#allocation40_spill] sm:$0xff] %v11649_v29  ;;  %v11670_v26 = vpack.c.bf16 %v872_v5, %v868_v58  ;;  %v875_v58 = vld [vmem:[#allocation4 + $0x390] sm:$0xff] }
  0x84   :  { %8079 = vmatpush1.bf16.msra.mxu1 %v11611_v10  ;;  %8049 = vmatprep.subr.bf16.mxu0 %v11613_v13 }
  0x85   :  { %8081 = vmatprep.subr.bf16.mxu1 %v11617_v62  ;;  %1108 = vmatprep.mubr.f32.mxu0 %v13434_v0  ;;  %13672 = vst [vmem:[#allocation46_spill] sm:$0xff] %v11670_v26 }
  0x86   :  { %1179 = vmatprep.mubr.f32.mxu1 %v13434_v0  ;;  %v870_v0 = vld [vmem:[#allocation4 + $0x368] sm:$0xff] }
  0x87   :  { %8051 = vmatpush1.bf16.msra.mxu0 %v11623_v31  ;;  %v11667_v19 = vpack.c.bf16 %v870_v0, %v866_v54  ;;  %v877_v54 = vld [vmem:[#allocation4 + $0x3a0] sm:$0xff] }
  0x88   :  { %8083 = vmatpush1.bf16.msra.mxu1 %v11627_v34  ;;  %8053 = vmatprep.subr.bf16.mxu0 %v11629_v35 }
  0x89   :  { %8085 = vmatprep.subr.bf16.mxu1 %v11632_v43 }
  0x8b   :  { %8055 = vmatpush1.bf16.msra.mxu0 %v11637_v57 }
  0x8c   :  { %8087 = vmatpush1.bf16.msra.mxu1 %v11641_v63  ;;  %8057 = vmatprep.subr.bf16.mxu0 %v11643_v2  ;;  %v11661_v63 = vpack.c.bf16 %v861_v46, %v857_v41  ;;  %v874_v2 = vld [vmem:[#allocation4 + $0x388] sm:$0xff]  ;;  %v876_v41 = vld [vmem:[#allocation4 + $0x398] sm:$0xff] }
  0x8d   :  { %8089 = vmatprep.subr.bf16.mxu1 %v11646_v17  ;;  %v871_v17 = vld [vmem:[#allocation4 + $0x370] sm:$0xff]  ;;  %v880_v46 = vld [vmem:[#allocation4 + $0x3b8] sm:$0xff] }
  0x8e   :  { %13670 = vst [vmem:[#allocation44_spill] sm:$0xff] %v11661_v63  ;;  %v11677_v0 = vpack.c.bf16 %v871_v17, %v867_v25  ;;  %v11682_v5 = vpack.c.bf16 %v880_v46, %v876_v41  ;;  %v885_v25 = vld [vmem:[#allocation4 + $0x3e0] sm:$0xff]  ;;  %v883_v46 = vld [vmem:[#allocation4 + $0x3d0] sm:$0xff] }
  0x8f   :  { %8059 = vmatpush1.bf16.msra.mxu0 %v11649_v29  ;;  %v878_v29 = vld [vmem:[#allocation4 + $0x3a8] sm:$0xff] }
  0x90   :  { %8091 = vmatpush1.bf16.msra.mxu1 %v11653_v60  ;;  %8061 = vmatprep.subr.bf16.mxu0 %v11655_v38  ;;  %v11673_v60 = vpack.c.bf16 %v869_v22, %v865_v59  ;;  %v11679_v47 = vpack.c.bf16 %v878_v29, %v874_v2  ;;  %v882_v38 = vld [vmem:[#allocation4 + $0x3c8] sm:$0xff]  ;;  %v884_v59 = vld [vmem:[#allocation4 + $0x3d8] sm:$0xff]  ;;  %v881_v29 = vld [vmem:[#allocation4 + $0x3c0] sm:$0xff] }
  0x91   :  { %8093 = vmatprep.subr.bf16.mxu1 %v11658_v50  ;;  %v879_v50 = vld [vmem:[#allocation4 + $0x3b0] sm:$0xff]  ;;  %v888_v22 = vld [vmem:[#allocation4 + $0x3f8] sm:$0xff] }
  0x92   :  { %v11689_v2 = vpack.c.bf16 %v879_v50, %v875_v58  ;;  %v11694_v41 = vpack.c.bf16 %v888_v22, %v884_v59  ;;  %v590_v58 = vld [vmem:[%s13427_s3] sm:$0xff] }
  0x93   :  { %8063 = vmatpush1.bf16.msra.mxu0 %v11661_v63  ;;  %v886_v63 = vld [vmem:[#allocation4 + $0x3e8] sm:$0xff] }
  0x94   :  { %8095 = vmatpush1.bf16.msra.mxu1 %v11665_v14  ;;  %8065 = vmatprep.subr.bf16.mxu0 %v11667_v19  ;;  %v11685_v14 = vpack.c.bf16 %v877_v54, %v873_v52  ;;  %v11691_v17 = vpack.c.bf16 %v886_v63, %v882_v38  ;;  %v11697_v52 = vpack.c.bf16 %v885_v25, %v881_v29  ;;  %v13673_v63 = vmov 0.0  }
  0x95   :  { %8097 = vmatprep.subr.bf16.mxu1 %v11670_v26  ;;  %v887_v26 = vld [vmem:[#allocation4 + $0x3f0] sm:$0xff]  ;;  %v592_v38 = vlaneseq }
  0x96   :  { %v11701_v50 = vpack.c.bf16 %v887_v26, %v883_v46 }
  0x97   :  { %8067 = vmatpush1.bf16.msra.mxu0 %v11673_v60  ;;  %v11744_v26 = vshrl.u32 %v592_v38, 7 }
  0x98   :  { %8099 = vmatpush1.bf16.msra.mxu1 %v11677_v0  ;;  %8069 = vmatprep.subr.bf16.mxu0 %v11679_v47 }
  0x99   :  { %8101 = vmatprep.subr.bf16.mxu1 %v11682_v5  ;;  %13674 = vst [vmem:[#allocation47_spill] sm:$0xff] %v11744_v26  ;;  %v13468_v54 = vsub.s32 0, %v11744_v26  ;;  %v13469_v59 = vsub.s32 1, %v11744_v26  ;;  %v13478_v46 = vsub.s32 2, %v11744_v26 }
  0x9b   :  { %8071 = vmatpush1.bf16.msra.mxu0 %v11685_v14  ;;  %v11753_v22 = vrot.slane %v590_v58, %v13468_v54  ;;  %v11757_v29 = vrot.slane %v590_v58, %v13469_v59  ;;  %v13481_v59 = vsub.s32 3, %v11744_v26 }
  0x9c   :  { %8103 = vmatpush1.bf16.msra.mxu1 %v11689_v2  ;;  %8073 = vmatprep.subr.bf16.mxu0 %v11691_v17 }
  0x9d   :  { %8105 = vmatprep.subr.bf16.mxu1 %v11694_v41  ;;  %13675 = vst [vmem:[#allocation48_spill] sm:$0xff] %v11753_v22  ;;  %13676 = vst [vmem:[#allocation49_spill] sm:$0xff] %v11757_v29 }
  0x9f   :  { %8075 = vmatpush1.bf16.msra.mxu0 %v11697_v52 }
  0xa0   :  { %8107 = vmatpush1.bf16.msra.mxu1 %v11701_v50  ;;  %8109 = vmatprep.subr.bf16.mxu0 %v11390_v53 }
  0xa1   :  { %8141 = vmatprep.subr.bf16.mxu1 %v11394_v56 }
  0xa2   :  { %1109 = vmatmul.mubr.f32.vlgmr.msra.gmra.mrb[30].mxu0 %v13673_v63 }
  0xa3   :  { %1180 = vmatmul.mubr.f32.vlgmr.msra.gmra.mrb[30].mxu1 %v13673_v63  ;;  %8111 = vmatpush1.bf16.msra.mxu0 %v11467_v6 }
  0xa4   :  { %8143 = vmatpush1.bf16.msra.mxu1 %v11470_v9  ;;  %8113 = vmatprep.subr.bf16.mxu0 %v11472_v12 }
  0xa5   :  { %8145 = vmatprep.subr.bf16.mxu1 %v11476_v15  ;;  %1310 = vmatprep.mubr.f32.mxu0 %v13673_v63 }
  0xa6   :  { %1381 = vmatprep.mubr.f32.mxu1 %v13673_v63 }
  0xa7   :  { %8115 = vmatpush1.bf16.msra.mxu0 %v11481_v18 }
  0xa8   :  { %8147 = vmatpush1.bf16.msra.mxu1 %v11485_v21  ;;  %8117 = vmatprep.subr.bf16.mxu0 %v11489_v24 }
  0xa9   :  { %8149 = vmatprep.subr.bf16.mxu1 %v11494_v27 }
  0xab   :  { %8119 = vmatpush1.bf16.msra.mxu0 %v11499_v30 }
  0xac   :  { %8151 = vmatpush1.bf16.msra.mxu1 %v11503_v33  ;;  %8121 = vmatprep.subr.bf16.mxu0 %v11507_v36 }
  0xad   :  { %8153 = vmatprep.subr.bf16.mxu1 %v11512_v39 }
  0xaf   :  { %8123 = vmatpush1.bf16.msra.mxu0 %v11517_v42 }
  0xb0   :  { %8155 = vmatpush1.bf16.msra.mxu1 %v11521_v45  ;;  %8125 = vmatprep.subr.bf16.mxu0 %v11525_v48 }
  0xb1   :  { %8157 = vmatprep.subr.bf16.mxu1 %v11530_v51 }
  0xb3   :  { %8127 = vmatpush1.bf16.msra.mxu0 %v11535_v55 }
  0xb4   :  { %8159 = vmatpush1.bf16.msra.mxu1 %v11539_v1  ;;  %8129 = vmatprep.subr.bf16.mxu0 %v11543_v4 }
  0xb5   :  { %8161 = vmatprep.subr.bf16.mxu1 %v11548_v7 }
  0xb7   :  { %8131 = vmatpush1.bf16.msra.mxu0 %v11553_v11 }
  0xb8   :  { %8163 = vmatpush1.bf16.msra.mxu1 %v11557_v16  ;;  %8133 = vmatprep.subr.bf16.mxu0 %v11561_v20 }
  0xb9   :  { %8165 = vmatprep.subr.bf16.mxu1 %v11566_v23 }
  0xbb   :  { %8135 = vmatpush1.bf16.msra.mxu0 %v11571_v28 }
  0xbc   :  { %8167 = vmatpush1.bf16.msra.mxu1 %v11575_v32  ;;  %8137 = vmatprep.subr.bf16.mxu0 %v11579_v37  ;;  %v11764_v37 = vrot.slane %v590_v58, %v13478_v46 }
  0xbd   :  { %8169 = vmatprep.subr.bf16.mxu1 %v11584_v40 }
  0xbe   :  { %13677 = vst [vmem:[#allocation50_spill] sm:$0xff] %v11764_v37 }
  0xbf   :  { %8139 = vmatpush1.bf16.msra.mxu0 %v11589_v44 }
  0xc0   :  { %8171 = vmatpush1.bf16.msra.mxu1 %v11593_v49  ;;  %8173 = vmatprep.subr.bf16.mxu0 %v11597_v61 }
  0xc1   :  { %8205 = vmatprep.subr.bf16.mxu1 %v11602_v3 }
 0x155   :  { %v959_v25 = vpop.f32.mrb[0].mxu0 }
 0x156   :  { %v10332_v38 = vadd.f32 %v959_v25, %v11753_v22  ;;  %v1030_v3 = vpop.f32.mrb[0].mxu1  ;;  %v961_v61 = vpop.f32.mrb[1].mxu0  ;;  %v11770_v25 = vrot.slane %v590_v58, %v13481_v59 }
 0x157   :  { %v10333_v49 = vadd.f32 %v961_v61, %v11757_v29  ;;  %v1032_v44 = vpop.f32.mrb[1].mxu1  ;;  %v10348_v32 = vadd.f32 %v1030_v3, %v11764_v37  ;;  %v13487_v3 = vsub.s32 5, %v11744_v26 }
 0x158   :  { %v7731_v40 = vmul.f32 -1.442695, %v10332_v38  ;;  %13678 = vst [vmem:[#allocation51_spill] sm:$0xff] %v11770_v25  ;;  %v10349_v61 = vadd.f32 %v1032_v44, %v11770_v25 }
 0x159   :  { %v7732_v54 = vmul.f32 -1.442695, %v10333_v49  ;;  %v7733_v22 = vmul.f32 -1.442695, %v10348_v32 }
 0x15a   :  { %10598 = vpow2.f32 %v7731_v40  ;;  %v13486_v40 = vsub.s32 4, %v11744_v26 }
 0x15b   :  { %10600 = vpow2.f32 %v7732_v54 }
 0x15c   :  { %10602 = vpow2.f32 %v7733_v22  ;;  %v11777_v32 = vrot.slane %v590_v58, %v13486_v40  ;;  %v11781_v22 = vrot.slane %v590_v58, %v13487_v3 }
 0x15d   :  { %10604 = vtanh.f32 %v10349_v61 }
 0x15e   :  { %13679 = vst [vmem:[#allocation52_spill] sm:$0xff] %v11777_v32  ;;  %13680 = vst [vmem:[#allocation53_spill] sm:$0xff] %v11781_v22 }
 0x164   :  { %v10599_v29 = vpop.eup %10598 }
 0x165   :  { %v1199_v38 = vadd.f32 1.0, %v10599_v29  ;;  %v10601_v28 = vpop.eup %10600 }
 0x166   :  { %v1200_v49 = vadd.f32 1.0, %v10601_v28  ;;  %v10603_v54 = vpop.eup %10602 }
 0x167   :  { %10606 = vrcp.f32 %v1199_v38  ;;  %v10605_v46 = vpop.eup %10604  ;;  %v1201_v29 = vadd.f32 1.0, %v10603_v54  ;;  %v13492_v38 = vsub.s32 6, %v11744_v26 }
 0x168   :  { %10608 = vrcp.f32 %v1200_v49 }
 0x169   :  { %10610 = vrcp.f32 %v1201_v29  ;;  %v11791_v3 = vrot.slane %v590_v58, %v13492_v38 }
 0x171   :  { %v10607_v37 = vpop.eup %10606 }
 0x172   :  { %v1229_v59 = vmul.f32 %v10607_v37, %v10605_v46  ;;  %v10609_v44 = vpop.eup %10608 }
 0x173   :  { %v1228_v28 = vmul.f32 0.0, %v10609_v44 }
 0x175   :  { %v1110_v61 = vpop.f32.mrb[30].mxu0  ;;  %v11784_v49 = vadd.f32 %v1229_v59, %v1228_v28  ;;  %v13494_v59 = vsub.s32 7, %v11744_v26 }
 0x176   :  { %v10378_v25 = vadd.f32 %v1110_v61, %v11777_v32  ;;  %v1181_v23 = vpop.f32.mrb[30].mxu1  ;;  %v1112_v37 = vpop.f32.mrb[31].mxu0 }
 0x177   :  { %13681 = vst [vmem:[#allocation54_spill] sm:$0xff] %v11784_v49  ;;  %v10379_v46 = vadd.f32 %v1112_v37, %v11781_v22  ;;  %v1183_v40 = vpop.f32.mrb[31].mxu1  ;;  %10612 = vtanh.f32 %v11784_v49  ;;  %v10394_v28 = vadd.f32 %v1181_v23, %v11791_v3  ;;  %v11797_v29 = vrot.slane %v590_v58, %v13494_v59  ;;  %v10611_v61 = vpop.eup %10610  ;;  %v13683_v58 = vld [vmem:[#allocation37_spill] sm:$0xff] }
 0x178   :  { %v7734_v54 = vmul.f32 -1.442695, %v10378_v25 }
 0x179   :  { %v7735_v44 = vmul.f32 -1.442695, %v10379_v46  ;;  %v7736_v37 = vmul.f32 -1.442695, %v10394_v28  ;;  %v10395_v25 = vadd.f32 %v1183_v40, %v11797_v29  ;;  %v13686_v28 = vld [vmem:[#allocation40_spill] sm:$0xff] }
 0x17a   :  { %10614 = vpow2.f32 %v7734_v54 }
 0x17b   :  { %10616 = vpow2.f32 %v7735_v44 }
 0x17c   :  { %10618 = vpow2.f32 %v7736_v37 }
 0x17d   :  { %10620 = vtanh.f32 %v10395_v25 }
 0x181   :  { %v10613_v22 = vpop.eup %10612 }
 0x182   :  { %v11800_v32 = vmul.f32 %v10613_v22, %v10611_v61  ;;  %v13684_v22 = vld [vmem:[#allocation38_spill] sm:$0xff]  ;;  %v13687_v61 = vld [vmem:[#allocation41_spill] sm:$0xff] }
 0x184   :  { %13682 = vst [vmem:[#allocation55_spill] sm:$0xff] %v11800_v32  ;;  %v10615_v38 = vpop.eup %10614  ;;  %1311 = vmatmul.mubr.f32.vlgmr.msra.gmra.mrb[2].mxu0 %v11800_v32  ;;  %1382 = vmatmul.mubr.f32.vlgmr.msra.gmra.mrb[2].mxu1 %v11800_v32  ;;  %v13690_v32 = vld [vmem:[#allocation44_spill] sm:$0xff] }
 0x185   :  { %v1217_v49 = vadd.f32 1.0, %v10615_v38  ;;  %v10617_v46 = vpop.eup %10616  ;;  %8175 = vmatpush1.bf16.msra.mxu0 %v11607_v8  ;;  %8207 = vmatpush1.bf16.msra.mxu1 %v11611_v10  ;;  %v13685_v38 = vld [vmem:[#allocation39_spill] sm:$0xff] }
 0x186   :  { %v1218_v23 = vadd.f32 1.0, %v10617_v46  ;;  %8177 = vmatprep.subr.bf16.mxu0 %v11613_v13  ;;  %8209 = vmatprep.subr.bf16.mxu1 %v11617_v62  ;;  %v10619_v40 = vpop.eup %10618  ;;  %v13688_v46 = vld [vmem:[#allocation42_spill] sm:$0xff] }
 0x187   :  { %10622 = vrcp.f32 %v1217_v49  ;;  %1461 = vmatprep.mubr.f32.mxu0 %v13673_v63  ;;  %1532 = vmatprep.mubr.f32.mxu1 %v13673_v63  ;;  %v10621_v49 = vpop.eup %10620  ;;  %v1219_v25 = vadd.f32 1.0, %v10619_v40 }
 0x188   :  { %10624 = vrcp.f32 %v1218_v23  ;;  %v13689_v23 = vld [vmem:[#allocation43_spill] sm:$0xff] }
 0x189   :  { %8179 = vmatpush1.bf16.msra.mxu0 %v11623_v31  ;;  %8211 = vmatpush1.bf16.msra.mxu1 %v11627_v34  ;;  %10626 = vrcp.f32 %v1219_v25  ;;  %v13696_v25 = vld [vmem:[#allocation30_spill] sm:$0xff] }
 0x18a   :  { %8181 = vmatprep.subr.bf16.mxu0 %v11629_v35  ;;  %8213 = vmatprep.subr.bf16.mxu1 %v11632_v43 }
 0x18d   :  { %8183 = vmatpush1.bf16.msra.mxu0 %v11637_v57  ;;  %8215 = vmatpush1.bf16.msra.mxu1 %v13683_v58 }
 0x18e   :  { %8185 = vmatprep.subr.bf16.mxu0 %v13684_v22  ;;  %8217 = vmatprep.subr.bf16.mxu1 %v13685_v38  ;;  %v13691_v22 = vld [vmem:[#allocation45_spill] sm:$0xff] }
 0x191   :  { %v10623_v54 = vpop.eup %10622  ;;  %8187 = vmatpush1.bf16.msra.mxu0 %v13686_v28  ;;  %8219 = vmatpush1.bf16.msra.mxu1 %v13687_v61 }
 0x192   :  { %v1232_v44 = vmul.f32 %v10623_v54, %v10621_v49  ;;  %v10625_v37 = vpop.eup %10624  ;;  %8189 = vmatprep.subr.bf16.mxu0 %v13688_v46  ;;  %8221 = vmatprep.subr.bf16.mxu1 %v13689_v23  ;;  %v13692_v49 = vld [vmem:[#allocation46_spill] sm:$0xff] }
 0x193   :  { %v1231_v59 = vmul.f32 0.0, %v10625_v37  ;;  %v13695_v37 = vld [vmem:[#allocation29_spill] sm:$0xff] }
 0x195   :  { %v11822_v26 = vadd.f32 %v1232_v44, %v1231_v59  ;;  %8191 = vmatpush1.bf16.msra.mxu0 %v13690_v32  ;;  %8223 = vmatpush1.bf16.msra.mxu1 %v13691_v22  ;;  %v10627_v59 = vpop.eup %10626  ;;  %v13694_v44 = vld [vmem:[#allocation28_spill] sm:$0xff] }
 0x196   :  { %8193 = vmatprep.subr.bf16.mxu0 %v11667_v19  ;;  %8225 = vmatprep.subr.bf16.mxu1 %v13692_v49 }
 0x197   :  { %10628 = vtanh.f32 %v11822_v26 }
 0x199   :  { %8195 = vmatpush1.bf16.msra.mxu0 %v11673_v60  ;;  %8227 = vmatpush1.bf16.msra.mxu1 %v11677_v0 }
 0x19a   :  { %8197 = vmatprep.subr.bf16.mxu0 %v11679_v47  ;;  %8229 = vmatprep.subr.bf16.mxu1 %v11682_v5 }
 0x19d   :  { %8199 = vmatpush1.bf16.msra.mxu0 %v11685_v14  ;;  %8231 = vmatpush1.bf16.msra.mxu1 %v11689_v2 }
 0x19e   :  { %8201 = vmatprep.subr.bf16.mxu0 %v11691_v17  ;;  %8233 = vmatprep.subr.bf16.mxu1 %v11694_v41 }
 0x1a1   :  { %v10629_v40 = vpop.eup %10628  ;;  %8203 = vmatpush1.bf16.msra.mxu0 %v11697_v52  ;;  %8235 = vmatpush1.bf16.msra.mxu1 %v11701_v50 }
 0x1a2   :  { %v11839_v54 = vmul.f32 %v10629_v40, %v10627_v59  ;;  %8237 = vmatprep.subr.bf16.mxu0 %v11390_v53  ;;  %8269 = vmatprep.subr.bf16.mxu1 %v11394_v56  ;;  %v13697_v59 = vld [vmem:[#allocation31_spill] sm:$0xff]  ;;  %v13698_v40 = vld [vmem:[#allocation32_spill] sm:$0xff] }
 0x1a4   :  { %13693 = vst [vmem:[#allocation37_spill] sm:$0xff] %v11839_v54  ;;  %1462 = vmatmul.mubr.f32.vlgmr.msra.gmra.mrb[28].mxu0 %v11839_v54  ;;  %1533 = vmatmul.mubr.f32.vlgmr.msra.gmra.mrb[28].mxu1 %v11839_v54  ;;  %v13699_v54 = vld [vmem:[#allocation33_spill] sm:$0xff] }
 0x1a5   :  { %8239 = vmatpush1.bf16.msra.mxu0 %v11467_v6  ;;  %8271 = vmatpush1.bf16.msra.mxu1 %v11470_v9 }
 0x1a6   :  { %8241 = vmatprep.subr.bf16.mxu0 %v11472_v12  ;;  %8273 = vmatprep.subr.bf16.mxu1 %v11476_v15 }
 0x1a7   :  { %1664 = vmatprep.mubr.f32.mxu0 %v13673_v63  ;;  %1735 = vmatprep.mubr.f32.mxu1 %v13673_v63 }
 0x1a9   :  { %8243 = vmatpush1.bf16.msra.mxu0 %v11481_v18  ;;  %8275 = vmatpush1.bf16.msra.mxu1 %v11485_v21 }
 0x1aa   :  { %8245 = vmatprep.subr.bf16.mxu0 %v11489_v24  ;;  %8277 = vmatprep.subr.bf16.mxu1 %v11494_v27 }
 0x1ad   :  { %8247 = vmatpush1.bf16.msra.mxu0 %v11499_v30  ;;  %8279 = vmatpush1.bf16.msra.mxu1 %v11503_v33 }
 0x1ae   :  { %8249 = vmatprep.subr.bf16.mxu0 %v11507_v36  ;;  %8281 = vmatprep.subr.bf16.mxu1 %v11512_v39 }
 0x1b1   :  { %8251 = vmatpush1.bf16.msra.mxu0 %v11517_v42  ;;  %8283 = vmatpush1.bf16.msra.mxu1 %v11521_v45  ;;  %v13706_v45 = vld [vmem:[#allocation51_spill] sm:$0xff] }
 0x1b2   :  { %8253 = vmatprep.subr.bf16.mxu0 %v11525_v48  ;;  %8285 = vmatprep.subr.bf16.mxu1 %v11530_v51  ;;  %v13704_v51 = vld [vmem:[#allocation49_spill] sm:$0xff] }
 0x1b5   :  { %8255 = vmatpush1.bf16.msra.mxu0 %v11535_v55  ;;  %8287 = vmatpush1.bf16.msra.mxu1 %v11539_v1  ;;  %v13703_v1 = vld [vmem:[#allocation48_spill] sm:$0xff] }
 0x1b6   :  { %8257 = vmatprep.subr.bf16.mxu0 %v11543_v4  ;;  %8289 = vmatprep.subr.bf16.mxu1 %v11548_v7  ;;  %v13700_v4 = vld [vmem:[#allocation34_spill] sm:$0xff]  ;;  %v13701_v7 = vld [vmem:[#allocation35_spill] sm:$0xff] }
 0x1b9   :  { %8259 = vmatpush1.bf16.msra.mxu0 %v11553_v11  ;;  %8291 = vmatpush1.bf16.msra.mxu1 %v11557_v16  ;;  %v13702_v11 = vld [vmem:[#allocation36_spill] sm:$0xff] }
 0x1ba   :  { %8261 = vmatprep.subr.bf16.mxu0 %v11561_v20  ;;  %8293 = vmatprep.subr.bf16.mxu1 %v13694_v44 }
 0x1bd   :  { %8263 = vmatpush1.bf16.msra.mxu0 %v13695_v37  ;;  %8295 = vmatpush1.bf16.msra.mxu1 %v13696_v25 }
 0x1be   :  { %8265 = vmatprep.subr.bf16.mxu0 %v13697_v59  ;;  %8297 = vmatprep.subr.bf16.mxu1 %v13698_v40  ;;  %v13705_v40 = vld [vmem:[#allocation50_spill] sm:$0xff] }
 0x1c1   :  { %8267 = vmatpush1.bf16.msra.mxu0 %v13699_v54  ;;  %8299 = vmatpush1.bf16.msra.mxu1 %v13700_v4 }
 0x1c2   :  { %8301 = vmatprep.subr.bf16.mxu0 %v13701_v7  ;;  %8333 = vmatprep.subr.bf16.mxu1 %v13702_v11 }
 0x257   :  { %v1312_v16 = vpop.f32.mrb[2].mxu0  ;;  %v1383_v20 = vpop.f32.mrb[2].mxu1 }
 0x258   :  { %v10334_v44 = vadd.f32 %v1312_v16, %v13703_v1  ;;  %v1314_v55 = vpop.f32.mrb[3].mxu0  ;;  %v1385_v37 = vpop.f32.mrb[3].mxu1  ;;  %v10350_v54 = vadd.f32 %v1383_v20, %v13705_v40 }
 0x259   :  { %v10335_v25 = vadd.f32 %v1314_v55, %v13704_v51  ;;  %v10351_v4 = vadd.f32 %v1385_v37, %v13706_v45 }
 0x25a   :  { %v7737_v48 = vmul.f32 -1.442695, %v10334_v44  ;;  %v7739_v42 = vmul.f32 -1.442695, %v10350_v54  ;;  %v13708_v54 = vld [vmem:[#allocation52_spill] sm:$0xff] }
 0x25b   :  { %v7738_v59 = vmul.f32 -1.442695, %v10335_v25 }
 0x25c   :  { %10630 = vpow2.f32 %v7737_v48 }
 0x25d   :  { %10632 = vpow2.f32 %v7738_v59  ;;  %v13707_v59 = vld [vmem:[#allocation54_spill] sm:$0xff] }
 0x25e   :  { %10634 = vtanh.f32 %v10351_v4 }
 0x25f   :  { %10636 = vpow2.f32 %v7739_v42 }
 0x266   :  { %v10631_v7 = vpop.eup %10630 }
 0x267   :  { %v1552_v39 = vadd.f32 1.0, %v10631_v7  ;;  %v10633_v11 = vpop.eup %10632 }
 0x268   :  { %v1553_v16 = vadd.f32 1.0, %v10633_v11  ;;  %v10635_v1 = vpop.eup %10634 }
 0x269   :  { %10638 = vrcp.f32 %v1552_v39  ;;  %v10637_v36 = vpop.eup %10636  ;;  %v13709_v39 = vld [vmem:[#allocation53_spill] sm:$0xff] }
 0x26a   :  { %10640 = vrcp.f32 %v1553_v16  ;;  %v1554_v48 = vadd.f32 1.0, %v10637_v36 }
 0x26c   :  { %10642 = vrcp.f32 %v1554_v48 }
 0x273   :  { %v10639_v55 = vpop.eup %10638 }
 0x274   :  { %v1582_v44 = vmul.f32 %v10639_v55, %v10635_v1  ;;  %v10641_v25 = vpop.eup %10640 }
 0x275   :  { %v1581_v51 = vmul.f32 %v10641_v25, %v13707_v59 }
 0x276   :  { %v10643_v1 = vpop.eup %10642 }
 0x277   :  { %v1463_v20 = vpop.f32.mrb[28].mxu0  ;;  %v1534_v40 = vpop.f32.mrb[28].mxu1  ;;  %v11884_v37 = vadd.f32 %v1582_v44, %v1581_v51 }
 0x278   :  { %v10376_v7 = vadd.f32 %v1463_v20, %v13708_v54  ;;  %v1465_v4 = vpop.f32.mrb[29].mxu0  ;;  %v1536_v45 = vpop.f32.mrb[29].mxu1  ;;  %v10392_v36 = vadd.f32 %v1534_v40, %v11791_v3 }
 0x279   :  { %v10377_v42 = vadd.f32 %v1465_v4, %v13709_v39  ;;  %10644 = vtanh.f32 %v11884_v37  ;;  %v10393_v55 = vadd.f32 %v1536_v45, %v11797_v29 }
 0x27a   :  { %v7740_v11 = vmul.f32 -1.442695, %v10376_v7  ;;  %v7742_v44 = vmul.f32 -1.442695, %v10392_v36  ;;  %v13711_v7 = vld [vmem:[#allocation38_spill] sm:$0xff] }
 0x27b   :  { %v7741_v16 = vmul.f32 -1.442695, %v10377_v42 }
 0x27c   :  { %10646 = vpow2.f32 %v7740_v11 }
 0x27d   :  { %10648 = vpow2.f32 %v7741_v16 }
 0x27e   :  { %10650 = vtanh.f32 %v10393_v55 }
 0x27f   :  { %10652 = vpow2.f32 %v7742_v44 }
 0x283   :  { %v10645_v51 = vpop.eup %10644 }
 0x284   :  { %v11891_v25 = vmul.f32 %v10645_v51, %v10643_v1 }
 0x286   :  { %13710 = vst [vmem:[#allocation39_spill] sm:$0xff] %v11891_v25  ;;  %v10647_v59 = vpop.eup %10646  ;;  %1665 = vmatmul.mubr.f32.vlgmr.msra.gmra.mrb[4].mxu0 %v11891_v25  ;;  %1736 = vmatmul.mubr.f32.vlgmr.msra.gmra.mrb[4].mxu1 %v11891_v25  ;;  %v13727_v25 = vld [vmem:[#allocation29_spill] sm:$0xff] }
 0x287   :  { %v1570_v20 = vadd.f32 1.0, %v10647_v59  ;;  %v10649_v48 = vpop.eup %10648  ;;  %8303 = vmatpush1.bf16.msra.mxu0 %v11607_v8  ;;  %8335 = vmatpush1.bf16.msra.mxu1 %v11611_v10  ;;  %v13713_v59 = vld [vmem:[#allocation15_spill] sm:$0xff] }
 0x288   :  { %v1571_v40 = vadd.f32 1.0, %v10649_v48  ;;  %8305 = vmatprep.subr.bf16.mxu0 %v11613_v13  ;;  %8337 = vmatprep.subr.bf16.mxu1 %v11617_v62  ;;  %v10651_v45 = vpop.eup %10650  ;;  %v13715_v48 = vld [vmem:[#allocation17_spill] sm:$0xff] }
 0x289   :  { %10654 = vrcp.f32 %v1570_v20  ;;  %1815 = vmatprep.mubr.f32.mxu0 %v13673_v63  ;;  %1886 = vmatprep.mubr.f32.mxu1 %v13673_v63  ;;  %v10653_v4 = vpop.eup %10652  ;;  %v13714_v20 = vld [vmem:[#allocation16_spill] sm:$0xff] }
 0x28a   :  { %10656 = vrcp.f32 %v1571_v40  ;;  %v1572_v36 = vadd.f32 1.0, %v10653_v4  ;;  %v13716_v40 = vld [vmem:[#allocation18_spill] sm:$0xff]  ;;  %v13718_v4 = vld [vmem:[#allocation20_spill] sm:$0xff] }
 0x28b   :  { %8307 = vmatpush1.bf16.msra.mxu0 %v11623_v31  ;;  %8339 = vmatpush1.bf16.msra.mxu1 %v11627_v34 }
 0x28c   :  { %8309 = vmatprep.subr.bf16.mxu0 %v11629_v35  ;;  %8341 = vmatprep.subr.bf16.mxu1 %v11632_v43  ;;  %10658 = vrcp.f32 %v1572_v36  ;;  %v13722_v36 = vld [vmem:[#allocation24_spill] sm:$0xff] }
 0x28f   :  { %8311 = vmatpush1.bf16.msra.mxu0 %v11637_v57  ;;  %8343 = vmatpush1.bf16.msra.mxu1 %v13683_v58 }
 0x290   :  { %8313 = vmatprep.subr.bf16.mxu0 %v13711_v7  ;;  %8345 = vmatprep.subr.bf16.mxu1 %v13685_v38 }
 0x293   :  { %v10655_v42 = vpop.eup %10654  ;;  %8315 = vmatpush1.bf16.msra.mxu0 %v13686_v28  ;;  %8347 = vmatpush1.bf16.msra.mxu1 %v13687_v61 }
 0x294   :  { %v1585_v11 = vmul.f32 %v10655_v42, %v10651_v45  ;;  %v10657_v16 = vpop.eup %10656  ;;  %8317 = vmatprep.subr.bf16.mxu0 %v13688_v46  ;;  %8349 = vmatprep.subr.bf16.mxu1 %v13689_v23  ;;  %v13717_v45 = vld [vmem:[#allocation19_spill] sm:$0xff]  ;;  %v13719_v42 = vld [vmem:[#allocation21_spill] sm:$0xff] }
 0x295   :  { %v1584_v1 = vmul.f32 %v10657_v16, %v11822_v26  ;;  %v13721_v16 = vld [vmem:[#allocation23_spill] sm:$0xff] }
 0x296   :  { %v10659_v26 = vpop.eup %10658 }
 0x297   :  { %v11914_v55 = vadd.f32 %v1585_v11, %v1584_v1  ;;  %8319 = vmatpush1.bf16.msra.mxu0 %v13690_v32  ;;  %8351 = vmatpush1.bf16.msra.mxu1 %v13691_v22  ;;  %v13720_v11 = vld [vmem:[#allocation22_spill] sm:$0xff]  ;;  %v13723_v1 = vld [vmem:[#allocation25_spill] sm:$0xff] }
 0x298   :  { %8321 = vmatprep.subr.bf16.mxu0 %v11667_v19  ;;  %8353 = vmatprep.subr.bf16.mxu1 %v13692_v49 }
 0x299   :  { %10660 = vtanh.f32 %v11914_v55 }
 0x29b   :  { %8323 = vmatpush1.bf16.msra.mxu0 %v11673_v60  ;;  %8355 = vmatpush1.bf16.msra.mxu1 %v11677_v0 }
 0x29c   :  { %8325 = vmatprep.subr.bf16.mxu0 %v11679_v47  ;;  %8357 = vmatprep.subr.bf16.mxu1 %v11682_v5 }
 0x29f   :  { %8327 = vmatpush1.bf16.msra.mxu0 %v11685_v14  ;;  %8359 = vmatpush1.bf16.msra.mxu1 %v11689_v2 }
 0x2a0   :  { %8329 = vmatprep.subr.bf16.mxu0 %v11691_v17  ;;  %8361 = vmatprep.subr.bf16.mxu1 %v11694_v41 }
 0x2a3   :  { %v10661_v51 = vpop.eup %10660  ;;  %8331 = vmatpush1.bf16.msra.mxu0 %v11697_v52  ;;  %8363 = vmatpush1.bf16.msra.mxu1 %v11701_v50 }
 0x2a4   :  { %v11931_v44 = vmul.f32 %v10661_v51, %v10659_v26  ;;  %8365 = vmatprep.subr.bf16.mxu0 %v11390_v53  ;;  %8397 = vmatprep.subr.bf16.mxu1 %v11394_v56  ;;  %v13724_v26 = vld [vmem:[#allocation26_spill] sm:$0xff]  ;;  %v13725_v51 = vld [vmem:[#allocation27_spill] sm:$0xff] }
 0x2a6   :  { %13712 = vst [vmem:[#allocation40_spill] sm:$0xff] %v11931_v44  ;;  %1816 = vmatmul.mubr.f32.vlgmr.msra.gmra.mrb[26].mxu0 %v11931_v44  ;;  %1887 = vmatmul.mubr.f32.vlgmr.msra.gmra.mrb[26].mxu1 %v11931_v44  ;;  %v13726_v44 = vld [vmem:[#allocation28_spill] sm:$0xff] }
 0x2a7   :  { %8367 = vmatpush1.bf16.msra.mxu0 %v11467_v6  ;;  %8399 = vmatpush1.bf16.msra.mxu1 %v11470_v9 }
 0x2a8   :  { %8369 = vmatprep.subr.bf16.mxu0 %v11472_v12  ;;  %8401 = vmatprep.subr.bf16.mxu1 %v11476_v15 }
 0x2a9   :  { %2018 = vmatprep.mubr.f32.mxu0 %v13673_v63  ;;  %2089 = vmatprep.mubr.f32.mxu1 %v13673_v63 }
 0x2ab   :  { %8371 = vmatpush1.bf16.msra.mxu0 %v11481_v18  ;;  %8403 = vmatpush1.bf16.msra.mxu1 %v11485_v21 }
 0x2ac   :  { %8373 = vmatprep.subr.bf16.mxu0 %v11489_v24  ;;  %8405 = vmatprep.subr.bf16.mxu1 %v11494_v27 }
 0x2af   :  { %8375 = vmatpush1.bf16.msra.mxu0 %v11499_v30  ;;  %8407 = vmatpush1.bf16.msra.mxu1 %v11503_v33  ;;  %v13738_v33 = vld [vmem:[#allocation51_spill] sm:$0xff] }
 0x2b0   :  { %8377 = vmatprep.subr.bf16.mxu0 %v13713_v59  ;;  %8409 = vmatprep.subr.bf16.mxu1 %v13714_v20  ;;  %v13736_v20 = vld [vmem:[#allocation49_spill] sm:$0xff] }
 0x2b3   :  { %8379 = vmatpush1.bf16.msra.mxu0 %v13715_v48  ;;  %8411 = vmatpush1.bf16.msra.mxu1 %v13716_v40  ;;  %v13735_v40 = vld [vmem:[#allocation48_spill] sm:$0xff] }
 0x2b4   :  { %8381 = vmatprep.subr.bf16.mxu0 %v13717_v45  ;;  %8413 = vmatprep.subr.bf16.mxu1 %v13718_v4  ;;  %v13728_v45 = vld [vmem:[#allocation30_spill] sm:$0xff]  ;;  %v13729_v4 = vld [vmem:[#allocation31_spill] sm:$0xff] }
 0x2b7   :  { %8383 = vmatpush1.bf16.msra.mxu0 %v13719_v42  ;;  %8415 = vmatpush1.bf16.msra.mxu1 %v13720_v11  ;;  %v13730_v42 = vld [vmem:[#allocation32_spill] sm:$0xff]  ;;  %v13731_v11 = vld [vmem:[#allocation33_spill] sm:$0xff] }
 0x2b8   :  { %8385 = vmatprep.subr.bf16.mxu0 %v13721_v16  ;;  %8417 = vmatprep.subr.bf16.mxu1 %v13722_v36  ;;  %v13732_v16 = vld [vmem:[#allocation34_spill] sm:$0xff]  ;;  %v13733_v36 = vld [vmem:[#allocation35_spill] sm:$0xff] }
 0x2bb   :  { %8387 = vmatpush1.bf16.msra.mxu0 %v13723_v1  ;;  %8419 = vmatpush1.bf16.msra.mxu1 %v13724_v26  ;;  %v13734_v1 = vld [vmem:[#allocation36_spill] sm:$0xff] }
 0x2bc   :  { %8389 = vmatprep.subr.bf16.mxu0 %v13725_v51  ;;  %8421 = vmatprep.subr.bf16.mxu1 %v13726_v44 }
 0x2bf   :  { %8391 = vmatpush1.bf16.msra.mxu0 %v13727_v25  ;;  %8423 = vmatpush1.bf16.msra.mxu1 %v13728_v45 }
 0x2c0   :  { %8393 = vmatprep.subr.bf16.mxu0 %v13729_v4  ;;  %8425 = vmatprep.subr.bf16.mxu1 %v13730_v42  ;;  %v13737_v42 = vld [vmem:[#allocation50_spill] sm:$0xff] }
 0x2c3   :  { %8395 = vmatpush1.bf16.msra.mxu0 %v13731_v11  ;;  %8427 = vmatpush1.bf16.msra.mxu1 %v13732_v16 }
 0x2c4   :  { %8429 = vmatprep.subr.bf16.mxu0 %v13733_v36  ;;  %8461 = vmatprep.subr.bf16.mxu1 %v13734_v1 }
 0x359   :  { %v1666_v26 = vpop.f32.mrb[4].mxu0  ;;  %v1737_v51 = vpop.f32.mrb[4].mxu1 }
 0x35a   :  { %v10336_v44 = vadd.f32 %v1666_v26, %v13735_v40  ;;  %v1668_v48 = vpop.f32.mrb[5].mxu0  ;;  %v1739_v25 = vpop.f32.mrb[5].mxu1  ;;  %v10352_v11 = vadd.f32 %v1737_v51, %v13737_v42 }
 0x35b   :  { %v10337_v45 = vadd.f32 %v1668_v48, %v13736_v20  ;;  %v10353_v16 = vadd.f32 %v1739_v25, %v13738_v33 }
 0x35c   :  { %v7743_v59 = vmul.f32 -1.442695, %v10336_v44  ;;  %v7745_v30 = vmul.f32 -1.442695, %v10352_v11 }
 0x35d   :  { %v7744_v4 = vmul.f32 -1.442695, %v10337_v45 }
 0x35e   :  { %10662 = vpow2.f32 %v7743_v59 }
 0x35f   :  { %10664 = vpow2.f32 %v7744_v4 }
 0x360   :  { %10666 = vtanh.f32 %v10353_v16 }
 0x361   :  { %10668 = vpow2.f32 %v7745_v30 }
 0x368   :  { %v10663_v36 = vpop.eup %10662 }
 0x369   :  { %v1906_v27 = vadd.f32 1.0, %v10663_v36  ;;  %v10665_v1 = vpop.eup %10664 }
 0x36a   :  { %v1907_v26 = vadd.f32 1.0, %v10665_v1  ;;  %v10667_v40 = vpop.eup %10666 }
 0x36b   :  { %10670 = vrcp.f32 %v1906_v27  ;;  %v10669_v24 = vpop.eup %10668 }
 0x36c   :  { %10672 = vrcp.f32 %v1907_v26  ;;  %v1908_v59 = vadd.f32 1.0, %v10669_v24 }
 0x36e   :  { %10674 = vrcp.f32 %v1908_v59 }
 0x375   :  { %v10671_v48 = vpop.eup %10670 }
 0x376   :  { %v1936_v44 = vmul.f32 %v10671_v48, %v10667_v40  ;;  %v10673_v45 = vpop.eup %10672 }
 0x377   :  { %v1935_v4 = vmul.f32 %v10673_v45, %v11884_v37 }
 0x378   :  { %v10675_v37 = vpop.eup %10674 }
 0x379   :  { %v1817_v51 = vpop.f32.mrb[26].mxu0  ;;  %v1888_v42 = vpop.f32.mrb[26].mxu1  ;;  %v11976_v25 = vadd.f32 %v1936_v44, %v1935_v4 }
 0x37a   :  { %v10374_v11 = vadd.f32 %v1817_v51, %v13708_v54  ;;  %v1819_v16 = vpop.f32.mrb[27].mxu0  ;;  %v1890_v36 = vpop.f32.mrb[27].mxu1  ;;  %v10390_v24 = vadd.f32 %v1888_v42, %v11791_v3 }
 0x37b   :  { %v10375_v27 = vadd.f32 %v1819_v16, %v13709_v39  ;;  %10676 = vtanh.f32 %v11976_v25  ;;  %v10391_v40 = vadd.f32 %v1890_v36, %v11797_v29 }
 0x37c   :  { %v7746_v30 = vmul.f32 -1.442695, %v10374_v11  ;;  %v7748_v48 = vmul.f32 -1.442695, %v10390_v24 }
 0x37d   :  { %v7747_v1 = vmul.f32 -1.442695, %v10375_v27 }
 0x37e   :  { %10678 = vpow2.f32 %v7746_v30 }
 0x37f   :  { %10680 = vpow2.f32 %v7747_v1 }
 0x380   :  { %10682 = vtanh.f32 %v10391_v40 }
 0x381   :  { %10684 = vpow2.f32 %v7748_v48  ;;  %v13742_v48 = vld [vmem:[#allocation12_spill] sm:$0xff] }
 0x385   :  { %v10677_v26 = vpop.eup %10676 }
 0x386   :  { %v11983_v44 = vmul.f32 %v10677_v26, %v10675_v37  ;;  %v13741_v26 = vld [vmem:[#allocation11_spill] sm:$0xff] }
 0x388   :  { %13739 = vst [vmem:[#allocation41_spill] sm:$0xff] %v11983_v44  ;;  %v10679_v45 = vpop.eup %10678  ;;  %2019 = vmatmul.mubr.f32.vlgmr.msra.gmra.mrb[6].mxu0 %v11983_v44  ;;  %2090 = vmatmul.mubr.f32.vlgmr.msra.gmra.mrb[6].mxu1 %v11983_v44  ;;  %v13757_v44 = vld [vmem:[#allocation27_spill] sm:$0xff] }
 0x389   :  { %v1924_v4 = vadd.f32 1.0, %v10679_v45  ;;  %v10681_v59 = vpop.eup %10680  ;;  %8431 = vmatpush1.bf16.msra.mxu0 %v11607_v8  ;;  %8463 = vmatpush1.bf16.msra.mxu1 %v11611_v10  ;;  %v13743_v45 = vld [vmem:[#allocation13_spill] sm:$0xff] }
 0x38a   :  { %v1925_v42 = vadd.f32 1.0, %v10681_v59  ;;  %8433 = vmatprep.subr.bf16.mxu0 %v11613_v13  ;;  %8465 = vmatprep.subr.bf16.mxu1 %v11617_v62  ;;  %v10683_v51 = vpop.eup %10682  ;;  %v13745_v59 = vld [vmem:[#allocation15_spill] sm:$0xff] }
 0x38b   :  { %10686 = vrcp.f32 %v1924_v4  ;;  %2169 = vmatprep.mubr.f32.mxu0 %v13673_v63  ;;  %2240 = vmatprep.mubr.f32.mxu1 %v13673_v63  ;;  %v10685_v11 = vpop.eup %10684  ;;  %v13744_v4 = vld [vmem:[#allocation14_spill] sm:$0xff] }
 0x38c   :  { %10688 = vrcp.f32 %v1925_v42  ;;  %v1926_v30 = vadd.f32 1.0, %v10685_v11  ;;  %v13746_v42 = vld [vmem:[#allocation16_spill] sm:$0xff]  ;;  %v13748_v11 = vld [vmem:[#allocation18_spill] sm:$0xff] }
 0x38d   :  { %8435 = vmatpush1.bf16.msra.mxu0 %v11623_v31  ;;  %8467 = vmatpush1.bf16.msra.mxu1 %v11627_v34 }
 0x38e   :  { %8437 = vmatprep.subr.bf16.mxu0 %v11629_v35  ;;  %8469 = vmatprep.subr.bf16.mxu1 %v11632_v43  ;;  %10690 = vrcp.f32 %v1926_v30  ;;  %v13752_v30 = vld [vmem:[#allocation22_spill] sm:$0xff] }
 0x391   :  { %8439 = vmatpush1.bf16.msra.mxu0 %v11637_v57  ;;  %8471 = vmatpush1.bf16.msra.mxu1 %v13683_v58 }
 0x392   :  { %8441 = vmatprep.subr.bf16.mxu0 %v13711_v7  ;;  %8473 = vmatprep.subr.bf16.mxu1 %v13685_v38 }
 0x395   :  { %v10687_v16 = vpop.eup %10686  ;;  %8443 = vmatpush1.bf16.msra.mxu0 %v13686_v28  ;;  %8475 = vmatpush1.bf16.msra.mxu1 %v13687_v61 }
 0x396   :  { %v1939_v36 = vmul.f32 %v10687_v16, %v10683_v51  ;;  %v10689_v27 = vpop.eup %10688  ;;  %8445 = vmatprep.subr.bf16.mxu0 %v13688_v46  ;;  %8477 = vmatprep.subr.bf16.mxu1 %v13689_v23  ;;  %v13747_v51 = vld [vmem:[#allocation17_spill] sm:$0xff]  ;;  %v13749_v16 = vld [vmem:[#allocation19_spill] sm:$0xff] }
 0x397   :  { %v1938_v1 = vmul.f32 %v10689_v27, %v11914_v55  ;;  %v13751_v27 = vld [vmem:[#allocation21_spill] sm:$0xff] }
 0x398   :  { %v10691_v55 = vpop.eup %10690 }
 0x399   :  { %v12006_v24 = vadd.f32 %v1939_v36, %v1938_v1  ;;  %8447 = vmatpush1.bf16.msra.mxu0 %v13690_v32  ;;  %8479 = vmatpush1.bf16.msra.mxu1 %v13691_v22  ;;  %v13750_v36 = vld [vmem:[#allocation20_spill] sm:$0xff]  ;;  %v13753_v1 = vld [vmem:[#allocation23_spill] sm:$0xff] }
 0x39a   :  { %8449 = vmatprep.subr.bf16.mxu0 %v11667_v19  ;;  %8481 = vmatprep.subr.bf16.mxu1 %v13692_v49 }
 0x39b   :  { %10692 = vtanh.f32 %v12006_v24 }
 0x39d   :  { %8451 = vmatpush1.bf16.msra.mxu0 %v11673_v60  ;;  %8483 = vmatpush1.bf16.msra.mxu1 %v11677_v0 }
 0x39e   :  { %8453 = vmatprep.subr.bf16.mxu0 %v11679_v47  ;;  %8485 = vmatprep.subr.bf16.mxu1 %v11682_v5 }
 0x3a1   :  { %8455 = vmatpush1.bf16.msra.mxu0 %v11685_v14  ;;  %8487 = vmatpush1.bf16.msra.mxu1 %v11689_v2 }
 0x3a2   :  { %8457 = vmatprep.subr.bf16.mxu0 %v11691_v17  ;;  %8489 = vmatprep.subr.bf16.mxu1 %v11694_v41 }
 0x3a5   :  { %v10693_v37 = vpop.eup %10692  ;;  %8459 = vmatpush1.bf16.msra.mxu0 %v11697_v52  ;;  %8491 = vmatpush1.bf16.msra.mxu1 %v11701_v50 }
 0x3a6   :  { %v12023_v40 = vmul.f32 %v10693_v37, %v10691_v55  ;;  %8493 = vmatprep.subr.bf16.mxu0 %v11390_v53  ;;  %8525 = vmatprep.subr.bf16.mxu1 %v11394_v56  ;;  %v13754_v55 = vld [vmem:[#allocation24_spill] sm:$0xff]  ;;  %v13755_v37 = vld [vmem:[#allocation25_spill] sm:$0xff] }
 0x3a8   :  { %13740 = vst [vmem:[#allocation42_spill] sm:$0xff] %v12023_v40  ;;  %2170 = vmatmul.mubr.f32.vlgmr.msra.gmra.mrb[24].mxu0 %v12023_v40  ;;  %2241 = vmatmul.mubr.f32.vlgmr.msra.gmra.mrb[24].mxu1 %v12023_v40  ;;  %v13756_v40 = vld [vmem:[#allocation26_spill] sm:$0xff] }
 0x3a9   :  { %8495 = vmatpush1.bf16.msra.mxu0 %v11467_v6  ;;  %8527 = vmatpush1.bf16.msra.mxu1 %v11470_v9 }
 0x3aa   :  { %8497 = vmatprep.subr.bf16.mxu0 %v11472_v12  ;;  %8529 = vmatprep.subr.bf16.mxu1 %v11476_v15 }
 0x3ab   :  { %2371 = vmatprep.mubr.f32.mxu0 %v13673_v63  ;;  %2442 = vmatprep.mubr.f32.mxu1 %v13673_v63 }
 0x3ad   :  { %8499 = vmatpush1.bf16.msra.mxu0 %v11481_v18  ;;  %8531 = vmatpush1.bf16.msra.mxu1 %v11485_v21 }
 0x3ae   :  { %8501 = vmatprep.subr.bf16.mxu0 %v13741_v26  ;;  %8533 = vmatprep.subr.bf16.mxu1 %v13742_v48 }
 0x3b1   :  { %8503 = vmatpush1.bf16.msra.mxu0 %v13743_v45  ;;  %8535 = vmatpush1.bf16.msra.mxu1 %v13744_v4 }
 0x3b2   :  { %8505 = vmatprep.subr.bf16.mxu0 %v13745_v59  ;;  %8537 = vmatprep.subr.bf16.mxu1 %v13746_v42  ;;  %v13767_v42 = vld [vmem:[#allocation48_spill] sm:$0xff] }
 0x3b5   :  { %8507 = vmatpush1.bf16.msra.mxu0 %v13747_v51  ;;  %8539 = vmatpush1.bf16.msra.mxu1 %v13748_v11  ;;  %v13758_v51 = vld [vmem:[#allocation28_spill] sm:$0xff]  ;;  %v13759_v11 = vld [vmem:[#allocation29_spill] sm:$0xff] }
 0x3b6   :  { %8509 = vmatprep.subr.bf16.mxu0 %v13749_v16  ;;  %8541 = vmatprep.subr.bf16.mxu1 %v13750_v36  ;;  %v13760_v16 = vld [vmem:[#allocation30_spill] sm:$0xff]  ;;  %v13761_v36 = vld [vmem:[#allocation31_spill] sm:$0xff] }
 0x3b9   :  { %8511 = vmatpush1.bf16.msra.mxu0 %v13751_v27  ;;  %8543 = vmatpush1.bf16.msra.mxu1 %v13752_v30  ;;  %v13762_v27 = vld [vmem:[#allocation32_spill] sm:$0xff]  ;;  %v13763_v30 = vld [vmem:[#allocation33_spill] sm:$0xff] }
 0x3ba   :  { %8513 = vmatprep.subr.bf16.mxu0 %v13753_v1  ;;  %8545 = vmatprep.subr.bf16.mxu1 %v13754_v55  ;;  %v13764_v1 = vld [vmem:[#allocation34_spill] sm:$0xff]  ;;  %v13765_v55 = vld [vmem:[#allocation35_spill] sm:$0xff] }
 0x3bd   :  { %8515 = vmatpush1.bf16.msra.mxu0 %v13755_v37  ;;  %8547 = vmatpush1.bf16.msra.mxu1 %v13756_v40  ;;  %v13766_v37 = vld [vmem:[#allocation36_spill] sm:$0xff] }
 0x3be   :  { %8517 = vmatprep.subr.bf16.mxu0 %v13757_v44  ;;  %8549 = vmatprep.subr.bf16.mxu1 %v13758_v51 }
 0x3c1   :  { %8519 = vmatpush1.bf16.msra.mxu0 %v13759_v11  ;;  %8551 = vmatpush1.bf16.msra.mxu1 %v13760_v16 }
 0x3c2   :  { %8521 = vmatprep.subr.bf16.mxu0 %v13761_v36  ;;  %8553 = vmatprep.subr.bf16.mxu1 %v13762_v27  ;;  %v13768_v27 = vld [vmem:[#allocation50_spill] sm:$0xff] }
 0x3c5   :  { %8523 = vmatpush1.bf16.msra.mxu0 %v13763_v30  ;;  %8555 = vmatpush1.bf16.msra.mxu1 %v13764_v1 }
 0x3c6   :  { %8557 = vmatprep.subr.bf16.mxu0 %v13765_v55  ;;  %8589 = vmatprep.subr.bf16.mxu1 %v13766_v37 }
 0x45b   :  { %v2020_v40 = vpop.f32.mrb[6].mxu0  ;;  %v2091_v44 = vpop.f32.mrb[6].mxu1 }
 0x45c   :  { %v10338_v51 = vadd.f32 %v2020_v40, %v13767_v42  ;;  %v2022_v59 = vpop.f32.mrb[7].mxu0  ;;  %v2093_v11 = vpop.f32.mrb[7].mxu1  ;;  %v10354_v30 = vadd.f32 %v2091_v44, %v13768_v27 }
 0x45d   :  { %v10339_v16 = vadd.f32 %v2022_v59, %v13736_v20  ;;  %v10355_v1 = vadd.f32 %v2093_v11, %v13738_v33 }
 0x45e   :  { %v7749_v4 = vmul.f32 -1.442695, %v10338_v51  ;;  %v7751_v45 = vmul.f32 -1.442695, %v10354_v30 }
 0x45f   :  { %v7750_v36 = vmul.f32 -1.442695, %v10339_v16 }
 0x460   :  { %10694 = vpow2.f32 %v7749_v4 }
 0x461   :  { %10696 = vpow2.f32 %v7750_v36 }
 0x462   :  { %10698 = vtanh.f32 %v10355_v1 }
 0x463   :  { %10700 = vpow2.f32 %v7751_v45 }
 0x46a   :  { %v10695_v55 = vpop.eup %10694 }
 0x46b   :  { %v2260_v48 = vadd.f32 1.0, %v10695_v55  ;;  %v10697_v37 = vpop.eup %10696 }
 0x46c   :  { %v2261_v40 = vadd.f32 1.0, %v10697_v37  ;;  %v10699_v42 = vpop.eup %10698 }
 0x46d   :  { %10702 = vrcp.f32 %v2260_v48  ;;  %v10701_v26 = vpop.eup %10700 }
 0x46e   :  { %10704 = vrcp.f32 %v2261_v40  ;;  %v2262_v4 = vadd.f32 1.0, %v10701_v26 }
 0x470   :  { %10706 = vrcp.f32 %v2262_v4 }
 0x477   :  { %v10703_v59 = vpop.eup %10702 }
 0x478   :  { %v2290_v51 = vmul.f32 %v10703_v59, %v10699_v42  ;;  %v10705_v16 = vpop.eup %10704 }
 0x479   :  { %v2289_v36 = vmul.f32 %v10705_v16, %v11976_v25 }
 0x47a   :  { %v10707_v25 = vpop.eup %10706 }
 0x47b   :  { %v2171_v44 = vpop.f32.mrb[24].mxu0  ;;  %v2242_v27 = vpop.f32.mrb[24].mxu1  ;;  %v12068_v11 = vadd.f32 %v2290_v51, %v2289_v36 }
 0x47c   :  { %v10372_v30 = vadd.f32 %v2171_v44, %v13708_v54  ;;  %v2173_v1 = vpop.f32.mrb[25].mxu0  ;;  %v2244_v55 = vpop.f32.mrb[25].mxu1  ;;  %v10388_v26 = vadd.f32 %v2242_v27, %v11791_v3 }
 0x47d   :  { %v10373_v48 = vadd.f32 %v2173_v1, %v13709_v39  ;;  %10708 = vtanh.f32 %v12068_v11  ;;  %v10389_v42 = vadd.f32 %v2244_v55, %v11797_v29 }
 0x47e   :  { %v7752_v45 = vmul.f32 -1.442695, %v10372_v30  ;;  %v7754_v59 = vmul.f32 -1.442695, %v10388_v26 }
 0x47f   :  { %v7753_v37 = vmul.f32 -1.442695, %v10373_v48 }
 0x480   :  { %10710 = vpow2.f32 %v7752_v45 }
 0x481   :  { %10712 = vpow2.f32 %v7753_v37 }
 0x482   :  { %10714 = vtanh.f32 %v10389_v42 }
 0x483   :  { %10716 = vpow2.f32 %v7754_v59  ;;  %v13772_v59 = vld [vmem:[#allocation12_spill] sm:$0xff] }
 0x487   :  { %v10709_v40 = vpop.eup %10708 }
 0x488   :  { %v12075_v51 = vmul.f32 %v10709_v40, %v10707_v25  ;;  %v13771_v40 = vld [vmem:[#allocation11_spill] sm:$0xff] }
 0x48a   :  { %13769 = vst [vmem:[#allocation43_spill] sm:$0xff] %v12075_v51  ;;  %v10711_v16 = vpop.eup %10710  ;;  %2372 = vmatmul.mubr.f32.vlgmr.msra.gmra.mrb[8].mxu0 %v12075_v51  ;;  %2443 = vmatmul.mubr.f32.vlgmr.msra.gmra.mrb[8].mxu1 %v12075_v51  ;;  %v13787_v51 = vld [vmem:[#allocation27_spill] sm:$0xff] }
 0x48b   :  { %v2278_v36 = vadd.f32 1.0, %v10711_v16  ;;  %v10713_v4 = vpop.eup %10712  ;;  %8559 = vmatpush1.bf16.msra.mxu0 %v11607_v8  ;;  %8591 = vmatpush1.bf16.msra.mxu1 %v11611_v10  ;;  %v13773_v16 = vld [vmem:[#allocation13_spill] sm:$0xff] }
 0x48c   :  { %v2279_v27 = vadd.f32 1.0, %v10713_v4  ;;  %8561 = vmatprep.subr.bf16.mxu0 %v11613_v13  ;;  %8593 = vmatprep.subr.bf16.mxu1 %v11617_v62  ;;  %v10715_v44 = vpop.eup %10714  ;;  %v13775_v4 = vld [vmem:[#allocation15_spill] sm:$0xff] }
 0x48d   :  { %10718 = vrcp.f32 %v2278_v36  ;;  %2521 = vmatprep.mubr.f32.mxu0 %v13673_v63  ;;  %2592 = vmatprep.mubr.f32.mxu1 %v13673_v63  ;;  %v10717_v30 = vpop.eup %10716  ;;  %v13774_v36 = vld [vmem:[#allocation14_spill] sm:$0xff] }
 0x48e   :  { %10720 = vrcp.f32 %v2279_v27  ;;  %v2280_v45 = vadd.f32 1.0, %v10717_v30  ;;  %v13776_v27 = vld [vmem:[#allocation16_spill] sm:$0xff]  ;;  %v13778_v30 = vld [vmem:[#allocation18_spill] sm:$0xff] }
 0x48f   :  { %8563 = vmatpush1.bf16.msra.mxu0 %v11623_v31  ;;  %8595 = vmatpush1.bf16.msra.mxu1 %v11627_v34 }
 0x490   :  { %8565 = vmatprep.subr.bf16.mxu0 %v11629_v35  ;;  %8597 = vmatprep.subr.bf16.mxu1 %v11632_v43  ;;  %10722 = vrcp.f32 %v2280_v45  ;;  %v13782_v45 = vld [vmem:[#allocation22_spill] sm:$0xff] }
 0x493   :  { %8567 = vmatpush1.bf16.msra.mxu0 %v11637_v57  ;;  %8599 = vmatpush1.bf16.msra.mxu1 %v13683_v58 }
 0x494   :  { %8569 = vmatprep.subr.bf16.mxu0 %v13711_v7  ;;  %8601 = vmatprep.subr.bf16.mxu1 %v13685_v38 }
 0x497   :  { %v10719_v1 = vpop.eup %10718  ;;  %8571 = vmatpush1.bf16.msra.mxu0 %v13686_v28  ;;  %8603 = vmatpush1.bf16.msra.mxu1 %v13687_v61 }
 0x498   :  { %v2293_v55 = vmul.f32 %v10719_v1, %v10715_v44  ;;  %v10721_v48 = vpop.eup %10720  ;;  %8573 = vmatprep.subr.bf16.mxu0 %v13688_v46  ;;  %8605 = vmatprep.subr.bf16.mxu1 %v13689_v23  ;;  %v13777_v44 = vld [vmem:[#allocation17_spill] sm:$0xff]  ;;  %v13779_v1 = vld [vmem:[#allocation19_spill] sm:$0xff] }
 0x499   :  { %v2292_v37 = vmul.f32 %v10721_v48, %v12006_v24  ;;  %v13781_v48 = vld [vmem:[#allocation21_spill] sm:$0xff] }
 0x49a   :  { %v10723_v24 = vpop.eup %10722 }
 0x49b   :  { %v12098_v26 = vadd.f32 %v2293_v55, %v2292_v37  ;;  %8575 = vmatpush1.bf16.msra.mxu0 %v13690_v32  ;;  %8607 = vmatpush1.bf16.msra.mxu1 %v13691_v22  ;;  %v13780_v55 = vld [vmem:[#allocation20_spill] sm:$0xff]  ;;  %v13783_v37 = vld [vmem:[#allocation23_spill] sm:$0xff] }
 0x49c   :  { %8577 = vmatprep.subr.bf16.mxu0 %v11667_v19  ;;  %8609 = vmatprep.subr.bf16.mxu1 %v13692_v49 }
 0x49d   :  { %10724 = vtanh.f32 %v12098_v26 }
 0x49f   :  { %8579 = vmatpush1.bf16.msra.mxu0 %v11673_v60  ;;  %8611 = vmatpush1.bf16.msra.mxu1 %v11677_v0 }
 0x4a0   :  { %8581 = vmatprep.subr.bf16.mxu0 %v11679_v47  ;;  %8613 = vmatprep.subr.bf16.mxu1 %v11682_v5 }
 0x4a3   :  { %8583 = vmatpush1.bf16.msra.mxu0 %v11685_v14  ;;  %8615 = vmatpush1.bf16.msra.mxu1 %v11689_v2 }
 0x4a4   :  { %8585 = vmatprep.subr.bf16.mxu0 %v11691_v17  ;;  %8617 = vmatprep.subr.bf16.mxu1 %v11694_v41 }
 0x4a7   :  { %v10725_v25 = vpop.eup %10724  ;;  %8587 = vmatpush1.bf16.msra.mxu0 %v11697_v52  ;;  %8619 = vmatpush1.bf16.msra.mxu1 %v11701_v50 }
 0x4a8   :  { %v12115_v42 = vmul.f32 %v10725_v25, %v10723_v24  ;;  %8621 = vmatprep.subr.bf16.mxu0 %v11390_v53  ;;  %8653 = vmatprep.subr.bf16.mxu1 %v11394_v56  ;;  %v13784_v24 = vld [vmem:[#allocation24_spill] sm:$0xff]  ;;  %v13785_v25 = vld [vmem:[#allocation25_spill] sm:$0xff] }
 0x4aa   :  { %13770 = vst [vmem:[#allocation44_spill] sm:$0xff] %v12115_v42  ;;  %2522 = vmatmul.mubr.f32.vlgmr.msra.gmra.mrb[22].mxu0 %v12115_v42  ;;  %2593 = vmatmul.mubr.f32.vlgmr.msra.gmra.mrb[22].mxu1 %v12115_v42  ;;  %v13786_v42 = vld [vmem:[#allocation26_spill] sm:$0xff] }
 0x4ab   :  { %8623 = vmatpush1.bf16.msra.mxu0 %v11467_v6  ;;  %8655 = vmatpush1.bf16.msra.mxu1 %v11470_v9 }
 0x4ac   :  { %8625 = vmatprep.subr.bf16.mxu0 %v11472_v12  ;;  %8657 = vmatprep.subr.bf16.mxu1 %v11476_v15 }
 0x4ad   :  { %2721 = vmatprep.mubr.f32.mxu0 %v13673_v63  ;;  %2792 = vmatprep.mubr.f32.mxu1 %v13673_v63 }
 0x4af   :  { %8627 = vmatpush1.bf16.msra.mxu0 %v11481_v18  ;;  %8659 = vmatpush1.bf16.msra.mxu1 %v11485_v21 }
 0x4b0   :  { %8629 = vmatprep.subr.bf16.mxu0 %v13771_v40  ;;  %8661 = vmatprep.subr.bf16.mxu1 %v13772_v59 }
 0x4b3   :  { %8631 = vmatpush1.bf16.msra.mxu0 %v13773_v16  ;;  %8663 = vmatpush1.bf16.msra.mxu1 %v13774_v36 }
 0x4b4   :  { %8633 = vmatprep.subr.bf16.mxu0 %v13775_v4  ;;  %8665 = vmatprep.subr.bf16.mxu1 %v13776_v27  ;;  %v13797_v27 = vld [vmem:[#allocation48_spill] sm:$0xff] }
 0x4b7   :  { %8635 = vmatpush1.bf16.msra.mxu0 %v13777_v44  ;;  %8667 = vmatpush1.bf16.msra.mxu1 %v13778_v30  ;;  %v13788_v44 = vld [vmem:[#allocation28_spill] sm:$0xff]  ;;  %v13789_v30 = vld [vmem:[#allocation29_spill] sm:$0xff] }
 0x4b8   :  { %8637 = vmatprep.subr.bf16.mxu0 %v13779_v1  ;;  %8669 = vmatprep.subr.bf16.mxu1 %v13780_v55  ;;  %v13790_v1 = vld [vmem:[#allocation30_spill] sm:$0xff]  ;;  %v13791_v55 = vld [vmem:[#allocation31_spill] sm:$0xff] }
 0x4bb   :  { %8639 = vmatpush1.bf16.msra.mxu0 %v13781_v48  ;;  %8671 = vmatpush1.bf16.msra.mxu1 %v13782_v45  ;;  %v13792_v48 = vld [vmem:[#allocation32_spill] sm:$0xff]  ;;  %v13793_v45 = vld [vmem:[#allocation33_spill] sm:$0xff] }
 0x4bc   :  { %8641 = vmatprep.subr.bf16.mxu0 %v13783_v37  ;;  %8673 = vmatprep.subr.bf16.mxu1 %v13784_v24  ;;  %v13794_v37 = vld [vmem:[#allocation34_spill] sm:$0xff]  ;;  %v13795_v24 = vld [vmem:[#allocation35_spill] sm:$0xff] }
 0x4bf   :  { %8643 = vmatpush1.bf16.msra.mxu0 %v13785_v25  ;;  %8675 = vmatpush1.bf16.msra.mxu1 %v13786_v42  ;;  %v13796_v25 = vld [vmem:[#allocation36_spill] sm:$0xff] }
 0x4c0   :  { %8645 = vmatprep.subr.bf16.mxu0 %v13787_v51  ;;  %8677 = vmatprep.subr.bf16.mxu1 %v13788_v44 }
 0x4c3   :  { %8647 = vmatpush1.bf16.msra.mxu0 %v13789_v30  ;;  %8679 = vmatpush1.bf16.msra.mxu1 %v13790_v1 }
 0x4c4   :  { %8649 = vmatprep.subr.bf16.mxu0 %v13791_v55  ;;  %8681 = vmatprep.subr.bf16.mxu1 %v13792_v48  ;;  %v13798_v48 = vld [vmem:[#allocation50_spill] sm:$0xff] }
 0x4c7   :  { %8651 = vmatpush1.bf16.msra.mxu0 %v13793_v45  ;;  %8683 = vmatpush1.bf16.msra.mxu1 %v13794_v37 }
 0x4c8   :  { %8685 = vmatprep.subr.bf16.mxu0 %v13795_v24  ;;  %8717 = vmatprep.subr.bf16.mxu1 %v13796_v25 }
 0x55d   :  { %v2373_v42 = vpop.f32.mrb[8].mxu0  ;;  %v2444_v51 = vpop.f32.mrb[8].mxu1 }
 0x55e   :  { %v10340_v44 = vadd.f32 %v2373_v42, %v13797_v27  ;;  %v2375_v4 = vpop.f32.mrb[9].mxu0  ;;  %v2446_v30 = vpop.f32.mrb[9].mxu1  ;;  %v10356_v45 = vadd.f32 %v2444_v51, %v13798_v48 }
 0x55f   :  { %v10341_v1 = vadd.f32 %v2375_v4, %v13736_v20  ;;  %v10357_v37 = vadd.f32 %v2446_v30, %v13738_v33 }
 0x560   :  { %v7755_v36 = vmul.f32 -1.442695, %v10340_v44  ;;  %v7757_v16 = vmul.f32 -1.442695, %v10356_v45 }
 0x561   :  { %v7756_v55 = vmul.f32 -1.442695, %v10341_v1 }
 0x562   :  { %10726 = vpow2.f32 %v7755_v36 }
 0x563   :  { %10728 = vpow2.f32 %v7756_v55 }
 0x564   :  { %10730 = vtanh.f32 %v10357_v37 }
 0x565   :  { %10732 = vpow2.f32 %v7757_v16 }
 0x56c   :  { %v10727_v24 = vpop.eup %10726 }
 0x56d   :  { %v2612_v59 = vadd.f32 1.0, %v10727_v24  ;;  %v10729_v25 = vpop.eup %10728 }
 0x56e   :  { %v2613_v42 = vadd.f32 1.0, %v10729_v25  ;;  %v10731_v27 = vpop.eup %10730 }
 0x56f   :  { %10734 = vrcp.f32 %v2612_v59  ;;  %v10733_v40 = vpop.eup %10732 }
 0x570   :  { %10736 = vrcp.f32 %v2613_v42  ;;  %v2614_v36 = vadd.f32 1.0, %v10733_v40 }
 0x572   :  { %10738 = vrcp.f32 %v2614_v36 }
 0x579   :  { %v10735_v4 = vpop.eup %10734 }
 0x57a   :  { %v2642_v44 = vmul.f32 %v10735_v4, %v10731_v27  ;;  %v10737_v1 = vpop.eup %10736 }
 0x57b   :  { %v2641_v55 = vmul.f32 %v10737_v1, %v12068_v11 }
 0x57c   :  { %v10739_v11 = vpop.eup %10738 }
 0x57d   :  { %v2523_v51 = vpop.f32.mrb[22].mxu0  ;;  %v2594_v48 = vpop.f32.mrb[22].mxu1  ;;  %v12160_v30 = vadd.f32 %v2642_v44, %v2641_v55 }
 0x57e   :  { %v10370_v45 = vadd.f32 %v2523_v51, %v13708_v54  ;;  %v2525_v37 = vpop.f32.mrb[23].mxu0  ;;  %v2596_v24 = vpop.f32.mrb[23].mxu1  ;;  %v10386_v40 = vadd.f32 %v2594_v48, %v11791_v3 }
 0x57f   :  { %v10371_v59 = vadd.f32 %v2525_v37, %v13709_v39  ;;  %10740 = vtanh.f32 %v12160_v30  ;;  %v10387_v27 = vadd.f32 %v2596_v24, %v11797_v29 }
 0x580   :  { %v7758_v16 = vmul.f32 -1.442695, %v10370_v45  ;;  %v7760_v4 = vmul.f32 -1.442695, %v10386_v40 }
 0x581   :  { %v7759_v25 = vmul.f32 -1.442695, %v10371_v59 }
 0x582   :  { %10742 = vpow2.f32 %v7758_v16 }
 0x583   :  { %10744 = vpow2.f32 %v7759_v25 }
 0x584   :  { %10746 = vtanh.f32 %v10387_v27 }
 0x585   :  { %10748 = vpow2.f32 %v7760_v4  ;;  %v13802_v4 = vld [vmem:[#allocation12_spill] sm:$0xff] }
 0x589   :  { %v10741_v42 = vpop.eup %10740 }
 0x58a   :  { %v12167_v44 = vmul.f32 %v10741_v42, %v10739_v11  ;;  %v13801_v42 = vld [vmem:[#allocation11_spill] sm:$0xff] }
 0x58c   :  { %13799 = vst [vmem:[#allocation45_spill] sm:$0xff] %v12167_v44  ;;  %v10743_v1 = vpop.eup %10742  ;;  %2722 = vmatmul.mubr.f32.vlgmr.msra.gmra.mrb[10].mxu0 %v12167_v44  ;;  %2793 = vmatmul.mubr.f32.vlgmr.msra.gmra.mrb[10].mxu1 %v12167_v44  ;;  %v13816_v44 = vld [vmem:[#allocation26_spill] sm:$0xff] }
 0x58d   :  { %v2630_v55 = vadd.f32 1.0, %v10743_v1  ;;  %v10745_v36 = vpop.eup %10744  ;;  %8687 = vmatpush1.bf16.msra.mxu0 %v11607_v8  ;;  %8719 = vmatpush1.bf16.msra.mxu1 %v11611_v10  ;;  %v13803_v1 = vld [vmem:[#allocation13_spill] sm:$0xff] }
 0x58e   :  { %v2631_v48 = vadd.f32 1.0, %v10745_v36  ;;  %8689 = vmatprep.subr.bf16.mxu0 %v11613_v13  ;;  %8721 = vmatprep.subr.bf16.mxu1 %v11617_v62  ;;  %v10747_v51 = vpop.eup %10746  ;;  %v13805_v36 = vld [vmem:[#allocation15_spill] sm:$0xff] }
 0x58f   :  { %10750 = vrcp.f32 %v2630_v55  ;;  %2871 = vmatprep.mubr.f32.mxu0 %v13673_v63  ;;  %2942 = vmatprep.mubr.f32.mxu1 %v13673_v63  ;;  %v10749_v45 = vpop.eup %10748  ;;  %v13804_v55 = vld [vmem:[#allocation14_spill] sm:$0xff] }
 0x590   :  { %10752 = vrcp.f32 %v2631_v48  ;;  %v2632_v16 = vadd.f32 1.0, %v10749_v45  ;;  %v13806_v48 = vld [vmem:[#allocation16_spill] sm:$0xff]  ;;  %v13808_v45 = vld [vmem:[#allocation18_spill] sm:$0xff] }
 0x591   :  { %8691 = vmatpush1.bf16.msra.mxu0 %v11623_v31  ;;  %8723 = vmatpush1.bf16.msra.mxu1 %v11627_v34 }
 0x592   :  { %8693 = vmatprep.subr.bf16.mxu0 %v11629_v35  ;;  %8725 = vmatprep.subr.bf16.mxu1 %v11632_v43  ;;  %10754 = vrcp.f32 %v2632_v16  ;;  %v13812_v16 = vld [vmem:[#allocation22_spill] sm:$0xff] }
 0x595   :  { %8695 = vmatpush1.bf16.msra.mxu0 %v11637_v57  ;;  %8727 = vmatpush1.bf16.msra.mxu1 %v13683_v58 }
 0x596   :  { %8697 = vmatprep.subr.bf16.mxu0 %v13711_v7  ;;  %8729 = vmatprep.subr.bf16.mxu1 %v13685_v38 }
 0x599   :  { %v10751_v37 = vpop.eup %10750  ;;  %8699 = vmatpush1.bf16.msra.mxu0 %v13686_v28  ;;  %8731 = vmatpush1.bf16.msra.mxu1 %v13687_v61 }
 0x59a   :  { %v2645_v24 = vmul.f32 %v10751_v37, %v10747_v51  ;;  %v10753_v59 = vpop.eup %10752  ;;  %8701 = vmatprep.subr.bf16.mxu0 %v13688_v46  ;;  %8733 = vmatprep.subr.bf16.mxu1 %v13689_v23  ;;  %v13807_v51 = vld [vmem:[#allocation17_spill] sm:$0xff]  ;;  %v13809_v37 = vld [vmem:[#allocation19_spill] sm:$0xff] }
 0x59b   :  { %v2644_v25 = vmul.f32 %v10753_v59, %v12098_v26  ;;  %v13811_v59 = vld [vmem:[#allocation21_spill] sm:$0xff] }
 0x59c   :  { %v10755_v26 = vpop.eup %10754 }
 0x59d   :  { %v12190_v40 = vadd.f32 %v2645_v24, %v2644_v25  ;;  %8703 = vmatpush1.bf16.msra.mxu0 %v13690_v32  ;;  %8735 = vmatpush1.bf16.msra.mxu1 %v13691_v22  ;;  %v13810_v24 = vld [vmem:[#allocation20_spill] sm:$0xff]  ;;  %v13813_v25 = vld [vmem:[#allocation23_spill] sm:$0xff] }
 0x59e   :  { %8705 = vmatprep.subr.bf16.mxu0 %v11667_v19  ;;  %8737 = vmatprep.subr.bf16.mxu1 %v13692_v49 }
 0x59f   :  { %10756 = vtanh.f32 %v12190_v40 }
 0x5a1   :  { %8707 = vmatpush1.bf16.msra.mxu0 %v11673_v60  ;;  %8739 = vmatpush1.bf16.msra.mxu1 %v11677_v0 }
 0x5a2   :  { %8709 = vmatprep.subr.bf16.mxu0 %v11679_v47  ;;  %8741 = vmatprep.subr.bf16.mxu1 %v11682_v5 }
 0x5a5   :  { %8711 = vmatpush1.bf16.msra.mxu0 %v11685_v14  ;;  %8743 = vmatpush1.bf16.msra.mxu1 %v11689_v2 }
 0x5a6   :  { %8713 = vmatprep.subr.bf16.mxu0 %v11691_v17  ;;  %8745 = vmatprep.subr.bf16.mxu1 %v11694_v41 }
 0x5a9   :  { %v10757_v11 = vpop.eup %10756  ;;  %8715 = vmatpush1.bf16.msra.mxu0 %v11697_v52  ;;  %8747 = vmatpush1.bf16.msra.mxu1 %v11701_v50 }
 0x5aa   :  { %v12207_v27 = vmul.f32 %v10757_v11, %v10755_v26  ;;  %8749 = vmatprep.subr.bf16.mxu0 %v11390_v53  ;;  %8781 = vmatprep.subr.bf16.mxu1 %v11394_v56  ;;  %v13814_v26 = vld [vmem:[#allocation24_spill] sm:$0xff]  ;;  %v13815_v11 = vld [vmem:[#allocation25_spill] sm:$0xff] }
 0x5ac   :  { %13800 = vst [vmem:[#allocation46_spill] sm:$0xff] %v12207_v27  ;;  %2872 = vmatmul.mubr.f32.vlgmr.msra.gmra.mrb[20].mxu0 %v12207_v27  ;;  %2943 = vmatmul.mubr.f32.vlgmr.msra.gmra.mrb[20].mxu1 %v12207_v27  ;;  %v13817_v27 = vld [vmem:[#allocation27_spill] sm:$0xff] }
 0x5ad   :  { %8751 = vmatpush1.bf16.msra.mxu0 %v11467_v6  ;;  %8783 = vmatpush1.bf16.msra.mxu1 %v11470_v9 }
 0x5ae   :  { %8753 = vmatprep.subr.bf16.mxu0 %v11472_v12  ;;  %8785 = vmatprep.subr.bf16.mxu1 %v11476_v15 }
 0x5af   :  { %3071 = vmatprep.mubr.f32.mxu0 %v13673_v63  ;;  %3142 = vmatprep.mubr.f32.mxu1 %v13673_v63 }
 0x5b1   :  { %8755 = vmatpush1.bf16.msra.mxu0 %v11481_v18  ;;  %8787 = vmatpush1.bf16.msra.mxu1 %v11485_v21 }
 0x5b2   :  { %8757 = vmatprep.subr.bf16.mxu0 %v13801_v42  ;;  %8789 = vmatprep.subr.bf16.mxu1 %v13802_v4 }
 0x5b5   :  { %8759 = vmatpush1.bf16.msra.mxu0 %v13803_v1  ;;  %8791 = vmatpush1.bf16.msra.mxu1 %v13804_v55 }
 0x5b6   :  { %8761 = vmatprep.subr.bf16.mxu0 %v13805_v36  ;;  %8793 = vmatprep.subr.bf16.mxu1 %v13806_v48  ;;  %v13827_v48 = vld [vmem:[#allocation48_spill] sm:$0xff] }
 0x5b9   :  { %8763 = vmatpush1.bf16.msra.mxu0 %v13807_v51  ;;  %8795 = vmatpush1.bf16.msra.mxu1 %v13808_v45  ;;  %v13818_v51 = vld [vmem:[#allocation28_spill] sm:$0xff]  ;;  %v13819_v45 = vld [vmem:[#allocation29_spill] sm:$0xff] }
 0x5ba   :  { %8765 = vmatprep.subr.bf16.mxu0 %v13809_v37  ;;  %8797 = vmatprep.subr.bf16.mxu1 %v13810_v24  ;;  %v13820_v37 = vld [vmem:[#allocation30_spill] sm:$0xff]  ;;  %v13821_v24 = vld [vmem:[#allocation31_spill] sm:$0xff] }
 0x5bd   :  { %8767 = vmatpush1.bf16.msra.mxu0 %v13811_v59  ;;  %8799 = vmatpush1.bf16.msra.mxu1 %v13812_v16  ;;  %v13822_v59 = vld [vmem:[#allocation32_spill] sm:$0xff]  ;;  %v13823_v16 = vld [vmem:[#allocation33_spill] sm:$0xff] }
 0x5be   :  { %8769 = vmatprep.subr.bf16.mxu0 %v13813_v25  ;;  %8801 = vmatprep.subr.bf16.mxu1 %v13814_v26  ;;  %v13824_v25 = vld [vmem:[#allocation34_spill] sm:$0xff]  ;;  %v13825_v26 = vld [vmem:[#allocation35_spill] sm:$0xff] }
 0x5c1   :  { %8771 = vmatpush1.bf16.msra.mxu0 %v13815_v11  ;;  %8803 = vmatpush1.bf16.msra.mxu1 %v13816_v44  ;;  %v13826_v11 = vld [vmem:[#allocation36_spill] sm:$0xff] }
 0x5c2   :  { %8773 = vmatprep.subr.bf16.mxu0 %v13817_v27  ;;  %8805 = vmatprep.subr.bf16.mxu1 %v13818_v51 }
 0x5c5   :  { %8775 = vmatpush1.bf16.msra.mxu0 %v13819_v45  ;;  %8807 = vmatpush1.bf16.msra.mxu1 %v13820_v37 }
 0x5c6   :  { %8777 = vmatprep.subr.bf16.mxu0 %v13821_v24  ;;  %8809 = vmatprep.subr.bf16.mxu1 %v13822_v59  ;;  %v13828_v59 = vld [vmem:[#allocation50_spill] sm:$0xff] }
 0x5c9   :  { %8779 = vmatpush1.bf16.msra.mxu0 %v13823_v16  ;;  %8811 = vmatpush1.bf16.msra.mxu1 %v13824_v25 }
 0x5ca   :  { %8813 = vmatprep.subr.bf16.mxu0 %v13825_v26  ;;  %8845 = vmatprep.subr.bf16.mxu1 %v13826_v11 }
 0x65f   :  { %v2723_v44 = vpop.f32.mrb[10].mxu0  ;;  %v2794_v27 = vpop.f32.mrb[10].mxu1 }
 0x660   :  { %v10342_v51 = vadd.f32 %v2723_v44, %v13827_v48  ;;  %v2725_v36 = vpop.f32.mrb[11].mxu0  ;;  %v2796_v45 = vpop.f32.mrb[11].mxu1  ;;  %v10358_v16 = vadd.f32 %v2794_v27, %v13828_v59 }
 0x661   :  { %v10343_v37 = vadd.f32 %v2725_v36, %v13736_v20  ;;  %v10359_v25 = vadd.f32 %v2796_v45, %v13738_v33 }
 0x662   :  { %v7761_v55 = vmul.f32 -1.442695, %v10342_v51  ;;  %v7763_v1 = vmul.f32 -1.442695, %v10358_v16 }
 0x663   :  { %v7762_v24 = vmul.f32 -1.442695, %v10343_v37 }
 0x664   :  { %10758 = vpow2.f32 %v7761_v55 }
 0x665   :  { %10760 = vpow2.f32 %v7762_v24 }
 0x666   :  { %10762 = vtanh.f32 %v10359_v25 }
 0x667   :  { %10764 = vpow2.f32 %v7763_v1 }
 0x66e   :  { %v10759_v26 = vpop.eup %10758 }
 0x66f   :  { %v2962_v4 = vadd.f32 1.0, %v10759_v26  ;;  %v10761_v11 = vpop.eup %10760 }
 0x670   :  { %v2963_v44 = vadd.f32 1.0, %v10761_v11  ;;  %v10763_v48 = vpop.eup %10762 }
 0x671   :  { %10766 = vrcp.f32 %v2962_v4  ;;  %v10765_v42 = vpop.eup %10764 }
 0x672   :  { %10768 = vrcp.f32 %v2963_v44  ;;  %v2964_v55 = vadd.f32 1.0, %v10765_v42 }
 0x674   :  { %10770 = vrcp.f32 %v2964_v55 }
 0x67b   :  { %v10767_v36 = vpop.eup %10766 }
 0x67c   :  { %v2992_v51 = vmul.f32 %v10767_v36, %v10763_v48  ;;  %v10769_v37 = vpop.eup %10768 }
 0x67d   :  { %v2991_v24 = vmul.f32 %v10769_v37, %v12160_v30 }
 0x67e   :  { %v10771_v30 = vpop.eup %10770 }
 0x67f   :  { %v2873_v27 = vpop.f32.mrb[20].mxu0  ;;  %v2944_v59 = vpop.f32.mrb[20].mxu1  ;;  %v12252_v45 = vadd.f32 %v2992_v51, %v2991_v24 }
 0x680   :  { %v10368_v16 = vadd.f32 %v2873_v27, %v13708_v54  ;;  %v2875_v25 = vpop.f32.mrb[21].mxu0  ;;  %v2946_v26 = vpop.f32.mrb[21].mxu1  ;;  %v10384_v42 = vadd.f32 %v2944_v59, %v11791_v3 }
 0x681   :  { %v10369_v4 = vadd.f32 %v2875_v25, %v13709_v39  ;;  %10772 = vtanh.f32 %v12252_v45  ;;  %v10385_v48 = vadd.f32 %v2946_v26, %v11797_v29 }
 0x682   :  { %v7764_v1 = vmul.f32 -1.442695, %v10368_v16  ;;  %v7766_v36 = vmul.f32 -1.442695, %v10384_v42 }
 0x683   :  { %v7765_v11 = vmul.f32 -1.442695, %v10369_v4 }
 0x684   :  { %10774 = vpow2.f32 %v7764_v1 }
 0x685   :  { %10776 = vpow2.f32 %v7765_v11 }
 0x686   :  { %10778 = vtanh.f32 %v10385_v48 }
 0x687   :  { %10780 = vpow2.f32 %v7766_v36  ;;  %v13836_v36 = vld [vmem:[#allocation18_spill] sm:$0xff] }
 0x68b   :  { %v10773_v44 = vpop.eup %10772 }
 0x68c   :  { %v12259_v51 = vmul.f32 %v10773_v44, %v10771_v30  ;;  %v13831_v44 = vld [vmem:[#allocation13_spill] sm:$0xff] }
 0x68e   :  { %v10775_v37 = vpop.eup %10774  ;;  %3072 = vmatmul.mubr.f32.vlgmr.msra.gmra.mrb[12].mxu0 %v12259_v51  ;;  %3143 = vmatmul.mubr.f32.vlgmr.msra.gmra.mrb[12].mxu1 %v12259_v51 }
 0x68f   :  { %v2980_v24 = vadd.f32 1.0, %v10775_v37  ;;  %v10777_v55 = vpop.eup %10776  ;;  %8815 = vmatpush1.bf16.msra.mxu0 %v11607_v8  ;;  %8847 = vmatpush1.bf16.msra.mxu1 %v11611_v10  ;;  %v13837_v37 = vld [vmem:[#allocation19_spill] sm:$0xff] }
 0x690   :  { %v2981_v59 = vadd.f32 1.0, %v10777_v55  ;;  %8817 = vmatprep.subr.bf16.mxu0 %v11613_v13  ;;  %8849 = vmatprep.subr.bf16.mxu1 %v11617_v62  ;;  %v10779_v27 = vpop.eup %10778  ;;  %v13841_v55 = vld [vmem:[#allocation23_spill] sm:$0xff] }
 0x691   :  { %10782 = vrcp.f32 %v2980_v24  ;;  %3221 = vmatprep.mubr.f32.mxu0 %v13673_v63  ;;  %3292 = vmatprep.mubr.f32.mxu1 %v13673_v63  ;;  %v10781_v16 = vpop.eup %10780  ;;  %v13840_v24 = vld [vmem:[#allocation22_spill] sm:$0xff] }
 0x692   :  { %10784 = vrcp.f32 %v2981_v59  ;;  %v2982_v1 = vadd.f32 1.0, %v10781_v16  ;;  %v13842_v59 = vld [vmem:[#allocation24_spill] sm:$0xff]  ;;  %v13844_v16 = vld [vmem:[#allocation26_spill] sm:$0xff] }
 0x693   :  { %8819 = vmatpush1.bf16.msra.mxu0 %v11623_v31  ;;  %8851 = vmatpush1.bf16.msra.mxu1 %v11627_v34 }
 0x694   :  { %8821 = vmatprep.subr.bf16.mxu0 %v11629_v35  ;;  %8853 = vmatprep.subr.bf16.mxu1 %v11632_v43  ;;  %10786 = vrcp.f32 %v2982_v1  ;;  %v13848_v1 = vld [vmem:[#allocation30_spill] sm:$0xff] }
 0x697   :  { %8823 = vmatpush1.bf16.msra.mxu0 %v11637_v57  ;;  %8855 = vmatpush1.bf16.msra.mxu1 %v13683_v58 }
 0x698   :  { %8825 = vmatprep.subr.bf16.mxu0 %v13711_v7  ;;  %8857 = vmatprep.subr.bf16.mxu1 %v13685_v38 }
 0x69b   :  { %v10783_v25 = vpop.eup %10782  ;;  %8827 = vmatpush1.bf16.msra.mxu0 %v13686_v28  ;;  %8859 = vmatpush1.bf16.msra.mxu1 %v13687_v61 }
 0x69c   :  { %v2995_v26 = vmul.f32 %v10783_v25, %v10779_v27  ;;  %v10785_v4 = vpop.eup %10784  ;;  %8829 = vmatprep.subr.bf16.mxu0 %v13688_v46  ;;  %8861 = vmatprep.subr.bf16.mxu1 %v13689_v23  ;;  %v13843_v27 = vld [vmem:[#allocation25_spill] sm:$0xff]  ;;  %v13845_v25 = vld [vmem:[#allocation27_spill] sm:$0xff] }
 0x69d   :  { %v2994_v11 = vmul.f32 %v10785_v4, %v12190_v40  ;;  %v13847_v4 = vld [vmem:[#allocation29_spill] sm:$0xff] }
 0x69e   :  { %v10787_v40 = vpop.eup %10786 }
 0x69f   :  { %v12282_v42 = vadd.f32 %v2995_v26, %v2994_v11  ;;  %8831 = vmatpush1.bf16.msra.mxu0 %v13690_v32  ;;  %8863 = vmatpush1.bf16.msra.mxu1 %v13691_v22  ;;  %v13846_v26 = vld [vmem:[#allocation28_spill] sm:$0xff]  ;;  %v13849_v11 = vld [vmem:[#allocation31_spill] sm:$0xff] }
 0x6a0   :  { %8833 = vmatprep.subr.bf16.mxu0 %v11667_v19  ;;  %8865 = vmatprep.subr.bf16.mxu1 %v13692_v49 }
 0x6a1   :  { %10788 = vtanh.f32 %v12282_v42 }
 0x6a3   :  { %8835 = vmatpush1.bf16.msra.mxu0 %v11673_v60  ;;  %8867 = vmatpush1.bf16.msra.mxu1 %v11677_v0 }
 0x6a4   :  { %8837 = vmatprep.subr.bf16.mxu0 %v11679_v47  ;;  %8869 = vmatprep.subr.bf16.mxu1 %v11682_v5 }
 0x6a7   :  { %8839 = vmatpush1.bf16.msra.mxu0 %v11685_v14  ;;  %8871 = vmatpush1.bf16.msra.mxu1 %v11689_v2 }
 0x6a8   :  { %8841 = vmatprep.subr.bf16.mxu0 %v11691_v17  ;;  %8873 = vmatprep.subr.bf16.mxu1 %v11694_v41 }
 0x6ab   :  { %v10789_v30 = vpop.eup %10788  ;;  %8843 = vmatpush1.bf16.msra.mxu0 %v11697_v52  ;;  %8875 = vmatpush1.bf16.msra.mxu1 %v11701_v50 }
 0x6ac   :  { %v12299_v48 = vmul.f32 %v10789_v30, %v10787_v40  ;;  %8877 = vmatprep.subr.bf16.mxu0 %v11390_v53  ;;  %8909 = vmatprep.subr.bf16.mxu1 %v11394_v56  ;;  %v13829_v53 = vld [vmem:[#allocation11_spill] sm:$0xff]  ;;  %v13830_v56 = vld [vmem:[#allocation12_spill] sm:$0xff]  ;;  %v13851_v30 = vld [vmem:[#allocation33_spill] sm:$0xff] }
 0x6ad   :  { %v13850_v40 = vld [vmem:[#allocation32_spill] sm:$0xff] }
 0x6ae   :  { %3222 = vmatmul.mubr.f32.vlgmr.msra.gmra.mrb[18].mxu0 %v12299_v48  ;;  %3293 = vmatmul.mubr.f32.vlgmr.msra.gmra.mrb[18].mxu1 %v12299_v48 }
 0x6af   :  { %8879 = vmatpush1.bf16.msra.mxu0 %v11467_v6  ;;  %8911 = vmatpush1.bf16.msra.mxu1 %v11470_v9  ;;  %v13832_v6 = vld [vmem:[#allocation14_spill] sm:$0xff]  ;;  %v13833_v9 = vld [vmem:[#allocation15_spill] sm:$0xff] }
 0x6b0   :  { %8881 = vmatprep.subr.bf16.mxu0 %v11472_v12  ;;  %8913 = vmatprep.subr.bf16.mxu1 %v11476_v15  ;;  %v13834_v12 = vld [vmem:[#allocation16_spill] sm:$0xff]  ;;  %v13835_v15 = vld [vmem:[#allocation17_spill] sm:$0xff] }
 0x6b1   :  { %3421 = vmatprep.mubr.f32.mxu0 %v13673_v63  ;;  %3492 = vmatprep.mubr.f32.mxu1 %v13673_v63 }
 0x6b3   :  { %8883 = vmatpush1.bf16.msra.mxu0 %v11481_v18  ;;  %8915 = vmatpush1.bf16.msra.mxu1 %v11485_v21  ;;  %v13838_v18 = vld [vmem:[#allocation20_spill] sm:$0xff]  ;;  %v13839_v21 = vld [vmem:[#allocation21_spill] sm:$0xff] }
 0x6b4   :  { %8885 = vmatprep.subr.bf16.mxu0 %v13829_v53  ;;  %8917 = vmatprep.subr.bf16.mxu1 %v13830_v56  ;;  %v13852_v53 = vld [vmem:[#allocation34_spill] sm:$0xff]  ;;  %v13853_v56 = vld [vmem:[#allocation35_spill] sm:$0xff] }
 0x6b7   :  { %8887 = vmatpush1.bf16.msra.mxu0 %v13831_v44  ;;  %8919 = vmatpush1.bf16.msra.mxu1 %v13832_v6  ;;  %v13854_v44 = vld [vmem:[#allocation36_spill] sm:$0xff] }
 0x6b8   :  { %8889 = vmatprep.subr.bf16.mxu0 %v13833_v9  ;;  %8921 = vmatprep.subr.bf16.mxu1 %v13834_v12  ;;  %v13855_v12 = vld [vmem:[#allocation48_spill] sm:$0xff] }
 0x6bb   :  { %8891 = vmatpush1.bf16.msra.mxu0 %v13835_v15  ;;  %8923 = vmatpush1.bf16.msra.mxu1 %v13836_v36 }
 0x6bc   :  { %8893 = vmatprep.subr.bf16.mxu0 %v13837_v37  ;;  %8925 = vmatprep.subr.bf16.mxu1 %v13838_v18 }
 0x6bf   :  { %8895 = vmatpush1.bf16.msra.mxu0 %v13839_v21  ;;  %8927 = vmatpush1.bf16.msra.mxu1 %v13840_v24 }
 0x6c0   :  { %8897 = vmatprep.subr.bf16.mxu0 %v13841_v55  ;;  %8929 = vmatprep.subr.bf16.mxu1 %v13842_v59  ;;  %v13856_v55 = vld [vmem:[#allocation50_spill] sm:$0xff] }
 0x6c3   :  { %8899 = vmatpush1.bf16.msra.mxu0 %v13843_v27  ;;  %8931 = vmatpush1.bf16.msra.mxu1 %v13844_v16 }
 0x6c4   :  { %8901 = vmatprep.subr.bf16.mxu0 %v13845_v25  ;;  %8933 = vmatprep.subr.bf16.mxu1 %v13846_v26 }
 0x6c7   :  { %8903 = vmatpush1.bf16.msra.mxu0 %v13847_v4  ;;  %8935 = vmatpush1.bf16.msra.mxu1 %v13848_v1 }
 0x6c8   :  { %8905 = vmatprep.subr.bf16.mxu0 %v13849_v11  ;;  %8937 = vmatprep.subr.bf16.mxu1 %v13850_v40 }
 0x6cb   :  { %8907 = vmatpush1.bf16.msra.mxu0 %v13851_v30  ;;  %8939 = vmatpush1.bf16.msra.mxu1 %v13852_v53 }
 0x6cc   :  { %8941 = vmatprep.subr.bf16.mxu0 %v13853_v56  ;;  %8973 = vmatprep.subr.bf16.mxu1 %v13854_v44 }
 0x761   :  { %v3073_v6 = vpop.f32.mrb[12].mxu0  ;;  %v3144_v9 = vpop.f32.mrb[12].mxu1 }
 0x762   :  { %v10344_v15 = vadd.f32 %v3073_v6, %v13855_v12  ;;  %v3075_v36 = vpop.f32.mrb[13].mxu0  ;;  %v3146_v37 = vpop.f32.mrb[13].mxu1  ;;  %v10360_v59 = vadd.f32 %v3144_v9, %v13856_v55 }
 0x763   :  { %v10345_v18 = vadd.f32 %v3075_v36, %v13736_v20  ;;  %v10361_v27 = vadd.f32 %v3146_v37, %v13738_v33 }
 0x764   :  { %v7767_v21 = vmul.f32 -1.442695, %v10344_v15  ;;  %v7769_v16 = vmul.f32 -1.442695, %v10360_v59 }
 0x765   :  { %v7768_v24 = vmul.f32 -1.442695, %v10345_v18 }
 0x766   :  { %10790 = vpow2.f32 %v7767_v21 }
 0x767   :  { %10792 = vpow2.f32 %v7768_v24 }
 0x768   :  { %10794 = vtanh.f32 %v10361_v27 }
 0x769   :  { %10796 = vpow2.f32 %v7769_v16 }
 0x770   :  { %v10791_v25 = vpop.eup %10790 }
 0x771   :  { %v3312_v26 = vadd.f32 1.0, %v10791_v25  ;;  %v10793_v4 = vpop.eup %10792 }
 0x772   :  { %v3313_v1 = vadd.f32 1.0, %v10793_v4  ;;  %v10795_v11 = vpop.eup %10794 }
 0x773   :  { %10798 = vrcp.f32 %v3312_v26  ;;  %v10797_v40 = vpop.eup %10796 }
 0x774   :  { %10800 = vrcp.f32 %v3313_v1  ;;  %v3314_v44 = vadd.f32 1.0, %v10797_v40 }
 0x776   :  { %10802 = vrcp.f32 %v3314_v44  ;;  %v3737_v44 = vld [vmem:[#allocation6 + $0x90] sm:$0xff] }
 0x77d   :  { %v10799_v30 = vpop.eup %10798 }
 0x77e   :  { %v3342_v53 = vmul.f32 %v10799_v30, %v10795_v11  ;;  %v10801_v56 = vpop.eup %10800 }
 0x77f   :  { %v3341_v6 = vmul.f32 %v10801_v56, %v12252_v45 }
 0x780   :  { %v10803_v45 = vpop.eup %10802 }
 0x781   :  { %v3223_v9 = vpop.f32.mrb[18].mxu0  ;;  %v3294_v15 = vpop.f32.mrb[18].mxu1  ;;  %v12344_v36 = vadd.f32 %v3342_v53, %v3341_v6  ;;  %v3745_v6 = vld [vmem:[#allocation6 + $0xd0] sm:$0xff] }
 0x782   :  { %v10366_v37 = vadd.f32 %v3223_v9, %v13708_v54  ;;  %v3225_v18 = vpop.f32.mrb[19].mxu0  ;;  %v3296_v21 = vpop.f32.mrb[19].mxu1  ;;  %v10382_v16 = vadd.f32 %v3294_v15, %v11791_v3  ;;  %v9074_v9 = vpack.c.bf16 %v3745_v6, %v3737_v44  ;;  %v3752_v15 = vld [vmem:[#allocation6 + $0x108] sm:$0xff]  ;;  %v3809_v44 = vld [vmem:[#allocation6 + $0x2d0] sm:$0xff] }
 0x783   :  { %v10367_v24 = vadd.f32 %v3225_v18, %v13709_v39  ;;  %10804 = vtanh.f32 %v12344_v36  ;;  %v10383_v25 = vadd.f32 %v3296_v21, %v11797_v29  ;;  %v3754_v18 = vld [vmem:[#allocation6 + $0x118] sm:$0xff] }
 0x784   :  { %v7770_v59 = vmul.f32 -1.442695, %v10366_v37  ;;  %v7772_v4 = vmul.f32 -1.442695, %v10382_v16  ;;  %v3760_v37 = vld [vmem:[#allocation6 + $0x148] sm:$0xff] }
 0x785   :  { %v7771_v27 = vmul.f32 -1.442695, %v10367_v24  ;;  %v9012_v21 = vpack.c.bf16 %v3760_v37, %v3752_v15  ;;  %v3762_v24 = vld [vmem:[#allocation6 + $0x158] sm:$0xff]  ;;  %v3824_v15 = vld [vmem:[#allocation6 + $0x348] sm:$0xff] }
 0x786   :  { %10806 = vpow2.f32 %v7770_v59  ;;  %v3751_v59 = vld [vmem:[#allocation6 + $0x100] sm:$0xff]  ;;  %v9076_v16 = vpack.c.bf16 %v3762_v24, %v3754_v18  ;;  %v3818_v37 = vld [vmem:[#allocation6 + $0x318] sm:$0xff] }
 0x787   :  { %10808 = vpow2.f32 %v7771_v27  ;;  %v3759_v27 = vld [vmem:[#allocation6 + $0x140] sm:$0xff] }
 0x788   :  { %10810 = vtanh.f32 %v10383_v25  ;;  %v3753_v25 = vld [vmem:[#allocation6 + $0x110] sm:$0xff]  ;;  %v3815_v24 = vld [vmem:[#allocation6 + $0x300] sm:$0xff] }
 0x789   :  { %10812 = vpow2.f32 %v7772_v4 }
 0x78d   :  { %v10805_v26 = vpop.eup %10804 }
 0x78e   :  { %v12351_v1 = vmul.f32 %v10805_v26, %v10803_v45  ;;  %v9014_v45 = vpack.c.bf16 %v3759_v27, %v3751_v59  ;;  %v3761_v26 = vld [vmem:[#allocation6 + $0x150] sm:$0xff]  ;;  %v3823_v59 = vld [vmem:[#allocation6 + $0x340] sm:$0xff] }
 0x78f   :  { %v9078_v4 = vpack.c.bf16 %v3761_v26, %v3753_v25  ;;  %v3825_v25 = vld [vmem:[#allocation6 + $0x350] sm:$0xff] }
 0x790   :  { %v10807_v11 = vpop.eup %10806  ;;  %3422 = vmatmul.mubr.f32.vlgmr.msra.gmra.mrb[14].mxu0 %v12351_v1  ;;  %3493 = vmatmul.mubr.f32.vlgmr.msra.gmra.mrb[14].mxu1 %v12351_v1 }
 0x791   :  { %v3330_v40 = vadd.f32 1.0, %v10807_v11  ;;  %v10809_v30 = vpop.eup %10808  ;;  %8943 = vmatpush1.bf16.msra.mxu0 %v11607_v8  ;;  %8975 = vmatpush1.bf16.msra.mxu1 %v11611_v10  ;;  %v3768_v11 = vld [vmem:[#allocation6 + $0x188] sm:$0xff] }
 0x792   :  { %v3331_v53 = vadd.f32 1.0, %v10809_v30  ;;  %8945 = vmatprep.subr.bf16.mxu0 %v11613_v13  ;;  %8977 = vmatprep.subr.bf16.mxu1 %v11617_v62  ;;  %v10811_v8 = vpop.eup %10810  ;;  %v3770_v30 = vld [vmem:[#allocation6 + $0x198] sm:$0xff] }
 0x793   :  { %10814 = vrcp.f32 %v3330_v40  ;;  %3571 = vmatprep.mubr.f32.mxu0 %v13673_v63  ;;  %3642 = vmatprep.mubr.f32.mxu1 %v13673_v63  ;;  %v10813_v10 = vpop.eup %10812  ;;  %v3776_v40 = vld [vmem:[#allocation6 + $0x1c8] sm:$0xff] }
 0x794   :  { %10816 = vrcp.f32 %v3331_v53  ;;  %v9016_v53 = vpack.c.bf16 %v3776_v40, %v3768_v11  ;;  %v3840_v11 = vld [vmem:[#allocation6 + $0x3c8] sm:$0xff]  ;;  %v3834_v40 = vld [vmem:[#allocation6 + $0x398] sm:$0xff] }
 0x795   :  { %8947 = vmatpush1.bf16.msra.mxu0 %v11623_v31  ;;  %8979 = vmatpush1.bf16.msra.mxu1 %v11627_v34  ;;  %v3332_v34 = vadd.f32 1.0, %v10813_v10  ;;  %v3767_v10 = vld [vmem:[#allocation6 + $0x180] sm:$0xff] }
 0x796   :  { %8949 = vmatprep.subr.bf16.mxu0 %v11629_v35  ;;  %8981 = vmatprep.subr.bf16.mxu1 %v11632_v43 }
 0x797   :  { %10818 = vrcp.f32 %v3332_v34  ;;  %v3769_v34 = vld [vmem:[#allocation6 + $0x190] sm:$0xff] }
 0x799   :  { %8951 = vmatpush1.bf16.msra.mxu0 %v11637_v57  ;;  %8983 = vmatpush1.bf16.msra.mxu1 %v13683_v58 }
 0x79a   :  { %8953 = vmatprep.subr.bf16.mxu0 %v13711_v7  ;;  %8985 = vmatprep.subr.bf16.mxu1 %v13685_v38  ;;  %v3729_v38 = vld [vmem:[#allocation6 + $0x50] sm:$0xff]  ;;  %v3743_v7 = vld [vmem:[#allocation6 + $0xc0] sm:$0xff] }
 0x79d   :  { %v10815_v13 = vpop.eup %10814  ;;  %8955 = vmatpush1.bf16.msra.mxu0 %v13686_v28  ;;  %8987 = vmatpush1.bf16.msra.mxu1 %v13687_v61  ;;  %v3744_v28 = vld [vmem:[#allocation6 + $0xc8] sm:$0xff]  ;;  %v3738_v61 = vld [vmem:[#allocation6 + $0x98] sm:$0xff] }
 0x79e   :  { %v3345_v62 = vmul.f32 %v10815_v13, %v10811_v8  ;;  %v10817_v31 = vpop.eup %10816  ;;  %8957 = vmatprep.subr.bf16.mxu0 %v13688_v46  ;;  %8989 = vmatprep.subr.bf16.mxu1 %v13689_v23  ;;  %v3746_v23 = vld [vmem:[#allocation6 + $0xd8] sm:$0xff]  ;;  %v3775_v13 = vld [vmem:[#allocation6 + $0x1c0] sm:$0xff] }
 0x79f   :  { %v3344_v35 = vmul.f32 %v10817_v31, %v12282_v42  ;;  %v9072_v42 = vpack.c.bf16 %v3746_v23, %v3738_v61  ;;  %v3778_v8 = vld [vmem:[#allocation6 + $0x1d8] sm:$0xff]  ;;  %v9018_v31 = vpack.c.bf16 %v3775_v13, %v3767_v10  ;;  %v3799_v23 = vld [vmem:[#allocation6 + $0x280] sm:$0xff] }
 0x7a0   :  { %v3839_v10 = vld [vmem:[#allocation6 + $0x3c0] sm:$0xff] }
 0x7a1   :  { %v12374_v43 = vadd.f32 %v3345_v62, %v3344_v35  ;;  %8959 = vmatpush1.bf16.msra.mxu0 %v13690_v32  ;;  %8991 = vmatpush1.bf16.msra.mxu1 %v13691_v22  ;;  %v10819_v57 = vpop.eup %10818  ;;  %v3727_v32 = vld [vmem:[#allocation6 + $0x40] sm:$0xff]  ;;  %v3721_v22 = vld [vmem:[#allocation6 + $0x10] sm:$0xff]  ;;  %v9080_v62 = vpack.c.bf16 %v3778_v8, %v3770_v30 }
 0x7a2   :  { %8961 = vmatprep.subr.bf16.mxu0 %v11667_v19  ;;  %8993 = vmatprep.subr.bf16.mxu1 %v13692_v49  ;;  %v3735_v49 = vld [vmem:[#allocation6 + $0x80] sm:$0xff]  ;;  %v3777_v35 = vld [vmem:[#allocation6 + $0x1d0] sm:$0xff] }
 0x7a3   :  { %10820 = vtanh.f32 %v12374_v43  ;;  %v9010_v56 = vpack.c.bf16 %v3743_v7, %v3735_v49  ;;  %v3807_v49 = vld [vmem:[#allocation6 + $0x2c0] sm:$0xff] }
 0x7a4   :  { %v3831_v8 = vld [vmem:[#allocation6 + $0x380] sm:$0xff] }
 0x7a5   :  { %8963 = vmatpush1.bf16.msra.mxu0 %v11673_v60  ;;  %8995 = vmatpush1.bf16.msra.mxu1 %v11677_v0  ;;  %v3720_v0 = vld [vmem:[#allocation6 + $0x8] sm:$0xff] }
 0x7a6   :  { %8965 = vmatprep.subr.bf16.mxu0 %v11679_v47  ;;  %8997 = vmatprep.subr.bf16.mxu1 %v11682_v5  ;;  %v3722_v47 = vld [vmem:[#allocation6 + $0x18] sm:$0xff] }
 0x7a9   :  { %8967 = vmatpush1.bf16.msra.mxu0 %v11685_v14  ;;  %8999 = vmatpush1.bf16.msra.mxu1 %v11689_v2  ;;  %v3728_v14 = vld [vmem:[#allocation6 + $0x48] sm:$0xff]  ;;  %v3730_v2 = vld [vmem:[#allocation6 + $0x58] sm:$0xff] }
 0x7aa   :  { %8969 = vmatprep.subr.bf16.mxu0 %v11691_v17  ;;  %9001 = vmatprep.subr.bf16.mxu1 %v11694_v41  ;;  %v9004_v5 = vpack.c.bf16 %v3728_v14, %v3720_v0  ;;  %v3719_v17 = vld [vmem:[#allocation6] sm:$0xff]  ;;  %v9068_v41 = vpack.c.bf16 %v3730_v2, %v3722_v47  ;;  %v3792_v0 = vld [vmem:[#allocation6 + $0x248] sm:$0xff]  ;;  %v3786_v14 = vld [vmem:[#allocation6 + $0x218] sm:$0xff] }
 0x7ab   :  { %v9006_v58 = vpack.c.bf16 %v3727_v32, %v3719_v17  ;;  %v3783_v17 = vld [vmem:[#allocation6 + $0x200] sm:$0xff] }
 0x7ac   :  { %v3791_v32 = vld [vmem:[#allocation6 + $0x240] sm:$0xff] }
 0x7ad   :  { %v10821_v19 = vpop.eup %10820  ;;  %8971 = vmatpush1.bf16.msra.mxu0 %v11697_v52  ;;  %9003 = vmatpush1.bf16.msra.mxu1 %v11701_v50  ;;  %v9070_v52 = vpack.c.bf16 %v3729_v38, %v3721_v22  ;;  %v3736_v50 = vld [vmem:[#allocation6 + $0x88] sm:$0xff]  ;;  %v3793_v22 = vld [vmem:[#allocation6 + $0x250] sm:$0xff] }
 0x7ae   :  { %v12391_v60 = vmul.f32 %v10821_v19, %v10819_v57  ;;  %9005 = vmatprep.subr.bf16.mxu0 %v9004_v5  ;;  %9069 = vmatprep.subr.bf16.mxu1 %v9068_v41  ;;  %v9008_v46 = vpack.c.bf16 %v3744_v28, %v3736_v50  ;;  %v9082_v57 = vpack.c.bf16 %v3777_v35, %v3769_v34  ;;  %v3784_v19 = vld [vmem:[#allocation6 + $0x208] sm:$0xff]  ;;  %v3794_v5 = vld [vmem:[#allocation6 + $0x258] sm:$0xff]  ;;  %v3785_v41 = vld [vmem:[#allocation6 + $0x210] sm:$0xff] }
 0x7af   :  { %v9020_v47 = vpack.c.bf16 %v3792_v0, %v3784_v19  ;;  %v9084_v2 = vpack.c.bf16 %v3794_v5, %v3786_v14  ;;  %v9086_v38 = vpack.c.bf16 %v3793_v22, %v3785_v41  ;;  %v3808_v50 = vld [vmem:[#allocation6 + $0x2c8] sm:$0xff]  ;;  %v3802_v28 = vld [vmem:[#allocation6 + $0x298] sm:$0xff]  ;;  %v3841_v34 = vld [vmem:[#allocation6 + $0x3d0] sm:$0xff] }
 0x7b0   :  { %3572 = vmatmul.mubr.f32.vlgmr.msra.gmra.mrb[16].mxu0 %v12391_v60  ;;  %3643 = vmatmul.mubr.f32.vlgmr.msra.gmra.mrb[16].mxu1 %v12391_v60  ;;  %v3856_v19 = vld [vmem:[#allocation6 + $0x448] sm:$0xff]  ;;  %v3850_v0 = vld [vmem:[#allocation6 + $0x418] sm:$0xff]  ;;  %v3847_v5 = vld [vmem:[#allocation6 + $0x400] sm:$0xff] }
 0x7b1   :  { %9007 = vmatpush1.bf16.msra.mxu0 %v9006_v58  ;;  %9071 = vmatpush1.bf16.msra.mxu1 %v9070_v52  ;;  %v9022_v58 = vpack.c.bf16 %v3791_v32, %v3783_v17  ;;  %v3800_v52 = vld [vmem:[#allocation6 + $0x288] sm:$0xff]  ;;  %v3849_v41 = vld [vmem:[#allocation6 + $0x410] sm:$0xff] }
 0x7b2   :  { %9009 = vmatprep.subr.bf16.mxu0 %v9008_v46  ;;  %9073 = vmatprep.subr.bf16.mxu1 %v9072_v42  ;;  %v9024_v61 = vpack.c.bf16 %v3808_v50, %v3800_v52  ;;  %v3810_v46 = vld [vmem:[#allocation6 + $0x2d8] sm:$0xff]  ;;  %v9026_v42 = vpack.c.bf16 %v3807_v49, %v3799_v23  ;;  %v3872_v52 = vld [vmem:[#allocation6 + $0x4c8] sm:$0xff]  ;;  %v3871_v23 = vld [vmem:[#allocation6 + $0x4c0] sm:$0xff] }
 0x7b3   :  { %v9088_v7 = vpack.c.bf16 %v3810_v46, %v3802_v28  ;;  %v3866_v50 = vld [vmem:[#allocation6 + $0x498] sm:$0xff]  ;;  %v3863_v46 = vld [vmem:[#allocation6 + $0x480] sm:$0xff] }
 0x7b5   :  { %9011 = vmatpush1.bf16.msra.mxu0 %v9010_v56  ;;  %9075 = vmatpush1.bf16.msra.mxu1 %v9074_v9  ;;  %v3801_v56 = vld [vmem:[#allocation6 + $0x290] sm:$0xff]  ;;  %v3816_v9 = vld [vmem:[#allocation6 + $0x308] sm:$0xff] }
 0x7b6   :  { %9013 = vmatprep.subr.bf16.mxu0 %v9012_v21  ;;  %9077 = vmatprep.subr.bf16.mxu1 %v9076_v16  ;;  %v9090_v6 = vpack.c.bf16 %v3809_v44, %v3801_v56  ;;  %v9028_v18 = vpack.c.bf16 %v3824_v15, %v3816_v9  ;;  %v3826_v21 = vld [vmem:[#allocation6 + $0x358] sm:$0xff]  ;;  %v9030_v16 = vpack.c.bf16 %v3823_v59, %v3815_v24  ;;  %v3873_v56 = vld [vmem:[#allocation6 + $0x4d0] sm:$0xff]  ;;  %v3888_v9 = vld [vmem:[#allocation6 + $0x548] sm:$0xff] }
 0x7b7   :  { %v9092_v27 = vpack.c.bf16 %v3826_v21, %v3818_v37  ;;  %v3882_v15 = vld [vmem:[#allocation6 + $0x518] sm:$0xff]  ;;  %v3879_v21 = vld [vmem:[#allocation6 + $0x500] sm:$0xff] }
 0x7b8   :  { %v3887_v24 = vld [vmem:[#allocation6 + $0x540] sm:$0xff] }
 0x7b9   :  { %9015 = vmatpush1.bf16.msra.mxu0 %v9014_v45  ;;  %9079 = vmatpush1.bf16.msra.mxu1 %v9078_v4  ;;  %v3817_v45 = vld [vmem:[#allocation6 + $0x310] sm:$0xff]  ;;  %v3832_v4 = vld [vmem:[#allocation6 + $0x388] sm:$0xff] }
 0x7ba   :  { %9017 = vmatprep.subr.bf16.mxu0 %v9016_v53  ;;  %9081 = vmatprep.subr.bf16.mxu1 %v9080_v62  ;;  %v9094_v26 = vpack.c.bf16 %v3825_v25, %v3817_v45  ;;  %v9032_v30 = vpack.c.bf16 %v3840_v11, %v3832_v4  ;;  %v3842_v53 = vld [vmem:[#allocation6 + $0x3d8] sm:$0xff]  ;;  %v9034_v62 = vpack.c.bf16 %v3839_v10, %v3831_v8  ;;  %v3889_v45 = vld [vmem:[#allocation6 + $0x550] sm:$0xff]  ;;  %v3904_v4 = vld [vmem:[#allocation6 + $0x5c8] sm:$0xff] }
 0x7bb   :  { %v9096_v13 = vpack.c.bf16 %v3842_v53, %v3834_v40  ;;  %v3898_v11 = vld [vmem:[#allocation6 + $0x598] sm:$0xff]  ;;  %v3895_v53 = vld [vmem:[#allocation6 + $0x580] sm:$0xff] }
 0x7bc   :  { %v3903_v8 = vld [vmem:[#allocation6 + $0x5c0] sm:$0xff] }
 0x7bd   :  { %9019 = vmatpush1.bf16.msra.mxu0 %v9018_v31  ;;  %9083 = vmatpush1.bf16.msra.mxu1 %v9082_v57  ;;  %v3833_v31 = vld [vmem:[#allocation6 + $0x390] sm:$0xff]  ;;  %v3848_v57 = vld [vmem:[#allocation6 + $0x408] sm:$0xff] }
 0x7be   :  { %9021 = vmatprep.subr.bf16.mxu0 %v9020_v47  ;;  %9085 = vmatprep.subr.bf16.mxu1 %v9084_v2  ;;  %v9098_v35 = vpack.c.bf16 %v3841_v34, %v3833_v31  ;;  %v9036_v14 = vpack.c.bf16 %v3856_v19, %v3848_v57  ;;  %v3858_v47 = vld [vmem:[#allocation6 + $0x458] sm:$0xff]  ;;  %v3855_v2 = vld [vmem:[#allocation6 + $0x440] sm:$0xff]  ;;  %v3905_v31 = vld [vmem:[#allocation6 + $0x5d0] sm:$0xff] }
 0x7bf   :  { %v9100_v17 = vpack.c.bf16 %v3858_v47, %v3850_v0  ;;  %v9038_v32 = vpack.c.bf16 %v3855_v2, %v3847_v5  ;;  %v3920_v57 = vld [vmem:[#allocation6 + $0x648] sm:$0xff]  ;;  %v3914_v19 = vld [vmem:[#allocation6 + $0x618] sm:$0xff]  ;;  %v3911_v47 = vld [vmem:[#allocation6 + $0x600] sm:$0xff] }
 0x7c0   :  { %v3919_v5 = vld [vmem:[#allocation6 + $0x640] sm:$0xff] }
 0x7c1   :  { %9023 = vmatpush1.bf16.msra.mxu0 %v9022_v58  ;;  %9087 = vmatpush1.bf16.msra.mxu1 %v9086_v38  ;;  %v3857_v58 = vld [vmem:[#allocation6 + $0x450] sm:$0xff]  ;;  %v3864_v38 = vld [vmem:[#allocation6 + $0x488] sm:$0xff] }
 0x7c2   :  { %9025 = vmatprep.subr.bf16.mxu0 %v9024_v61  ;;  %9089 = vmatprep.subr.bf16.mxu1 %v9088_v7  ;;  %v9102_v22 = vpack.c.bf16 %v3857_v58, %v3849_v41  ;;  %v9040_v28 = vpack.c.bf16 %v3872_v52, %v3864_v38  ;;  %v3874_v61 = vld [vmem:[#allocation6 + $0x4d8] sm:$0xff]  ;;  %v9042_v7 = vpack.c.bf16 %v3871_v23, %v3863_v46  ;;  %v3921_v41 = vld [vmem:[#allocation6 + $0x650] sm:$0xff]  ;;  %v3936_v38 = vld [vmem:[#allocation6 + $0x6c8] sm:$0xff] }
 0x7c3   :  { %v9104_v49 = vpack.c.bf16 %v3874_v61, %v3866_v50  ;;  %v3930_v52 = vld [vmem:[#allocation6 + $0x698] sm:$0xff]  ;;  %v3927_v61 = vld [vmem:[#allocation6 + $0x680] sm:$0xff] }
 0x7c4   :  { %v3935_v46 = vld [vmem:[#allocation6 + $0x6c0] sm:$0xff] }
 0x7c5   :  { %9027 = vmatpush1.bf16.msra.mxu0 %v9026_v42  ;;  %9091 = vmatpush1.bf16.msra.mxu1 %v9090_v6  ;;  %v3865_v42 = vld [vmem:[#allocation6 + $0x490] sm:$0xff]  ;;  %v3880_v6 = vld [vmem:[#allocation6 + $0x508] sm:$0xff] }
 0x7c6   :  { %9029 = vmatprep.subr.bf16.mxu0 %v9028_v18  ;;  %9093 = vmatprep.subr.bf16.mxu1 %v9092_v27  ;;  %v9106_v44 = vpack.c.bf16 %v3873_v56, %v3865_v42  ;;  %v9044_v37 = vpack.c.bf16 %v3888_v9, %v3880_v6  ;;  %v3890_v18 = vld [vmem:[#allocation6 + $0x558] sm:$0xff]  ;;  %v9046_v27 = vpack.c.bf16 %v3887_v24, %v3879_v21  ;;  %v3937_v42 = vld [vmem:[#allocation6 + $0x6d0] sm:$0xff]  ;;  %v3944_v56 = vld [vmem:[#allocation6 + $0x708] sm:$0xff] }
 0x7c7   :  { %v9108_v59 = vpack.c.bf16 %v3890_v18, %v3882_v15  ;;  %v3952_v6 = vld [vmem:[#allocation6 + $0x748] sm:$0xff]  ;;  %v3946_v9 = vld [vmem:[#allocation6 + $0x718] sm:$0xff]  ;;  %v3943_v21 = vld [vmem:[#allocation6 + $0x700] sm:$0xff] }
 0x7c8   :  { %v3954_v15 = vld [vmem:[#allocation6 + $0x758] sm:$0xff]  ;;  %v3951_v24 = vld [vmem:[#allocation6 + $0x740] sm:$0xff] }
 0x7c9   :  { %9031 = vmatpush1.bf16.msra.mxu0 %v9030_v16  ;;  %9095 = vmatpush1.bf16.msra.mxu1 %v9094_v26  ;;  %v3881_v16 = vld [vmem:[#allocation6 + $0x510] sm:$0xff]  ;;  %v3896_v26 = vld [vmem:[#allocation6 + $0x588] sm:$0xff]  ;;  %v9124_v18 = vpack.c.bf16 %v3954_v15, %v3946_v9 }
 0x7ca   :  { %9033 = vmatprep.subr.bf16.mxu0 %v9032_v30  ;;  %9097 = vmatprep.subr.bf16.mxu1 %v9096_v13  ;;  %v9110_v25 = vpack.c.bf16 %v3889_v45, %v3881_v16  ;;  %v9048_v40 = vpack.c.bf16 %v3904_v4, %v3896_v26  ;;  %v3906_v30 = vld [vmem:[#allocation6 + $0x5d8] sm:$0xff]  ;;  %v9050_v13 = vpack.c.bf16 %v3903_v8, %v3895_v53  ;;  %v3953_v16 = vld [vmem:[#allocation6 + $0x750] sm:$0xff]  ;;  %v3960_v45 = vld [vmem:[#allocation6 + $0x788] sm:$0xff] }
 0x7cb   :  { %v9112_v10 = vpack.c.bf16 %v3906_v30, %v3898_v11  ;;  %v3962_v11 = vld [vmem:[#allocation6 + $0x798] sm:$0xff]  ;;  %v3959_v30 = vld [vmem:[#allocation6 + $0x780] sm:$0xff] }
 0x7cc   :  { %v3967_v8 = vld [vmem:[#allocation6 + $0x7c0] sm:$0xff] }
 0x7cd   :  { %9035 = vmatpush1.bf16.msra.mxu0 %v9034_v62  ;;  %9099 = vmatpush1.bf16.msra.mxu1 %v9098_v35  ;;  %v3897_v62 = vld [vmem:[#allocation6 + $0x590] sm:$0xff]  ;;  %v3912_v35 = vld [vmem:[#allocation6 + $0x608] sm:$0xff] }
 0x7ce   :  { %9037 = vmatprep.subr.bf16.mxu0 %v9036_v14  ;;  %9101 = vmatprep.subr.bf16.mxu1 %v9100_v17  ;;  %v9114_v34 = vpack.c.bf16 %v3905_v31, %v3897_v62  ;;  %v9052_v0 = vpack.c.bf16 %v3920_v57, %v3912_v35  ;;  %v3922_v14 = vld [vmem:[#allocation6 + $0x658] sm:$0xff]  ;;  %v9054_v17 = vpack.c.bf16 %v3919_v5, %v3911_v47  ;;  %v3732_v35 = vld [vmem:[#allocation6 + $0x68] sm:$0xff] }
 0x7cf   :  { %v9116_v2 = vpack.c.bf16 %v3922_v14, %v3914_v19  ;;  %v9066_v62 = vpack.c.bf16 %v3967_v8, %v3959_v30  ;;  %v3726_v57 = vld [vmem:[#allocation6 + $0x38] sm:$0xff] }
 0x7d1   :  { %9039 = vmatpush1.bf16.msra.mxu0 %v9038_v32  ;;  %9103 = vmatpush1.bf16.msra.mxu1 %v9102_v22  ;;  %v3913_v32 = vld [vmem:[#allocation6 + $0x610] sm:$0xff]  ;;  %v3928_v22 = vld [vmem:[#allocation6 + $0x688] sm:$0xff] }
 0x7d2   :  { %9041 = vmatprep.subr.bf16.mxu0 %v9040_v28  ;;  %9105 = vmatprep.subr.bf16.mxu1 %v9104_v49  ;;  %v9118_v58 = vpack.c.bf16 %v3921_v41, %v3913_v32  ;;  %v9056_v50 = vpack.c.bf16 %v3936_v38, %v3928_v22  ;;  %v3938_v28 = vld [vmem:[#allocation6 + $0x6d8] sm:$0xff]  ;;  %v9058_v49 = vpack.c.bf16 %v3935_v46, %v3927_v61 }
 0x7d3   :  { %v9120_v23 = vpack.c.bf16 %v3938_v28, %v3930_v52 }
 0x7d5   :  { %9043 = vmatpush1.bf16.msra.mxu0 %v9042_v7  ;;  %9107 = vmatpush1.bf16.msra.mxu1 %v9106_v44  ;;  %v3929_v7 = vld [vmem:[#allocation6 + $0x690] sm:$0xff] }
 0x7d6   :  { %9045 = vmatprep.subr.bf16.mxu0 %v9044_v37  ;;  %9109 = vmatprep.subr.bf16.mxu1 %v9108_v59  ;;  %v9122_v44 = vpack.c.bf16 %v3937_v42, %v3929_v7  ;;  %v9060_v37 = vpack.c.bf16 %v3952_v6, %v3944_v56  ;;  %v3945_v59 = vld [vmem:[#allocation6 + $0x710] sm:$0xff] }
 0x7d7   :  { %v9126_v26 = vpack.c.bf16 %v3953_v16, %v3945_v59 }
 0x7d9   :  { %9047 = vmatpush1.bf16.msra.mxu0 %v9046_v27  ;;  %9111 = vmatpush1.bf16.msra.mxu1 %v9110_v25  ;;  %v9062_v27 = vpack.c.bf16 %v3951_v24, %v3943_v21  ;;  %v3968_v25 = vld [vmem:[#allocation6 + $0x7c8] sm:$0xff] }
 0x7da   :  { %9049 = vmatprep.subr.bf16.mxu0 %v9048_v40  ;;  %9113 = vmatprep.subr.bf16.mxu1 %v9112_v10  ;;  %v9064_v4 = vpack.c.bf16 %v3968_v25, %v3960_v45  ;;  %v3970_v40 = vld [vmem:[#allocation6 + $0x7d8] sm:$0xff]  ;;  %v3961_v10 = vld [vmem:[#allocation6 + $0x790] sm:$0xff] }
 0x7db   :  { %v9128_v53 = vpack.c.bf16 %v3970_v40, %v3962_v11 }
 0x7dd   :  { %9051 = vmatpush1.bf16.msra.mxu0 %v9050_v13  ;;  %9115 = vmatpush1.bf16.msra.mxu1 %v9114_v34  ;;  %v3969_v13 = vld [vmem:[#allocation6 + $0x7d0] sm:$0xff]  ;;  %v3724_v34 = vld [vmem:[#allocation6 + $0x28] sm:$0xff] }
 0x7de   :  { %9053 = vmatprep.subr.bf16.mxu0 %v9052_v0  ;;  %9117 = vmatprep.subr.bf16.mxu1 %v9116_v2  ;;  %v9130_v31 = vpack.c.bf16 %v3969_v13, %v3961_v10  ;;  %v9132_v19 = vpack.c.bf16 %v3732_v35, %v3724_v34  ;;  %v3734_v0 = vld [vmem:[#allocation6 + $0x78] sm:$0xff]  ;;  %v3723_v13 = vld [vmem:[#allocation6 + $0x20] sm:$0xff]  ;;  %v3733_v34 = vld [vmem:[#allocation6 + $0x70] sm:$0xff] }
 0x7df   :  { %v9196_v14 = vpack.c.bf16 %v3734_v0, %v3726_v57  ;;  %v3740_v57 = vld [vmem:[#allocation6 + $0xa8] sm:$0xff] }
 0x7e0   :  { %v3748_v0 = vld [vmem:[#allocation6 + $0xe8] sm:$0xff] }
 0x7e1   :  { %9055 = vmatpush1.bf16.msra.mxu0 %v9054_v17  ;;  %9119 = vmatpush1.bf16.msra.mxu1 %v9118_v58 }
 0x7e2   :  { %9057 = vmatprep.subr.bf16.mxu0 %v9056_v50  ;;  %9121 = vmatprep.subr.bf16.mxu1 %v9120_v23 }
 0x7e5   :  { %9059 = vmatpush1.bf16.msra.mxu0 %v9058_v49  ;;  %9123 = vmatpush1.bf16.msra.mxu1 %v9122_v44 }
 0x7e6   :  { %9061 = vmatprep.subr.bf16.mxu0 %v9060_v37  ;;  %9125 = vmatprep.subr.bf16.mxu1 %v9124_v18 }
 0x7e9   :  { %9063 = vmatpush1.bf16.msra.mxu0 %v9062_v27  ;;  %9127 = vmatpush1.bf16.msra.mxu1 %v9126_v26 }
 0x7ea   :  { %9065 = vmatprep.subr.bf16.mxu0 %v9064_v4  ;;  %9129 = vmatprep.subr.bf16.mxu1 %v9128_v53 }
 0x7ed   :  { %9067 = vmatpush1.bf16.msra.mxu0 %v9066_v62  ;;  %9131 = vmatpush1.bf16.msra.mxu1 %v9130_v31  ;;  %v3731_v62 = vld [vmem:[#allocation6 + $0x60] sm:$0xff]  ;;  %v3725_v31 = vld [vmem:[#allocation6 + $0x30] sm:$0xff] }
 0x7ee   :  { %9133 = vmatprep.subr.bf16.mxu0 %v9132_v19  ;;  %9197 = vmatprep.subr.bf16.mxu1 %v9196_v14  ;;  %v3742_v14 = vld [vmem:[#allocation6 + $0xb8] sm:$0xff] }
 0x863   :  { %v3423_v47 = vpop.f32.mrb[14].mxu0  ;;  %v3494_v5 = vpop.f32.mrb[14].mxu1 }
 0x864   :  { %v10346_v2 = vadd.f32 %v3423_v47, %v13855_v12  ;;  %v3425_v17 = vpop.f32.mrb[15].mxu0  ;;  %v3496_v32 = vpop.f32.mrb[15].mxu1  ;;  %v10362_v38 = vadd.f32 %v3494_v5, %v13856_v55  ;;  %v3750_v47 = vld [vmem:[#allocation6 + $0xf8] sm:$0xff] }
 0x865   :  { %v10347_v41 = vadd.f32 %v3425_v17, %v13736_v20  ;;  %v10363_v52 = vadd.f32 %v3496_v32, %v13738_v33  ;;  %v9198_v17 = vpack.c.bf16 %v3733_v34, %v3725_v31  ;;  %v3739_v32 = vld [vmem:[#allocation6 + $0xa0] sm:$0xff]  ;;  %v3812_v34 = vld [vmem:[#allocation6 + $0x2e8] sm:$0xff] }
 0x866   :  { %v7773_v58 = vmul.f32 -1.442695, %v10346_v2  ;;  %v7775_v50 = vmul.f32 -1.442695, %v10362_v38  ;;  %v9134_v2 = vpack.c.bf16 %v3731_v62, %v3723_v13  ;;  %v9200_v38 = vpack.c.bf16 %v3750_v47, %v3742_v14  ;;  %v3804_v62 = vld [vmem:[#allocation6 + $0x2a8] sm:$0xff]  ;;  %v13861_v31 = vld [vmem:[#allocation43_spill] sm:$0xff] }
 0x867   :  { %v7774_v22 = vmul.f32 -1.442695, %v10347_v41  ;;  %v3747_v41 = vld [vmem:[#allocation6 + $0xe0] sm:$0xff]  ;;  %v13862_v47 = vld [vmem:[#allocation44_spill] sm:$0xff] }
 0x868   :  { %10822 = vpow2.f32 %v7773_v58  ;;  %v3749_v58 = vld [vmem:[#allocation6 + $0xf0] sm:$0xff]  ;;  %v3803_v14 = vld [vmem:[#allocation6 + $0x2a0] sm:$0xff] }
 0x869   :  { %10824 = vpow2.f32 %v7774_v22  ;;  %v9136_v22 = vpack.c.bf16 %v3748_v0, %v3740_v57  ;;  %v3814_v57 = vld [vmem:[#allocation6 + $0x2f8] sm:$0xff] }
 0x86a   :  { %10826 = vtanh.f32 %v10363_v52  ;;  %v3756_v52 = vld [vmem:[#allocation6 + $0x128] sm:$0xff] }
 0x86b   :  { %10828 = vpow2.f32 %v7775_v50  ;;  %v13857_v50 = vld [vmem:[#allocation55_spill] sm:$0xff] }
 0x872   :  { %v10823_v28 = vpop.eup %10822 }
 0x873   :  { %v3662_v61 = vadd.f32 1.0, %v10823_v28  ;;  %v10825_v46 = vpop.eup %10824  ;;  %v3764_v28 = vld [vmem:[#allocation6 + $0x168] sm:$0xff] }
 0x874   :  { %v3663_v12 = vadd.f32 1.0, %v10825_v46  ;;  %v10827_v23 = vpop.eup %10826  ;;  %v3766_v46 = vld [vmem:[#allocation6 + $0x178] sm:$0xff] }
 0x875   :  { %10830 = vrcp.f32 %v3662_v61  ;;  %v10829_v49 = vpop.eup %10828  ;;  %v3758_v61 = vld [vmem:[#allocation6 + $0x138] sm:$0xff] }
 0x876   :  { %10832 = vrcp.f32 %v3663_v12  ;;  %v3664_v56 = vadd.f32 1.0, %v10829_v49  ;;  %v9138_v12 = vpack.c.bf16 %v3747_v41, %v3739_v32  ;;  %v3755_v49 = vld [vmem:[#allocation6 + $0x120] sm:$0xff]  ;;  %v3813_v32 = vld [vmem:[#allocation6 + $0x2f0] sm:$0xff]  ;;  %v9152_v41 = vpack.c.bf16 %v3812_v34, %v3804_v62 }
 0x878   :  { %10834 = vrcp.f32 %v3664_v56  ;;  %v9140_v56 = vpack.c.bf16 %v3764_v28, %v3756_v52  ;;  %v3822_v52 = vld [vmem:[#allocation6 + $0x338] sm:$0xff] }
 0x879   :  { %v3830_v28 = vld [vmem:[#allocation6 + $0x378] sm:$0xff] }
 0x87f   :  { %v10831_v20 = vpop.eup %10830 }
 0x880   :  { %v3692_v7 = vmul.f32 %v10831_v20, %v10827_v23  ;;  %v10833_v42 = vpop.eup %10832  ;;  %v3763_v20 = vld [vmem:[#allocation6 + $0x160] sm:$0xff] }
 0x881   :  { %v3691_v44 = vmul.f32 %v10833_v42, %v12344_v36  ;;  %v3765_v42 = vld [vmem:[#allocation6 + $0x170] sm:$0xff] }
 0x882   :  { %v10835_v27 = vpop.eup %10834 }
 0x883   :  { %v3573_v55 = vpop.f32.mrb[16].mxu0  ;;  %v3644_v6 = vpop.f32.mrb[16].mxu1  ;;  %v3693_v33 = vadd.f32 %v3692_v7, %v3691_v44  ;;  %v3757_v7 = vld [vmem:[#allocation6 + $0x130] sm:$0xff]  ;;  %v9204_v44 = vpack.c.bf16 %v3766_v46, %v3758_v61 }
 0x884   :  { %v10364_v9 = vadd.f32 %v3573_v55, %v13708_v54  ;;  %v3575_v15 = vpop.f32.mrb[17].mxu0  ;;  %v3646_v37 = vpop.f32.mrb[17].mxu1  ;;  %v10380_v59 = vadd.f32 %v3644_v6, %v11791_v3  ;;  %v3772_v55 = vld [vmem:[#allocation6 + $0x1a8] sm:$0xff]  ;;  %v13858_v6 = vld [vmem:[#allocation39_spill] sm:$0xff] }
 0x885   :  { %v10365_v18 = vadd.f32 %v3575_v15, %v13709_v39  ;;  %10836 = vtanh.f32 %v3693_v33  ;;  %v10381_v36 = vadd.f32 %v3646_v37, %v11797_v29  ;;  %v3780_v33 = vld [vmem:[#allocation6 + $0x1e8] sm:$0xff]  ;;  %v3782_v15 = vld [vmem:[#allocation6 + $0x1f8] sm:$0xff]  ;;  %v9142_v37 = vpack.c.bf16 %v3763_v20, %v3755_v49  ;;  %v3827_v49 = vld [vmem:[#allocation6 + $0x360] sm:$0xff] }
 0x886   :  { %v7776_v21 = vmul.f32 -1.442695, %v10364_v9  ;;  %v7778_v45 = vmul.f32 -1.442695, %v10380_v59  ;;  %v3774_v9 = vld [vmem:[#allocation6 + $0x1b8] sm:$0xff]  ;;  %v3773_v59 = vld [vmem:[#allocation6 + $0x1b0] sm:$0xff] }
 0x887   :  { %v7777_v24 = vmul.f32 -1.442695, %v10365_v18  ;;  %v9206_v18 = vpack.c.bf16 %v3765_v42, %v3757_v7  ;;  %v3821_v20 = vld [vmem:[#allocation6 + $0x330] sm:$0xff] }
 0x888   :  { %10838 = vpow2.f32 %v7776_v21  ;;  %v3771_v21 = vld [vmem:[#allocation6 + $0x1a0] sm:$0xff]  ;;  %v3829_v7 = vld [vmem:[#allocation6 + $0x370] sm:$0xff] }
 0x889   :  { %10840 = vpow2.f32 %v7777_v24  ;;  %v3779_v24 = vld [vmem:[#allocation6 + $0x1e0] sm:$0xff] }
 0x88a   :  { %10842 = vtanh.f32 %v10381_v36  ;;  %v9144_v36 = vpack.c.bf16 %v3780_v33, %v3772_v55  ;;  %v3844_v55 = vld [vmem:[#allocation6 + $0x3e8] sm:$0xff]  ;;  %v3838_v33 = vld [vmem:[#allocation6 + $0x3b8] sm:$0xff] }
 0x88b   :  { %10844 = vpow2.f32 %v7778_v45  ;;  %v3788_v45 = vld [vmem:[#allocation6 + $0x228] sm:$0xff] }
 0x88f   :  { %v10837_v16 = vpop.eup %10836 }
 0x890   :  { %v12404_v25 = vmul.f32 %v10837_v16, %v10835_v27  ;;  %v3781_v27 = vld [vmem:[#allocation6 + $0x1f0] sm:$0xff]  ;;  %v9208_v16 = vpack.c.bf16 %v3782_v15, %v3774_v9  ;;  %v3846_v9 = vld [vmem:[#allocation6 + $0x3f8] sm:$0xff] }
 0x892   :  { %v10839_v54 = vpop.eup %10838 }
 0x893   :  { %v3680_v26 = vadd.f32 1.0, %v10839_v54  ;;  %v10841_v4 = vpop.eup %10840  ;;  %v13859_v54 = vld [vmem:[#allocation41_spill] sm:$0xff] }
 0x894   :  { %v3681_v39 = vadd.f32 1.0, %v10841_v4  ;;  %v10843_v11 = vpop.eup %10842  ;;  %v3790_v4 = vld [vmem:[#allocation6 + $0x238] sm:$0xff] }
 0x895   :  { %10846 = vrcp.f32 %v3680_v26  ;;  %v10845_v40 = vpop.eup %10844  ;;  %v3796_v26 = vld [vmem:[#allocation6 + $0x268] sm:$0xff] }
 0x896   :  { %10848 = vrcp.f32 %v3681_v39  ;;  %v3682_v8 = vadd.f32 1.0, %v10845_v40  ;;  %v3798_v39 = vld [vmem:[#allocation6 + $0x278] sm:$0xff]  ;;  %v9210_v40 = vpack.c.bf16 %v3781_v27, %v3773_v59  ;;  %v3837_v59 = vld [vmem:[#allocation6 + $0x3b0] sm:$0xff] }
 0x897   :  { %v9212_v13 = vpack.c.bf16 %v3798_v39, %v3790_v4  ;;  %v3845_v27 = vld [vmem:[#allocation6 + $0x3f0] sm:$0xff]  ;;  %v3854_v4 = vld [vmem:[#allocation6 + $0x438] sm:$0xff] }
 0x898   :  { %10850 = vrcp.f32 %v3682_v8  ;;  %v3789_v8 = vld [vmem:[#allocation6 + $0x230] sm:$0xff]  ;;  %v3862_v39 = vld [vmem:[#allocation6 + $0x478] sm:$0xff] }
 0x899   :  { %v9228_v34 = vpack.c.bf16 %v3862_v39, %v3854_v4  ;;  %v3918_v4 = vld [vmem:[#allocation6 + $0x638] sm:$0xff] }
 0x89a   :  { %v3926_v39 = vld [vmem:[#allocation6 + $0x678] sm:$0xff] }
 0x89f   :  { %v10847_v30 = vpop.eup %10846 }
 0x8a0   :  { %v3695_v53 = vmul.f32 %v10847_v30, %v10843_v11  ;;  %v10849_v3 = vpop.eup %10848  ;;  %v9146_v11 = vpack.c.bf16 %v3779_v24, %v3771_v21  ;;  %v3787_v30 = vld [vmem:[#allocation6 + $0x220] sm:$0xff]  ;;  %v13865_v21 = vld [vmem:[#allocation40_spill] sm:$0xff] }
 0x8a1   :  { %v3694_v29 = vmul.f32 %v10849_v3, %v12374_v43  ;;  %v3741_v43 = vld [vmem:[#allocation6 + $0xb0] sm:$0xff]  ;;  %v3795_v3 = vld [vmem:[#allocation6 + $0x260] sm:$0xff] }
 0x8a2   :  { %v10851_v35 = vpop.eup %10850  ;;  %v9202_v23 = vpack.c.bf16 %v3749_v58, %v3741_v43  ;;  %v3820_v58 = vld [vmem:[#allocation6 + $0x328] sm:$0xff]  ;;  %v3843_v24 = vld [vmem:[#allocation6 + $0x3e0] sm:$0xff] }
 0x8a3   :  { %v3696_v10 = vadd.f32 %v3695_v53, %v3694_v29  ;;  %v13860_v53 = vld [vmem:[#allocation46_spill] sm:$0xff]  ;;  %v3797_v29 = vld [vmem:[#allocation6 + $0x270] sm:$0xff] }
 0x8a4   :  { %v9214_v0 = vpack.c.bf16 %v3797_v29, %v3789_v8  ;;  %v13866_v8 = vld [vmem:[#allocation37_spill] sm:$0xff] }
 0x8a5   :  { %10852 = vtanh.f32 %v3696_v10  ;;  %v9148_v10 = vpack.c.bf16 %v3796_v26, %v3788_v45  ;;  %v3852_v45 = vld [vmem:[#allocation6 + $0x428] sm:$0xff]  ;;  %v3853_v29 = vld [vmem:[#allocation6 + $0x430] sm:$0xff] }
 0x8a6   :  { %v3860_v26 = vld [vmem:[#allocation6 + $0x468] sm:$0xff] }
 0x8a7   :  { %v9164_v62 = vpack.c.bf16 %v3860_v26, %v3852_v45  ;;  %v3916_v45 = vld [vmem:[#allocation6 + $0x628] sm:$0xff] }
 0x8a8   :  { %v3924_v26 = vld [vmem:[#allocation6 + $0x668] sm:$0xff] }
 0x8af   :  { %v10853_v19 = vpop.eup %10852 }
 0x8b0   :  { %v12407_v5 = vmul.f32 %v10853_v19, %v10851_v35  ;;  %v3806_v35 = vld [vmem:[#allocation6 + $0x2b8] sm:$0xff]  ;;  %v9150_v19 = vpack.c.bf16 %v3795_v3, %v3787_v30  ;;  %v3851_v30 = vld [vmem:[#allocation6 + $0x420] sm:$0xff] }
 0x8b1   :  { %v9216_v43 = vpack.c.bf16 %v3814_v57, %v3806_v35  ;;  %v3859_v3 = vld [vmem:[#allocation6 + $0x460] sm:$0xff]  ;;  %v3876_v35 = vld [vmem:[#allocation6 + $0x4e8] sm:$0xff]  ;;  %v3870_v57 = vld [vmem:[#allocation6 + $0x4b8] sm:$0xff] }
 0x8b2   :  { %4039 = vmatprep.mubr.f32.mxu0 %v12407_v5  ;;  %4152 = vmatprep.mubr.f32.mxu1 %v12407_v5 }
 0x8b3   :  { %4040 = vmatmul.mubr.f32.vlgmr.msra.gmra.mrb[32].mxu0 %v13857_v50  ;;  %4153 = vmatmul.mubr.f32.vlgmr.msra.gmra.mrb[32].mxu1 %v13857_v50 }
 0x8b4   :  { %9135 = vmatpush1.bf16.msra.mxu0 %v9134_v2  ;;  %9199 = vmatpush1.bf16.msra.mxu1 %v9198_v17  ;;  %v3811_v2 = vld [vmem:[#allocation6 + $0x2e0] sm:$0xff]  ;;  %v3805_v17 = vld [vmem:[#allocation6 + $0x2b0] sm:$0xff] }
 0x8b5   :  { %4045 = vmatprep.mubr.f32.mxu0 %v12391_v60  ;;  %4158 = vmatprep.mubr.f32.mxu1 %v12391_v60  ;;  %v9154_v61 = vpack.c.bf16 %v3811_v2, %v3803_v14  ;;  %v9218_v46 = vpack.c.bf16 %v3813_v32, %v3805_v17  ;;  %v3867_v2 = vld [vmem:[#allocation6 + $0x4a0] sm:$0xff] }
 0x8b6   :  { %9137 = vmatprep.subr.bf16.mxu0 %v9136_v22  ;;  %9201 = vmatprep.subr.bf16.mxu1 %v9200_v38  ;;  %v13863_v22 = vld [vmem:[#allocation45_spill] sm:$0xff]  ;;  %v3828_v38 = vld [vmem:[#allocation6 + $0x368] sm:$0xff]  ;;  %v3875_v17 = vld [vmem:[#allocation6 + $0x4e0] sm:$0xff] }
 0x8b7   :  { %4046 = vmatmul.mubr.f32.gmra.mrb[34].mxu0 %v13858_v6  ;;  %4159 = vmatmul.mubr.f32.gmra.mrb[34].mxu1 %v13858_v6  ;;  %v9156_v42 = vpack.c.bf16 %v3828_v38, %v3820_v58  ;;  %v3877_v58 = vld [vmem:[#allocation6 + $0x4f0] sm:$0xff]  ;;  %v3884_v38 = vld [vmem:[#allocation6 + $0x528] sm:$0xff] }
 0x8b8   :  { %9139 = vmatpush1.bf16.msra.mxu0 %v9138_v12  ;;  %9203 = vmatpush1.bf16.msra.mxu1 %v9202_v23  ;;  %v3819_v12 = vld [vmem:[#allocation6 + $0x320] sm:$0xff]  ;;  %v13864_v23 = vld [vmem:[#allocation42_spill] sm:$0xff] }
 0x8b9   :  { %4051 = vmatprep.mubr.f32.mxu0 %v12299_v48  ;;  %4164 = vmatprep.mubr.f32.mxu1 %v12299_v48  ;;  %v9158_v15 = vpack.c.bf16 %v3827_v49, %v3819_v12  ;;  %v3883_v49 = vld [vmem:[#allocation6 + $0x520] sm:$0xff] }
 0x8ba   :  { %9141 = vmatprep.subr.bf16.mxu0 %v9140_v56  ;;  %9205 = vmatprep.subr.bf16.mxu1 %v9204_v44  ;;  %v9220_v56 = vpack.c.bf16 %v3830_v28, %v3822_v52  ;;  %v3836_v44 = vld [vmem:[#allocation6 + $0x3a8] sm:$0xff]  ;;  %v3886_v28 = vld [vmem:[#allocation6 + $0x538] sm:$0xff] }
 0x8bb   :  { %4052 = vmatmul.mubr.f32.gmra.mrb[36].mxu0 %v13859_v54  ;;  %4165 = vmatmul.mubr.f32.gmra.mrb[36].mxu1 %v13859_v54  ;;  %v3892_v52 = vld [vmem:[#allocation6 + $0x568] sm:$0xff] }
 0x8bc   :  { %9143 = vmatpush1.bf16.msra.mxu0 %v9142_v37  ;;  %9207 = vmatpush1.bf16.msra.mxu1 %v9206_v18  ;;  %v9222_v37 = vpack.c.bf16 %v3829_v7, %v3821_v20  ;;  %v3835_v18 = vld [vmem:[#allocation6 + $0x3a0] sm:$0xff]  ;;  %v9172_v7 = vpack.c.bf16 %v3892_v52, %v3884_v38  ;;  %v3948_v38 = vld [vmem:[#allocation6 + $0x728] sm:$0xff] }
 0x8bd   :  { %4057 = vmatprep.mubr.f32.mxu0 %v13860_v53  ;;  %4170 = vmatprep.mubr.f32.mxu1 %v13860_v53  ;;  %v3891_v20 = vld [vmem:[#allocation6 + $0x560] sm:$0xff]  ;;  %v3956_v52 = vld [vmem:[#allocation6 + $0x768] sm:$0xff] }
 0x8be   :  { %9145 = vmatprep.subr.bf16.mxu0 %v9144_v36  ;;  %9209 = vmatprep.subr.bf16.mxu1 %v9208_v16  ;;  %v9160_v36 = vpack.c.bf16 %v3844_v55, %v3836_v44  ;;  %v9224_v16 = vpack.c.bf16 %v3846_v9, %v3838_v33  ;;  %v3900_v44 = vld [vmem:[#allocation6 + $0x5a8] sm:$0xff]  ;;  %v3902_v33 = vld [vmem:[#allocation6 + $0x5b8] sm:$0xff] }
 0x8bf   :  { %4058 = vmatmul.mubr.f32.gmra.mrb[38].mxu0 %v13861_v31  ;;  %4171 = vmatmul.mubr.f32.gmra.mrb[38].mxu1 %v13861_v31  ;;  %v3908_v55 = vld [vmem:[#allocation6 + $0x5e8] sm:$0xff]  ;;  %v3910_v9 = vld [vmem:[#allocation6 + $0x5f8] sm:$0xff] }
 0x8c0   :  { %9147 = vmatpush1.bf16.msra.mxu0 %v9146_v11  ;;  %9211 = vmatpush1.bf16.msra.mxu1 %v9210_v40  ;;  %v9162_v11 = vpack.c.bf16 %v3843_v24, %v3835_v18  ;;  %v9226_v40 = vpack.c.bf16 %v3845_v27, %v3837_v59  ;;  %v3899_v18 = vld [vmem:[#allocation6 + $0x5a0] sm:$0xff]  ;;  %v9176_v59 = vpack.c.bf16 %v3908_v55, %v3900_v44  ;;  %v3964_v44 = vld [vmem:[#allocation6 + $0x7a8] sm:$0xff] }
 0x8c1   :  { %4063 = vmatprep.mubr.f32.mxu0 %v13862_v47  ;;  %4176 = vmatprep.mubr.f32.mxu1 %v13862_v47  ;;  %v3907_v24 = vld [vmem:[#allocation6 + $0x5e0] sm:$0xff]  ;;  %v9240_v27 = vpack.c.bf16 %v3910_v9, %v3902_v33  ;;  %v3972_v55 = vld [vmem:[#allocation6 + $0x7e8] sm:$0xff]  ;;  %v3966_v33 = vld [vmem:[#allocation6 + $0x7b8] sm:$0xff] }
 0x8c2   :  { %9149 = vmatprep.subr.bf16.mxu0 %v9148_v10  ;;  %9213 = vmatprep.subr.bf16.mxu1 %v9212_v13  ;;  %v3861_v10 = vld [vmem:[#allocation6 + $0x470] sm:$0xff]  ;;  %v3868_v13 = vld [vmem:[#allocation6 + $0x4a8] sm:$0xff]  ;;  %v3974_v9 = vld [vmem:[#allocation6 + $0x7f8] sm:$0xff] }
 0x8c3   :  { %4064 = vmatmul.mubr.f32.gmra.mrb[40].mxu0 %v13863_v22  ;;  %4177 = vmatmul.mubr.f32.gmra.mrb[40].mxu1 %v13863_v22  ;;  %v9230_v14 = vpack.c.bf16 %v3861_v10, %v3853_v29  ;;  %v9168_v32 = vpack.c.bf16 %v3876_v35, %v3868_v13  ;;  %v9180_v29 = vpack.c.bf16 %v3924_v26, %v3916_v45  ;;  %v3917_v13 = vld [vmem:[#allocation6 + $0x630] sm:$0xff]  ;;  %v3940_v35 = vld [vmem:[#allocation6 + $0x6e8] sm:$0xff] }
 0x8c4   :  { %9151 = vmatpush1.bf16.msra.mxu0 %v9150_v19  ;;  %9215 = vmatpush1.bf16.msra.mxu1 %v9214_v0  ;;  %v3878_v19 = vld [vmem:[#allocation6 + $0x4f8] sm:$0xff]  ;;  %v9166_v0 = vpack.c.bf16 %v3859_v3, %v3851_v30  ;;  %v3915_v30 = vld [vmem:[#allocation6 + $0x620] sm:$0xff]  ;;  %v9244_v10 = vpack.c.bf16 %v3926_v39, %v3918_v4  ;;  %v4598_v45 = vld [vmem:[#allocation8 + $0x8] sm:$0xff] }
 0x8c5   :  { %4069 = vmatprep.mubr.f32.mxu0 %v13864_v23  ;;  %4182 = vmatprep.mubr.f32.mxu1 %v13864_v23  ;;  %v3923_v3 = vld [vmem:[#allocation6 + $0x660] sm:$0xff]  ;;  %v4602_v26 = vld [vmem:[#allocation8 + $0x28] sm:$0xff]  ;;  %v4600_v4 = vld [vmem:[#allocation8 + $0x18] sm:$0xff] }
 0x8c6   :  { %9153 = vmatprep.subr.bf16.mxu0 %v9152_v41  ;;  %9217 = vmatprep.subr.bf16.mxu1 %v9216_v43  ;;  %v9232_v41 = vpack.c.bf16 %v3878_v19, %v3870_v57  ;;  %v3869_v43 = vld [vmem:[#allocation6 + $0x4b0] sm:$0xff]  ;;  %v3934_v57 = vld [vmem:[#allocation6 + $0x6b8] sm:$0xff] }
 0x8c7   :  { %4070 = vmatmul.mubr.f32.gmra.mrb[42].mxu0 %v12259_v51  ;;  %4183 = vmatmul.mubr.f32.gmra.mrb[42].mxu1 %v12259_v51  ;;  %v9234_v12 = vpack.c.bf16 %v3877_v58, %v3869_v43  ;;  %v3942_v19 = vld [vmem:[#allocation6 + $0x6f8] sm:$0xff]  ;;  %v3933_v43 = vld [vmem:[#allocation6 + $0x6b0] sm:$0xff] }
 0x8c8   :  { %9155 = vmatpush1.bf16.msra.mxu0 %v9154_v61  ;;  %9219 = vmatpush1.bf16.msra.mxu1 %v9218_v46  ;;  %v3894_v61 = vld [vmem:[#allocation6 + $0x578] sm:$0xff]  ;;  %v9170_v46 = vpack.c.bf16 %v3875_v17, %v3867_v2  ;;  %v3931_v2 = vld [vmem:[#allocation6 + $0x6a0] sm:$0xff]  ;;  %v3941_v58 = vld [vmem:[#allocation6 + $0x6f0] sm:$0xff] }
 0x8c9   :  { %4075 = vmatprep.mubr.f32.mxu0 %v13865_v21  ;;  %4188 = vmatprep.mubr.f32.mxu1 %v13865_v21  ;;  %v3939_v17 = vld [vmem:[#allocation6 + $0x6e0] sm:$0xff]  ;;  %v4604_v39 = vld [vmem:[#allocation8 + $0x38] sm:$0xff] }
 0x8ca   :  { %9157 = vmatprep.subr.bf16.mxu0 %v9156_v42  ;;  %9221 = vmatprep.subr.bf16.mxu1 %v9220_v56  ;;  %v3885_v42 = vld [vmem:[#allocation6 + $0x530] sm:$0xff] }
 0x8cb   :  { %4076 = vmatmul.mubr.f32.gmra.mrb[44].mxu0 %v12351_v1  ;;  %4189 = vmatmul.mubr.f32.gmra.mrb[44].mxu1 %v12351_v1  ;;  %v3893_v56 = vld [vmem:[#allocation6 + $0x570] sm:$0xff] }
 0x8cc   :  { %9159 = vmatpush1.bf16.msra.mxu0 %v9158_v15  ;;  %9223 = vmatpush1.bf16.msra.mxu1 %v9222_v37  ;;  %v9174_v15 = vpack.c.bf16 %v3891_v20, %v3883_v49  ;;  %v9238_v37 = vpack.c.bf16 %v3893_v56, %v3885_v42  ;;  %v3947_v49 = vld [vmem:[#allocation6 + $0x720] sm:$0xff]  ;;  %v3949_v42 = vld [vmem:[#allocation6 + $0x730] sm:$0xff] }
 0x8cd   :  { %4081 = vmatprep.mubr.f32.mxu0 %v13866_v8  ;;  %4194 = vmatprep.mubr.f32.mxu1 %v13866_v8  ;;  %v3955_v20 = vld [vmem:[#allocation6 + $0x760] sm:$0xff]  ;;  %v3957_v56 = vld [vmem:[#allocation6 + $0x770] sm:$0xff] }
 0x8ce   :  { %9161 = vmatprep.subr.bf16.mxu0 %v9160_v36  ;;  %9225 = vmatprep.subr.bf16.mxu1 %v9224_v16  ;;  %v3901_v36 = vld [vmem:[#allocation6 + $0x5b0] sm:$0xff] }
 0x8cf   :  { %4082 = vmatmul.mubr.f32.gmra.mrb[46].mxu0 %v12404_v25  ;;  %4195 = vmatmul.mubr.f32.gmra.mrb[46].mxu1 %v12404_v25  ;;  %v3909_v16 = vld [vmem:[#allocation6 + $0x5f0] sm:$0xff] }
 0x8d0   :  { %9163 = vmatpush1.bf16.msra.mxu0 %v9162_v11  ;;  %9227 = vmatpush1.bf16.msra.mxu1 %v9226_v40  ;;  %v9178_v11 = vpack.c.bf16 %v3907_v24, %v3899_v18  ;;  %v9242_v40 = vpack.c.bf16 %v3909_v16, %v3901_v36  ;;  %v3963_v18 = vld [vmem:[#allocation6 + $0x7a0] sm:$0xff]  ;;  %v3965_v36 = vld [vmem:[#allocation6 + $0x7b0] sm:$0xff] }
 0x8d1   :  { %4265 = vmatprep.mubr.f32.mxu0 %v12407_v5  ;;  %4378 = vmatprep.mubr.f32.mxu1 %v12407_v5  ;;  %v9236_v5 = vpack.c.bf16 %v3894_v61, %v3886_v28  ;;  %v3950_v28 = vld [vmem:[#allocation6 + $0x738] sm:$0xff]  ;;  %v3971_v24 = vld [vmem:[#allocation6 + $0x7e0] sm:$0xff]  ;;  %v3973_v16 = vld [vmem:[#allocation6 + $0x7f0] sm:$0xff] }
 0x8d2   :  { %9165 = vmatprep.subr.bf16.mxu0 %v9164_v62  ;;  %9229 = vmatprep.subr.bf16.mxu1 %v9228_v34  ;;  %v3925_v62 = vld [vmem:[#allocation6 + $0x670] sm:$0xff]  ;;  %v3932_v34 = vld [vmem:[#allocation6 + $0x6a8] sm:$0xff]  ;;  %v3958_v61 = vld [vmem:[#allocation6 + $0x778] sm:$0xff] }
 0x8d4   :  { %9167 = vmatpush1.bf16.msra.mxu0 %v9166_v0  ;;  %9231 = vmatpush1.bf16.msra.mxu1 %v9230_v14  ;;  %v9182_v0 = vpack.c.bf16 %v3923_v3, %v3915_v30  ;;  %v9246_v14 = vpack.c.bf16 %v3925_v62, %v3917_v13  ;;  %v12443_v30 = vpack.c.bf16 %v4602_v26, %v4598_v45  ;;  %v4599_v13 = vld [vmem:[#allocation8 + $0x10] sm:$0xff] }
 0x8d5   :  { %9169 = vmatprep.subr.bf16.mxu0 %v9168_v32  ;;  %9233 = vmatprep.subr.bf16.mxu1 %v9232_v41  ;;  %v9184_v32 = vpack.c.bf16 %v3940_v35, %v3932_v34  ;;  %v9248_v41 = vpack.c.bf16 %v3942_v19, %v3934_v57  ;;  %v12445_v3 = vpack.c.bf16 %v4604_v39, %v4600_v4  ;;  %v4603_v62 = vld [vmem:[#allocation8 + $0x30] sm:$0xff]  ;;  %v4606_v34 = vld [vmem:[#allocation8 + $0x48] sm:$0xff]  ;;  %v4608_v57 = vld [vmem:[#allocation8 + $0x58] sm:$0xff] }
 0x8d6   :  { %v4610_v35 = vld [vmem:[#allocation8 + $0x68] sm:$0xff]  ;;  %v4612_v19 = vld [vmem:[#allocation8 + $0x78] sm:$0xff]  ;;  %v4629_v4 = vld [vmem:[#allocation8 + $0x100] sm:$0xff] }
 0x8d7   :  { %v4633_v39 = vld [vmem:[#allocation8 + $0x120] sm:$0xff] }
 0x8d8   :  { %9171 = vmatpush1.bf16.msra.mxu0 %v9170_v46  ;;  %9235 = vmatpush1.bf16.msra.mxu1 %v9234_v12  ;;  %v9186_v46 = vpack.c.bf16 %v3939_v17, %v3931_v2  ;;  %v9250_v12 = vpack.c.bf16 %v3941_v58, %v3933_v43  ;;  %v4605_v2 = vld [vmem:[#allocation8 + $0x40] sm:$0xff]  ;;  %v4607_v43 = vld [vmem:[#allocation8 + $0x50] sm:$0xff] }
 0x8d9   :  { %9173 = vmatprep.subr.bf16.mxu0 %v9172_v7  ;;  %9237 = vmatprep.subr.bf16.mxu1 %v9236_v5  ;;  %v9188_v7 = vpack.c.bf16 %v3956_v52, %v3948_v38  ;;  %v9252_v5 = vpack.c.bf16 %v3958_v61, %v3950_v28  ;;  %v4609_v17 = vld [vmem:[#allocation8 + $0x60] sm:$0xff]  ;;  %v4611_v58 = vld [vmem:[#allocation8 + $0x70] sm:$0xff]  ;;  %v4614_v38 = vld [vmem:[#allocation8 + $0x88] sm:$0xff] }
 0x8da   :  { %v4618_v52 = vld [vmem:[#allocation8 + $0xa8] sm:$0xff]  ;;  %v4616_v28 = vld [vmem:[#allocation8 + $0x98] sm:$0xff] }
 0x8db   :  { %v4620_v61 = vld [vmem:[#allocation8 + $0xb8] sm:$0xff] }
 0x8dc   :  { %9175 = vmatpush1.bf16.msra.mxu0 %v9174_v15  ;;  %9239 = vmatpush1.bf16.msra.mxu1 %v9238_v37  ;;  %v9190_v15 = vpack.c.bf16 %v3955_v20, %v3947_v49  ;;  %v9254_v37 = vpack.c.bf16 %v3957_v56, %v3949_v42  ;;  %v4613_v49 = vld [vmem:[#allocation8 + $0x80] sm:$0xff]  ;;  %v4622_v42 = vld [vmem:[#allocation8 + $0xc8] sm:$0xff] }
 0x8dd   :  { %9177 = vmatprep.subr.bf16.mxu0 %v9176_v59  ;;  %9241 = vmatprep.subr.bf16.mxu1 %v9240_v27  ;;  %v9192_v59 = vpack.c.bf16 %v3972_v55, %v3964_v44  ;;  %v9256_v27 = vpack.c.bf16 %v3974_v9, %v3966_v33  ;;  %v4617_v20 = vld [vmem:[#allocation8 + $0xa0] sm:$0xff]  ;;  %v4626_v56 = vld [vmem:[#allocation8 + $0xe8] sm:$0xff]  ;;  %v4624_v44 = vld [vmem:[#allocation8 + $0xd8] sm:$0xff] }
 0x8de   :  { %v4628_v55 = vld [vmem:[#allocation8 + $0xf8] sm:$0xff]  ;;  %v12479_v33 = vpack.c.bf16 %v4617_v20, %v4613_v49  ;;  %v4645_v49 = vld [vmem:[#allocation8 + $0x180] sm:$0xff] }
 0x8df   :  { %v4649_v20 = vld [vmem:[#allocation8 + $0x1a0] sm:$0xff] }
 0x8e0   :  { %9179 = vmatpush1.bf16.msra.mxu0 %v9178_v11  ;;  %9243 = vmatpush1.bf16.msra.mxu1 %v9242_v40  ;;  %v9194_v11 = vpack.c.bf16 %v3971_v24, %v3963_v18  ;;  %v9258_v40 = vpack.c.bf16 %v3973_v16, %v3965_v36  ;;  %13869 = vst [vmem:[#allocation53_spill] sm:$0xff] %v12479_v33  ;;  %v4623_v24 = vld [vmem:[#allocation8 + $0xd0] sm:$0xff]  ;;  %v4632_v36 = vld [vmem:[#allocation8 + $0x118] sm:$0xff] }
 0x8e1   :  { %9181 = vmatprep.subr.bf16.mxu0 %v9180_v29  ;;  %9245 = vmatprep.subr.bf16.mxu1 %v9244_v10  ;;  %v4597_v29 = vld [vmem:[#allocation8] sm:$0xff]  ;;  %v12487_v18 = vpack.c.bf16 %v4628_v55, %v4624_v44  ;;  %v4636_v16 = vld [vmem:[#allocation8 + $0x138] sm:$0xff] }
 0x8e2   :  { %v4601_v10 = vld [vmem:[#allocation8 + $0x20] sm:$0xff]  ;;  %v4656_v44 = vld [vmem:[#allocation8 + $0x1d8] sm:$0xff] }
 0x8e3   :  { %13872 = vst [vmem:[#allocation51_spill] sm:$0xff] %v12487_v18  ;;  %v4660_v55 = vld [vmem:[#allocation8 + $0x1f8] sm:$0xff] }
 0x8e4   :  { %9183 = vmatpush1.bf16.msra.mxu0 %v9182_v0  ;;  %9247 = vmatpush1.bf16.msra.mxu1 %v9246_v14  ;;  %v12449_v0 = vpack.c.bf16 %v4601_v10, %v4597_v29  ;;  %v12451_v14 = vpack.c.bf16 %v4603_v62, %v4599_v13  ;;  %v4638_v29 = vld [vmem:[#allocation8 + $0x148] sm:$0xff]  ;;  %v4640_v13 = vld [vmem:[#allocation8 + $0x158] sm:$0xff] }
 0x8e5   :  { %9185 = vmatprep.subr.bf16.mxu0 %v9184_v32  ;;  %9249 = vmatprep.subr.bf16.mxu1 %v9248_v41  ;;  %v12453_v32 = vpack.c.bf16 %v4610_v35, %v4606_v34  ;;  %v12455_v41 = vpack.c.bf16 %v4612_v19, %v4608_v57  ;;  %v4642_v10 = vld [vmem:[#allocation8 + $0x168] sm:$0xff]  ;;  %v4644_v62 = vld [vmem:[#allocation8 + $0x178] sm:$0xff]  ;;  %v12511_v34 = vpack.c.bf16 %v4633_v39, %v4629_v4  ;;  %v4637_v57 = vld [vmem:[#allocation8 + $0x140] sm:$0xff] }
 0x8e6   :  { %v4641_v19 = vld [vmem:[#allocation8 + $0x160] sm:$0xff]  ;;  %v4665_v4 = vld [vmem:[#allocation8 + $0x218] sm:$0xff] }
 0x8e7   :  { %13877 = vst [vmem:[#allocation15_spill] sm:$0xff] %v12511_v34  ;;  %v4669_v39 = vld [vmem:[#allocation8 + $0x238] sm:$0xff] }
 0x8e8   :  { %9187 = vmatpush1.bf16.msra.mxu0 %v9186_v46  ;;  %9251 = vmatpush1.bf16.msra.mxu1 %v9250_v12  ;;  %v12463_v46 = vpack.c.bf16 %v4609_v17, %v4605_v2  ;;  %v12465_v12 = vpack.c.bf16 %v4611_v58, %v4607_v43  ;;  %v12519_v2 = vpack.c.bf16 %v4644_v62, %v4640_v13  ;;  %v4639_v17 = vld [vmem:[#allocation8 + $0x150] sm:$0xff]  ;;  %v4646_v43 = vld [vmem:[#allocation8 + $0x188] sm:$0xff] }
 0x8e9   :  { %9189 = vmatprep.subr.bf16.mxu0 %v9188_v7  ;;  %9253 = vmatprep.subr.bf16.mxu1 %v9252_v5  ;;  %v12471_v7 = vpack.c.bf16 %v4620_v61, %v4616_v28  ;;  %v4615_v5 = vld [vmem:[#allocation8 + $0x90] sm:$0xff]  ;;  %v4650_v58 = vld [vmem:[#allocation8 + $0x1a8] sm:$0xff]  ;;  %v12527_v28 = vpack.c.bf16 %v4641_v19, %v4637_v57  ;;  %v12567_v13 = vpack.c.bf16 %v4669_v39, %v4665_v4 }
 0x8ea   :  { %13880 = vst [vmem:[#allocation18_spill] sm:$0xff] %v12519_v2  ;;  %v4664_v62 = vld [vmem:[#allocation8 + $0x210] sm:$0xff]  ;;  %v4671_v57 = vld [vmem:[#allocation8 + $0x248] sm:$0xff] }
 0x8eb   :  { %13868 = vst [vmem:[#allocation52_spill] sm:$0xff] %v12471_v7  ;;  %13881 = vst [vmem:[#allocation19_spill] sm:$0xff] %v12527_v28  ;;  %v4675_v19 = vld [vmem:[#allocation8 + $0x268] sm:$0xff]  ;;  %v4684_v4 = vld [vmem:[#allocation8 + $0x2b0] sm:$0xff] }
 0x8ec   :  { %9191 = vmatpush1.bf16.msra.mxu0 %v9190_v15  ;;  %9255 = vmatpush1.bf16.msra.mxu1 %v9254_v37  ;;  %v4621_v15 = vld [vmem:[#allocation8 + $0xc0] sm:$0xff]  ;;  %13892 = vst [vmem:[#allocation30_spill] sm:$0xff] %v12567_v13  ;;  %v4687_v39 = vld [vmem:[#allocation8 + $0x2c8] sm:$0xff] }
 0x8ed   :  { %9193 = vmatprep.subr.bf16.mxu0 %v9192_v59  ;;  %9257 = vmatprep.subr.bf16.mxu1 %v9256_v27  ;;  %v4625_v37 = vld [vmem:[#allocation8 + $0xe0] sm:$0xff]  ;;  %v4630_v59 = vld [vmem:[#allocation8 + $0x108] sm:$0xff] }
 0x8ee   :  { %v4634_v27 = vld [vmem:[#allocation8 + $0x128] sm:$0xff]  ;;  %v12495_v45 = vpack.c.bf16 %v4625_v37, %v4621_v15  ;;  %v12543_v15 = vpack.c.bf16 %v4649_v20, %v4645_v49  ;;  %v4672_v20 = vld [vmem:[#allocation8 + $0x250] sm:$0xff] }
 0x8f0   :  { %9195 = vmatpush1.bf16.msra.mxu0 %v9194_v11  ;;  %9259 = vmatpush1.bf16.msra.mxu1 %v9258_v40  ;;  %13873 = vst [vmem:[#allocation11_spill] sm:$0xff] %v12495_v45  ;;  %v12503_v11 = vpack.c.bf16 %v4636_v16, %v4632_v36  ;;  %v4631_v40 = vld [vmem:[#allocation8 + $0x110] sm:$0xff]  ;;  %13885 = vst [vmem:[#allocation23_spill] sm:$0xff] %v12543_v15  ;;  %v4663_v36 = vld [vmem:[#allocation8 + $0x208] sm:$0xff] }
 0x8f1   :  { %9261 = vmatprep.subr.bf16.mxu0 %v12443_v30  ;;  %9293 = vmatprep.subr.bf16.mxu1 %v12445_v3  ;;  %v4667_v16 = vld [vmem:[#allocation8 + $0x228] sm:$0xff] }
 0x8f2   :  { %13876 = vst [vmem:[#allocation14_spill] sm:$0xff] %v12503_v11 }
 0x8f3   :  { %4266 = vmatmul.mubr.f32.vlgmr.msra.gmra.mrb[48].mxu0 %v13857_v50  ;;  %4379 = vmatmul.mubr.f32.vlgmr.msra.gmra.mrb[48].mxu1 %v13857_v50  ;;  %v12469_v50 = vpack.c.bf16 %v4618_v52, %v4614_v38  ;;  %v4648_v38 = vld [vmem:[#allocation8 + $0x198] sm:$0xff] }
 0x8f4   :  { %4271 = vmatprep.mubr.f32.mxu0 %v12391_v60  ;;  %4384 = vmatprep.mubr.f32.mxu1 %v12391_v60  ;;  %v4619_v60 = vld [vmem:[#allocation8 + $0xb0] sm:$0xff]  ;;  %v4652_v52 = vld [vmem:[#allocation8 + $0x1b8] sm:$0xff] }
 0x8f5   :  { %9263 = vmatpush1.bf16.msra.mxu0 %v12449_v0  ;;  %9295 = vmatpush1.bf16.msra.mxu1 %v12451_v14  ;;  %13867 = vst [vmem:[#allocation54_spill] sm:$0xff] %v12469_v50  ;;  %v12481_v9 = vpack.c.bf16 %v4619_v60, %v4615_v5  ;;  %v12535_v5 = vpack.c.bf16 %v4652_v52, %v4648_v38  ;;  %v4647_v60 = vld [vmem:[#allocation8 + $0x190] sm:$0xff]  ;;  %v4670_v38 = vld [vmem:[#allocation8 + $0x240] sm:$0xff] }
 0x8f6   :  { %9265 = vmatprep.subr.bf16.mxu0 %v12453_v32  ;;  %9297 = vmatprep.subr.bf16.mxu1 %v12455_v41  ;;  %v4674_v52 = vld [vmem:[#allocation8 + $0x260] sm:$0xff] }
 0x8f7   :  { %4272 = vmatmul.mubr.f32.gmra.mrb[50].mxu0 %v13858_v6  ;;  %4385 = vmatmul.mubr.f32.gmra.mrb[50].mxu1 %v13858_v6  ;;  %13870 = vst [vmem:[#allocation38_spill] sm:$0xff] %v12481_v9  ;;  %v12485_v6 = vpack.c.bf16 %v4626_v56, %v4622_v42  ;;  %13884 = vst [vmem:[#allocation22_spill] sm:$0xff] %v12535_v5  ;;  %v4654_v42 = vld [vmem:[#allocation8 + $0x1c8] sm:$0xff] }
 0x8f8   :  { %4277 = vmatprep.mubr.f32.mxu0 %v12299_v48  ;;  %4390 = vmatprep.mubr.f32.mxu1 %v12299_v48  ;;  %v4627_v48 = vld [vmem:[#allocation8 + $0xf0] sm:$0xff]  ;;  %v4658_v56 = vld [vmem:[#allocation8 + $0x1e8] sm:$0xff] }
 0x8f9   :  { %9267 = vmatpush1.bf16.msra.mxu0 %v12463_v46  ;;  %9299 = vmatpush1.bf16.msra.mxu1 %v12465_v12  ;;  %13871 = vst [vmem:[#allocation49_spill] sm:$0xff] %v12485_v6  ;;  %v12497_v26 = vpack.c.bf16 %v4627_v48, %v4623_v24  ;;  %v4653_v24 = vld [vmem:[#allocation8 + $0x1c0] sm:$0xff] }
 0x8fa   :  { %9269 = vmatprep.subr.bf16.mxu0 %v12469_v50  ;;  %9301 = vmatprep.subr.bf16.mxu1 %v12471_v7  ;;  %v4657_v48 = vld [vmem:[#allocation8 + $0x1e0] sm:$0xff] }
 0x8fb   :  { %4278 = vmatmul.mubr.f32.gmra.mrb[52].mxu0 %v13859_v54  ;;  %4391 = vmatmul.mubr.f32.gmra.mrb[52].mxu1 %v13859_v54  ;;  %13874 = vst [vmem:[#allocation12_spill] sm:$0xff] %v12497_v26  ;;  %v12501_v54 = vpack.c.bf16 %v4634_v27, %v4630_v59  ;;  %v12551_v59 = vpack.c.bf16 %v4660_v55, %v4656_v44  ;;  %v4655_v27 = vld [vmem:[#allocation8 + $0x1d0] sm:$0xff]  ;;  %v4685_v44 = vld [vmem:[#allocation8 + $0x2b8] sm:$0xff] }
 0x8fc   :  { %4283 = vmatprep.mubr.f32.mxu0 %v13860_v53  ;;  %4396 = vmatprep.mubr.f32.mxu1 %v13860_v53  ;;  %v4635_v53 = vld [vmem:[#allocation8 + $0x130] sm:$0xff]  ;;  %v12589_v55 = vpack.c.bf16 %v4674_v52, %v4670_v38 }
 0x8fd   :  { %9271 = vmatpush1.bf16.msra.mxu0 %v12479_v33  ;;  %9303 = vmatpush1.bf16.msra.mxu1 %v12481_v9  ;;  %13875 = vst [vmem:[#allocation13_spill] sm:$0xff] %v12501_v54  ;;  %v12513_v35 = vpack.c.bf16 %v4635_v53, %v4631_v40  ;;  %13888 = vst [vmem:[#allocation26_spill] sm:$0xff] %v12551_v59  ;;  %v12559_v40 = vpack.c.bf16 %v4657_v48, %v4653_v24  ;;  %v4678_v48 = vld [vmem:[#allocation8 + $0x280] sm:$0xff]  ;;  %v4688_v52 = vld [vmem:[#allocation8 + $0x2d0] sm:$0xff] }
 0x8fe   :  { %9273 = vmatprep.subr.bf16.mxu0 %v12485_v6  ;;  %9305 = vmatprep.subr.bf16.mxu1 %v12487_v18 }
 0x8ff   :  { %4284 = vmatmul.mubr.f32.gmra.mrb[54].mxu0 %v13861_v31  ;;  %4397 = vmatmul.mubr.f32.gmra.mrb[54].mxu1 %v13861_v31  ;;  %13878 = vst [vmem:[#allocation16_spill] sm:$0xff] %v12513_v35  ;;  %v12517_v31 = vpack.c.bf16 %v4642_v10, %v4638_v29  ;;  %13889 = vst [vmem:[#allocation27_spill] sm:$0xff] %v12559_v40  ;;  %v4662_v29 = vld [vmem:[#allocation8 + $0x200] sm:$0xff] }
 0x900   :  { %4289 = vmatprep.mubr.f32.mxu0 %v13862_v47  ;;  %4402 = vmatprep.mubr.f32.mxu1 %v13862_v47  ;;  %v4643_v47 = vld [vmem:[#allocation8 + $0x170] sm:$0xff]  ;;  %v4666_v10 = vld [vmem:[#allocation8 + $0x220] sm:$0xff] }
 0x901   :  { %9275 = vmatpush1.bf16.msra.mxu0 %v12495_v45  ;;  %9307 = vmatpush1.bf16.msra.mxu1 %v12497_v26  ;;  %13879 = vst [vmem:[#allocation17_spill] sm:$0xff] %v12517_v31  ;;  %v12529_v61 = vpack.c.bf16 %v4643_v47, %v4639_v17  ;;  %v4673_v17 = vld [vmem:[#allocation8 + $0x258] sm:$0xff] }
 0x902   :  { %9277 = vmatprep.subr.bf16.mxu0 %v12501_v54  ;;  %9309 = vmatprep.subr.bf16.mxu1 %v12503_v11  ;;  %v4677_v47 = vld [vmem:[#allocation8 + $0x278] sm:$0xff] }
 0x903   :  { %4290 = vmatmul.mubr.f32.gmra.mrb[56].mxu0 %v13863_v22  ;;  %4403 = vmatmul.mubr.f32.gmra.mrb[56].mxu1 %v13863_v22  ;;  %13882 = vst [vmem:[#allocation20_spill] sm:$0xff] %v12529_v61  ;;  %v12533_v22 = vpack.c.bf16 %v4650_v58, %v4646_v43  ;;  %v12575_v43 = vpack.c.bf16 %v4666_v10, %v4662_v29  ;;  %v4691_v29 = vld [vmem:[#allocation8 + $0x2e8] sm:$0xff]  ;;  %v4689_v10 = vld [vmem:[#allocation8 + $0x2d8] sm:$0xff] }
 0x904   :  { %4295 = vmatprep.mubr.f32.mxu0 %v13864_v23  ;;  %4408 = vmatprep.mubr.f32.mxu1 %v13864_v23  ;;  %v4651_v23 = vld [vmem:[#allocation8 + $0x1b0] sm:$0xff]  ;;  %v12583_v49 = vpack.c.bf16 %v4677_v47, %v4673_v17  ;;  %v4690_v17 = vld [vmem:[#allocation8 + $0x2e0] sm:$0xff]  ;;  %v12609_v47 = vpack.c.bf16 %v4691_v29, %v4687_v39 }
 0x905   :  { %9279 = vmatpush1.bf16.msra.mxu0 %v12511_v34  ;;  %9311 = vmatpush1.bf16.msra.mxu1 %v12513_v35  ;;  %13883 = vst [vmem:[#allocation21_spill] sm:$0xff] %v12533_v22  ;;  %v12545_v37 = vpack.c.bf16 %v4651_v23, %v4647_v60  ;;  %v4676_v60 = vld [vmem:[#allocation8 + $0x270] sm:$0xff]  ;;  %v4679_v23 = vld [vmem:[#allocation8 + $0x288] sm:$0xff] }
 0x906   :  { %9281 = vmatprep.subr.bf16.mxu0 %v12517_v31  ;;  %9313 = vmatprep.subr.bf16.mxu1 %v12519_v2  ;;  %v12591_v24 = vpack.c.bf16 %v4676_v60, %v4672_v20  ;;  %13896 = vst [vmem:[#allocation34_spill] sm:$0xff] %v12609_v47  ;;  %v4692_v20 = vld [vmem:[#allocation8 + $0x2f0] sm:$0xff]  ;;  %v4695_v60 = vld [vmem:[#allocation8 + $0x308] sm:$0xff] }
 0x907   :  { %4296 = vmatmul.mubr.f32.gmra.mrb[58].mxu0 %v12259_v51  ;;  %4409 = vmatmul.mubr.f32.gmra.mrb[58].mxu1 %v12259_v51  ;;  %13886 = vst [vmem:[#allocation24_spill] sm:$0xff] %v12545_v37  ;;  %v12549_v51 = vpack.c.bf16 %v4658_v56, %v4654_v42  ;;  %v4683_v42 = vld [vmem:[#allocation8 + $0x2a8] sm:$0xff]  ;;  %v4681_v56 = vld [vmem:[#allocation8 + $0x298] sm:$0xff]  ;;  %v4696_v29 = vld [vmem:[#allocation8 + $0x310] sm:$0xff] }
 0x908   :  { %4301 = vmatprep.mubr.f32.mxu0 %v13865_v21  ;;  %4414 = vmatprep.mubr.f32.mxu1 %v13865_v21  ;;  %v4659_v21 = vld [vmem:[#allocation8 + $0x1f0] sm:$0xff] }
 0x909   :  { %9283 = vmatpush1.bf16.msra.mxu0 %v12527_v28  ;;  %9315 = vmatpush1.bf16.msra.mxu1 %v12529_v61  ;;  %13887 = vst [vmem:[#allocation25_spill] sm:$0xff] %v12549_v51  ;;  %v12561_v53 = vpack.c.bf16 %v4659_v21, %v4655_v27  ;;  %v4682_v27 = vld [vmem:[#allocation8 + $0x2a0] sm:$0xff]  ;;  %v12595_v21 = vpack.c.bf16 %v4683_v42, %v4679_v23  ;;  %v4699_v23 = vld [vmem:[#allocation8 + $0x328] sm:$0xff]  ;;  %v4697_v42 = vld [vmem:[#allocation8 + $0x318] sm:$0xff] }
 0x90a   :  { %9285 = vmatprep.subr.bf16.mxu0 %v12533_v22  ;;  %9317 = vmatprep.subr.bf16.mxu1 %v12535_v5 }
 0x90b   :  { %4302 = vmatmul.mubr.f32.gmra.mrb[60].mxu0 %v12351_v1  ;;  %4415 = vmatmul.mubr.f32.gmra.mrb[60].mxu1 %v12351_v1  ;;  %13890 = vst [vmem:[#allocation28_spill] sm:$0xff] %v12561_v53  ;;  %v12565_v1 = vpack.c.bf16 %v4667_v16, %v4663_v36  ;;  %v12597_v36 = vpack.c.bf16 %v4685_v44, %v4681_v56  ;;  %v4680_v16 = vld [vmem:[#allocation8 + $0x290] sm:$0xff]  ;;  %v4701_v56 = vld [vmem:[#allocation8 + $0x338] sm:$0xff] }
 0x90c   :  { %4307 = vmatprep.mubr.f32.mxu0 %v13866_v8  ;;  %4420 = vmatprep.mubr.f32.mxu1 %v13866_v8  ;;  %v4668_v8 = vld [vmem:[#allocation8 + $0x230] sm:$0xff]  ;;  %v12623_v39 = vpack.c.bf16 %v4701_v56, %v4697_v42 }
 0x90d   :  { %9287 = vmatpush1.bf16.msra.mxu0 %v12543_v15  ;;  %9319 = vmatpush1.bf16.msra.mxu1 %v12545_v37  ;;  %13891 = vst [vmem:[#allocation29_spill] sm:$0xff] %v12565_v1  ;;  %v12577_v58 = vpack.c.bf16 %v4668_v8, %v4664_v62  ;;  %13893 = vst [vmem:[#allocation31_spill] sm:$0xff] %v12597_v36  ;;  %v4693_v62 = vld [vmem:[#allocation8 + $0x2f8] sm:$0xff]  ;;  %v12603_v8 = vpack.c.bf16 %v4682_v27, %v4678_v48  ;;  %v4694_v27 = vld [vmem:[#allocation8 + $0x300] sm:$0xff] }
 0x90e   :  { %9289 = vmatprep.subr.bf16.mxu0 %v12549_v51  ;;  %9321 = vmatprep.subr.bf16.mxu1 %v12551_v59  ;;  %v12611_v38 = vpack.c.bf16 %v4693_v62, %v4689_v10  ;;  %v12617_v48 = vpack.c.bf16 %v4692_v20, %v4688_v52  ;;  %13901 = vst [vmem:[#allocation55_spill] sm:$0xff] %v12623_v39  ;;  %v4700_v10 = vld [vmem:[#allocation8 + $0x330] sm:$0xff]  ;;  %v4703_v62 = vld [vmem:[#allocation8 + $0x348] sm:$0xff]  ;;  %v4702_v52 = vld [vmem:[#allocation8 + $0x340] sm:$0xff] }
 0x90f   :  { %4308 = vmatmul.mubr.f32.gmra.mrb[62].mxu0 %v12404_v25  ;;  %4421 = vmatmul.mubr.f32.gmra.mrb[62].mxu1 %v12404_v25  ;;  %v12581_v25 = vpack.c.bf16 %v4675_v19, %v4671_v57  ;;  %13894 = vst [vmem:[#allocation32_spill] sm:$0xff] %v12603_v8  ;;  %v12605_v57 = vpack.c.bf16 %v4684_v4, %v4680_v16  ;;  %v4686_v19 = vld [vmem:[#allocation8 + $0x2c0] sm:$0xff]  ;;  %v4704_v42 = vld [vmem:[#allocation8 + $0x350] sm:$0xff] }
 0x910   :  { %4794 = vmatprep.mubr.f32.mxu0 %v13673_v63  ;;  %4865 = vmatprep.mubr.f32.mxu1 %v13673_v63  ;;  %13897 = vst [vmem:[#allocation35_spill] sm:$0xff] %v12611_v38  ;;  %v12615_v44 = vpack.c.bf16 %v4690_v17, %v4686_v19  ;;  %13899 = vst [vmem:[#allocation48_spill] sm:$0xff] %v12617_v48  ;;  %v4698_v16 = vld [vmem:[#allocation8 + $0x320] sm:$0xff]  ;;  %v12621_v4 = vpack.c.bf16 %v4699_v23, %v4695_v60  ;;  %v4708_v56 = vld [vmem:[#allocation8 + $0x370] sm:$0xff] }
 0x911   :  { %9291 = vmatpush1.bf16.msra.mxu0 %v12559_v40  ;;  %9323 = vmatpush1.bf16.msra.mxu1 %v12561_v53  ;;  %13895 = vst [vmem:[#allocation33_spill] sm:$0xff] %v12605_v57  ;;  %v12627_v19 = vpack.c.bf16 %v4698_v16, %v4694_v27  ;;  %v12629_v17 = vpack.c.bf16 %v4700_v10, %v4696_v29  ;;  %v4706_v20 = vld [vmem:[#allocation8 + $0x360] sm:$0xff] }
 0x912   :  { %9325 = vmatprep.subr.bf16.mxu0 %v12565_v1  ;;  %9357 = vmatprep.subr.bf16.mxu1 %v12567_v13  ;;  %13898 = vst [vmem:[#allocation36_spill] sm:$0xff] %v12615_v44  ;;  %13900 = vst [vmem:[#allocation50_spill] sm:$0xff] %v12621_v4  ;;  %v12639_v27 = vpack.c.bf16 %v4706_v20, %v4702_v52  ;;  %v12641_v16 = vpack.c.bf16 %v4708_v56, %v4704_v42  ;;  %v4710_v29 = vld [vmem:[#allocation8 + $0x380] sm:$0xff]  ;;  %v4724_v56 = vld [vmem:[#allocation8 + $0x3f0] sm:$0xff] }
 0x913   :  { %13902 = vst [vmem:[#allocation39_spill] sm:$0xff] %v12627_v19  ;;  %13903 = vst [vmem:[#allocation41_spill] sm:$0xff] %v12629_v17  ;;  %v4714_v10 = vld [vmem:[#allocation8 + $0x3a0] sm:$0xff] }
 0x914   :  { %4795 = vmatmul.mubr.f32.vlgmr.msra.gmra.mrb[32].mxu0 %v13673_v63  ;;  %4866 = vmatmul.mubr.f32.vlgmr.msra.gmra.mrb[32].mxu1 %v13673_v63  ;;  %v12651_v52 = vpack.c.bf16 %v4714_v10, %v4710_v29  ;;  %v4718_v42 = vld [vmem:[#allocation8 + $0x3c0] sm:$0xff] }
 0x915   :  { %9327 = vmatpush1.bf16.msra.mxu0 %v12575_v43  ;;  %9359 = vmatpush1.bf16.msra.mxu1 %v12577_v58 }
 0x916   :  { %9329 = vmatprep.subr.bf16.mxu0 %v12581_v25  ;;  %9361 = vmatprep.subr.bf16.mxu1 %v12583_v49 }
 0x917   :  { %4944 = vmatprep.mubr.f32.mxu0 %v13673_v63  ;;  %5015 = vmatprep.mubr.f32.mxu1 %v13673_v63 }
 0x919   :  { %9331 = vmatpush1.bf16.msra.mxu0 %v12589_v55  ;;  %9363 = vmatpush1.bf16.msra.mxu1 %v12591_v24 }
 0x91a   :  { %9333 = vmatprep.subr.bf16.mxu0 %v12595_v21  ;;  %9365 = vmatprep.subr.bf16.mxu1 %v12597_v36  ;;  %v4705_v36 = vld [vmem:[#allocation8 + $0x358] sm:$0xff] }
 0x91d   :  { %9335 = vmatpush1.bf16.msra.mxu0 %v12603_v8  ;;  %9367 = vmatpush1.bf16.msra.mxu1 %v12605_v57  ;;  %v4707_v8 = vld [vmem:[#allocation8 + $0x368] sm:$0xff]  ;;  %v4709_v57 = vld [vmem:[#allocation8 + $0x378] sm:$0xff] }
 0x91e   :  { %9337 = vmatprep.subr.bf16.mxu0 %v12609_v47  ;;  %9369 = vmatprep.subr.bf16.mxu1 %v12611_v38  ;;  %v12633_v60 = vpack.c.bf16 %v4707_v8, %v4703_v62  ;;  %v12635_v23 = vpack.c.bf16 %v4709_v57, %v4705_v36  ;;  %v4711_v38 = vld [vmem:[#allocation8 + $0x388] sm:$0xff]  ;;  %v4713_v47 = vld [vmem:[#allocation8 + $0x398] sm:$0xff]  ;;  %v4712_v57 = vld [vmem:[#allocation8 + $0x390] sm:$0xff] }
 0x91f   :  { %v4716_v62 = vld [vmem:[#allocation8 + $0x3b0] sm:$0xff] }
 0x920   :  { %v12653_v20 = vpack.c.bf16 %v4716_v62, %v4712_v57 }
 0x921   :  { %9339 = vmatpush1.bf16.msra.mxu0 %v12615_v44  ;;  %9371 = vmatpush1.bf16.msra.mxu1 %v12617_v48  ;;  %v4715_v44 = vld [vmem:[#allocation8 + $0x3a8] sm:$0xff]  ;;  %v4717_v48 = vld [vmem:[#allocation8 + $0x3b8] sm:$0xff] }
 0x922   :  { %9341 = vmatprep.subr.bf16.mxu0 %v12621_v4  ;;  %9373 = vmatprep.subr.bf16.mxu1 %v12623_v39  ;;  %v12645_v36 = vpack.c.bf16 %v4715_v44, %v4711_v38  ;;  %v12647_v8 = vpack.c.bf16 %v4717_v48, %v4713_v47  ;;  %v4719_v39 = vld [vmem:[#allocation8 + $0x3c8] sm:$0xff]  ;;  %v4721_v4 = vld [vmem:[#allocation8 + $0x3d8] sm:$0xff]  ;;  %v4722_v44 = vld [vmem:[#allocation8 + $0x3e0] sm:$0xff] }
 0x923   :  { %v4720_v48 = vld [vmem:[#allocation8 + $0x3d0] sm:$0xff]  ;;  %v12663_v29 = vpack.c.bf16 %v4722_v44, %v4718_v42 }
 0x924   :  { %v12665_v10 = vpack.c.bf16 %v4724_v56, %v4720_v48 }
 0x925   :  { %9343 = vmatpush1.bf16.msra.mxu0 %v12627_v19  ;;  %9375 = vmatpush1.bf16.msra.mxu1 %v12629_v17  ;;  %v4723_v19 = vld [vmem:[#allocation8 + $0x3e8] sm:$0xff]  ;;  %v4725_v17 = vld [vmem:[#allocation8 + $0x3f8] sm:$0xff] }
 0x926   :  { %9345 = vmatprep.subr.bf16.mxu0 %v12633_v60  ;;  %9377 = vmatprep.subr.bf16.mxu1 %v12635_v23  ;;  %v12657_v47 = vpack.c.bf16 %v4723_v19, %v4719_v39  ;;  %v12659_v38 = vpack.c.bf16 %v4725_v17, %v4721_v4  ;;  %v4427_v4 = vld [vmem:[%s13430_s6] sm:$0xff] }
 0x927   :  { %v13904_v39 = vld [vmem:[#allocation47_spill] sm:$0xff] }
 0x928   :  { %v13905_v19 = vsub.s32 0, %v13904_v39  ;;  %v13907_v57 = vsub.s32 1, %v13904_v39 }
 0x929   :  { %9347 = vmatpush1.bf16.msra.mxu0 %v12639_v27  ;;  %9379 = vmatpush1.bf16.msra.mxu1 %v12641_v16 }
 0x92a   :  { %9349 = vmatprep.subr.bf16.mxu0 %v12645_v36  ;;  %9381 = vmatprep.subr.bf16.mxu1 %v12647_v8  ;;  %v12714_v17 = vrot.slane %v4427_v4, %v13905_v19  ;;  %v12718_v62 = vrot.slane %v4427_v4, %v13907_v57  ;;  %v13911_v19 = vsub.s32 3, %v13904_v39 }
 0x92c   :  { %13906 = vst [vmem:[#allocation46_spill] sm:$0xff] %v12714_v17  ;;  %13908 = vst [vmem:[#allocation43_spill] sm:$0xff] %v12718_v62  ;;  %v12728_v57 = vrot.slane %v4427_v4, %v13911_v19  ;;  %v13913_v19 = vsub.s32 4, %v13904_v39 }
 0x92d   :  { %9351 = vmatpush1.bf16.msra.mxu0 %v12651_v52  ;;  %9383 = vmatpush1.bf16.msra.mxu1 %v12653_v20 }
 0x92e   :  { %9353 = vmatprep.subr.bf16.mxu0 %v12657_v47  ;;  %9385 = vmatprep.subr.bf16.mxu1 %v12659_v38  ;;  %13912 = vst [vmem:[#allocation45_spill] sm:$0xff] %v12728_v57 }
 0x931   :  { %9355 = vmatpush1.bf16.msra.mxu0 %v12663_v29  ;;  %9387 = vmatpush1.bf16.msra.mxu1 %v12665_v10 }
 0x932   :  { %9389 = vmatprep.subr.bf16.mxu0 %v12443_v30  ;;  %9421 = vmatprep.subr.bf16.mxu1 %v12445_v3 }
 0x934   :  { %4945 = vmatmul.mubr.f32.vlgmr.msra.gmra.mrb[62].mxu0 %v13673_v63  ;;  %5016 = vmatmul.mubr.f32.vlgmr.msra.gmra.mrb[62].mxu1 %v13673_v63 }
 0x935   :  { %9391 = vmatpush1.bf16.msra.mxu0 %v12449_v0  ;;  %9423 = vmatpush1.bf16.msra.mxu1 %v12451_v14 }
 0x936   :  { %9393 = vmatprep.subr.bf16.mxu0 %v12453_v32  ;;  %9425 = vmatprep.subr.bf16.mxu1 %v12455_v41 }
 0x937   :  { %5142 = vmatprep.mubr.f32.mxu0 %v13673_v63  ;;  %5213 = vmatprep.mubr.f32.mxu1 %v13673_v63 }
 0x939   :  { %9395 = vmatpush1.bf16.msra.mxu0 %v12463_v46  ;;  %9427 = vmatpush1.bf16.msra.mxu1 %v12465_v12 }
 0x93a   :  { %9397 = vmatprep.subr.bf16.mxu0 %v12469_v50  ;;  %9429 = vmatprep.subr.bf16.mxu1 %v12471_v7 }
 0x93d   :  { %9399 = vmatpush1.bf16.msra.mxu0 %v12479_v33  ;;  %9431 = vmatpush1.bf16.msra.mxu1 %v12481_v9 }
 0x93e   :  { %9401 = vmatprep.subr.bf16.mxu0 %v12485_v6  ;;  %9433 = vmatprep.subr.bf16.mxu1 %v12487_v18 }
 0x941   :  { %9403 = vmatpush1.bf16.msra.mxu0 %v12495_v45  ;;  %9435 = vmatpush1.bf16.msra.mxu1 %v12497_v26 }
 0x942   :  { %9405 = vmatprep.subr.bf16.mxu0 %v12501_v54  ;;  %9437 = vmatprep.subr.bf16.mxu1 %v12503_v11 }
 0x945   :  { %9407 = vmatpush1.bf16.msra.mxu0 %v12511_v34  ;;  %9439 = vmatpush1.bf16.msra.mxu1 %v12513_v35 }
 0x946   :  { %9409 = vmatprep.subr.bf16.mxu0 %v12517_v31  ;;  %9441 = vmatprep.subr.bf16.mxu1 %v12519_v2 }
 0x949   :  { %9411 = vmatpush1.bf16.msra.mxu0 %v12527_v28  ;;  %9443 = vmatpush1.bf16.msra.mxu1 %v12529_v61 }
 0x94a   :  { %9413 = vmatprep.subr.bf16.mxu0 %v12533_v22  ;;  %9445 = vmatprep.subr.bf16.mxu1 %v12535_v5 }
 0x94d   :  { %9415 = vmatpush1.bf16.msra.mxu0 %v12543_v15  ;;  %9447 = vmatpush1.bf16.msra.mxu1 %v12545_v37 }
 0x94e   :  { %9417 = vmatprep.subr.bf16.mxu0 %v12549_v51  ;;  %9449 = vmatprep.subr.bf16.mxu1 %v12551_v59  ;;  %v13909_v59 = vsub.s32 2, %v13904_v39 }
 0x950   :  { %v12724_v51 = vrot.slane %v4427_v4, %v13909_v59 }
 0x951   :  { %9419 = vmatpush1.bf16.msra.mxu0 %v12559_v40  ;;  %9451 = vmatpush1.bf16.msra.mxu1 %v12561_v53 }
 0x952   :  { %9453 = vmatprep.subr.bf16.mxu0 %v12565_v1  ;;  %9485 = vmatprep.subr.bf16.mxu1 %v12567_v13  ;;  %13910 = vst [vmem:[#allocation44_spill] sm:$0xff] %v12724_v51 }
 0x9e7   :  { %v4796_v42 = vpop.f32.mrb[32].mxu0  ;;  %v4867_v44 = vpop.f32.mrb[32].mxu1 }
 0x9e8   :  { %v10396_v48 = vadd.f32 %v4796_v42, %v12714_v17  ;;  %v4798_v56 = vpop.f32.mrb[33].mxu0  ;;  %v4869_v1 = vpop.f32.mrb[33].mxu1  ;;  %v10412_v37 = vadd.f32 %v4867_v44, %v12724_v51 }
 0x9e9   :  { %v10397_v13 = vadd.f32 %v4798_v56, %v12718_v62  ;;  %v10413_v42 = vadd.f32 %v4869_v1, %v12728_v57  ;;  %v12734_v62 = vrot.slane %v4427_v4, %v13913_v19  ;;  %v13917_v19 = vsub.s32 6, %v13904_v39 }
 0x9ea   :  { %v7779_v53 = vmul.f32 -1.442695, %v10396_v48  ;;  %v7781_v17 = vmul.f32 -1.442695, %v10412_v37  ;;  %v13915_v37 = vsub.s32 5, %v13904_v39 }
 0x9eb   :  { %v7780_v40 = vmul.f32 -1.442695, %v10397_v13  ;;  %13914 = vst [vmem:[#allocation42_spill] sm:$0xff] %v12734_v62 }
 0x9ec   :  { %10854 = vpow2.f32 %v7779_v53  ;;  %v12738_v1 = vrot.slane %v4427_v4, %v13915_v37  ;;  %v12747_v37 = vrot.slane %v4427_v4, %v13917_v19 }
 0x9ed   :  { %10856 = vpow2.f32 %v7780_v40 }
 0x9ee   :  { %10858 = vtanh.f32 %v10413_v42  ;;  %13916 = vst [vmem:[#allocation40_spill] sm:$0xff] %v12738_v1 }
 0x9ef   :  { %10860 = vpow2.f32 %v7781_v17 }
 0x9f6   :  { %v10855_v15 = vpop.eup %10854 }
 0x9f7   :  { %v5035_v5 = vadd.f32 1.0, %v10855_v15  ;;  %v10857_v48 = vpop.eup %10856 }
 0x9f8   :  { %v5036_v53 = vadd.f32 1.0, %v10857_v48  ;;  %v10859_v59 = vpop.eup %10858 }
 0x9f9   :  { %10862 = vrcp.f32 %v5035_v5  ;;  %v10861_v13 = vpop.eup %10860 }
 0x9fa   :  { %10864 = vrcp.f32 %v5036_v53  ;;  %v5037_v51 = vadd.f32 1.0, %v10861_v13 }
 0x9fc   :  { %10866 = vrcp.f32 %v5037_v51 }
 0xa03   :  { %v10863_v40 = vpop.eup %10862 }
 0xa04   :  { %v5065_v56 = vmul.f32 %v10863_v40, %v10859_v59  ;;  %v10865_v44 = vpop.eup %10864 }
 0xa05   :  { %v5064_v15 = vmul.f32 0.0, %v10865_v44 }
 0xa07   :  { %v4946_v42 = vpop.f32.mrb[62].mxu0  ;;  %v5017_v17 = vpop.f32.mrb[62].mxu1  ;;  %v12740_v5 = vadd.f32 %v5065_v56, %v5064_v15  ;;  %v13918_v56 = vsub.s32 7, %v13904_v39  ;;  %v13919_v39 = vld [vmem:[#allocation31_spill] sm:$0xff] }
 0xa08   :  { %v10442_v48 = vadd.f32 %v4946_v42, %v12734_v62  ;;  %v4948_v53 = vpop.f32.mrb[63].mxu0  ;;  %v5019_v57 = vpop.f32.mrb[63].mxu1  ;;  %v10458_v15 = vadd.f32 %v5017_v17, %v12747_v37  ;;  %v13922_v17 = vld [vmem:[#allocation34_spill] sm:$0xff] }
 0xa09   :  { %v10443_v59 = vadd.f32 %v4948_v53, %v12738_v1  ;;  %10868 = vtanh.f32 %v12740_v5  ;;  %v12751_v44 = vrot.slane %v4427_v4, %v13918_v56  ;;  %v10867_v42 = vpop.eup %10866 }
 0xa0a   :  { %v7782_v40 = vmul.f32 -1.442695, %v10442_v48  ;;  %v7784_v1 = vmul.f32 -1.442695, %v10458_v15 }
 0xa0b   :  { %v7783_v13 = vmul.f32 -1.442695, %v10443_v59  ;;  %v10459_v51 = vadd.f32 %v5019_v57, %v12751_v44  ;;  %v13921_v57 = vld [vmem:[#allocation33_spill] sm:$0xff] }
 0xa0c   :  { %10870 = vpow2.f32 %v7782_v40 }
 0xa0d   :  { %10872 = vpow2.f32 %v7783_v13  ;;  %v13923_v13 = vld [vmem:[#allocation35_spill] sm:$0xff] }
 0xa0e   :  { %10874 = vtanh.f32 %v10459_v51  ;;  %v13925_v51 = vld [vmem:[#allocation48_spill] sm:$0xff] }
 0xa0f   :  { %10876 = vpow2.f32 %v7784_v1 }
 0xa13   :  { %v10869_v53 = vpop.eup %10868 }
 0xa14   :  { %v5071_v62 = vmul.f32 %v10869_v53, %v10867_v42  ;;  %v13924_v42 = vld [vmem:[#allocation36_spill] sm:$0xff] }
 0xa16   :  { %v10871_v48 = vpop.eup %10870  ;;  %5143 = vmatmul.mubr.f32.vlgmr.msra.gmra.mrb[34].mxu0 %v5071_v62  ;;  %5214 = vmatmul.mubr.f32.vlgmr.msra.gmra.mrb[34].mxu1 %v5071_v62  ;;  %v13920_v62 = vld [vmem:[#allocation32_spill] sm:$0xff] }
 0xa17   :  { %v5053_v59 = vadd.f32 1.0, %v10871_v48  ;;  %v10873_v40 = vpop.eup %10872  ;;  %9455 = vmatpush1.bf16.msra.mxu0 %v12575_v43  ;;  %9487 = vmatpush1.bf16.msra.mxu1 %v12577_v58 }
 0xa18   :  { %v5054_v4 = vadd.f32 1.0, %v10873_v40  ;;  %9457 = vmatprep.subr.bf16.mxu0 %v12581_v25  ;;  %9489 = vmatprep.subr.bf16.mxu1 %v12583_v49  ;;  %v10875_v1 = vpop.eup %10874  ;;  %v13927_v40 = vld [vmem:[#allocation55_spill] sm:$0xff] }
 0xa19   :  { %10878 = vrcp.f32 %v5053_v59  ;;  %5292 = vmatprep.mubr.f32.mxu0 %v13673_v63  ;;  %5363 = vmatprep.mubr.f32.mxu1 %v13673_v63  ;;  %v10877_v19 = vpop.eup %10876  ;;  %v13926_v59 = vld [vmem:[#allocation50_spill] sm:$0xff] }
 0xa1a   :  { %10880 = vrcp.f32 %v5054_v4  ;;  %v5055_v48 = vadd.f32 1.0, %v10877_v19 }
 0xa1b   :  { %9459 = vmatpush1.bf16.msra.mxu0 %v12589_v55  ;;  %9491 = vmatpush1.bf16.msra.mxu1 %v12591_v24 }
 0xa1c   :  { %9461 = vmatprep.subr.bf16.mxu0 %v12595_v21  ;;  %9493 = vmatprep.subr.bf16.mxu1 %v13919_v39  ;;  %10882 = vrcp.f32 %v5055_v48  ;;  %v13932_v48 = vld [vmem:[#allocation24_spill] sm:$0xff] }
 0xa1f   :  { %9463 = vmatpush1.bf16.msra.mxu0 %v13920_v62  ;;  %9495 = vmatpush1.bf16.msra.mxu1 %v13921_v57  ;;  %v13928_v62 = vld [vmem:[#allocation39_spill] sm:$0xff] }
 0xa20   :  { %9465 = vmatprep.subr.bf16.mxu0 %v13922_v17  ;;  %9497 = vmatprep.subr.bf16.mxu1 %v13923_v13  ;;  %v13929_v17 = vld [vmem:[#allocation41_spill] sm:$0xff] }
 0xa23   :  { %v10879_v56 = vpop.eup %10878  ;;  %9467 = vmatpush1.bf16.msra.mxu0 %v13924_v42  ;;  %9499 = vmatpush1.bf16.msra.mxu1 %v13925_v51 }
 0xa24   :  { %v5068_v15 = vmul.f32 %v10879_v56, %v10875_v1  ;;  %v10881_v53 = vpop.eup %10880  ;;  %9469 = vmatprep.subr.bf16.mxu0 %v13926_v59  ;;  %9501 = vmatprep.subr.bf16.mxu1 %v13927_v40 }
 0xa25   :  { %v5067_v4 = vmul.f32 0.0, %v10881_v53  ;;  %v13931_v53 = vld [vmem:[#allocation23_spill] sm:$0xff] }
 0xa26   :  { %v10883_v1 = vpop.eup %10882 }
 0xa27   :  { %v12773_v57 = vadd.f32 %v5068_v15, %v5067_v4  ;;  %9471 = vmatpush1.bf16.msra.mxu0 %v13928_v62  ;;  %9503 = vmatpush1.bf16.msra.mxu1 %v13929_v17  ;;  %v13930_v15 = vld [vmem:[#allocation22_spill] sm:$0xff]  ;;  %v13933_v4 = vld [vmem:[#allocation25_spill] sm:$0xff] }
 0xa28   :  { %9473 = vmatprep.subr.bf16.mxu0 %v12633_v60  ;;  %9505 = vmatprep.subr.bf16.mxu1 %v12635_v23 }
 0xa29   :  { %10884 = vtanh.f32 %v12773_v57 }
 0xa2b   :  { %9475 = vmatpush1.bf16.msra.mxu0 %v12639_v27  ;;  %9507 = vmatpush1.bf16.msra.mxu1 %v12641_v16 }
 0xa2c   :  { %9477 = vmatprep.subr.bf16.mxu0 %v12645_v36  ;;  %9509 = vmatprep.subr.bf16.mxu1 %v12647_v8 }
 0xa2f   :  { %9479 = vmatpush1.bf16.msra.mxu0 %v12651_v52  ;;  %9511 = vmatpush1.bf16.msra.mxu1 %v12653_v20 }
 0xa30   :  { %9481 = vmatprep.subr.bf16.mxu0 %v12657_v47  ;;  %9513 = vmatprep.subr.bf16.mxu1 %v12659_v38 }
 0xa33   :  { %v10885_v19 = vpop.eup %10884  ;;  %9483 = vmatpush1.bf16.msra.mxu0 %v12663_v29  ;;  %9515 = vmatpush1.bf16.msra.mxu1 %v12665_v10 }
 0xa34   :  { %v5073_v56 = vmul.f32 %v10885_v19, %v10883_v1  ;;  %9517 = vmatprep.subr.bf16.mxu0 %v12443_v30  ;;  %9549 = vmatprep.subr.bf16.mxu1 %v12445_v3  ;;  %v13934_v1 = vld [vmem:[#allocation26_spill] sm:$0xff]  ;;  %v13935_v19 = vld [vmem:[#allocation27_spill] sm:$0xff] }
 0xa36   :  { %5293 = vmatmul.mubr.f32.vlgmr.msra.gmra.mrb[60].mxu0 %v5073_v56  ;;  %5364 = vmatmul.mubr.f32.vlgmr.msra.gmra.mrb[60].mxu1 %v5073_v56  ;;  %v13936_v56 = vld [vmem:[#allocation28_spill] sm:$0xff] }
 0xa37   :  { %9519 = vmatpush1.bf16.msra.mxu0 %v12449_v0  ;;  %9551 = vmatpush1.bf16.msra.mxu1 %v12451_v14 }
 0xa38   :  { %9521 = vmatprep.subr.bf16.mxu0 %v12453_v32  ;;  %9553 = vmatprep.subr.bf16.mxu1 %v12455_v41 }
 0xa39   :  { %5490 = vmatprep.mubr.f32.mxu0 %v13673_v63  ;;  %5561 = vmatprep.mubr.f32.mxu1 %v13673_v63 }
 0xa3b   :  { %9523 = vmatpush1.bf16.msra.mxu0 %v12463_v46  ;;  %9555 = vmatpush1.bf16.msra.mxu1 %v12465_v12 }
 0xa3c   :  { %9525 = vmatprep.subr.bf16.mxu0 %v12469_v50  ;;  %9557 = vmatprep.subr.bf16.mxu1 %v12471_v7 }
 0xa3f   :  { %9527 = vmatpush1.bf16.msra.mxu0 %v12479_v33  ;;  %9559 = vmatpush1.bf16.msra.mxu1 %v12481_v9 }
 0xa40   :  { %9529 = vmatprep.subr.bf16.mxu0 %v12485_v6  ;;  %9561 = vmatprep.subr.bf16.mxu1 %v12487_v18 }
 0xa43   :  { %9531 = vmatpush1.bf16.msra.mxu0 %v12495_v45  ;;  %9563 = vmatpush1.bf16.msra.mxu1 %v12497_v26 }
 0xa44   :  { %9533 = vmatprep.subr.bf16.mxu0 %v12501_v54  ;;  %9565 = vmatprep.subr.bf16.mxu1 %v12503_v11  ;;  %v13942_v54 = vld [vmem:[#allocation45_spill] sm:$0xff] }
 0xa47   :  { %9535 = vmatpush1.bf16.msra.mxu0 %v12511_v34  ;;  %9567 = vmatpush1.bf16.msra.mxu1 %v12513_v35  ;;  %v13940_v34 = vld [vmem:[#allocation43_spill] sm:$0xff] }
 0xa48   :  { %9537 = vmatprep.subr.bf16.mxu0 %v12517_v31  ;;  %9569 = vmatprep.subr.bf16.mxu1 %v12519_v2  ;;  %v13937_v2 = vld [vmem:[#allocation29_spill] sm:$0xff]  ;;  %v13939_v31 = vld [vmem:[#allocation46_spill] sm:$0xff] }
 0xa4b   :  { %9539 = vmatpush1.bf16.msra.mxu0 %v12527_v28  ;;  %9571 = vmatpush1.bf16.msra.mxu1 %v12529_v61  ;;  %v13938_v28 = vld [vmem:[#allocation30_spill] sm:$0xff] }
 0xa4c   :  { %9541 = vmatprep.subr.bf16.mxu0 %v12533_v22  ;;  %9573 = vmatprep.subr.bf16.mxu1 %v13930_v15 }
 0xa4f   :  { %9543 = vmatpush1.bf16.msra.mxu0 %v13931_v53  ;;  %9575 = vmatpush1.bf16.msra.mxu1 %v13932_v48 }
 0xa50   :  { %9545 = vmatprep.subr.bf16.mxu0 %v13933_v4  ;;  %9577 = vmatprep.subr.bf16.mxu1 %v13934_v1  ;;  %v13941_v1 = vld [vmem:[#allocation44_spill] sm:$0xff] }
 0xa53   :  { %9547 = vmatpush1.bf16.msra.mxu0 %v13935_v19  ;;  %9579 = vmatpush1.bf16.msra.mxu1 %v13936_v56 }
 0xa54   :  { %9581 = vmatprep.subr.bf16.mxu0 %v13937_v2  ;;  %9613 = vmatprep.subr.bf16.mxu1 %v13938_v28 }
 0xae9   :  { %v5144_v61 = vpop.f32.mrb[34].mxu0  ;;  %v5215_v22 = vpop.f32.mrb[34].mxu1 }
 0xaea   :  { %v10398_v15 = vadd.f32 %v5144_v61, %v13939_v31  ;;  %v5146_v35 = vpop.f32.mrb[35].mxu0  ;;  %v5217_v53 = vpop.f32.mrb[35].mxu1  ;;  %v10414_v19 = vadd.f32 %v5215_v22, %v13941_v1 }
 0xaeb   :  { %v10399_v48 = vadd.f32 %v5146_v35, %v13940_v34  ;;  %v10415_v56 = vadd.f32 %v5217_v53, %v13942_v54 }
 0xaec   :  { %v7785_v11 = vmul.f32 -1.442695, %v10398_v15  ;;  %v7787_v26 = vmul.f32 -1.442695, %v10414_v19  ;;  %v13943_v19 = vld [vmem:[#allocation42_spill] sm:$0xff] }
 0xaed   :  { %v7786_v4 = vmul.f32 -1.442695, %v10399_v48 }
 0xaee   :  { %10886 = vpow2.f32 %v7785_v11 }
 0xaef   :  { %10888 = vpow2.f32 %v7786_v4 }
 0xaf0   :  { %10890 = vtanh.f32 %v10415_v56 }
 0xaf1   :  { %10892 = vpow2.f32 %v7787_v26 }
 0xaf8   :  { %v10887_v2 = vpop.eup %10886 }
 0xaf9   :  { %v5383_v45 = vadd.f32 1.0, %v10887_v2  ;;  %v10889_v28 = vpop.eup %10888 }
 0xafa   :  { %v5384_v61 = vadd.f32 1.0, %v10889_v28  ;;  %v10891_v31 = vpop.eup %10890 }
 0xafb   :  { %10894 = vrcp.f32 %v5383_v45  ;;  %v10893_v18 = vpop.eup %10892  ;;  %v13944_v45 = vld [vmem:[#allocation40_spill] sm:$0xff] }
 0xafc   :  { %10896 = vrcp.f32 %v5384_v61  ;;  %v5385_v11 = vadd.f32 1.0, %v10893_v18 }
 0xafe   :  { %10898 = vrcp.f32 %v5385_v11 }
 0xb05   :  { %v10895_v35 = vpop.eup %10894 }
 0xb06   :  { %v5413_v15 = vmul.f32 %v10895_v35, %v10891_v31  ;;  %v10897_v48 = vpop.eup %10896 }
 0xb07   :  { %v5412_v4 = vmul.f32 %v10897_v48, %v12740_v5 }
 0xb08   :  { %v10899_v31 = vpop.eup %10898 }
 0xb09   :  { %v5294_v22 = vpop.f32.mrb[60].mxu0  ;;  %v5365_v1 = vpop.f32.mrb[60].mxu1  ;;  %v12831_v53 = vadd.f32 %v5413_v15, %v5412_v4 }
 0xb0a   :  { %v10440_v2 = vadd.f32 %v5294_v22, %v13943_v19  ;;  %v5296_v56 = vpop.f32.mrb[61].mxu0  ;;  %v5367_v54 = vpop.f32.mrb[61].mxu1  ;;  %v10456_v18 = vadd.f32 %v5365_v1, %v12747_v37  ;;  %v13946_v1 = vld [vmem:[#allocation33_spill] sm:$0xff] }
 0xb0b   :  { %v10441_v26 = vadd.f32 %v5296_v56, %v13944_v45  ;;  %10900 = vtanh.f32 %v12831_v53  ;;  %v10457_v5 = vadd.f32 %v5367_v54, %v12751_v44  ;;  %v13945_v54 = vld [vmem:[#allocation32_spill] sm:$0xff] }
 0xb0c   :  { %v7788_v28 = vmul.f32 -1.442695, %v10440_v2  ;;  %v7790_v15 = vmul.f32 -1.442695, %v10456_v18 }
 0xb0d   :  { %v7789_v61 = vmul.f32 -1.442695, %v10441_v26  ;;  %v13947_v26 = vld [vmem:[#allocation34_spill] sm:$0xff] }
 0xb0e   :  { %10902 = vpow2.f32 %v7788_v28 }
 0xb0f   :  { %10904 = vpow2.f32 %v7789_v61 }
 0xb10   :  { %10906 = vtanh.f32 %v10457_v5 }
 0xb11   :  { %10908 = vpow2.f32 %v7790_v15 }
 0xb15   :  { %v10901_v35 = vpop.eup %10900 }
 0xb16   :  { %v5419_v48 = vmul.f32 %v10901_v35, %v10899_v31 }
 0xb18   :  { %v10903_v4 = vpop.eup %10902  ;;  %5491 = vmatmul.mubr.f32.vlgmr.msra.gmra.mrb[36].mxu0 %v5419_v48  ;;  %5562 = vmatmul.mubr.f32.vlgmr.msra.gmra.mrb[36].mxu1 %v5419_v48 }
 0xb19   :  { %v5401_v22 = vadd.f32 1.0, %v10903_v4  ;;  %v10905_v11 = vpop.eup %10904  ;;  %9583 = vmatpush1.bf16.msra.mxu0 %v12575_v43  ;;  %9615 = vmatpush1.bf16.msra.mxu1 %v12577_v58 }
 0xb1a   :  { %v5402_v2 = vadd.f32 1.0, %v10905_v11  ;;  %9585 = vmatprep.subr.bf16.mxu0 %v12581_v25  ;;  %9617 = vmatprep.subr.bf16.mxu1 %v12583_v49  ;;  %v10907_v56 = vpop.eup %10906  ;;  %v13949_v11 = vld [vmem:[#allocation11_spill] sm:$0xff] }
 0xb1b   :  { %10910 = vrcp.f32 %v5401_v22  ;;  %5640 = vmatprep.mubr.f32.mxu0 %v13673_v63  ;;  %5711 = vmatprep.mubr.f32.mxu1 %v13673_v63  ;;  %v10909_v28 = vpop.eup %10908  ;;  %v13948_v22 = vld [vmem:[#allocation51_spill] sm:$0xff] }
 0xb1c   :  { %10912 = vrcp.f32 %v5402_v2  ;;  %v5403_v5 = vadd.f32 1.0, %v10909_v28  ;;  %v13950_v2 = vld [vmem:[#allocation12_spill] sm:$0xff]  ;;  %v13952_v28 = vld [vmem:[#allocation14_spill] sm:$0xff] }
 0xb1d   :  { %9587 = vmatpush1.bf16.msra.mxu0 %v12589_v55  ;;  %9619 = vmatpush1.bf16.msra.mxu1 %v12591_v24 }
 0xb1e   :  { %9589 = vmatprep.subr.bf16.mxu0 %v12595_v21  ;;  %9621 = vmatprep.subr.bf16.mxu1 %v13919_v39  ;;  %10914 = vrcp.f32 %v5403_v5  ;;  %v13956_v5 = vld [vmem:[#allocation18_spill] sm:$0xff] }
 0xb21   :  { %9591 = vmatpush1.bf16.msra.mxu0 %v13945_v54  ;;  %9623 = vmatpush1.bf16.msra.mxu1 %v13946_v1 }
 0xb22   :  { %9593 = vmatprep.subr.bf16.mxu0 %v13947_v26  ;;  %9625 = vmatprep.subr.bf16.mxu1 %v13923_v13 }
 0xb25   :  { %v10911_v61 = vpop.eup %10910  ;;  %9595 = vmatpush1.bf16.msra.mxu0 %v13924_v42  ;;  %9627 = vmatpush1.bf16.msra.mxu1 %v13925_v51 }
 0xb26   :  { %v5416_v18 = vmul.f32 %v10911_v61, %v10907_v56  ;;  %v10913_v31 = vpop.eup %10912  ;;  %9597 = vmatprep.subr.bf16.mxu0 %v13926_v59  ;;  %9629 = vmatprep.subr.bf16.mxu1 %v13927_v40  ;;  %v13951_v56 = vld [vmem:[#allocation13_spill] sm:$0xff]  ;;  %v13953_v61 = vld [vmem:[#allocation15_spill] sm:$0xff] }
 0xb27   :  { %v5415_v35 = vmul.f32 %v10913_v31, %v12773_v57  ;;  %v13955_v31 = vld [vmem:[#allocation17_spill] sm:$0xff] }
 0xb28   :  { %v10915_v57 = vpop.eup %10914 }
 0xb29   :  { %v12857_v15 = vadd.f32 %v5416_v18, %v5415_v35  ;;  %9599 = vmatpush1.bf16.msra.mxu0 %v13928_v62  ;;  %9631 = vmatpush1.bf16.msra.mxu1 %v13929_v17  ;;  %v13954_v18 = vld [vmem:[#allocation16_spill] sm:$0xff]  ;;  %v13957_v35 = vld [vmem:[#allocation19_spill] sm:$0xff] }
 0xb2a   :  { %9601 = vmatprep.subr.bf16.mxu0 %v12633_v60  ;;  %9633 = vmatprep.subr.bf16.mxu1 %v12635_v23 }
 0xb2b   :  { %10916 = vtanh.f32 %v12857_v15 }
 0xb2d   :  { %9603 = vmatpush1.bf16.msra.mxu0 %v12639_v27  ;;  %9635 = vmatpush1.bf16.msra.mxu1 %v12641_v16 }
 0xb2e   :  { %9605 = vmatprep.subr.bf16.mxu0 %v12645_v36  ;;  %9637 = vmatprep.subr.bf16.mxu1 %v12647_v8 }
 0xb31   :  { %9607 = vmatpush1.bf16.msra.mxu0 %v12651_v52  ;;  %9639 = vmatpush1.bf16.msra.mxu1 %v12653_v20 }
 0xb32   :  { %9609 = vmatprep.subr.bf16.mxu0 %v12657_v47  ;;  %9641 = vmatprep.subr.bf16.mxu1 %v12659_v38 }
 0xb35   :  { %v10917_v48 = vpop.eup %10916  ;;  %9611 = vmatpush1.bf16.msra.mxu0 %v12663_v29  ;;  %9643 = vmatpush1.bf16.msra.mxu1 %v12665_v10 }
 0xb36   :  { %v5421_v4 = vmul.f32 %v10917_v48, %v10915_v57  ;;  %9645 = vmatprep.subr.bf16.mxu0 %v12443_v30  ;;  %9677 = vmatprep.subr.bf16.mxu1 %v12445_v3  ;;  %v13958_v57 = vld [vmem:[#allocation20_spill] sm:$0xff]  ;;  %v13959_v48 = vld [vmem:[#allocation21_spill] sm:$0xff] }
 0xb38   :  { %5641 = vmatmul.mubr.f32.vlgmr.msra.gmra.mrb[58].mxu0 %v5421_v4  ;;  %5712 = vmatmul.mubr.f32.vlgmr.msra.gmra.mrb[58].mxu1 %v5421_v4  ;;  %v13960_v4 = vld [vmem:[#allocation22_spill] sm:$0xff] }
 0xb39   :  { %9647 = vmatpush1.bf16.msra.mxu0 %v12449_v0  ;;  %9679 = vmatpush1.bf16.msra.mxu1 %v12451_v14 }
 0xb3a   :  { %9649 = vmatprep.subr.bf16.mxu0 %v12453_v32  ;;  %9681 = vmatprep.subr.bf16.mxu1 %v12455_v41 }
 0xb3b   :  { %5838 = vmatprep.mubr.f32.mxu0 %v13673_v63  ;;  %5909 = vmatprep.mubr.f32.mxu1 %v13673_v63 }
 0xb3d   :  { %9651 = vmatpush1.bf16.msra.mxu0 %v12463_v46  ;;  %9683 = vmatpush1.bf16.msra.mxu1 %v12465_v12 }
 0xb3e   :  { %9653 = vmatprep.subr.bf16.mxu0 %v12469_v50  ;;  %9685 = vmatprep.subr.bf16.mxu1 %v12471_v7 }
 0xb41   :  { %9655 = vmatpush1.bf16.msra.mxu0 %v12479_v33  ;;  %9687 = vmatpush1.bf16.msra.mxu1 %v12481_v9  ;;  %v13971_v9 = vld [vmem:[#allocation45_spill] sm:$0xff] }
 0xb42   :  { %9657 = vmatprep.subr.bf16.mxu0 %v12485_v6  ;;  %9689 = vmatprep.subr.bf16.mxu1 %v13948_v22 }
 0xb45   :  { %9659 = vmatpush1.bf16.msra.mxu0 %v13949_v11  ;;  %9691 = vmatpush1.bf16.msra.mxu1 %v13950_v2  ;;  %v13961_v2 = vld [vmem:[#allocation23_spill] sm:$0xff]  ;;  %v13969_v11 = vld [vmem:[#allocation46_spill] sm:$0xff] }
 0xb46   :  { %9661 = vmatprep.subr.bf16.mxu0 %v13951_v56  ;;  %9693 = vmatprep.subr.bf16.mxu1 %v13952_v28  ;;  %v13962_v56 = vld [vmem:[#allocation24_spill] sm:$0xff]  ;;  %v13963_v28 = vld [vmem:[#allocation25_spill] sm:$0xff] }
 0xb49   :  { %9663 = vmatpush1.bf16.msra.mxu0 %v13953_v61  ;;  %9695 = vmatpush1.bf16.msra.mxu1 %v13954_v18  ;;  %v13964_v61 = vld [vmem:[#allocation26_spill] sm:$0xff]  ;;  %v13965_v18 = vld [vmem:[#allocation27_spill] sm:$0xff] }
 0xb4a   :  { %9665 = vmatprep.subr.bf16.mxu0 %v13955_v31  ;;  %9697 = vmatprep.subr.bf16.mxu1 %v13956_v5  ;;  %v13966_v31 = vld [vmem:[#allocation28_spill] sm:$0xff]  ;;  %v13967_v5 = vld [vmem:[#allocation29_spill] sm:$0xff] }
 0xb4d   :  { %9667 = vmatpush1.bf16.msra.mxu0 %v13957_v35  ;;  %9699 = vmatpush1.bf16.msra.mxu1 %v13958_v57  ;;  %v13968_v35 = vld [vmem:[#allocation30_spill] sm:$0xff] }
 0xb4e   :  { %9669 = vmatprep.subr.bf16.mxu0 %v13959_v48  ;;  %9701 = vmatprep.subr.bf16.mxu1 %v13960_v4 }
 0xb51   :  { %9671 = vmatpush1.bf16.msra.mxu0 %v13961_v2  ;;  %9703 = vmatpush1.bf16.msra.mxu1 %v13962_v56 }
 0xb52   :  { %9673 = vmatprep.subr.bf16.mxu0 %v13963_v28  ;;  %9705 = vmatprep.subr.bf16.mxu1 %v13964_v61  ;;  %v13970_v61 = vld [vmem:[#allocation44_spill] sm:$0xff] }
 0xb55   :  { %9675 = vmatpush1.bf16.msra.mxu0 %v13965_v18  ;;  %9707 = vmatpush1.bf16.msra.mxu1 %v13966_v31 }
 0xb56   :  { %9709 = vmatprep.subr.bf16.mxu0 %v13967_v5  ;;  %9741 = vmatprep.subr.bf16.mxu1 %v13968_v35 }
 0xbeb   :  { %v5492_v57 = vpop.f32.mrb[36].mxu0  ;;  %v5563_v48 = vpop.f32.mrb[36].mxu1 }
 0xbec   :  { %v10400_v4 = vadd.f32 %v5492_v57, %v13969_v11  ;;  %v5494_v22 = vpop.f32.mrb[37].mxu0  ;;  %v5565_v2 = vpop.f32.mrb[37].mxu1  ;;  %v10416_v18 = vadd.f32 %v5563_v48, %v13970_v61 }
 0xbed   :  { %v10401_v56 = vadd.f32 %v5494_v22, %v13940_v34  ;;  %v10417_v31 = vadd.f32 %v5565_v2, %v13971_v9 }
 0xbee   :  { %v7791_v6 = vmul.f32 -1.442695, %v10400_v4  ;;  %v7793_v33 = vmul.f32 -1.442695, %v10416_v18 }
 0xbef   :  { %v7792_v28 = vmul.f32 -1.442695, %v10401_v56 }
 0xbf0   :  { %10918 = vpow2.f32 %v7791_v6 }
 0xbf1   :  { %10920 = vpow2.f32 %v7792_v28 }
 0xbf2   :  { %10922 = vtanh.f32 %v10417_v31 }
 0xbf3   :  { %10924 = vpow2.f32 %v7793_v33 }
 0xbfa   :  { %v10919_v5 = vpop.eup %10918 }
 0xbfb   :  { %v5731_v7 = vadd.f32 1.0, %v10919_v5  ;;  %v10921_v35 = vpop.eup %10920 }
 0xbfc   :  { %v5732_v57 = vadd.f32 1.0, %v10921_v35  ;;  %v10923_v11 = vpop.eup %10922 }
 0xbfd   :  { %10926 = vrcp.f32 %v5731_v7  ;;  %v10925_v50 = vpop.eup %10924 }
 0xbfe   :  { %10928 = vrcp.f32 %v5732_v57  ;;  %v5733_v6 = vadd.f32 1.0, %v10925_v50 }
 0xc00   :  { %10930 = vrcp.f32 %v5733_v6 }
 0xc07   :  { %v10927_v22 = vpop.eup %10926 }
 0xc08   :  { %v5761_v4 = vmul.f32 %v10927_v22, %v10923_v11  ;;  %v10929_v56 = vpop.eup %10928 }
 0xc09   :  { %v5760_v28 = vmul.f32 %v10929_v56, %v12831_v53 }
 0xc0a   :  { %v10931_v53 = vpop.eup %10930 }
 0xc0b   :  { %v5642_v48 = vpop.f32.mrb[58].mxu0  ;;  %v5713_v61 = vpop.f32.mrb[58].mxu1  ;;  %v12915_v2 = vadd.f32 %v5761_v4, %v5760_v28 }
 0xc0c   :  { %v10438_v18 = vadd.f32 %v5642_v48, %v13943_v19  ;;  %v5644_v31 = vpop.f32.mrb[59].mxu0  ;;  %v5715_v5 = vpop.f32.mrb[59].mxu1  ;;  %v10454_v50 = vadd.f32 %v5713_v61, %v12747_v37 }
 0xc0d   :  { %v10439_v7 = vadd.f32 %v5644_v31, %v13944_v45  ;;  %10932 = vtanh.f32 %v12915_v2  ;;  %v10455_v11 = vadd.f32 %v5715_v5, %v12751_v44 }
 0xc0e   :  { %v7794_v33 = vmul.f32 -1.442695, %v10438_v18  ;;  %v7796_v22 = vmul.f32 -1.442695, %v10454_v50 }
 0xc0f   :  { %v7795_v35 = vmul.f32 -1.442695, %v10439_v7 }
 0xc10   :  { %10934 = vpow2.f32 %v7794_v33 }
 0xc11   :  { %10936 = vpow2.f32 %v7795_v35 }
 0xc12   :  { %10938 = vtanh.f32 %v10455_v11 }
 0xc13   :  { %10940 = vpow2.f32 %v7796_v22  ;;  %v13973_v22 = vld [vmem:[#allocation52_spill] sm:$0xff] }
 0xc17   :  { %v10933_v57 = vpop.eup %10932 }
 0xc18   :  { %v5767_v4 = vmul.f32 %v10933_v57, %v10931_v53  ;;  %v13972_v57 = vld [vmem:[#allocation54_spill] sm:$0xff] }
 0xc1a   :  { %v10935_v56 = vpop.eup %10934  ;;  %5839 = vmatmul.mubr.f32.vlgmr.msra.gmra.mrb[38].mxu0 %v5767_v4  ;;  %5910 = vmatmul.mubr.f32.vlgmr.msra.gmra.mrb[38].mxu1 %v5767_v4  ;;  %v13974_v4 = vld [vmem:[#allocation53_spill] sm:$0xff] }
 0xc1b   :  { %v5749_v28 = vadd.f32 1.0, %v10935_v56  ;;  %v10937_v6 = vpop.eup %10936  ;;  %9711 = vmatpush1.bf16.msra.mxu0 %v12575_v43  ;;  %9743 = vmatpush1.bf16.msra.mxu1 %v12577_v58  ;;  %v13975_v56 = vld [vmem:[#allocation38_spill] sm:$0xff] }
 0xc1c   :  { %v5750_v48 = vadd.f32 1.0, %v10937_v6  ;;  %9713 = vmatprep.subr.bf16.mxu0 %v12581_v25  ;;  %9745 = vmatprep.subr.bf16.mxu1 %v12583_v49  ;;  %v10939_v61 = vpop.eup %10938  ;;  %v13977_v6 = vld [vmem:[#allocation51_spill] sm:$0xff] }
 0xc1d   :  { %10942 = vrcp.f32 %v5749_v28  ;;  %5988 = vmatprep.mubr.f32.mxu0 %v13673_v63  ;;  %6059 = vmatprep.mubr.f32.mxu1 %v13673_v63  ;;  %v10941_v18 = vpop.eup %10940  ;;  %v13976_v28 = vld [vmem:[#allocation49_spill] sm:$0xff] }
 0xc1e   :  { %10944 = vrcp.f32 %v5750_v48  ;;  %v5751_v33 = vadd.f32 1.0, %v10941_v18  ;;  %v13978_v48 = vld [vmem:[#allocation11_spill] sm:$0xff]  ;;  %v13980_v18 = vld [vmem:[#allocation13_spill] sm:$0xff] }
 0xc1f   :  { %9715 = vmatpush1.bf16.msra.mxu0 %v12589_v55  ;;  %9747 = vmatpush1.bf16.msra.mxu1 %v12591_v24 }
 0xc20   :  { %9717 = vmatprep.subr.bf16.mxu0 %v12595_v21  ;;  %9749 = vmatprep.subr.bf16.mxu1 %v13919_v39  ;;  %10946 = vrcp.f32 %v5751_v33  ;;  %v13984_v33 = vld [vmem:[#allocation17_spill] sm:$0xff] }
 0xc23   :  { %9719 = vmatpush1.bf16.msra.mxu0 %v13945_v54  ;;  %9751 = vmatpush1.bf16.msra.mxu1 %v13946_v1 }
 0xc24   :  { %9721 = vmatprep.subr.bf16.mxu0 %v13947_v26  ;;  %9753 = vmatprep.subr.bf16.mxu1 %v13923_v13 }
 0xc27   :  { %v10943_v31 = vpop.eup %10942  ;;  %9723 = vmatpush1.bf16.msra.mxu0 %v13924_v42  ;;  %9755 = vmatpush1.bf16.msra.mxu1 %v13925_v51 }
 0xc28   :  { %v5764_v5 = vmul.f32 %v10943_v31, %v10939_v61  ;;  %v10945_v7 = vpop.eup %10944  ;;  %9725 = vmatprep.subr.bf16.mxu0 %v13926_v59  ;;  %9757 = vmatprep.subr.bf16.mxu1 %v13927_v40  ;;  %v13979_v61 = vld [vmem:[#allocation12_spill] sm:$0xff]  ;;  %v13981_v31 = vld [vmem:[#allocation14_spill] sm:$0xff] }
 0xc29   :  { %v5763_v35 = vmul.f32 %v10945_v7, %v12857_v15  ;;  %v13983_v7 = vld [vmem:[#allocation16_spill] sm:$0xff] }
 0xc2a   :  { %v10947_v15 = vpop.eup %10946 }
 0xc2b   :  { %v12941_v50 = vadd.f32 %v5764_v5, %v5763_v35  ;;  %9727 = vmatpush1.bf16.msra.mxu0 %v13928_v62  ;;  %9759 = vmatpush1.bf16.msra.mxu1 %v13929_v17  ;;  %v13982_v5 = vld [vmem:[#allocation15_spill] sm:$0xff]  ;;  %v13985_v35 = vld [vmem:[#allocation18_spill] sm:$0xff] }
 0xc2c   :  { %9729 = vmatprep.subr.bf16.mxu0 %v12633_v60  ;;  %9761 = vmatprep.subr.bf16.mxu1 %v12635_v23 }
 0xc2d   :  { %10948 = vtanh.f32 %v12941_v50 }
 0xc2f   :  { %9731 = vmatpush1.bf16.msra.mxu0 %v12639_v27  ;;  %9763 = vmatpush1.bf16.msra.mxu1 %v12641_v16 }
 0xc30   :  { %9733 = vmatprep.subr.bf16.mxu0 %v12645_v36  ;;  %9765 = vmatprep.subr.bf16.mxu1 %v12647_v8 }
 0xc33   :  { %9735 = vmatpush1.bf16.msra.mxu0 %v12651_v52  ;;  %9767 = vmatpush1.bf16.msra.mxu1 %v12653_v20 }
 0xc34   :  { %9737 = vmatprep.subr.bf16.mxu0 %v12657_v47  ;;  %9769 = vmatprep.subr.bf16.mxu1 %v12659_v38 }
 0xc37   :  { %v10949_v53 = vpop.eup %10948  ;;  %9739 = vmatpush1.bf16.msra.mxu0 %v12663_v29  ;;  %9771 = vmatpush1.bf16.msra.mxu1 %v12665_v10 }
 0xc38   :  { %v5769_v11 = vmul.f32 %v10949_v53, %v10947_v15  ;;  %9773 = vmatprep.subr.bf16.mxu0 %v12443_v30  ;;  %9805 = vmatprep.subr.bf16.mxu1 %v12445_v3  ;;  %v13986_v15 = vld [vmem:[#allocation19_spill] sm:$0xff]  ;;  %v13987_v53 = vld [vmem:[#allocation20_spill] sm:$0xff] }
 0xc3a   :  { %5989 = vmatmul.mubr.f32.vlgmr.msra.gmra.mrb[56].mxu0 %v5769_v11  ;;  %6060 = vmatmul.mubr.f32.vlgmr.msra.gmra.mrb[56].mxu1 %v5769_v11  ;;  %v13988_v11 = vld [vmem:[#allocation21_spill] sm:$0xff] }
 0xc3b   :  { %9775 = vmatpush1.bf16.msra.mxu0 %v12449_v0  ;;  %9807 = vmatpush1.bf16.msra.mxu1 %v12451_v14 }
 0xc3c   :  { %9777 = vmatprep.subr.bf16.mxu0 %v12453_v32  ;;  %9809 = vmatprep.subr.bf16.mxu1 %v12455_v41 }
 0xc3d   :  { %6186 = vmatprep.mubr.f32.mxu0 %v13673_v63  ;;  %6257 = vmatprep.mubr.f32.mxu1 %v13673_v63 }
 0xc3f   :  { %9779 = vmatpush1.bf16.msra.mxu0 %v12463_v46  ;;  %9811 = vmatpush1.bf16.msra.mxu1 %v12465_v12 }
 0xc40   :  { %9781 = vmatprep.subr.bf16.mxu0 %v13972_v57  ;;  %9813 = vmatprep.subr.bf16.mxu1 %v13973_v22 }
 0xc43   :  { %9783 = vmatpush1.bf16.msra.mxu0 %v13974_v4  ;;  %9815 = vmatpush1.bf16.msra.mxu1 %v13975_v56 }
 0xc44   :  { %9785 = vmatprep.subr.bf16.mxu0 %v13976_v28  ;;  %9817 = vmatprep.subr.bf16.mxu1 %v13977_v6  ;;  %v13998_v6 = vld [vmem:[#allocation46_spill] sm:$0xff] }
 0xc47   :  { %9787 = vmatpush1.bf16.msra.mxu0 %v13978_v48  ;;  %9819 = vmatpush1.bf16.msra.mxu1 %v13979_v61  ;;  %v13989_v48 = vld [vmem:[#allocation22_spill] sm:$0xff]  ;;  %v13990_v61 = vld [vmem:[#allocation23_spill] sm:$0xff] }
 0xc48   :  { %9789 = vmatprep.subr.bf16.mxu0 %v13980_v18  ;;  %9821 = vmatprep.subr.bf16.mxu1 %v13981_v31  ;;  %v13991_v18 = vld [vmem:[#allocation24_spill] sm:$0xff]  ;;  %v13992_v31 = vld [vmem:[#allocation25_spill] sm:$0xff] }
 0xc4b   :  { %9791 = vmatpush1.bf16.msra.mxu0 %v13982_v5  ;;  %9823 = vmatpush1.bf16.msra.mxu1 %v13983_v7  ;;  %v13993_v5 = vld [vmem:[#allocation26_spill] sm:$0xff]  ;;  %v13994_v7 = vld [vmem:[#allocation27_spill] sm:$0xff] }
 0xc4c   :  { %9793 = vmatprep.subr.bf16.mxu0 %v13984_v33  ;;  %9825 = vmatprep.subr.bf16.mxu1 %v13985_v35  ;;  %v13995_v33 = vld [vmem:[#allocation28_spill] sm:$0xff]  ;;  %v13996_v35 = vld [vmem:[#allocation29_spill] sm:$0xff] }
 0xc4f   :  { %9795 = vmatpush1.bf16.msra.mxu0 %v13986_v15  ;;  %9827 = vmatpush1.bf16.msra.mxu1 %v13987_v53  ;;  %v13997_v15 = vld [vmem:[#allocation30_spill] sm:$0xff] }
 0xc50   :  { %9797 = vmatprep.subr.bf16.mxu0 %v13988_v11  ;;  %9829 = vmatprep.subr.bf16.mxu1 %v13989_v48 }
 0xc53   :  { %9799 = vmatpush1.bf16.msra.mxu0 %v13990_v61  ;;  %9831 = vmatpush1.bf16.msra.mxu1 %v13991_v18 }
 0xc54   :  { %9801 = vmatprep.subr.bf16.mxu0 %v13992_v31  ;;  %9833 = vmatprep.subr.bf16.mxu1 %v13993_v5  ;;  %v13999_v5 = vld [vmem:[#allocation44_spill] sm:$0xff] }
 0xc57   :  { %9803 = vmatpush1.bf16.msra.mxu0 %v13994_v7  ;;  %9835 = vmatpush1.bf16.msra.mxu1 %v13995_v33 }
 0xc58   :  { %9837 = vmatprep.subr.bf16.mxu0 %v13996_v35  ;;  %9869 = vmatprep.subr.bf16.mxu1 %v13997_v15 }
 0xced   :  { %v5840_v53 = vpop.f32.mrb[38].mxu0  ;;  %v5911_v11 = vpop.f32.mrb[38].mxu1 }
 0xcee   :  { %v10402_v48 = vadd.f32 %v5840_v53, %v13998_v6  ;;  %v5842_v28 = vpop.f32.mrb[39].mxu0  ;;  %v5913_v61 = vpop.f32.mrb[39].mxu1  ;;  %v10418_v7 = vadd.f32 %v5911_v11, %v13999_v5 }
 0xcef   :  { %v10403_v18 = vadd.f32 %v5842_v28, %v13940_v34  ;;  %v10419_v33 = vadd.f32 %v5913_v61, %v13971_v9 }
 0xcf0   :  { %v7797_v56 = vmul.f32 -1.442695, %v10402_v48  ;;  %v7799_v4 = vmul.f32 -1.442695, %v10418_v7 }
 0xcf1   :  { %v7798_v31 = vmul.f32 -1.442695, %v10403_v18 }
 0xcf2   :  { %10950 = vpow2.f32 %v7797_v56 }
 0xcf3   :  { %10952 = vpow2.f32 %v7798_v31 }
 0xcf4   :  { %10954 = vtanh.f32 %v10419_v33 }
 0xcf5   :  { %10956 = vpow2.f32 %v7799_v4 }
 0xcfc   :  { %v10951_v35 = vpop.eup %10950 }
 0xcfd   :  { %v6079_v22 = vadd.f32 1.0, %v10951_v35  ;;  %v10953_v15 = vpop.eup %10952 }
 0xcfe   :  { %v6080_v53 = vadd.f32 1.0, %v10953_v15  ;;  %v10955_v6 = vpop.eup %10954 }
 0xcff   :  { %10958 = vrcp.f32 %v6079_v22  ;;  %v10957_v57 = vpop.eup %10956 }
 0xd00   :  { %10960 = vrcp.f32 %v6080_v53  ;;  %v6081_v56 = vadd.f32 1.0, %v10957_v57 }
 0xd02   :  { %10962 = vrcp.f32 %v6081_v56 }
 0xd09   :  { %v10959_v28 = vpop.eup %10958 }
 0xd0a   :  { %v6109_v48 = vmul.f32 %v10959_v28, %v10955_v6  ;;  %v10961_v18 = vpop.eup %10960 }
 0xd0b   :  { %v6108_v31 = vmul.f32 %v10961_v18, %v12915_v2 }
 0xd0c   :  { %v10963_v2 = vpop.eup %10962 }
 0xd0d   :  { %v5990_v11 = vpop.f32.mrb[56].mxu0  ;;  %v6061_v5 = vpop.f32.mrb[56].mxu1  ;;  %v12999_v61 = vadd.f32 %v6109_v48, %v6108_v31 }
 0xd0e   :  { %v10436_v7 = vadd.f32 %v5990_v11, %v13943_v19  ;;  %v5992_v33 = vpop.f32.mrb[57].mxu0  ;;  %v6063_v35 = vpop.f32.mrb[57].mxu1  ;;  %v10452_v57 = vadd.f32 %v6061_v5, %v12747_v37 }
 0xd0f   :  { %v10437_v22 = vadd.f32 %v5992_v33, %v13944_v45  ;;  %10964 = vtanh.f32 %v12999_v61  ;;  %v10453_v6 = vadd.f32 %v6063_v35, %v12751_v44 }
 0xd10   :  { %v7800_v4 = vmul.f32 -1.442695, %v10436_v7  ;;  %v7802_v28 = vmul.f32 -1.442695, %v10452_v57 }
 0xd11   :  { %v7801_v15 = vmul.f32 -1.442695, %v10437_v22 }
 0xd12   :  { %10966 = vpow2.f32 %v7800_v4 }
 0xd13   :  { %10968 = vpow2.f32 %v7801_v15 }
 0xd14   :  { %10970 = vtanh.f32 %v10453_v6 }
 0xd15   :  { %10972 = vpow2.f32 %v7802_v28  ;;  %v14001_v28 = vld [vmem:[#allocation52_spill] sm:$0xff] }
 0xd19   :  { %v10965_v53 = vpop.eup %10964 }
 0xd1a   :  { %v6115_v48 = vmul.f32 %v10965_v53, %v10963_v2  ;;  %v14000_v53 = vld [vmem:[#allocation54_spill] sm:$0xff] }
 0xd1c   :  { %v10967_v18 = vpop.eup %10966  ;;  %6187 = vmatmul.mubr.f32.vlgmr.msra.gmra.mrb[40].mxu0 %v6115_v48  ;;  %6258 = vmatmul.mubr.f32.vlgmr.msra.gmra.mrb[40].mxu1 %v6115_v48  ;;  %v14002_v48 = vld [vmem:[#allocation53_spill] sm:$0xff] }
 0xd1d   :  { %v6097_v31 = vadd.f32 1.0, %v10967_v18  ;;  %v10969_v56 = vpop.eup %10968  ;;  %9839 = vmatpush1.bf16.msra.mxu0 %v12575_v43  ;;  %9871 = vmatpush1.bf16.msra.mxu1 %v12577_v58  ;;  %v14003_v18 = vld [vmem:[#allocation38_spill] sm:$0xff] }
 0xd1e   :  { %v6098_v11 = vadd.f32 1.0, %v10969_v56  ;;  %9841 = vmatprep.subr.bf16.mxu0 %v12581_v25  ;;  %9873 = vmatprep.subr.bf16.mxu1 %v12583_v49  ;;  %v10971_v5 = vpop.eup %10970  ;;  %v14005_v56 = vld [vmem:[#allocation51_spill] sm:$0xff] }
 0xd1f   :  { %10974 = vrcp.f32 %v6097_v31  ;;  %6336 = vmatprep.mubr.f32.mxu0 %v13673_v63  ;;  %6407 = vmatprep.mubr.f32.mxu1 %v13673_v63  ;;  %v10973_v7 = vpop.eup %10972  ;;  %v14004_v31 = vld [vmem:[#allocation49_spill] sm:$0xff] }
 0xd20   :  { %10976 = vrcp.f32 %v6098_v11  ;;  %v6099_v4 = vadd.f32 1.0, %v10973_v7  ;;  %v14006_v11 = vld [vmem:[#allocation11_spill] sm:$0xff]  ;;  %v14008_v7 = vld [vmem:[#allocation13_spill] sm:$0xff] }
 0xd21   :  { %9843 = vmatpush1.bf16.msra.mxu0 %v12589_v55  ;;  %9875 = vmatpush1.bf16.msra.mxu1 %v12591_v24 }
 0xd22   :  { %9845 = vmatprep.subr.bf16.mxu0 %v12595_v21  ;;  %9877 = vmatprep.subr.bf16.mxu1 %v13919_v39  ;;  %10978 = vrcp.f32 %v6099_v4  ;;  %v14012_v4 = vld [vmem:[#allocation17_spill] sm:$0xff] }
 0xd25   :  { %9847 = vmatpush1.bf16.msra.mxu0 %v13945_v54  ;;  %9879 = vmatpush1.bf16.msra.mxu1 %v13946_v1 }
 0xd26   :  { %9849 = vmatprep.subr.bf16.mxu0 %v13947_v26  ;;  %9881 = vmatprep.subr.bf16.mxu1 %v13923_v13 }
 0xd29   :  { %v10975_v33 = vpop.eup %10974  ;;  %9851 = vmatpush1.bf16.msra.mxu0 %v13924_v42  ;;  %9883 = vmatpush1.bf16.msra.mxu1 %v13925_v51 }
 0xd2a   :  { %v6112_v35 = vmul.f32 %v10975_v33, %v10971_v5  ;;  %v10977_v22 = vpop.eup %10976  ;;  %9853 = vmatprep.subr.bf16.mxu0 %v13926_v59  ;;  %9885 = vmatprep.subr.bf16.mxu1 %v13927_v40  ;;  %v14007_v5 = vld [vmem:[#allocation12_spill] sm:$0xff]  ;;  %v14009_v33 = vld [vmem:[#allocation14_spill] sm:$0xff] }
 0xd2b   :  { %v6111_v15 = vmul.f32 %v10977_v22, %v12941_v50  ;;  %v14011_v22 = vld [vmem:[#allocation16_spill] sm:$0xff] }
 0xd2c   :  { %v10979_v50 = vpop.eup %10978 }
 0xd2d   :  { %v13025_v57 = vadd.f32 %v6112_v35, %v6111_v15  ;;  %9855 = vmatpush1.bf16.msra.mxu0 %v13928_v62  ;;  %9887 = vmatpush1.bf16.msra.mxu1 %v13929_v17  ;;  %v14010_v35 = vld [vmem:[#allocation15_spill] sm:$0xff]  ;;  %v14013_v15 = vld [vmem:[#allocation18_spill] sm:$0xff] }
 0xd2e   :  { %9857 = vmatprep.subr.bf16.mxu0 %v12633_v60  ;;  %9889 = vmatprep.subr.bf16.mxu1 %v12635_v23 }
 0xd2f   :  { %10980 = vtanh.f32 %v13025_v57 }
 0xd31   :  { %9859 = vmatpush1.bf16.msra.mxu0 %v12639_v27  ;;  %9891 = vmatpush1.bf16.msra.mxu1 %v12641_v16 }
 0xd32   :  { %9861 = vmatprep.subr.bf16.mxu0 %v12645_v36  ;;  %9893 = vmatprep.subr.bf16.mxu1 %v12647_v8 }
 0xd35   :  { %9863 = vmatpush1.bf16.msra.mxu0 %v12651_v52  ;;  %9895 = vmatpush1.bf16.msra.mxu1 %v12653_v20 }
 0xd36   :  { %9865 = vmatprep.subr.bf16.mxu0 %v12657_v47  ;;  %9897 = vmatprep.subr.bf16.mxu1 %v12659_v38 }
 0xd39   :  { %v10981_v2 = vpop.eup %10980  ;;  %9867 = vmatpush1.bf16.msra.mxu0 %v12663_v29  ;;  %9899 = vmatpush1.bf16.msra.mxu1 %v12665_v10 }
 0xd3a   :  { %v6117_v6 = vmul.f32 %v10981_v2, %v10979_v50  ;;  %9901 = vmatprep.subr.bf16.mxu0 %v12443_v30  ;;  %9933 = vmatprep.subr.bf16.mxu1 %v12445_v3  ;;  %v14014_v50 = vld [vmem:[#allocation19_spill] sm:$0xff]  ;;  %v14015_v2 = vld [vmem:[#allocation20_spill] sm:$0xff] }
 0xd3c   :  { %6337 = vmatmul.mubr.f32.vlgmr.msra.gmra.mrb[54].mxu0 %v6117_v6  ;;  %6408 = vmatmul.mubr.f32.vlgmr.msra.gmra.mrb[54].mxu1 %v6117_v6  ;;  %v14016_v6 = vld [vmem:[#allocation21_spill] sm:$0xff] }
 0xd3d   :  { %9903 = vmatpush1.bf16.msra.mxu0 %v12449_v0  ;;  %9935 = vmatpush1.bf16.msra.mxu1 %v12451_v14 }
 0xd3e   :  { %9905 = vmatprep.subr.bf16.mxu0 %v12453_v32  ;;  %9937 = vmatprep.subr.bf16.mxu1 %v12455_v41 }
 0xd3f   :  { %6534 = vmatprep.mubr.f32.mxu0 %v13673_v63  ;;  %6605 = vmatprep.mubr.f32.mxu1 %v13673_v63 }
 0xd41   :  { %9907 = vmatpush1.bf16.msra.mxu0 %v12463_v46  ;;  %9939 = vmatpush1.bf16.msra.mxu1 %v12465_v12 }
 0xd42   :  { %9909 = vmatprep.subr.bf16.mxu0 %v14000_v53  ;;  %9941 = vmatprep.subr.bf16.mxu1 %v14001_v28 }
 0xd45   :  { %9911 = vmatpush1.bf16.msra.mxu0 %v14002_v48  ;;  %9943 = vmatpush1.bf16.msra.mxu1 %v14003_v18 }
 0xd46   :  { %9913 = vmatprep.subr.bf16.mxu0 %v14004_v31  ;;  %9945 = vmatprep.subr.bf16.mxu1 %v14005_v56  ;;  %v14026_v56 = vld [vmem:[#allocation46_spill] sm:$0xff] }
 0xd49   :  { %9915 = vmatpush1.bf16.msra.mxu0 %v14006_v11  ;;  %9947 = vmatpush1.bf16.msra.mxu1 %v14007_v5  ;;  %v14017_v11 = vld [vmem:[#allocation22_spill] sm:$0xff]  ;;  %v14018_v5 = vld [vmem:[#allocation23_spill] sm:$0xff] }
 0xd4a   :  { %9917 = vmatprep.subr.bf16.mxu0 %v14008_v7  ;;  %9949 = vmatprep.subr.bf16.mxu1 %v14009_v33  ;;  %v14019_v7 = vld [vmem:[#allocation24_spill] sm:$0xff]  ;;  %v14020_v33 = vld [vmem:[#allocation25_spill] sm:$0xff] }
 0xd4d   :  { %9919 = vmatpush1.bf16.msra.mxu0 %v14010_v35  ;;  %9951 = vmatpush1.bf16.msra.mxu1 %v14011_v22  ;;  %v14021_v35 = vld [vmem:[#allocation26_spill] sm:$0xff]  ;;  %v14022_v22 = vld [vmem:[#allocation27_spill] sm:$0xff] }
 0xd4e   :  { %9921 = vmatprep.subr.bf16.mxu0 %v14012_v4  ;;  %9953 = vmatprep.subr.bf16.mxu1 %v14013_v15  ;;  %v14023_v4 = vld [vmem:[#allocation28_spill] sm:$0xff]  ;;  %v14024_v15 = vld [vmem:[#allocation29_spill] sm:$0xff] }
 0xd51   :  { %9923 = vmatpush1.bf16.msra.mxu0 %v14014_v50  ;;  %9955 = vmatpush1.bf16.msra.mxu1 %v14015_v2  ;;  %v14025_v50 = vld [vmem:[#allocation30_spill] sm:$0xff] }
 0xd52   :  { %9925 = vmatprep.subr.bf16.mxu0 %v14016_v6  ;;  %9957 = vmatprep.subr.bf16.mxu1 %v14017_v11 }
 0xd55   :  { %9927 = vmatpush1.bf16.msra.mxu0 %v14018_v5  ;;  %9959 = vmatpush1.bf16.msra.mxu1 %v14019_v7 }
 0xd56   :  { %9929 = vmatprep.subr.bf16.mxu0 %v14020_v33  ;;  %9961 = vmatprep.subr.bf16.mxu1 %v14021_v35  ;;  %v14027_v35 = vld [vmem:[#allocation44_spill] sm:$0xff] }
 0xd59   :  { %9931 = vmatpush1.bf16.msra.mxu0 %v14022_v22  ;;  %9963 = vmatpush1.bf16.msra.mxu1 %v14023_v4 }
 0xd5a   :  { %9965 = vmatprep.subr.bf16.mxu0 %v14024_v15  ;;  %9997 = vmatprep.subr.bf16.mxu1 %v14025_v50 }
 0xdef   :  { %v6188_v2 = vpop.f32.mrb[40].mxu0  ;;  %v6259_v6 = vpop.f32.mrb[40].mxu1 }
 0xdf0   :  { %v10404_v11 = vadd.f32 %v6188_v2, %v14026_v56  ;;  %v6190_v31 = vpop.f32.mrb[41].mxu0  ;;  %v6261_v5 = vpop.f32.mrb[41].mxu1  ;;  %v10420_v22 = vadd.f32 %v6259_v6, %v14027_v35 }
 0xdf1   :  { %v10405_v7 = vadd.f32 %v6190_v31, %v13940_v34  ;;  %v10421_v4 = vadd.f32 %v6261_v5, %v13971_v9 }
 0xdf2   :  { %v7803_v18 = vmul.f32 -1.442695, %v10404_v11  ;;  %v7805_v48 = vmul.f32 -1.442695, %v10420_v22 }
 0xdf3   :  { %v7804_v33 = vmul.f32 -1.442695, %v10405_v7 }
 0xdf4   :  { %10982 = vpow2.f32 %v7803_v18 }
 0xdf5   :  { %10984 = vpow2.f32 %v7804_v33 }
 0xdf6   :  { %10986 = vtanh.f32 %v10421_v4 }
 0xdf7   :  { %10988 = vpow2.f32 %v7805_v48 }
 0xdfe   :  { %v10983_v15 = vpop.eup %10982 }
 0xdff   :  { %v6427_v28 = vadd.f32 1.0, %v10983_v15  ;;  %v10985_v50 = vpop.eup %10984 }
 0xe00   :  { %v6428_v2 = vadd.f32 1.0, %v10985_v50  ;;  %v10987_v56 = vpop.eup %10986 }
 0xe01   :  { %10990 = vrcp.f32 %v6427_v28  ;;  %v10989_v53 = vpop.eup %10988 }
 0xe02   :  { %10992 = vrcp.f32 %v6428_v2  ;;  %v6429_v18 = vadd.f32 1.0, %v10989_v53 }
 0xe04   :  { %10994 = vrcp.f32 %v6429_v18 }
 0xe0b   :  { %v10991_v31 = vpop.eup %10990 }
 0xe0c   :  { %v6457_v11 = vmul.f32 %v10991_v31, %v10987_v56  ;;  %v10993_v7 = vpop.eup %10992 }
 0xe0d   :  { %v6456_v33 = vmul.f32 %v10993_v7, %v12999_v61 }
 0xe0e   :  { %v10995_v61 = vpop.eup %10994 }
 0xe0f   :  { %v6338_v6 = vpop.f32.mrb[54].mxu0  ;;  %v6409_v35 = vpop.f32.mrb[54].mxu1  ;;  %v13083_v5 = vadd.f32 %v6457_v11, %v6456_v33 }
 0xe10   :  { %v10434_v22 = vadd.f32 %v6338_v6, %v13943_v19  ;;  %v6340_v4 = vpop.f32.mrb[55].mxu0  ;;  %v6411_v15 = vpop.f32.mrb[55].mxu1  ;;  %v10450_v53 = vadd.f32 %v6409_v35, %v12747_v37 }
 0xe11   :  { %v10435_v28 = vadd.f32 %v6340_v4, %v13944_v45  ;;  %10996 = vtanh.f32 %v13083_v5  ;;  %v10451_v56 = vadd.f32 %v6411_v15, %v12751_v44 }
 0xe12   :  { %v7806_v48 = vmul.f32 -1.442695, %v10434_v22  ;;  %v7808_v31 = vmul.f32 -1.442695, %v10450_v53 }
 0xe13   :  { %v7807_v50 = vmul.f32 -1.442695, %v10435_v28 }
 0xe14   :  { %10998 = vpow2.f32 %v7806_v48 }
 0xe15   :  { %11000 = vpow2.f32 %v7807_v50 }
 0xe16   :  { %11002 = vtanh.f32 %v10451_v56 }
 0xe17   :  { %11004 = vpow2.f32 %v7808_v31  ;;  %v14029_v31 = vld [vmem:[#allocation52_spill] sm:$0xff] }
 0xe1b   :  { %v10997_v2 = vpop.eup %10996 }
 0xe1c   :  { %v6463_v11 = vmul.f32 %v10997_v2, %v10995_v61  ;;  %v14028_v2 = vld [vmem:[#allocation54_spill] sm:$0xff] }
 0xe1e   :  { %v10999_v7 = vpop.eup %10998  ;;  %6535 = vmatmul.mubr.f32.vlgmr.msra.gmra.mrb[42].mxu0 %v6463_v11  ;;  %6606 = vmatmul.mubr.f32.vlgmr.msra.gmra.mrb[42].mxu1 %v6463_v11  ;;  %v14030_v11 = vld [vmem:[#allocation53_spill] sm:$0xff] }
 0xe1f   :  { %v6445_v33 = vadd.f32 1.0, %v10999_v7  ;;  %v11001_v18 = vpop.eup %11000  ;;  %9967 = vmatpush1.bf16.msra.mxu0 %v12575_v43  ;;  %9999 = vmatpush1.bf16.msra.mxu1 %v12577_v58  ;;  %v14031_v7 = vld [vmem:[#allocation38_spill] sm:$0xff] }
 0xe20   :  { %v6446_v6 = vadd.f32 1.0, %v11001_v18  ;;  %9969 = vmatprep.subr.bf16.mxu0 %v12581_v25  ;;  %10001 = vmatprep.subr.bf16.mxu1 %v12583_v49  ;;  %v11003_v35 = vpop.eup %11002  ;;  %v14033_v18 = vld [vmem:[#allocation51_spill] sm:$0xff] }
 0xe21   :  { %11006 = vrcp.f32 %v6445_v33  ;;  %6684 = vmatprep.mubr.f32.mxu0 %v13673_v63  ;;  %6755 = vmatprep.mubr.f32.mxu1 %v13673_v63  ;;  %v11005_v22 = vpop.eup %11004  ;;  %v14032_v33 = vld [vmem:[#allocation49_spill] sm:$0xff] }
 0xe22   :  { %11008 = vrcp.f32 %v6446_v6  ;;  %v6447_v48 = vadd.f32 1.0, %v11005_v22  ;;  %v14034_v6 = vld [vmem:[#allocation11_spill] sm:$0xff]  ;;  %v14036_v22 = vld [vmem:[#allocation13_spill] sm:$0xff] }
 0xe23   :  { %9971 = vmatpush1.bf16.msra.mxu0 %v12589_v55  ;;  %10003 = vmatpush1.bf16.msra.mxu1 %v12591_v24 }
 0xe24   :  { %9973 = vmatprep.subr.bf16.mxu0 %v12595_v21  ;;  %10005 = vmatprep.subr.bf16.mxu1 %v13919_v39  ;;  %11010 = vrcp.f32 %v6447_v48  ;;  %v14040_v48 = vld [vmem:[#allocation17_spill] sm:$0xff] }
 0xe27   :  { %9975 = vmatpush1.bf16.msra.mxu0 %v13945_v54  ;;  %10007 = vmatpush1.bf16.msra.mxu1 %v13946_v1 }
 0xe28   :  { %9977 = vmatprep.subr.bf16.mxu0 %v13947_v26  ;;  %10009 = vmatprep.subr.bf16.mxu1 %v13923_v13 }
 0xe2b   :  { %v11007_v4 = vpop.eup %11006  ;;  %9979 = vmatpush1.bf16.msra.mxu0 %v13924_v42  ;;  %10011 = vmatpush1.bf16.msra.mxu1 %v13925_v51 }
 0xe2c   :  { %v6460_v15 = vmul.f32 %v11007_v4, %v11003_v35  ;;  %v11009_v28 = vpop.eup %11008  ;;  %9981 = vmatprep.subr.bf16.mxu0 %v13926_v59  ;;  %10013 = vmatprep.subr.bf16.mxu1 %v13927_v40  ;;  %v14035_v35 = vld [vmem:[#allocation12_spill] sm:$0xff]  ;;  %v14037_v4 = vld [vmem:[#allocation14_spill] sm:$0xff] }
 0xe2d   :  { %v6459_v50 = vmul.f32 %v11009_v28, %v13025_v57  ;;  %v14039_v28 = vld [vmem:[#allocation16_spill] sm:$0xff] }
 0xe2e   :  { %v11011_v57 = vpop.eup %11010 }
 0xe2f   :  { %v13109_v53 = vadd.f32 %v6460_v15, %v6459_v50  ;;  %9983 = vmatpush1.bf16.msra.mxu0 %v13928_v62  ;;  %10015 = vmatpush1.bf16.msra.mxu1 %v13929_v17  ;;  %v14038_v15 = vld [vmem:[#allocation15_spill] sm:$0xff]  ;;  %v14041_v50 = vld [vmem:[#allocation18_spill] sm:$0xff] }
 0xe30   :  { %9985 = vmatprep.subr.bf16.mxu0 %v12633_v60  ;;  %10017 = vmatprep.subr.bf16.mxu1 %v12635_v23 }
 0xe31   :  { %11012 = vtanh.f32 %v13109_v53 }
 0xe33   :  { %9987 = vmatpush1.bf16.msra.mxu0 %v12639_v27  ;;  %10019 = vmatpush1.bf16.msra.mxu1 %v12641_v16 }
 0xe34   :  { %9989 = vmatprep.subr.bf16.mxu0 %v12645_v36  ;;  %10021 = vmatprep.subr.bf16.mxu1 %v12647_v8 }
 0xe37   :  { %9991 = vmatpush1.bf16.msra.mxu0 %v12651_v52  ;;  %10023 = vmatpush1.bf16.msra.mxu1 %v12653_v20 }
 0xe38   :  { %9993 = vmatprep.subr.bf16.mxu0 %v12657_v47  ;;  %10025 = vmatprep.subr.bf16.mxu1 %v12659_v38 }
 0xe3b   :  { %v11013_v61 = vpop.eup %11012  ;;  %9995 = vmatpush1.bf16.msra.mxu0 %v12663_v29  ;;  %10027 = vmatpush1.bf16.msra.mxu1 %v12665_v10 }
 0xe3c   :  { %v6465_v56 = vmul.f32 %v11013_v61, %v11011_v57  ;;  %10029 = vmatprep.subr.bf16.mxu0 %v12443_v30  ;;  %10061 = vmatprep.subr.bf16.mxu1 %v12445_v3  ;;  %v14042_v57 = vld [vmem:[#allocation19_spill] sm:$0xff]  ;;  %v14043_v61 = vld [vmem:[#allocation20_spill] sm:$0xff] }
 0xe3e   :  { %6685 = vmatmul.mubr.f32.vlgmr.msra.gmra.mrb[52].mxu0 %v6465_v56  ;;  %6756 = vmatmul.mubr.f32.vlgmr.msra.gmra.mrb[52].mxu1 %v6465_v56  ;;  %v14044_v56 = vld [vmem:[#allocation21_spill] sm:$0xff] }
 0xe3f   :  { %10031 = vmatpush1.bf16.msra.mxu0 %v12449_v0  ;;  %10063 = vmatpush1.bf16.msra.mxu1 %v12451_v14 }
 0xe40   :  { %10033 = vmatprep.subr.bf16.mxu0 %v12453_v32  ;;  %10065 = vmatprep.subr.bf16.mxu1 %v12455_v41 }
 0xe41   :  { %6882 = vmatprep.mubr.f32.mxu0 %v13673_v63  ;;  %6953 = vmatprep.mubr.f32.mxu1 %v13673_v63 }
 0xe43   :  { %10035 = vmatpush1.bf16.msra.mxu0 %v12463_v46  ;;  %10067 = vmatpush1.bf16.msra.mxu1 %v12465_v12 }
 0xe44   :  { %10037 = vmatprep.subr.bf16.mxu0 %v14028_v2  ;;  %10069 = vmatprep.subr.bf16.mxu1 %v14029_v31 }
 0xe47   :  { %10039 = vmatpush1.bf16.msra.mxu0 %v14030_v11  ;;  %10071 = vmatpush1.bf16.msra.mxu1 %v14031_v7 }
 0xe48   :  { %10041 = vmatprep.subr.bf16.mxu0 %v14032_v33  ;;  %10073 = vmatprep.subr.bf16.mxu1 %v14033_v18  ;;  %v14054_v18 = vld [vmem:[#allocation46_spill] sm:$0xff] }
 0xe4b   :  { %10043 = vmatpush1.bf16.msra.mxu0 %v14034_v6  ;;  %10075 = vmatpush1.bf16.msra.mxu1 %v14035_v35  ;;  %v14045_v6 = vld [vmem:[#allocation22_spill] sm:$0xff]  ;;  %v14046_v35 = vld [vmem:[#allocation23_spill] sm:$0xff] }
 0xe4c   :  { %10045 = vmatprep.subr.bf16.mxu0 %v14036_v22  ;;  %10077 = vmatprep.subr.bf16.mxu1 %v14037_v4  ;;  %v14047_v22 = vld [vmem:[#allocation24_spill] sm:$0xff]  ;;  %v14048_v4 = vld [vmem:[#allocation25_spill] sm:$0xff] }
 0xe4f   :  { %10047 = vmatpush1.bf16.msra.mxu0 %v14038_v15  ;;  %10079 = vmatpush1.bf16.msra.mxu1 %v14039_v28  ;;  %v14049_v15 = vld [vmem:[#allocation26_spill] sm:$0xff]  ;;  %v14050_v28 = vld [vmem:[#allocation27_spill] sm:$0xff] }
 0xe50   :  { %10049 = vmatprep.subr.bf16.mxu0 %v14040_v48  ;;  %10081 = vmatprep.subr.bf16.mxu1 %v14041_v50  ;;  %v14051_v48 = vld [vmem:[#allocation28_spill] sm:$0xff]  ;;  %v14052_v50 = vld [vmem:[#allocation29_spill] sm:$0xff] }
 0xe53   :  { %10051 = vmatpush1.bf16.msra.mxu0 %v14042_v57  ;;  %10083 = vmatpush1.bf16.msra.mxu1 %v14043_v61  ;;  %v14053_v57 = vld [vmem:[#allocation30_spill] sm:$0xff] }
 0xe54   :  { %10053 = vmatprep.subr.bf16.mxu0 %v14044_v56  ;;  %10085 = vmatprep.subr.bf16.mxu1 %v14045_v6 }
 0xe57   :  { %10055 = vmatpush1.bf16.msra.mxu0 %v14046_v35  ;;  %10087 = vmatpush1.bf16.msra.mxu1 %v14047_v22 }
 0xe58   :  { %10057 = vmatprep.subr.bf16.mxu0 %v14048_v4  ;;  %10089 = vmatprep.subr.bf16.mxu1 %v14049_v15  ;;  %v14055_v15 = vld [vmem:[#allocation44_spill] sm:$0xff] }
 0xe5b   :  { %10059 = vmatpush1.bf16.msra.mxu0 %v14050_v28  ;;  %10091 = vmatpush1.bf16.msra.mxu1 %v14051_v48 }
 0xe5c   :  { %10093 = vmatprep.subr.bf16.mxu0 %v14052_v50  ;;  %10125 = vmatprep.subr.bf16.mxu1 %v14053_v57 }
 0xef1   :  { %v6536_v61 = vpop.f32.mrb[42].mxu0  ;;  %v6607_v56 = vpop.f32.mrb[42].mxu1 }
 0xef2   :  { %v10406_v6 = vadd.f32 %v6536_v61, %v14054_v18  ;;  %v6538_v33 = vpop.f32.mrb[43].mxu0  ;;  %v6609_v35 = vpop.f32.mrb[43].mxu1  ;;  %v10422_v28 = vadd.f32 %v6607_v56, %v14055_v15 }
 0xef3   :  { %v10407_v22 = vadd.f32 %v6538_v33, %v13940_v34  ;;  %v10423_v48 = vadd.f32 %v6609_v35, %v13971_v9 }
 0xef4   :  { %v7809_v7 = vmul.f32 -1.442695, %v10406_v6  ;;  %v7811_v11 = vmul.f32 -1.442695, %v10422_v28 }
 0xef5   :  { %v7810_v4 = vmul.f32 -1.442695, %v10407_v22 }
 0xef6   :  { %11014 = vpow2.f32 %v7809_v7 }
 0xef7   :  { %11016 = vpow2.f32 %v7810_v4 }
 0xef8   :  { %11018 = vtanh.f32 %v10423_v48 }
 0xef9   :  { %11020 = vpow2.f32 %v7811_v11 }
 0xf00   :  { %v11015_v50 = vpop.eup %11014 }
 0xf01   :  { %v6775_v31 = vadd.f32 1.0, %v11015_v50  ;;  %v11017_v57 = vpop.eup %11016 }
 0xf02   :  { %v6776_v61 = vadd.f32 1.0, %v11017_v57  ;;  %v11019_v18 = vpop.eup %11018 }
 0xf03   :  { %11022 = vrcp.f32 %v6775_v31  ;;  %v11021_v2 = vpop.eup %11020 }
 0xf04   :  { %11024 = vrcp.f32 %v6776_v61  ;;  %v6777_v7 = vadd.f32 1.0, %v11021_v2 }
 0xf06   :  { %11026 = vrcp.f32 %v6777_v7 }
 0xf0d   :  { %v11023_v33 = vpop.eup %11022 }
 0xf0e   :  { %v6805_v6 = vmul.f32 %v11023_v33, %v11019_v18  ;;  %v11025_v22 = vpop.eup %11024 }
 0xf0f   :  { %v6804_v4 = vmul.f32 %v11025_v22, %v13083_v5 }
 0xf10   :  { %v11027_v5 = vpop.eup %11026 }
 0xf11   :  { %v6686_v56 = vpop.f32.mrb[52].mxu0  ;;  %v6757_v15 = vpop.f32.mrb[52].mxu1  ;;  %v13167_v35 = vadd.f32 %v6805_v6, %v6804_v4 }
 0xf12   :  { %v10432_v28 = vadd.f32 %v6686_v56, %v13943_v19  ;;  %v6688_v48 = vpop.f32.mrb[53].mxu0  ;;  %v6759_v50 = vpop.f32.mrb[53].mxu1  ;;  %v10448_v2 = vadd.f32 %v6757_v15, %v12747_v37 }
 0xf13   :  { %v10433_v31 = vadd.f32 %v6688_v48, %v13944_v45  ;;  %11028 = vtanh.f32 %v13167_v35  ;;  %v10449_v18 = vadd.f32 %v6759_v50, %v12751_v44 }
 0xf14   :  { %v7812_v11 = vmul.f32 -1.442695, %v10432_v28  ;;  %v7814_v33 = vmul.f32 -1.442695, %v10448_v2 }
 0xf15   :  { %v7813_v57 = vmul.f32 -1.442695, %v10433_v31 }
 0xf16   :  { %11030 = vpow2.f32 %v7812_v11 }
 0xf17   :  { %11032 = vpow2.f32 %v7813_v57 }
 0xf18   :  { %11034 = vtanh.f32 %v10449_v18 }
 0xf19   :  { %11036 = vpow2.f32 %v7814_v33  ;;  %v14063_v33 = vld [vmem:[#allocation12_spill] sm:$0xff] }
 0xf1d   :  { %v11029_v61 = vpop.eup %11028 }
 0xf1e   :  { %v6811_v6 = vmul.f32 %v11029_v61, %v11027_v5  ;;  %v14058_v61 = vld [vmem:[#allocation53_spill] sm:$0xff] }
 0xf20   :  { %v11031_v22 = vpop.eup %11030  ;;  %6883 = vmatmul.mubr.f32.vlgmr.msra.gmra.mrb[44].mxu0 %v6811_v6  ;;  %6954 = vmatmul.mubr.f32.vlgmr.msra.gmra.mrb[44].mxu1 %v6811_v6  ;;  %v14064_v6 = vld [vmem:[#allocation13_spill] sm:$0xff] }
 0xf21   :  { %v6793_v4 = vadd.f32 1.0, %v11031_v22  ;;  %v11033_v7 = vpop.eup %11032  ;;  %10095 = vmatpush1.bf16.msra.mxu0 %v12575_v43  ;;  %10127 = vmatpush1.bf16.msra.mxu1 %v12577_v58  ;;  %v14067_v22 = vld [vmem:[#allocation16_spill] sm:$0xff] }
 0xf22   :  { %v6794_v56 = vadd.f32 1.0, %v11033_v7  ;;  %10097 = vmatprep.subr.bf16.mxu0 %v12581_v25  ;;  %10129 = vmatprep.subr.bf16.mxu1 %v12583_v49  ;;  %v11035_v15 = vpop.eup %11034  ;;  %v14069_v7 = vld [vmem:[#allocation18_spill] sm:$0xff] }
 0xf23   :  { %11038 = vrcp.f32 %v6793_v4  ;;  %7032 = vmatprep.mubr.f32.mxu0 %v13673_v63  ;;  %7103 = vmatprep.mubr.f32.mxu1 %v13673_v63  ;;  %v11037_v28 = vpop.eup %11036  ;;  %v14068_v4 = vld [vmem:[#allocation17_spill] sm:$0xff] }
 0xf24   :  { %11040 = vrcp.f32 %v6794_v56  ;;  %v6795_v11 = vadd.f32 1.0, %v11037_v28  ;;  %v14070_v56 = vld [vmem:[#allocation19_spill] sm:$0xff]  ;;  %v14072_v28 = vld [vmem:[#allocation21_spill] sm:$0xff] }
 0xf25   :  { %10099 = vmatpush1.bf16.msra.mxu0 %v12589_v55  ;;  %10131 = vmatpush1.bf16.msra.mxu1 %v12591_v24 }
 0xf26   :  { %10101 = vmatprep.subr.bf16.mxu0 %v12595_v21  ;;  %10133 = vmatprep.subr.bf16.mxu1 %v13919_v39  ;;  %11042 = vrcp.f32 %v6795_v11  ;;  %v14076_v11 = vld [vmem:[#allocation25_spill] sm:$0xff] }
 0xf29   :  { %10103 = vmatpush1.bf16.msra.mxu0 %v13945_v54  ;;  %10135 = vmatpush1.bf16.msra.mxu1 %v13946_v1 }
 0xf2a   :  { %10105 = vmatprep.subr.bf16.mxu0 %v13947_v26  ;;  %10137 = vmatprep.subr.bf16.mxu1 %v13923_v13 }
 0xf2d   :  { %v11039_v48 = vpop.eup %11038  ;;  %10107 = vmatpush1.bf16.msra.mxu0 %v13924_v42  ;;  %10139 = vmatpush1.bf16.msra.mxu1 %v13925_v51 }
 0xf2e   :  { %v6808_v50 = vmul.f32 %v11039_v48, %v11035_v15  ;;  %v11041_v31 = vpop.eup %11040  ;;  %10109 = vmatprep.subr.bf16.mxu0 %v13926_v59  ;;  %10141 = vmatprep.subr.bf16.mxu1 %v13927_v40  ;;  %v14071_v15 = vld [vmem:[#allocation20_spill] sm:$0xff]  ;;  %v14073_v48 = vld [vmem:[#allocation22_spill] sm:$0xff] }
 0xf2f   :  { %v6807_v57 = vmul.f32 %v11041_v31, %v13109_v53  ;;  %v14075_v31 = vld [vmem:[#allocation24_spill] sm:$0xff] }
 0xf30   :  { %v11043_v53 = vpop.eup %11042 }
 0xf31   :  { %v13193_v2 = vadd.f32 %v6808_v50, %v6807_v57  ;;  %10111 = vmatpush1.bf16.msra.mxu0 %v13928_v62  ;;  %10143 = vmatpush1.bf16.msra.mxu1 %v13929_v17  ;;  %v14074_v50 = vld [vmem:[#allocation23_spill] sm:$0xff]  ;;  %v14077_v57 = vld [vmem:[#allocation26_spill] sm:$0xff] }
 0xf32   :  { %10113 = vmatprep.subr.bf16.mxu0 %v12633_v60  ;;  %10145 = vmatprep.subr.bf16.mxu1 %v12635_v23 }
 0xf33   :  { %11044 = vtanh.f32 %v13193_v2 }
 0xf35   :  { %10115 = vmatpush1.bf16.msra.mxu0 %v12639_v27  ;;  %10147 = vmatpush1.bf16.msra.mxu1 %v12641_v16 }
 0xf36   :  { %10117 = vmatprep.subr.bf16.mxu0 %v12645_v36  ;;  %10149 = vmatprep.subr.bf16.mxu1 %v12647_v8 }
 0xf39   :  { %10119 = vmatpush1.bf16.msra.mxu0 %v12651_v52  ;;  %10151 = vmatpush1.bf16.msra.mxu1 %v12653_v20 }
 0xf3a   :  { %10121 = vmatprep.subr.bf16.mxu0 %v12657_v47  ;;  %10153 = vmatprep.subr.bf16.mxu1 %v12659_v38 }
 0xf3d   :  { %v11045_v5 = vpop.eup %11044  ;;  %10123 = vmatpush1.bf16.msra.mxu0 %v12663_v29  ;;  %10155 = vmatpush1.bf16.msra.mxu1 %v12665_v10 }
 0xf3e   :  { %v6813_v18 = vmul.f32 %v11045_v5, %v11043_v53  ;;  %10157 = vmatprep.subr.bf16.mxu0 %v12443_v30  ;;  %10189 = vmatprep.subr.bf16.mxu1 %v12445_v3  ;;  %v14056_v30 = vld [vmem:[#allocation54_spill] sm:$0xff]  ;;  %v14057_v3 = vld [vmem:[#allocation52_spill] sm:$0xff]  ;;  %v14078_v53 = vld [vmem:[#allocation27_spill] sm:$0xff] }
 0xf3f   :  { %v14079_v5 = vld [vmem:[#allocation28_spill] sm:$0xff] }
 0xf40   :  { %7033 = vmatmul.mubr.f32.vlgmr.msra.gmra.mrb[50].mxu0 %v6813_v18  ;;  %7104 = vmatmul.mubr.f32.vlgmr.msra.gmra.mrb[50].mxu1 %v6813_v18  ;;  %v14080_v18 = vld [vmem:[#allocation29_spill] sm:$0xff] }
 0xf41   :  { %10159 = vmatpush1.bf16.msra.mxu0 %v12449_v0  ;;  %10191 = vmatpush1.bf16.msra.mxu1 %v12451_v14  ;;  %v14059_v0 = vld [vmem:[#allocation38_spill] sm:$0xff]  ;;  %v14060_v14 = vld [vmem:[#allocation49_spill] sm:$0xff] }
 0xf42   :  { %10161 = vmatprep.subr.bf16.mxu0 %v12453_v32  ;;  %10193 = vmatprep.subr.bf16.mxu1 %v12455_v41  ;;  %v14061_v32 = vld [vmem:[#allocation51_spill] sm:$0xff] }
 0xf43   :  { %7230 = vmatprep.mubr.f32.mxu0 %v13673_v63  ;;  %7301 = vmatprep.mubr.f32.mxu1 %v13673_v63  ;;  %v14062_v41 = vld [vmem:[#allocation11_spill] sm:$0xff] }
 0xf45   :  { %10163 = vmatpush1.bf16.msra.mxu0 %v12463_v46  ;;  %10195 = vmatpush1.bf16.msra.mxu1 %v12465_v12  ;;  %v14065_v46 = vld [vmem:[#allocation14_spill] sm:$0xff]  ;;  %v14066_v12 = vld [vmem:[#allocation15_spill] sm:$0xff] }
 0xf46   :  { %10165 = vmatprep.subr.bf16.mxu0 %v14056_v30  ;;  %10197 = vmatprep.subr.bf16.mxu1 %v14057_v3  ;;  %v14081_v30 = vld [vmem:[#allocation30_spill] sm:$0xff] }
 0xf49   :  { %10167 = vmatpush1.bf16.msra.mxu0 %v14058_v61  ;;  %10199 = vmatpush1.bf16.msra.mxu1 %v14059_v0  ;;  %v14082_v0 = vld [vmem:[#allocation46_spill] sm:$0xff] }
 0xf4a   :  { %10169 = vmatprep.subr.bf16.mxu0 %v14060_v14  ;;  %10201 = vmatprep.subr.bf16.mxu1 %v14061_v32 }
 0xf4d   :  { %10171 = vmatpush1.bf16.msra.mxu0 %v14062_v41  ;;  %10203 = vmatpush1.bf16.msra.mxu1 %v14063_v33 }
 0xf4e   :  { %10173 = vmatprep.subr.bf16.mxu0 %v14064_v6  ;;  %10205 = vmatprep.subr.bf16.mxu1 %v14065_v46 }
 0xf51   :  { %10175 = vmatpush1.bf16.msra.mxu0 %v14066_v12  ;;  %10207 = vmatpush1.bf16.msra.mxu1 %v14067_v22  ;;  %v14083_v12 = vld [vmem:[#allocation44_spill] sm:$0xff] }
 0xf52   :  { %10177 = vmatprep.subr.bf16.mxu0 %v14068_v4  ;;  %10209 = vmatprep.subr.bf16.mxu1 %v14069_v7 }
 0xf55   :  { %10179 = vmatpush1.bf16.msra.mxu0 %v14070_v56  ;;  %10211 = vmatpush1.bf16.msra.mxu1 %v14071_v15 }
 0xf56   :  { %10181 = vmatprep.subr.bf16.mxu0 %v14072_v28  ;;  %10213 = vmatprep.subr.bf16.mxu1 %v14073_v48 }
 0xf59   :  { %10183 = vmatpush1.bf16.msra.mxu0 %v14074_v50  ;;  %10215 = vmatpush1.bf16.msra.mxu1 %v14075_v31 }
 0xf5a   :  { %10185 = vmatprep.subr.bf16.mxu0 %v14076_v11  ;;  %10217 = vmatprep.subr.bf16.mxu1 %v14077_v57 }
 0xf5d   :  { %10187 = vmatpush1.bf16.msra.mxu0 %v14078_v53  ;;  %10219 = vmatpush1.bf16.msra.mxu1 %v14079_v5 }
 0xf5e   :  { %10221 = vmatprep.subr.bf16.mxu0 %v14080_v18  ;;  %10253 = vmatprep.subr.bf16.mxu1 %v14081_v30 }
 0xff3   :  { %v6884_v3 = vpop.f32.mrb[44].mxu0  ;;  %v6955_v61 = vpop.f32.mrb[44].mxu1 }
 0xff4   :  { %v10408_v14 = vadd.f32 %v6884_v3, %v14082_v0  ;;  %v6886_v32 = vpop.f32.mrb[45].mxu0  ;;  %v6957_v41 = vpop.f32.mrb[45].mxu1  ;;  %v10424_v22 = vadd.f32 %v6955_v61, %v14083_v12 }
 0xff5   :  { %v10409_v33 = vadd.f32 %v6886_v32, %v13940_v34  ;;  %v10425_v4 = vadd.f32 %v6957_v41, %v13971_v9 }
 0xff6   :  { %v7815_v6 = vmul.f32 -1.442695, %v10408_v14  ;;  %v7817_v7 = vmul.f32 -1.442695, %v10424_v22 }
 0xff7   :  { %v7816_v46 = vmul.f32 -1.442695, %v10409_v33 }
 0xff8   :  { %11046 = vpow2.f32 %v7815_v6 }
 0xff9   :  { %11048 = vpow2.f32 %v7816_v46 }
 0xffa   :  { %11050 = vtanh.f32 %v10425_v4 }
 0xffb   :  { %11052 = vpow2.f32 %v7817_v7 }
0x1002   :  { %v11047_v56 = vpop.eup %11046 }
0x1003   :  { %v7123_v15 = vadd.f32 1.0, %v11047_v56  ;;  %v11049_v28 = vpop.eup %11048 }
0x1004   :  { %v7124_v48 = vadd.f32 1.0, %v11049_v28  ;;  %v11051_v50 = vpop.eup %11050 }
0x1005   :  { %11054 = vrcp.f32 %v7123_v15  ;;  %v11053_v31 = vpop.eup %11052 }
0x1006   :  { %11056 = vrcp.f32 %v7124_v48  ;;  %v7125_v5 = vadd.f32 1.0, %v11053_v31 }
0x1008   :  { %11058 = vrcp.f32 %v7125_v5  ;;  %v7525_v5 = vld [vmem:[%s13431_s7 + $0x78] sm:$0xff] }
0x100f   :  { %v11055_v11 = vpop.eup %11054 }
0x1010   :  { %v7153_v57 = vmul.f32 %v11055_v11, %v11051_v50  ;;  %v11057_v53 = vpop.eup %11056  ;;  %v7523_v11 = vld [vmem:[%s13431_s7 + $0x68] sm:$0xff] }
0x1011   :  { %v7152_v18 = vmul.f32 %v11057_v53, %v13167_v35  ;;  %v7524_v53 = vld [vmem:[%s13431_s7 + $0x70] sm:$0xff] }
0x1012   :  { %v11059_v35 = vpop.eup %11058 }
0x1013   :  { %v7034_v30 = vpop.f32.mrb[50].mxu0  ;;  %v7105_v3 = vpop.f32.mrb[50].mxu1  ;;  %v13251_v61 = vadd.f32 %v7153_v57, %v7152_v18  ;;  %v10330_v18 = vpack.c.bf16 %v7525_v5, %v7524_v53 }
0x1014   :  { %v10430_v14 = vadd.f32 %v7034_v30, %v13943_v19  ;;  %v7036_v32 = vpop.f32.mrb[51].mxu0  ;;  %v7107_v41 = vpop.f32.mrb[51].mxu1  ;;  %v10446_v22 = vadd.f32 %v7105_v3, %v12747_v37  ;;  %v7827_v30 = vld [vmem:[%s13431_s7 + $0x80] sm:$0xff]  ;;  %v7828_v3 = vld [vmem:[%s13431_s7 + $0x88] sm:$0xff] }
0x1015   :  { %v10431_v33 = vadd.f32 %v7036_v32, %v13944_v45  ;;  %11060 = vtanh.f32 %v13251_v61  ;;  %v10447_v4 = vadd.f32 %v7107_v41, %v12751_v44  ;;  %v7829_v32 = vld [vmem:[%s13431_s7 + $0x90] sm:$0xff]  ;;  %v7830_v41 = vld [vmem:[%s13431_s7 + $0x98] sm:$0xff] }
0x1016   :  { %v7818_v6 = vmul.f32 -1.442695, %v10430_v14  ;;  %v7820_v56 = vmul.f32 -1.442695, %v10446_v22  ;;  %v10285_v14 = vpack.c.bf16 %v7828_v3, %v7827_v30  ;;  %v7833_v22 = vld [vmem:[%s13431_s7 + $0xb0] sm:$0xff] }
0x1017   :  { %v7819_v46 = vmul.f32 -1.442695, %v10431_v33  ;;  %v10288_v33 = vpack.c.bf16 %v7830_v41, %v7829_v32 }
0x1018   :  { %11062 = vpow2.f32 %v7818_v6  ;;  %v7831_v6 = vld [vmem:[%s13431_s7 + $0xa0] sm:$0xff] }
0x1019   :  { %11064 = vpow2.f32 %v7819_v46 }
0x101a   :  { %11066 = vtanh.f32 %v10447_v4 }
0x101b   :  { %11068 = vpow2.f32 %v7820_v56  ;;  %v7836_v56 = vld [vmem:[%s13431_s7 + $0xc8] sm:$0xff] }
0x101f   :  { %v11061_v7 = vpop.eup %11060 }
0x1020   :  { %v7159_v15 = vmul.f32 %v11061_v7, %v11059_v35  ;;  %v7834_v35 = vld [vmem:[%s13431_s7 + $0xb8] sm:$0xff]  ;;  %v7835_v7 = vld [vmem:[%s13431_s7 + $0xc0] sm:$0xff] }
0x1021   :  { %v10294_v4 = vpack.c.bf16 %v7834_v35, %v7833_v22 }
0x1022   :  { %v11063_v28 = vpop.eup %11062  ;;  %7231 = vmatmul.mubr.f32.vlgmr.msra.gmra.mrb[46].mxu0 %v7159_v15  ;;  %7302 = vmatmul.mubr.f32.vlgmr.msra.gmra.mrb[46].mxu1 %v7159_v15  ;;  %v10297_v15 = vpack.c.bf16 %v7836_v56, %v7835_v7 }
0x1023   :  { %v7141_v48 = vadd.f32 1.0, %v11063_v28  ;;  %v11065_v50 = vpop.eup %11064  ;;  %10223 = vmatpush1.bf16.msra.mxu0 %v12575_v43  ;;  %10255 = vmatpush1.bf16.msra.mxu1 %v12577_v58  ;;  %v7837_v28 = vld [vmem:[%s13431_s7 + $0xd0] sm:$0xff] }
0x1024   :  { %v7142_v31 = vadd.f32 1.0, %v11065_v50  ;;  %10225 = vmatprep.subr.bf16.mxu0 %v12581_v25  ;;  %10257 = vmatprep.subr.bf16.mxu1 %v12583_v49  ;;  %v11067_v43 = vpop.eup %11066 }
0x1025   :  { %11070 = vrcp.f32 %v7141_v48  ;;  %7380 = vmatprep.mubr.f32.mxu0 %v13673_v63  ;;  %7451 = vmatprep.mubr.f32.mxu1 %v13673_v63  ;;  %v11069_v58 = vpop.eup %11068  ;;  %v7838_v48 = vld [vmem:[%s13431_s7 + $0xd8] sm:$0xff] }
0x1026   :  { %11072 = vrcp.f32 %v7142_v31  ;;  %v10300_v50 = vpack.c.bf16 %v7838_v48, %v7837_v28  ;;  %v7839_v31 = vld [vmem:[%s13431_s7 + $0xe0] sm:$0xff] }
0x1027   :  { %10227 = vmatpush1.bf16.msra.mxu0 %v12589_v55  ;;  %10259 = vmatpush1.bf16.msra.mxu1 %v12591_v24  ;;  %v7143_v24 = vadd.f32 1.0, %v11069_v58  ;;  %v7843_v48 = vld [vmem:[%s13432_s8] ss:$0 sm:$0xff] }
0x1028   :  { %10229 = vmatprep.subr.bf16.mxu0 %v12595_v21  ;;  %10261 = vmatprep.subr.bf16.mxu1 %v13919_v39 }
0x1029   :  { %11074 = vrcp.f32 %v7143_v24 }
0x102b   :  { %10231 = vmatpush1.bf16.msra.mxu0 %v13945_v54  ;;  %10263 = vmatpush1.bf16.msra.mxu1 %v13946_v1  ;;  %v7520_v54 = vld [vmem:[%s13431_s7 + $0x50] sm:$0xff]  ;;  %v7521_v1 = vld [vmem:[%s13431_s7 + $0x58] sm:$0xff] }
0x102c   :  { %10233 = vmatprep.subr.bf16.mxu0 %v13947_v26  ;;  %10265 = vmatprep.subr.bf16.mxu1 %v13923_v13  ;;  %v7517_v13 = vld [vmem:[%s13431_s7 + $0x38] sm:$0xff]  ;;  %v10324_v26 = vpack.c.bf16 %v7521_v1, %v7520_v54 }
0x102f   :  { %v11071_v25 = vpop.eup %11070  ;;  %10235 = vmatpush1.bf16.msra.mxu0 %v13924_v42  ;;  %10267 = vmatpush1.bf16.msra.mxu1 %v13925_v51  ;;  %v7518_v51 = vld [vmem:[%s13431_s7 + $0x40] sm:$0xff] }
0x1030   :  { %v7156_v49 = vmul.f32 %v11071_v25, %v11067_v43  ;;  %v11073_v55 = vpop.eup %11072  ;;  %10237 = vmatprep.subr.bf16.mxu0 %v13926_v59  ;;  %10269 = vmatprep.subr.bf16.mxu1 %v13927_v40  ;;  %v7519_v59 = vld [vmem:[%s13431_s7 + $0x48] sm:$0xff]  ;;  %v7841_v25 = vld [vmem:[%s13431_s7 + $0xf0] sm:$0xff] }
0x1031   :  { %v7155_v21 = vmul.f32 %v11073_v55, %v13193_v2  ;;  %v10321_v40 = vpack.c.bf16 %v7519_v59, %v7518_v51  ;;  %v7522_v2 = vld [vmem:[%s13431_s7 + $0x60] sm:$0xff]  ;;  %v7840_v43 = vld [vmem:[%s13431_s7 + $0xe8] sm:$0xff] }
0x1032   :  { %v10327_v57 = vpack.c.bf16 %v7523_v11, %v7522_v2  ;;  %v10303_v58 = vpack.c.bf16 %v7840_v43, %v7839_v31 }
0x1033   :  { %v13277_v39 = vadd.f32 %v7156_v49, %v7155_v21  ;;  %10239 = vmatpush1.bf16.msra.mxu0 %v13928_v62  ;;  %10271 = vmatpush1.bf16.msra.mxu1 %v13929_v17  ;;  %v7516_v17 = vld [vmem:[%s13431_s7 + $0x30] sm:$0xff]  ;;  %v7842_v49 = vld [vmem:[%s13431_s7 + $0xf8] sm:$0xff] }
0x1034   :  { %10241 = vmatprep.subr.bf16.mxu0 %v12633_v60  ;;  %10273 = vmatprep.subr.bf16.mxu1 %v12635_v23  ;;  %v11075_v60 = vpop.eup %11074  ;;  %v10318_v42 = vpack.c.bf16 %v7517_v13, %v7516_v17  ;;  %v10306_v55 = vpack.c.bf16 %v7842_v49, %v7841_v25 }
0x1035   :  { %11076 = vtanh.f32 %v13277_v39 }
0x1037   :  { %10243 = vmatpush1.bf16.msra.mxu0 %v12639_v27  ;;  %10275 = vmatpush1.bf16.msra.mxu1 %v12641_v16  ;;  %v7510_v16 = vld [vmem:[%s13431_s7] sm:$0xff] }
0x1038   :  { %10245 = vmatprep.subr.bf16.mxu0 %v12645_v36  ;;  %10277 = vmatprep.subr.bf16.mxu1 %v12647_v8  ;;  %v7511_v36 = vld [vmem:[%s13431_s7 + $0x8] sm:$0xff] }
0x1039   :  { %v10309_v8 = vpack.c.bf16 %v7511_v36, %v7510_v16 }
0x103b   :  { %10247 = vmatpush1.bf16.msra.mxu0 %v12651_v52  ;;  %10279 = vmatpush1.bf16.msra.mxu1 %v12653_v20  ;;  %v11188_v52 = vmov 0.0|0.0   ;;  %v7512_v20 = vld [vmem:[%s13431_s7 + $0x10] sm:$0xff] }
0x103c   :  { %10249 = vmatprep.subr.bf16.mxu0 %v12657_v47  ;;  %10281 = vmatprep.subr.bf16.mxu1 %v12659_v38  ;;  %v7513_v47 = vld [vmem:[%s13431_s7 + $0x18] sm:$0xff] }
0x103d   :  { %v10312_v38 = vpack.c.bf16 %v7513_v47, %v7512_v20 }
0x103f   :  { %v11077_v23 = vpop.eup %11076  ;;  %10251 = vmatpush1.bf16.msra.mxu0 %v12663_v29  ;;  %10283 = vmatpush1.bf16.msra.mxu1 %v12665_v10  ;;  %v7514_v29 = vld [vmem:[%s13431_s7 + $0x20] sm:$0xff]  ;;  %v7515_v10 = vld [vmem:[%s13431_s7 + $0x28] sm:$0xff] }
0x1040   :  { %v7161_v27 = vmul.f32 %v11077_v23, %v11075_v60  ;;  %10308 = vmatprep.subr.bf16.mxu1 %v11188_v52  ;;  %10284 = vmatprep.subr.bf16.mxu0 %v11188_v52  ;;  %v10315_v62 = vpack.c.bf16 %v7515_v10, %v7514_v29 }
0x1042   :  { %7381 = vmatmul.mubr.f32.vlgmr.msra.gmra.mrb[48].mxu0 %v7161_v27  ;;  %7452 = vmatmul.mubr.f32.vlgmr.msra.gmra.mrb[48].mxu1 %v7161_v27 }
0x1043   :  { %10310 = vmatpush3.bf16.msra.mxu1 %v10309_v8  ;;  %7945 = vmatprep.mubr.msk.f32.mxu1 %vm11189_vm1, %v13673_v63 }
0x1044   :  { %10311 = vmatprep.subr.bf16.mxu1 %v11188_v52  ;;  %7910 = vmatprep.mubr.msk.f32.mxu0 %vm11189_vm1, %v13673_v63  ;;  %v7832_v63 = vld [vmem:[%s13431_s7 + $0xa8] sm:$0xff] }
0x1045   :  { %10286 = vmatpush3.bf16.msra.mxu0 %v10285_v14  ;;  %v10291_v46 = vpack.c.bf16 %v7832_v63, %v7831_v6 }
0x1046   :  { %10287 = vmatprep.subr.bf16.mxu0 %v11188_v52 }
0x1047   :  { %10313 = vmatpush3.bf16.msra.mxu1 %v10312_v38 }
0x1048   :  { %10314 = vmatprep.subr.bf16.mxu1 %v11188_v52 }
0x1049   :  { %10289 = vmatpush3.bf16.msra.mxu0 %v10288_v33 }
0x104a   :  { %10290 = vmatprep.subr.bf16.mxu0 %v11188_v52 }
0x104b   :  { %10316 = vmatpush3.bf16.msra.mxu1 %v10315_v62 }
0x104c   :  { %10317 = vmatprep.subr.bf16.mxu1 %v11188_v52 }
0x104d   :  { %10292 = vmatpush3.bf16.msra.mxu0 %v10291_v46 }
0x104e   :  { %10293 = vmatprep.subr.bf16.mxu0 %v11188_v52 }
0x104f   :  { %10319 = vmatpush3.bf16.msra.mxu1 %v10318_v42 }
0x1050   :  { %10320 = vmatprep.subr.bf16.mxu1 %v11188_v52 }
0x1051   :  { %10295 = vmatpush3.bf16.msra.mxu0 %v10294_v4 }
0x1052   :  { %10296 = vmatprep.subr.bf16.mxu0 %v11188_v52 }
0x1053   :  { %10322 = vmatpush3.bf16.msra.mxu1 %v10321_v40 }
0x1054   :  { %10323 = vmatprep.subr.bf16.mxu1 %v11188_v52 }
0x1055   :  { %10298 = vmatpush3.bf16.msra.mxu0 %v10297_v15 }
0x1056   :  { %10299 = vmatprep.subr.bf16.mxu0 %v11188_v52 }
0x1057   :  { %10325 = vmatpush3.bf16.msra.mxu1 %v10324_v26 }
0x1058   :  { %10326 = vmatprep.subr.bf16.mxu1 %v11188_v52 }
0x1059   :  { %10301 = vmatpush3.bf16.msra.mxu0 %v10300_v50 }
0x105a   :  { %10302 = vmatprep.subr.bf16.mxu0 %v11188_v52 }
0x105b   :  { %10328 = vmatpush3.bf16.msra.mxu1 %v10327_v57 }
0x105c   :  { %10329 = vmatprep.subr.bf16.mxu1 %v11188_v52 }
0x105d   :  { %10304 = vmatpush3.bf16.msra.mxu0 %v10303_v58 }
0x105e   :  { %10305 = vmatprep.subr.bf16.mxu0 %v11188_v52 }
0x105f   :  { %10331 = vmatpush3.bf16.msra.mxu1 %v10330_v18 }
0x1061   :  { %10307 = vmatpush3.bf16.msra.mxu0 %v10306_v55 }
0x10f5   :  { %v7232_v24 = vpop.f32.mrb[46].mxu0  ;;  %v7303_v21 = vpop.f32.mrb[46].mxu1 }
0x10f6   :  { %v10410_v60 = vadd.f32 %v7232_v24, %v14082_v0  ;;  %v7234_v23 = vpop.f32.mrb[47].mxu0  ;;  %v7305_v27 = vpop.f32.mrb[47].mxu1  ;;  %v10426_v20 = vadd.f32 %v7303_v21, %v14083_v12 }
0x10f7   :  { %v10411_v16 = vadd.f32 %v7234_v23, %v13940_v34  ;;  %v10427_v47 = vadd.f32 %v7305_v27, %v13971_v9 }
0x10f8   :  { %v7821_v36 = vmul.f32 -1.442695, %v10410_v60  ;;  %v7823_v38 = vmul.f32 -1.442695, %v10426_v20 }
0x10f9   :  { %v7822_v8 = vmul.f32 -1.442695, %v10411_v16 }
0x10fa   :  { %11078 = vpow2.f32 %v7821_v36 }
0x10fb   :  { %11080 = vpow2.f32 %v7822_v8 }
0x10fc   :  { %11082 = vtanh.f32 %v10427_v47 }
0x10fd   :  { %11084 = vpow2.f32 %v7823_v38 }
0x1104   :  { %v11079_v29 = vpop.eup %11078 }
0x1105   :  { %v7471_v52 = vadd.f32 1.0, %v11079_v29  ;;  %v11081_v10 = vpop.eup %11080 }
0x1106   :  { %v7472_v0 = vadd.f32 1.0, %v11081_v10  ;;  %v11083_v62 = vpop.eup %11082 }
0x1107   :  { %11086 = vrcp.f32 %v7471_v52  ;;  %v11085_v17 = vpop.eup %11084 }
0x1108   :  { %11088 = vrcp.f32 %v7472_v0  ;;  %v7473_v51 = vadd.f32 1.0, %v11085_v17 }
0x110a   :  { %11090 = vrcp.f32 %v7473_v51 }
0x1111   :  { %v11087_v34 = vpop.eup %11086 }
0x1112   :  { %v7501_v13 = vmul.f32 %v11087_v34, %v11083_v62  ;;  %v11089_v42 = vpop.eup %11088 }
0x1113   :  { %v7500_v59 = vmul.f32 %v11089_v42, %v13251_v61 }
0x1114   :  { %v11091_v5 = vpop.eup %11090 }
0x1115   :  { %v7382_v12 = vpop.f32.mrb[48].mxu0  ;;  %v7453_v40 = vpop.f32.mrb[48].mxu1  ;;  %v7502_v9 = vadd.f32 %v7501_v13, %v7500_v59 }
0x1116   :  { %v10428_v54 = vadd.f32 %v7382_v12, %v13943_v19  ;;  %v7384_v1 = vpop.f32.mrb[49].mxu0  ;;  %v7455_v26 = vpop.f32.mrb[49].mxu1  ;;  %v10444_v53 = vadd.f32 %v7453_v40, %v12747_v37 }
0x1117   :  { %v10429_v2 = vadd.f32 %v7384_v1, %v13944_v45  ;;  %11092 = vtanh.f32 %v7502_v9  ;;  %v10445_v61 = vadd.f32 %v7455_v26, %v12751_v44 }
0x1118   :  { %v7824_v11 = vmul.f32 -1.442695, %v10428_v54  ;;  %v7826_v30 = vmul.f32 -1.442695, %v10444_v53 }
0x1119   :  { %v7825_v57 = vmul.f32 -1.442695, %v10429_v2 }
0x111a   :  { %11094 = vpow2.f32 %v7824_v11 }
0x111b   :  { %11096 = vpow2.f32 %v7825_v57 }
0x111c   :  { %11098 = vtanh.f32 %v10445_v61 }
0x111d   :  { %11100 = vpow2.f32 %v7826_v30 }
0x1121   :  { %v11093_v18 = vpop.eup %11092 }
0x1122   :  { %v7507_v3 = vmul.f32 %v11093_v18, %v11091_v5 }
0x1124   :  { %v11095_v14 = vpop.eup %11094  ;;  %7946 = vmatmul.mubr.f32.vlgmr.msra.gmra.mrb[64].mxu1 %v7507_v3 }
0x1125   :  { %v7489_v19 = vadd.f32 1.0, %v11095_v14  ;;  %v11097_v32 = vpop.eup %11096 }
0x1126   :  { %v7490_v45 = vadd.f32 1.0, %v11097_v32  ;;  %v11099_v41 = vpop.eup %11098 }
0x1127   :  { %11102 = vrcp.f32 %v7489_v19  ;;  %v11101_v33 = vpop.eup %11100 }
0x1128   :  { %11104 = vrcp.f32 %v7490_v45  ;;  %v7491_v46 = vadd.f32 1.0, %v11101_v33 }
0x112a   :  { %11106 = vrcp.f32 %v7491_v46 }
0x1131   :  { %v11103_v6 = vpop.eup %11102 }
0x1132   :  { %v7504_v63 = vmul.f32 %v11103_v6, %v11099_v41  ;;  %v11105_v37 = vpop.eup %11104 }
0x1133   :  { %v7503_v44 = vmul.f32 %v11105_v37, %v13277_v39 }
0x1134   :  { %v11107_v35 = vpop.eup %11106 }
0x1135   :  { %v7505_v22 = vadd.f32 %v7504_v63, %v7503_v44 }
0x1137   :  { %11108 = vtanh.f32 %v7505_v22 }
0x1141   :  { %v11109_v4 = vpop.eup %11108 }
0x1142   :  { %v7509_v7 = vmul.f32 %v11109_v4, %v11107_v35 }
0x1144   :  { %7911 = vmatmul.mubr.f32.vlgmr.msra.gmra.mrb[64].mxu0 %v7509_v7 }
0x11f7   :  { %v7679_v56 = vpop.f32.mrb[64].mxu1 }
0x11f8   :  { %v7947_v15 = vpop.f32.mrb[65].mxu1 }
0x1217   :  { %v7609_v28 = vpop.f32.mrb[64].mxu0 }
0x1218   :  { %v7680_v50 = vadd.f32 %v7679_v56, %v7609_v28  ;;  %v7912_v31 = vpop.f32.mrb[65].mxu0 }
0x121a   :  { %v7690_v43 = vadd.f32 %v7843_v48, %v7680_v50 }
0x121c   :  { %7692 = vst.msk [vmem:[%s13433_s9] sm:$0xff] %vm7691_vm2, %v7690_v43 }
0x121d   :  { %7697 = vsyncpa [#allocation5], 1 }
0x121e   :  { %7698 = vsyncpa [#allocation7], 1 }

</bundles_post_ra>
